<compile_context>
chip_gen: v7x
topology: tpu7x:2x2x1
jax: 0.10.0
libtpu: 0.0.40
codegen_flags: <defaults>
</compile_context>

<pallas_src>
import jax
import jax.numpy as jnp
from jax.experimental import pallas as pl
from jax.experimental.pallas import tpu as pltpu


# ----------------------------- Pallas kernel --------------------------------

def attention_decoder_kernel(
    src_ref,        # (TB, N, S)   encoder features (batch tile)
    emb_ref,        # (TB, T, E)   pre-gathered embeddings (batch tile, batch-major)
    w_i2h_ref,      # (S, H)       i2h weight (transposed), no bias
    w_h2h_ref,      # (H, H)       h2h weight (transposed)
    b_h2h_ref,      # (1, H)       h2h bias
    w_score_ref,    # (1, H)       score weight as a broadcast row
    w_gates_ref,    # (S+E+H, 4H)  fused LSTM [ctx; emb; hidden] -> gates weight
    b_lstm_ref,     # (1, 4H)      b_ih + b_hh
    w_gen_ref,      # (H, Cp)      generator weight (transposed, class-padded)
    b_gen_ref,      # (1, Cp)      generator bias  (class-padded)
    probs_ref,      # (TB, T, Cp)  output, PyTorch layout, lane-dense
):
    TB, N, S = src_ref.shape
    T = emb_ref.shape[1]
    H = w_h2h_ref.shape[0]

    src = src_ref[...]                                                     # (TB, N, S)
    # Step-invariant encoder projection: one flat MXU matmul with TB*N rows.
    src_feat = jnp.dot(src.reshape(TB * N, S), w_i2h_ref[...],
                       preferred_element_type=jnp.float32).reshape(TB, N, H)

    w_h2h = w_h2h_ref[...]
    b_h2h = b_h2h_ref[...]
    w_score = w_score_ref[...].reshape(1, 1, H)                            # broadcast row
    w_gates = w_gates_ref[...]
    b_lstm = b_lstm_ref[...]
    w_gen = w_gen_ref[...]
    b_gen = b_gen_ref[...]

    h = jnp.zeros((TB, H), jnp.float32)
    c = jnp.zeros((TB, H), jnp.float32)

    # Fully unrolled decoder recurrence (T is static and small): every index below is
    # static, giving the scheduler cross-step visibility.
    for i in range(T):
        # prev_hidden_proj = h2h(h)
        hp = jnp.dot(h, w_h2h, preferred_element_type=jnp.float32) + b_h2h     # (TB, H)
        e = jnp.tanh(src_feat + hp[:, None, :])                                # (TB, N, H)
        # score: width-1 mat-vec as VPU multiply + lane reduce (keeps the MXU free).
        logit = jnp.sum(e * w_score, axis=-1)                                  # (TB, N)
        # softmax over encoder steps (approx reciprocal -> EUP slot)
        m = jnp.max(logit, axis=1, keepdims=True)
        ex = jnp.exp(logit - m)
        alpha = ex * pl.reciprocal(jnp.sum(ex, axis=1, keepdims=True), approx=True)
        # context = alpha^T @ src as a batched MXU dot (no (TB,N,S) temporary)
        context = jnp.einsum("bqn,bns->bqs", alpha[:, None, :], src,
                             preferred_element_type=jnp.float32)[:, 0, :]      # (TB, S)

        # Fused LSTMCell: single gate matmul on concat([context, emb, h]).
        x = jnp.concatenate([context, emb_ref[:, i, :], h], axis=-1)           # (TB, S+E+H)
        gates = jnp.dot(x, w_gates, preferred_element_type=jnp.float32) + b_lstm
        i_g = jax.nn.sigmoid(gates[:, 0:H])
        f_g = jax.nn.sigmoid(gates[:, H:2 * H])
        g_g = jnp.tanh(gates[:, 2 * H:3 * H])
        o_g = jax.nn.sigmoid(gates[:, 3 * H:4 * H])
        c = f_g * c + i_g * g_g
        h = o_g * jnp.tanh(c)

        # Generator + lane-dense store directly in [B, T, Cp] layout (static index).
        probs_ref[:, i, :] = (jnp.dot(h, w_gen, preferred_element_type=jnp.float32)
                              + b_gen)


# ------------------------------ wrapper --------------------------------------

def attention_decoder_forward(src, text, params, batch_max_length, batch_tile=8):
    """Teacher-forcing forward. src: (B, N, S) f32, text: (B, batch_max_length) i32.
    Returns probs in PyTorch layout (B, num_steps, num_classes)."""
    B, N, S = src.shape
    T = batch_max_length - 1
    H = params["w_h2h_T"].shape[0]
    C = params["w_gen_T"].shape[1]
    E = params["emb_table"].shape[1]

    TB = batch_tile
    B_pad = ((B + TB - 1) // TB) * TB
    C_pad = max(128, ((C + 127) // 128) * 128)

    # Embedding gather (glue), batch-major (B, T, E).
    emb_seq = params["emb_table"][text[:, :T]].astype(jnp.float32)
    src_f = src.astype(jnp.float32)
    if B_pad != B:
        pad = ((0, B_pad - B), (0, 0), (0, 0))
        src_f = jnp.pad(src_f, pad)
        emb_seq = jnp.pad(emb_seq, pad)

    # Fuse the three LSTM input weights: [context ; embedding ; hidden] -> 4H.
    w_gates = jnp.concatenate(
        [params["w_ih_ctx_T"], params["w_ih_emb_T"], params["w_hh_T"]], axis=0)
    # Score weight as a (1, H) broadcast row.
    w_score_row = params["w_score_T"].reshape(1, H)
    # Lane-dense generator: pad class dim to a multiple of 128.
    w_gen_pad = jnp.pad(params["w_gen_T"], ((0, 0), (0, C_pad - C)))
    b_gen_pad = jnp.pad(params["b_gen"], ((0, 0), (0, C_pad - C)))

    inputs = [
        src_f, emb_seq,
        params["w_i2h_T"], params["w_h2h_T"], params["b_h2h"],
        w_score_row, w_gates, params["b_lstm"],
        w_gen_pad, b_gen_pad,
    ]

    def batched_spec(shape):
        nd = len(shape)
        return pl.BlockSpec((TB,) + tuple(shape[1:]),
                            lambda b, _nd=nd: (b,) + (0,) * (_nd - 1))

    def full_spec(shape):
        nd = len(shape)
        return pl.BlockSpec(tuple(shape), lambda b, _nd=nd: (0,) * _nd)

    in_specs = [batched_spec(src_f.shape), batched_spec(emb_seq.shape)]
    in_specs += [full_spec(w.shape) for w in inputs[2:]]
    out_spec = pl.BlockSpec((TB, T, C_pad), lambda b: (b, 0, 0))

    # Advisory cost estimate so XLA overlaps the gather/pad glue with the kernel.
    flops = int(2 * B_pad * N * S * H
                + T * (2 * B_pad * H * H + 2 * B_pad * N * H + 2 * B_pad * N * S
                       + 2 * B_pad * (S + E + H) * 4 * H + 2 * B_pad * H * C_pad))
    transcendentals = int(T * (B_pad * N * H + B_pad * N + 6 * B_pad * H))
    bytes_accessed = int(4 * (src_f.size + emb_seq.size + B_pad * T * C_pad
                              + sum(int(w.size) for w in inputs[2:])))

    probs = pl.pallas_call(
        attention_decoder_kernel,
        out_shape=jax.ShapeDtypeStruct((B_pad, T, C_pad), jnp.float32),
        grid=(B_pad // TB,),
        in_specs=in_specs,
        out_specs=out_spec,
        compiler_params=pltpu.CompilerParams(dimension_semantics=("parallel",)),
        cost_estimate=pl.CostEstimate(flops=flops, transcendentals=transcendentals,
                                      bytes_accessed=bytes_accessed),
    )(*inputs)

    # Already in PyTorch layout; just drop batch/class padding.
    return probs[:B, :, :C]


# ------------------------ pure-JAX reference (for checking) ------------------

def reference_forward(src, text, params, batch_max_length):
    B, N, S = src.shape
    T = batch_max_length - 1
    H = params["w_h2h_T"].shape[0]
    emb_seq = jnp.transpose(params["emb_table"][text[:, :T]], (1, 0, 2))

    src_feat = jnp.einsum("bns,sh->bnh", src, params["w_i2h_T"])
    h = jnp.zeros((B, H), jnp.float32)
    c = jnp.zeros((B, H), jnp.float32)
    outs = []
    for i in range(T):
        hp = h @ params["w_h2h_T"] + params["b_h2h"]
        e = jnp.tanh(src_feat + hp[:, None, :])
        logit = jnp.einsum("bnh,ho->bno", e, params["w_score_T"])[:, :, 0]
        alpha = jax.nn.softmax(logit, axis=1)
        context = jnp.einsum("bn,bns->bs", alpha, src)
        gates = (context @ params["w_ih_ctx_T"] + emb_seq[i] @ params["w_ih_emb_T"]
                 + h @ params["w_hh_T"] + params["b_lstm"])
        i_g = jax.nn.sigmoid(gates[:, 0:H])
        f_g = jax.nn.sigmoid(gates[:, H:2 * H])
        g_g = jnp.tanh(gates[:, 2 * H:3 * H])
        o_g = jax.nn.sigmoid(gates[:, 3 * H:4 * H])
        c = f_g * c + i_g * g_g
        h = o_g * jnp.tanh(c)
        outs.append(h)
    hid = jnp.stack(outs, axis=1)                                  # (B, T, H)
    return hid @ params["w_gen_T"] + params["b_gen"]               # (B, T, C)


# ------------------------------ main ------------------------------------------

if __name__ == "__main__":
    # Small shapes consistent with the module.
    B, N, S = 2, 16, 8          # batch, encoder steps, src_dim
    E, H = 8, 16                # embedding_dim, hidden_dim
    C = 10                      # num_classes
    batch_max_length = 9        # -> num_steps = 8

    key = jax.random.PRNGKey(0)
    ks = jax.random.split(key, 16)

    def rnd(k, shape, scale=0.1):
        return scale * jax.random.normal(k, shape, dtype=jnp.float32)

    params = {
        "emb_table":  rnd(ks[0], (C + 1, E)),          # nn.Embedding(num_classes+1, E)
        "w_i2h_T":    rnd(ks[1], (S, H)),              # Linear(S, H, bias=False), transposed
        "w_h2h_T":    rnd(ks[2], (H, H)),              # Linear(H, H), transposed
        "b_h2h":      rnd(ks[3], (1, H)),
        "w_score_T":  rnd(ks[4], (H, 1)),              # Linear(H, 1, bias=False), transposed
        "w_ih_ctx_T": rnd(ks[5], (S, 4 * H)),          # LSTMCell weight_ih (context cols), transposed
        "w_ih_emb_T": rnd(ks[6], (E, 4 * H)),          # LSTMCell weight_ih (embedding cols), transposed
        "w_hh_T":     rnd(ks[7], (H, 4 * H)),          # LSTMCell weight_hh, transposed
        "b_lstm":     rnd(ks[8], (1, 4 * H)),          # b_ih + b_hh combined
        "w_gen_T":    rnd(ks[9], (H, C)),              # generator Linear(H, C), transposed
        "b_gen":      rnd(ks[10], (1, C)),
    }

    src = rnd(ks[11], (B, N, S), scale=1.0)
    text = jax.random.randint(ks[12], (B, batch_max_length), 0, C + 1, dtype=jnp.int32)

    probs = attention_decoder_forward(src, text, params, batch_max_length)
    probs = jax.block_until_ready(probs)

    ref = reference_forward(src, text, params, batch_max_length)
    assert probs.shape == (B, batch_max_length - 1, C)
    # Tolerance loosened slightly vs exact f32: the softmax uses the hardware
    # approximate reciprocal (pl.reciprocal(approx=True)) in the kernel.
    assert jnp.allclose(probs, ref, atol=2e-3, rtol=2e-3), "Pallas kernel mismatch vs reference"

    print("KERNEL_OK")
</pallas_src>

<mosaic_0001>
module attributes {stable_mosaic.version = 11 : i64} {
  func.func @attention_decoder_kernel(%arg0: i32, %arg1: memref<8x16x8xf32, #tpu.memory_space<vmem>>, %arg2: memref<8x8x8xf32, #tpu.memory_space<vmem>>, %arg3: memref<8x16xf32, #tpu.memory_space<vmem>>, %arg4: memref<16x16xf32, #tpu.memory_space<vmem>>, %arg5: memref<1x16xf32, #tpu.memory_space<vmem>>, %arg6: memref<1x16xf32, #tpu.memory_space<vmem>>, %arg7: memref<32x64xf32, #tpu.memory_space<vmem>>, %arg8: memref<1x64xf32, #tpu.memory_space<vmem>>, %arg9: memref<16x128xf32, #tpu.memory_space<vmem>>, %arg10: memref<1x128xf32, #tpu.memory_space<vmem>>, %arg11: memref<8x8x128xf32, #tpu.memory_space<vmem>>) attributes {dimension_semantics = [#tpu.dimension_semantics<parallel>], iteration_bounds = array<i64: 1>, scalar_prefetch = 0 : i64, scratch_operands = 0 : i64, tpu.core_type = #tpu.core_type<tc>, window_params = [{transform_indices = @transform_0, window_bounds = array<i64: 8, 16, 8>}, {transform_indices = @transform_1, window_bounds = array<i64: 8, 8, 8>}, {pipeline_mode = #tpu.pipeline_mode<synchronous>, transform_indices = @transform_2, window_bounds = array<i64: 8, 16>}, {pipeline_mode = #tpu.pipeline_mode<synchronous>, transform_indices = @transform_3, window_bounds = array<i64: 16, 16>}, {pipeline_mode = #tpu.pipeline_mode<synchronous>, transform_indices = @transform_4, window_bounds = array<i64: 1, 16>}, {pipeline_mode = #tpu.pipeline_mode<synchronous>, transform_indices = @transform_5, window_bounds = array<i64: 1, 16>}, {pipeline_mode = #tpu.pipeline_mode<synchronous>, transform_indices = @transform_6, window_bounds = array<i64: 32, 64>}, {pipeline_mode = #tpu.pipeline_mode<synchronous>, transform_indices = @transform_7, window_bounds = array<i64: 1, 64>}, {pipeline_mode = #tpu.pipeline_mode<synchronous>, transform_indices = @transform_8, window_bounds = array<i64: 16, 128>}, {pipeline_mode = #tpu.pipeline_mode<synchronous>, transform_indices = @transform_9, window_bounds = array<i64: 1, 128>}, {transform_indices = @transform_10, window_bounds = array<i64: 8, 8, 128>}]} {
    %c0 = arith.constant 0 : index
    %c0_0 = arith.constant 0 : index
    %c0_1 = arith.constant 0 : index
    %0 = vector.load %arg1[%c0, %c0_0, %c0_1] : memref<8x16x8xf32, #tpu.memory_space<vmem>>, vector<8x16x8xf32>
    %1 = vector.shape_cast %0 : vector<8x16x8xf32> to vector<128x8xf32>
    %c0_2 = arith.constant 0 : index
    %c0_3 = arith.constant 0 : index
    %2 = vector.load %arg3[%c0_2, %c0_3] : memref<8x16xf32, #tpu.memory_space<vmem>>, vector<8x16xf32>
    %cst = arith.constant dense<0.000000e+00> : vector<128x16xf32>
    %3 = tpu.matmul %1, %2, %cst {dimension_numbers = #tpu.dot_dimension_numbers<[1], [0], [0], [1], [0, 0, 1, 1], [], []>} : vector<128x8xf32>, vector<8x16xf32>, vector<128x16xf32> -> vector<128x16xf32>
    %4 = vector.shape_cast %3 : vector<128x16xf32> to vector<8x16x16xf32>
    %c0_4 = arith.constant 0 : index
    %c0_5 = arith.constant 0 : index
    %5 = vector.load %arg4[%c0_4, %c0_5] : memref<16x16xf32, #tpu.memory_space<vmem>>, vector<16x16xf32>
    %c0_6 = arith.constant 0 : index
    %c0_7 = arith.constant 0 : index
    %6 = vector.load %arg5[%c0_6, %c0_7] : memref<1x16xf32, #tpu.memory_space<vmem>>, vector<1x16xf32>
    %c0_8 = arith.constant 0 : index
    %c0_9 = arith.constant 0 : index
    %7 = vector.load %arg6[%c0_8, %c0_9] : memref<1x16xf32, #tpu.memory_space<vmem>>, vector<1x16xf32>
    %8 = vector.shape_cast %7 : vector<1x16xf32> to vector<1x1x16xf32>
    %c0_10 = arith.constant 0 : index
    %c0_11 = arith.constant 0 : index
    %9 = vector.load %arg7[%c0_10, %c0_11] : memref<32x64xf32, #tpu.memory_space<vmem>>, vector<32x64xf32>
    %c0_12 = arith.constant 0 : index
    %c0_13 = arith.constant 0 : index
    %10 = vector.load %arg8[%c0_12, %c0_13] : memref<1x64xf32, #tpu.memory_space<vmem>>, vector<1x64xf32>
    %c0_14 = arith.constant 0 : index
    %c0_15 = arith.constant 0 : index
    %11 = vector.load %arg9[%c0_14, %c0_15] : memref<16x128xf32, #tpu.memory_space<vmem>>, vector<16x128xf32>
    %c0_16 = arith.constant 0 : index
    %c0_17 = arith.constant 0 : index
    %12 = vector.load %arg10[%c0_16, %c0_17] : memref<1x128xf32, #tpu.memory_space<vmem>>, vector<1x128xf32>
    %cst_18 = arith.constant 0.000000e+00 : f32
    %13 = vector.broadcast %cst_18 : f32 to vector<8x16xf32>
    %cst_19 = arith.constant 0.000000e+00 : f32
    %14 = vector.broadcast %cst_19 : f32 to vector<8x16xf32>
    %cst_20 = arith.constant dense<0.000000e+00> : vector<8x16xf32>
    %15 = tpu.matmul %13, %5, %cst_20 {dimension_numbers = #tpu.dot_dimension_numbers<[1], [0], [0], [1], [0, 0, 1, 1], [], []>} : vector<8x16xf32>, vector<16x16xf32>, vector<8x16xf32> -> vector<8x16xf32>
    %16 = vector.broadcast %6 : vector<1x16xf32> to vector<8x16xf32>
    %17 = arith.addf %15, %16 : vector<8x16xf32>
    %18 = vector.shape_cast %17 : vector<8x16xf32> to vector<8x1x16xf32>
    %19 = vector.broadcast %18 : vector<8x1x16xf32> to vector<8x16x16xf32>
    %20 = arith.addf %4, %19 : vector<8x16x16xf32>
    %21 = math.tanh %20 : vector<8x16x16xf32>
    %22 = vector.broadcast %8 : vector<1x1x16xf32> to vector<8x16x16xf32>
    %23 = arith.mulf %21, %22 : vector<8x16x16xf32>
    %cst_21 = arith.constant dense<0.000000e+00> : vector<8x16xf32>
    %24 = vector.multi_reduction <add>, %23, %cst_21 [2] : vector<8x16x16xf32> to vector<8x16xf32>
    %cst_22 = arith.constant dense<0xFF800000> : vector<8xf32>
    %25 = vector.multi_reduction <maximumf>, %24, %cst_22 [1] : vector<8x16xf32> to vector<8xf32>
    %26 = vector.shape_cast %25 : vector<8xf32> to vector<8x1xf32>
    %27 = vector.broadcast %26 : vector<8x1xf32> to vector<8x16xf32>
    %28 = arith.subf %24, %27 : vector<8x16xf32>
    %29 = math.exp %28 : vector<8x16xf32>
    %cst_23 = arith.constant dense<0.000000e+00> : vector<8xf32>
    %30 = vector.multi_reduction <add>, %29, %cst_23 [1] : vector<8x16xf32> to vector<8xf32>
    %31 = vector.shape_cast %30 : vector<8xf32> to vector<8x1xf32>
    %32 = tpu.reciprocal %31 {approx = true} : vector<8x1xf32> -> vector<8x1xf32>
    %33 = vector.broadcast %32 : vector<8x1xf32> to vector<8x16xf32>
    %34 = arith.mulf %29, %33 : vector<8x16xf32>
    %35 = vector.shape_cast %34 : vector<8x16xf32> to vector<8x1x16xf32>
    "tpu.trace_start"() <{level = 10 : i32, message = "bqn,bns->bqs"}> : () -> ()
    %cst_24 = arith.constant dense<0.000000e+00> : vector<8x1x8xf32>
    %36 = tpu.matmul %35, %0, %cst_24 {dimension_numbers = #tpu.dot_dimension_numbers<[2], [1], [1], [2], [0, 0, 0, 1, 1, 2], [0], [0]>} : vector<8x1x16xf32>, vector<8x16x8xf32>, vector<8x1x8xf32> -> vector<8x1x8xf32>
    "tpu.trace_stop"() : () -> ()
    %37 = vector.shape_cast %36 : vector<8x1x8xf32> to vector<8x8xf32>
    %c0_25 = arith.constant 0 : index
    %c0_26 = arith.constant 0 : index
    %c0_27 = arith.constant 0 : index
    %38 = vector.load %arg2[%c0_25, %c0_26, %c0_27] : memref<8x8x8xf32, #tpu.memory_space<vmem>>, vector<8x1x8xf32>
    %39 = vector.shape_cast %38 : vector<8x1x8xf32> to vector<8x8xf32>
    %40 = tpu.concatenate %37, %39, %13 in 1 : vector<8x8xf32>, vector<8x8xf32>, vector<8x16xf32> -> vector<8x32xf32>
    %cst_28 = arith.constant dense<0.000000e+00> : vector<8x64xf32>
    %41 = tpu.matmul %40, %9, %cst_28 {dimension_numbers = #tpu.dot_dimension_numbers<[1], [0], [0], [1], [0, 0, 1, 1], [], []>} : vector<8x32xf32>, vector<32x64xf32>, vector<8x64xf32> -> vector<8x64xf32>
    %42 = vector.broadcast %10 : vector<1x64xf32> to vector<8x64xf32>
    %43 = arith.addf %41, %42 : vector<8x64xf32>
    %44 = vector.extract_strided_slice %43 {offsets = [0, 0], sizes = [8, 16], strides = [1, 1]} : vector<8x64xf32> to vector<8x16xf32>
    %45 = arith.negf %44 : vector<8x16xf32>
    %46 = math.exp %45 : vector<8x16xf32>
    %cst_29 = arith.constant 1.000000e+00 : f32
    %47 = vector.broadcast %cst_29 : f32 to vector<8x16xf32>
    %48 = arith.addf %47, %46 : vector<8x16xf32>
    %49 = arith.divf %47, %48 : vector<8x16xf32>
    %50 = vector.extract_strided_slice %43 {offsets = [0, 16], sizes = [8, 16], strides = [1, 1]} : vector<8x64xf32> to vector<8x16xf32>
    %51 = arith.negf %50 : vector<8x16xf32>
    %52 = math.exp %51 : vector<8x16xf32>
    %cst_30 = arith.constant 1.000000e+00 : f32
    %53 = vector.broadcast %cst_30 : f32 to vector<8x16xf32>
    %54 = arith.addf %53, %52 : vector<8x16xf32>
    %55 = arith.divf %53, %54 : vector<8x16xf32>
    %56 = vector.extract_strided_slice %43 {offsets = [0, 32], sizes = [8, 16], strides = [1, 1]} : vector<8x64xf32> to vector<8x16xf32>
    %57 = math.tanh %56 : vector<8x16xf32>
    %58 = vector.extract_strided_slice %43 {offsets = [0, 48], sizes = [8, 16], strides = [1, 1]} : vector<8x64xf32> to vector<8x16xf32>
    %59 = arith.negf %58 : vector<8x16xf32>
    %60 = math.exp %59 : vector<8x16xf32>
    %cst_31 = arith.constant 1.000000e+00 : f32
    %61 = vector.broadcast %cst_31 : f32 to vector<8x16xf32>
    %62 = arith.addf %61, %60 : vector<8x16xf32>
    %63 = arith.divf %61, %62 : vector<8x16xf32>
    %64 = arith.mulf %55, %14 : vector<8x16xf32>
    %65 = arith.mulf %49, %57 : vector<8x16xf32>
    %66 = arith.addf %64, %65 : vector<8x16xf32>
    %67 = math.tanh %66 : vector<8x16xf32>
    %68 = arith.mulf %63, %67 : vector<8x16xf32>
    %cst_32 = arith.constant dense<0.000000e+00> : vector<8x128xf32>
    %69 = tpu.matmul %68, %11, %cst_32 {dimension_numbers = #tpu.dot_dimension_numbers<[1], [0], [0], [1], [0, 0, 1, 1], [], []>} : vector<8x16xf32>, vector<16x128xf32>, vector<8x128xf32> -> vector<8x128xf32>
    %70 = vector.broadcast %12 : vector<1x128xf32> to vector<8x128xf32>
    %71 = arith.addf %69, %70 : vector<8x128xf32>
    %c0_33 = arith.constant 0 : index
    %c0_34 = arith.constant 0 : index
    %c0_35 = arith.constant 0 : index
    %72 = vector.load %arg11[%c0_33, %c0_34, %c0_35] : memref<8x8x128xf32, #tpu.memory_space<vmem>>, vector<8x1x128xf32>
    %73 = vector.shape_cast %72 : vector<8x1x128xf32> to vector<8x128xf32>
    %74 = vector.shape_cast %71 : vector<8x128xf32> to vector<8x1x128xf32>
    tpu.vector_store %arg11[%c0_33, %c0_34, %c0_35], %74 {strides = array<i32>} : memref<8x8x128xf32, #tpu.memory_space<vmem>>, vector<8x1x128xf32>,
    %cst_36 = arith.constant dense<0.000000e+00> : vector<8x16xf32>
    %75 = tpu.matmul %68, %5, %cst_36 {dimension_numbers = #tpu.dot_dimension_numbers<[1], [0], [0], [1], [0, 0, 1, 1], [], []>} : vector<8x16xf32>, vector<16x16xf32>, vector<8x16xf32> -> vector<8x16xf32>
    %76 = vector.broadcast %6 : vector<1x16xf32> to vector<8x16xf32>
    %77 = arith.addf %75, %76 : vector<8x16xf32>
    %78 = vector.shape_cast %77 : vector<8x16xf32> to vector<8x1x16xf32>
    %79 = vector.broadcast %78 : vector<8x1x16xf32> to vector<8x16x16xf32>
    %80 = arith.addf %4, %79 : vector<8x16x16xf32>
    %81 = math.tanh %80 : vector<8x16x16xf32>
    %82 = vector.broadcast %8 : vector<1x1x16xf32> to vector<8x16x16xf32>
    %83 = arith.mulf %81, %82 : vector<8x16x16xf32>
    %cst_37 = arith.constant dense<0.000000e+00> : vector<8x16xf32>
    %84 = vector.multi_reduction <add>, %83, %cst_37 [2] : vector<8x16x16xf32> to vector<8x16xf32>
    %cst_38 = arith.constant dense<0xFF800000> : vector<8xf32>
    %85 = vector.multi_reduction <maximumf>, %84, %cst_38 [1] : vector<8x16xf32> to vector<8xf32>
    %86 = vector.shape_cast %85 : vector<8xf32> to vector<8x1xf32>
    %87 = vector.broadcast %86 : vector<8x1xf32> to vector<8x16xf32>
    %88 = arith.subf %84, %87 : vector<8x16xf32>
    %89 = math.exp %88 : vector<8x16xf32>
    %cst_39 = arith.constant dense<0.000000e+00> : vector<8xf32>
    %90 = vector.multi_reduction <add>, %89, %cst_39 [1] : vector<8x16xf32> to vector<8xf32>
    %91 = vector.shape_cast %90 : vector<8xf32> to vector<8x1xf32>
    %92 = tpu.reciprocal %91 {approx = true} : vector<8x1xf32> -> vector<8x1xf32>
    %93 = vector.broadcast %92 : vector<8x1xf32> to vector<8x16xf32>
    %94 = arith.mulf %89, %93 : vector<8x16xf32>
    %95 = vector.shape_cast %94 : vector<8x16xf32> to vector<8x1x16xf32>
    "tpu.trace_start"() <{level = 10 : i32, message = "bqn,bns->bqs"}> : () -> ()
    %cst_40 = arith.constant dense<0.000000e+00> : vector<8x1x8xf32>
    %96 = tpu.matmul %95, %0, %cst_40 {dimension_numbers = #tpu.dot_dimension_numbers<[2], [1], [1], [2], [0, 0, 0, 1, 1, 2], [0], [0]>} : vector<8x1x16xf32>, vector<8x16x8xf32>, vector<8x1x8xf32> -> vector<8x1x8xf32>
    "tpu.trace_stop"() : () -> ()
    %97 = vector.shape_cast %96 : vector<8x1x8xf32> to vector<8x8xf32>
    %c0_41 = arith.constant 0 : index
    %c1 = arith.constant 1 : index
    %c0_42 = arith.constant 0 : index
    %98 = vector.load %arg2[%c0_41, %c1, %c0_42] : memref<8x8x8xf32, #tpu.memory_space<vmem>>, vector<8x1x8xf32>
    %99 = vector.shape_cast %98 : vector<8x1x8xf32> to vector<8x8xf32>
    %100 = tpu.concatenate %97, %99, %68 in 1 : vector<8x8xf32>, vector<8x8xf32>, vector<8x16xf32> -> vector<8x32xf32>
    %cst_43 = arith.constant dense<0.000000e+00> : vector<8x64xf32>
    %101 = tpu.matmul %100, %9, %cst_43 {dimension_numbers = #tpu.dot_dimension_numbers<[1], [0], [0], [1], [0, 0, 1, 1], [], []>} : vector<8x32xf32>, vector<32x64xf32>, vector<8x64xf32> -> vector<8x64xf32>
    %102 = vector.broadcast %10 : vector<1x64xf32> to vector<8x64xf32>
    %103 = arith.addf %101, %102 : vector<8x64xf32>
    %104 = vector.extract_strided_slice %103 {offsets = [0, 0], sizes = [8, 16], strides = [1, 1]} : vector<8x64xf32> to vector<8x16xf32>
    %105 = arith.negf %104 : vector<8x16xf32>
    %106 = math.exp %105 : vector<8x16xf32>
    %cst_44 = arith.constant 1.000000e+00 : f32
    %107 = vector.broadcast %cst_44 : f32 to vector<8x16xf32>
    %108 = arith.addf %107, %106 : vector<8x16xf32>
    %109 = arith.divf %107, %108 : vector<8x16xf32>
    %110 = vector.extract_strided_slice %103 {offsets = [0, 16], sizes = [8, 16], strides = [1, 1]} : vector<8x64xf32> to vector<8x16xf32>
    %111 = arith.negf %110 : vector<8x16xf32>
    %112 = math.exp %111 : vector<8x16xf32>
    %cst_45 = arith.constant 1.000000e+00 : f32
    %113 = vector.broadcast %cst_45 : f32 to vector<8x16xf32>
    %114 = arith.addf %113, %112 : vector<8x16xf32>
    %115 = arith.divf %113, %114 : vector<8x16xf32>
    %116 = vector.extract_strided_slice %103 {offsets = [0, 32], sizes = [8, 16], strides = [1, 1]} : vector<8x64xf32> to vector<8x16xf32>
    %117 = math.tanh %116 : vector<8x16xf32>
    %118 = vector.extract_strided_slice %103 {offsets = [0, 48], sizes = [8, 16], strides = [1, 1]} : vector<8x64xf32> to vector<8x16xf32>
    %119 = arith.negf %118 : vector<8x16xf32>
    %120 = math.exp %119 : vector<8x16xf32>
    %cst_46 = arith.constant 1.000000e+00 : f32
    %121 = vector.broadcast %cst_46 : f32 to vector<8x16xf32>
    %122 = arith.addf %121, %120 : vector<8x16xf32>
    %123 = arith.divf %121, %122 : vector<8x16xf32>
    %124 = arith.mulf %115, %66 : vector<8x16xf32>
    %125 = arith.mulf %109, %117 : vector<8x16xf32>
    %126 = arith.addf %124, %125 : vector<8x16xf32>
    %127 = math.tanh %126 : vector<8x16xf32>
    %128 = arith.mulf %123, %127 : vector<8x16xf32>
    %cst_47 = arith.constant dense<0.000000e+00> : vector<8x128xf32>
    %129 = tpu.matmul %128, %11, %cst_47 {dimension_numbers = #tpu.dot_dimension_numbers<[1], [0], [0], [1], [0, 0, 1, 1], [], []>} : vector<8x16xf32>, vector<16x128xf32>, vector<8x128xf32> -> vector<8x128xf32>
    %130 = vector.broadcast %12 : vector<1x128xf32> to vector<8x128xf32>
    %131 = arith.addf %129, %130 : vector<8x128xf32>
    %c0_48 = arith.constant 0 : index
    %c1_49 = arith.constant 1 : index
    %c0_50 = arith.constant 0 : index
    %132 = vector.load %arg11[%c0_48, %c1_49, %c0_50] : memref<8x8x128xf32, #tpu.memory_space<vmem>>, vector<8x1x128xf32>
    %133 = vector.shape_cast %132 : vector<8x1x128xf32> to vector<8x128xf32>
    %134 = vector.shape_cast %131 : vector<8x128xf32> to vector<8x1x128xf32>
    tpu.vector_store %arg11[%c0_48, %c1_49, %c0_50], %134 {strides = array<i32>} : memref<8x8x128xf32, #tpu.memory_space<vmem>>, vector<8x1x128xf32>,
    %cst_51 = arith.constant dense<0.000000e+00> : vector<8x16xf32>
    %135 = tpu.matmul %128, %5, %cst_51 {dimension_numbers = #tpu.dot_dimension_numbers<[1], [0], [0], [1], [0, 0, 1, 1], [], []>} : vector<8x16xf32>, vector<16x16xf32>, vector<8x16xf32> -> vector<8x16xf32>
    %136 = vector.broadcast %6 : vector<1x16xf32> to vector<8x16xf32>
    %137 = arith.addf %135, %136 : vector<8x16xf32>
    %138 = vector.shape_cast %137 : vector<8x16xf32> to vector<8x1x16xf32>
    %139 = vector.broadcast %138 : vector<8x1x16xf32> to vector<8x16x16xf32>
    %140 = arith.addf %4, %139 : vector<8x16x16xf32>
    %141 = math.tanh %140 : vector<8x16x16xf32>
    %142 = vector.broadcast %8 : vector<1x1x16xf32> to vector<8x16x16xf32>
    %143 = arith.mulf %141, %142 : vector<8x16x16xf32>
    %cst_52 = arith.constant dense<0.000000e+00> : vector<8x16xf32>
    %144 = vector.multi_reduction <add>, %143, %cst_52 [2] : vector<8x16x16xf32> to vector<8x16xf32>
    %cst_53 = arith.constant dense<0xFF800000> : vector<8xf32>
    %145 = vector.multi_reduction <maximumf>, %144, %cst_53 [1] : vector<8x16xf32> to vector<8xf32>
    %146 = vector.shape_cast %145 : vector<8xf32> to vector<8x1xf32>
    %147 = vector.broadcast %146 : vector<8x1xf32> to vector<8x16xf32>
    %148 = arith.subf %144, %147 : vector<8x16xf32>
    %149 = math.exp %148 : vector<8x16xf32>
    %cst_54 = arith.constant dense<0.000000e+00> : vector<8xf32>
    %150 = vector.multi_reduction <add>, %149, %cst_54 [1] : vector<8x16xf32> to vector<8xf32>
    %151 = vector.shape_cast %150 : vector<8xf32> to vector<8x1xf32>
    %152 = tpu.reciprocal %151 {approx = true} : vector<8x1xf32> -> vector<8x1xf32>
    %153 = vector.broadcast %152 : vector<8x1xf32> to vector<8x16xf32>
    %154 = arith.mulf %149, %153 : vector<8x16xf32>
    %155 = vector.shape_cast %154 : vector<8x16xf32> to vector<8x1x16xf32>
    "tpu.trace_start"() <{level = 10 : i32, message = "bqn,bns->bqs"}> : () -> ()
    %cst_55 = arith.constant dense<0.000000e+00> : vector<8x1x8xf32>
    %156 = tpu.matmul %155, %0, %cst_55 {dimension_numbers = #tpu.dot_dimension_numbers<[2], [1], [1], [2], [0, 0, 0, 1, 1, 2], [0], [0]>} : vector<8x1x16xf32>, vector<8x16x8xf32>, vector<8x1x8xf32> -> vector<8x1x8xf32>
    "tpu.trace_stop"() : () -> ()
    %157 = vector.shape_cast %156 : vector<8x1x8xf32> to vector<8x8xf32>
    %c0_56 = arith.constant 0 : index
    %c2 = arith.constant 2 : index
    %c0_57 = arith.constant 0 : index
    %158 = vector.load %arg2[%c0_56, %c2, %c0_57] : memref<8x8x8xf32, #tpu.memory_space<vmem>>, vector<8x1x8xf32>
    %159 = vector.shape_cast %158 : vector<8x1x8xf32> to vector<8x8xf32>
    %160 = tpu.concatenate %157, %159, %128 in 1 : vector<8x8xf32>, vector<8x8xf32>, vector<8x16xf32> -> vector<8x32xf32>
    %cst_58 = arith.constant dense<0.000000e+00> : vector<8x64xf32>
    %161 = tpu.matmul %160, %9, %cst_58 {dimension_numbers = #tpu.dot_dimension_numbers<[1], [0], [0], [1], [0, 0, 1, 1], [], []>} : vector<8x32xf32>, vector<32x64xf32>, vector<8x64xf32> -> vector<8x64xf32>
    %162 = vector.broadcast %10 : vector<1x64xf32> to vector<8x64xf32>
    %163 = arith.addf %161, %162 : vector<8x64xf32>
    %164 = vector.extract_strided_slice %163 {offsets = [0, 0], sizes = [8, 16], strides = [1, 1]} : vector<8x64xf32> to vector<8x16xf32>
    %165 = arith.negf %164 : vector<8x16xf32>
    %166 = math.exp %165 : vector<8x16xf32>
    %cst_59 = arith.constant 1.000000e+00 : f32
    %167 = vector.broadcast %cst_59 : f32 to vector<8x16xf32>
    %168 = arith.addf %167, %166 : vector<8x16xf32>
    %169 = arith.divf %167, %168 : vector<8x16xf32>
    %170 = vector.extract_strided_slice %163 {offsets = [0, 16], sizes = [8, 16], strides = [1, 1]} : vector<8x64xf32> to vector<8x16xf32>
    %171 = arith.negf %170 : vector<8x16xf32>
    %172 = math.exp %171 : vector<8x16xf32>
    %cst_60 = arith.constant 1.000000e+00 : f32
    %173 = vector.broadcast %cst_60 : f32 to vector<8x16xf32>
    %174 = arith.addf %173, %172 : vector<8x16xf32>
    %175 = arith.divf %173, %174 : vector<8x16xf32>
    %176 = vector.extract_strided_slice %163 {offsets = [0, 32], sizes = [8, 16], strides = [1, 1]} : vector<8x64xf32> to vector<8x16xf32>
    %177 = math.tanh %176 : vector<8x16xf32>
    %178 = vector.extract_strided_slice %163 {offsets = [0, 48], sizes = [8, 16], strides = [1, 1]} : vector<8x64xf32> to vector<8x16xf32>
    %179 = arith.negf %178 : vector<8x16xf32>
    %180 = math.exp %179 : vector<8x16xf32>
    %cst_61 = arith.constant 1.000000e+00 : f32
    %181 = vector.broadcast %cst_61 : f32 to vector<8x16xf32>
    %182 = arith.addf %181, %180 : vector<8x16xf32>
    %183 = arith.divf %181, %182 : vector<8x16xf32>
    %184 = arith.mulf %175, %126 : vector<8x16xf32>
    %185 = arith.mulf %169, %177 : vector<8x16xf32>
    %186 = arith.addf %184, %185 : vector<8x16xf32>
    %187 = math.tanh %186 : vector<8x16xf32>
    %188 = arith.mulf %183, %187 : vector<8x16xf32>
    %cst_62 = arith.constant dense<0.000000e+00> : vector<8x128xf32>
    %189 = tpu.matmul %188, %11, %cst_62 {dimension_numbers = #tpu.dot_dimension_numbers<[1], [0], [0], [1], [0, 0, 1, 1], [], []>} : vector<8x16xf32>, vector<16x128xf32>, vector<8x128xf32> -> vector<8x128xf32>
    %190 = vector.broadcast %12 : vector<1x128xf32> to vector<8x128xf32>
    %191 = arith.addf %189, %190 : vector<8x128xf32>
    %c0_63 = arith.constant 0 : index
    %c2_64 = arith.constant 2 : index
    %c0_65 = arith.constant 0 : index
    %192 = vector.load %arg11[%c0_63, %c2_64, %c0_65] : memref<8x8x128xf32, #tpu.memory_space<vmem>>, vector<8x1x128xf32>
    %193 = vector.shape_cast %192 : vector<8x1x128xf32> to vector<8x128xf32>
    %194 = vector.shape_cast %191 : vector<8x128xf32> to vector<8x1x128xf32>
    tpu.vector_store %arg11[%c0_63, %c2_64, %c0_65], %194 {strides = array<i32>} : memref<8x8x128xf32, #tpu.memory_space<vmem>>, vector<8x1x128xf32>,
    %cst_66 = arith.constant dense<0.000000e+00> : vector<8x16xf32>
    %195 = tpu.matmul %188, %5, %cst_66 {dimension_numbers = #tpu.dot_dimension_numbers<[1], [0], [0], [1], [0, 0, 1, 1], [], []>} : vector<8x16xf32>, vector<16x16xf32>, vector<8x16xf32> -> vector<8x16xf32>
    %196 = vector.broadcast %6 : vector<1x16xf32> to vector<8x16xf32>
    %197 = arith.addf %195, %196 : vector<8x16xf32>
    %198 = vector.shape_cast %197 : vector<8x16xf32> to vector<8x1x16xf32>
    %199 = vector.broadcast %198 : vector<8x1x16xf32> to vector<8x16x16xf32>
    %200 = arith.addf %4, %199 : vector<8x16x16xf32>
    %201 = math.tanh %200 : vector<8x16x16xf32>
    %202 = vector.broadcast %8 : vector<1x1x16xf32> to vector<8x16x16xf32>
    %203 = arith.mulf %201, %202 : vector<8x16x16xf32>
    %cst_67 = arith.constant dense<0.000000e+00> : vector<8x16xf32>
    %204 = vector.multi_reduction <add>, %203, %cst_67 [2] : vector<8x16x16xf32> to vector<8x16xf32>
    %cst_68 = arith.constant dense<0xFF800000> : vector<8xf32>
    %205 = vector.multi_reduction <maximumf>, %204, %cst_68 [1] : vector<8x16xf32> to vector<8xf32>
    %206 = vector.shape_cast %205 : vector<8xf32> to vector<8x1xf32>
    %207 = vector.broadcast %206 : vector<8x1xf32> to vector<8x16xf32>
    %208 = arith.subf %204, %207 : vector<8x16xf32>
    %209 = math.exp %208 : vector<8x16xf32>
    %cst_69 = arith.constant dense<0.000000e+00> : vector<8xf32>
    %210 = vector.multi_reduction <add>, %209, %cst_69 [1] : vector<8x16xf32> to vector<8xf32>
    %211 = vector.shape_cast %210 : vector<8xf32> to vector<8x1xf32>
    %212 = tpu.reciprocal %211 {approx = true} : vector<8x1xf32> -> vector<8x1xf32>
    %213 = vector.broadcast %212 : vector<8x1xf32> to vector<8x16xf32>
    %214 = arith.mulf %209, %213 : vector<8x16xf32>
    %215 = vector.shape_cast %214 : vector<8x16xf32> to vector<8x1x16xf32>
    "tpu.trace_start"() <{level = 10 : i32, message = "bqn,bns->bqs"}> : () -> ()
    %cst_70 = arith.constant dense<0.000000e+00> : vector<8x1x8xf32>
    %216 = tpu.matmul %215, %0, %cst_70 {dimension_numbers = #tpu.dot_dimension_numbers<[2], [1], [1], [2], [0, 0, 0, 1, 1, 2], [0], [0]>} : vector<8x1x16xf32>, vector<8x16x8xf32>, vector<8x1x8xf32> -> vector<8x1x8xf32>
    "tpu.trace_stop"() : () -> ()
    %217 = vector.shape_cast %216 : vector<8x1x8xf32> to vector<8x8xf32>
    %c0_71 = arith.constant 0 : index
    %c3 = arith.constant 3 : index
    %c0_72 = arith.constant 0 : index
    %218 = vector.load %arg2[%c0_71, %c3, %c0_72] : memref<8x8x8xf32, #tpu.memory_space<vmem>>, vector<8x1x8xf32>
    %219 = vector.shape_cast %218 : vector<8x1x8xf32> to vector<8x8xf32>
    %220 = tpu.concatenate %217, %219, %188 in 1 : vector<8x8xf32>, vector<8x8xf32>, vector<8x16xf32> -> vector<8x32xf32>
    %cst_73 = arith.constant dense<0.000000e+00> : vector<8x64xf32>
    %221 = tpu.matmul %220, %9, %cst_73 {dimension_numbers = #tpu.dot_dimension_numbers<[1], [0], [0], [1], [0, 0, 1, 1], [], []>} : vector<8x32xf32>, vector<32x64xf32>, vector<8x64xf32> -> vector<8x64xf32>
    %222 = vector.broadcast %10 : vector<1x64xf32> to vector<8x64xf32>
    %223 = arith.addf %221, %222 : vector<8x64xf32>
    %224 = vector.extract_strided_slice %223 {offsets = [0, 0], sizes = [8, 16], strides = [1, 1]} : vector<8x64xf32> to vector<8x16xf32>
    %225 = arith.negf %224 : vector<8x16xf32>
    %226 = math.exp %225 : vector<8x16xf32>
    %cst_74 = arith.constant 1.000000e+00 : f32
    %227 = vector.broadcast %cst_74 : f32 to vector<8x16xf32>
    %228 = arith.addf %227, %226 : vector<8x16xf32>
    %229 = arith.divf %227, %228 : vector<8x16xf32>
    %230 = vector.extract_strided_slice %223 {offsets = [0, 16], sizes = [8, 16], strides = [1, 1]} : vector<8x64xf32> to vector<8x16xf32>
    %231 = arith.negf %230 : vector<8x16xf32>
    %232 = math.exp %231 : vector<8x16xf32>
    %cst_75 = arith.constant 1.000000e+00 : f32
    %233 = vector.broadcast %cst_75 : f32 to vector<8x16xf32>
    %234 = arith.addf %233, %232 : vector<8x16xf32>
    %235 = arith.divf %233, %234 : vector<8x16xf32>
    %236 = vector.extract_strided_slice %223 {offsets = [0, 32], sizes = [8, 16], strides = [1, 1]} : vector<8x64xf32> to vector<8x16xf32>
    %237 = math.tanh %236 : vector<8x16xf32>
    %238 = vector.extract_strided_slice %223 {offsets = [0, 48], sizes = [8, 16], strides = [1, 1]} : vector<8x64xf32> to vector<8x16xf32>
    %239 = arith.negf %238 : vector<8x16xf32>
    %240 = math.exp %239 : vector<8x16xf32>
    %cst_76 = arith.constant 1.000000e+00 : f32
    %241 = vector.broadcast %cst_76 : f32 to vector<8x16xf32>
    %242 = arith.addf %241, %240 : vector<8x16xf32>
    %243 = arith.divf %241, %242 : vector<8x16xf32>
    %244 = arith.mulf %235, %186 : vector<8x16xf32>
    %245 = arith.mulf %229, %237 : vector<8x16xf32>
    %246 = arith.addf %244, %245 : vector<8x16xf32>
    %247 = math.tanh %246 : vector<8x16xf32>
    %248 = arith.mulf %243, %247 : vector<8x16xf32>
    %cst_77 = arith.constant dense<0.000000e+00> : vector<8x128xf32>
    %249 = tpu.matmul %248, %11, %cst_77 {dimension_numbers = #tpu.dot_dimension_numbers<[1], [0], [0], [1], [0, 0, 1, 1], [], []>} : vector<8x16xf32>, vector<16x128xf32>, vector<8x128xf32> -> vector<8x128xf32>
    %250 = vector.broadcast %12 : vector<1x128xf32> to vector<8x128xf32>
    %251 = arith.addf %249, %250 : vector<8x128xf32>
    %c0_78 = arith.constant 0 : index
    %c3_79 = arith.constant 3 : index
    %c0_80 = arith.constant 0 : index
    %252 = vector.load %arg11[%c0_78, %c3_79, %c0_80] : memref<8x8x128xf32, #tpu.memory_space<vmem>>, vector<8x1x128xf32>
    %253 = vector.shape_cast %252 : vector<8x1x128xf32> to vector<8x128xf32>
    %254 = vector.shape_cast %251 : vector<8x128xf32> to vector<8x1x128xf32>
    tpu.vector_store %arg11[%c0_78, %c3_79, %c0_80], %254 {strides = array<i32>} : memref<8x8x128xf32, #tpu.memory_space<vmem>>, vector<8x1x128xf32>,
    %cst_81 = arith.constant dense<0.000000e+00> : vector<8x16xf32>
    %255 = tpu.matmul %248, %5, %cst_81 {dimension_numbers = #tpu.dot_dimension_numbers<[1], [0], [0], [1], [0, 0, 1, 1], [], []>} : vector<8x16xf32>, vector<16x16xf32>, vector<8x16xf32> -> vector<8x16xf32>
    %256 = vector.broadcast %6 : vector<1x16xf32> to vector<8x16xf32>
    %257 = arith.addf %255, %256 : vector<8x16xf32>
    %258 = vector.shape_cast %257 : vector<8x16xf32> to vector<8x1x16xf32>
    %259 = vector.broadcast %258 : vector<8x1x16xf32> to vector<8x16x16xf32>
    %260 = arith.addf %4, %259 : vector<8x16x16xf32>
    %261 = math.tanh %260 : vector<8x16x16xf32>
    %262 = vector.broadcast %8 : vector<1x1x16xf32> to vector<8x16x16xf32>
    %263 = arith.mulf %261, %262 : vector<8x16x16xf32>
    %cst_82 = arith.constant dense<0.000000e+00> : vector<8x16xf32>
    %264 = vector.multi_reduction <add>, %263, %cst_82 [2] : vector<8x16x16xf32> to vector<8x16xf32>
    %cst_83 = arith.constant dense<0xFF800000> : vector<8xf32>
    %265 = vector.multi_reduction <maximumf>, %264, %cst_83 [1] : vector<8x16xf32> to vector<8xf32>
    %266 = vector.shape_cast %265 : vector<8xf32> to vector<8x1xf32>
    %267 = vector.broadcast %266 : vector<8x1xf32> to vector<8x16xf32>
    %268 = arith.subf %264, %267 : vector<8x16xf32>
    %269 = math.exp %268 : vector<8x16xf32>
    %cst_84 = arith.constant dense<0.000000e+00> : vector<8xf32>
    %270 = vector.multi_reduction <add>, %269, %cst_84 [1] : vector<8x16xf32> to vector<8xf32>
    %271 = vector.shape_cast %270 : vector<8xf32> to vector<8x1xf32>
    %272 = tpu.reciprocal %271 {approx = true} : vector<8x1xf32> -> vector<8x1xf32>
    %273 = vector.broadcast %272 : vector<8x1xf32> to vector<8x16xf32>
    %274 = arith.mulf %269, %273 : vector<8x16xf32>
    %275 = vector.shape_cast %274 : vector<8x16xf32> to vector<8x1x16xf32>
    "tpu.trace_start"() <{level = 10 : i32, message = "bqn,bns->bqs"}> : () -> ()
    %cst_85 = arith.constant dense<0.000000e+00> : vector<8x1x8xf32>
    %276 = tpu.matmul %275, %0, %cst_85 {dimension_numbers = #tpu.dot_dimension_numbers<[2], [1], [1], [2], [0, 0, 0, 1, 1, 2], [0], [0]>} : vector<8x1x16xf32>, vector<8x16x8xf32>, vector<8x1x8xf32> -> vector<8x1x8xf32>
    "tpu.trace_stop"() : () -> ()
    %277 = vector.shape_cast %276 : vector<8x1x8xf32> to vector<8x8xf32>
    %c0_86 = arith.constant 0 : index
    %c4 = arith.constant 4 : index
    %c0_87 = arith.constant 0 : index
    %278 = vector.load %arg2[%c0_86, %c4, %c0_87] : memref<8x8x8xf32, #tpu.memory_space<vmem>>, vector<8x1x8xf32>
    %279 = vector.shape_cast %278 : vector<8x1x8xf32> to vector<8x8xf32>
    %280 = tpu.concatenate %277, %279, %248 in 1 : vector<8x8xf32>, vector<8x8xf32>, vector<8x16xf32> -> vector<8x32xf32>
    %cst_88 = arith.constant dense<0.000000e+00> : vector<8x64xf32>
    %281 = tpu.matmul %280, %9, %cst_88 {dimension_numbers = #tpu.dot_dimension_numbers<[1], [0], [0], [1], [0, 0, 1, 1], [], []>} : vector<8x32xf32>, vector<32x64xf32>, vector<8x64xf32> -> vector<8x64xf32>
    %282 = vector.broadcast %10 : vector<1x64xf32> to vector<8x64xf32>
    %283 = arith.addf %281, %282 : vector<8x64xf32>
    %284 = vector.extract_strided_slice %283 {offsets = [0, 0], sizes = [8, 16], strides = [1, 1]} : vector<8x64xf32> to vector<8x16xf32>
    %285 = arith.negf %284 : vector<8x16xf32>
    %286 = math.exp %285 : vector<8x16xf32>
    %cst_89 = arith.constant 1.000000e+00 : f32
    %287 = vector.broadcast %cst_89 : f32 to vector<8x16xf32>
    %288 = arith.addf %287, %286 : vector<8x16xf32>
    %289 = arith.divf %287, %288 : vector<8x16xf32>
    %290 = vector.extract_strided_slice %283 {offsets = [0, 16], sizes = [8, 16], strides = [1, 1]} : vector<8x64xf32> to vector<8x16xf32>
    %291 = arith.negf %290 : vector<8x16xf32>
    %292 = math.exp %291 : vector<8x16xf32>
    %cst_90 = arith.constant 1.000000e+00 : f32
    %293 = vector.broadcast %cst_90 : f32 to vector<8x16xf32>
    %294 = arith.addf %293, %292 : vector<8x16xf32>
    %295 = arith.divf %293, %294 : vector<8x16xf32>
    %296 = vector.extract_strided_slice %283 {offsets = [0, 32], sizes = [8, 16], strides = [1, 1]} : vector<8x64xf32> to vector<8x16xf32>
    %297 = math.tanh %296 : vector<8x16xf32>
    %298 = vector.extract_strided_slice %283 {offsets = [0, 48], sizes = [8, 16], strides = [1, 1]} : vector<8x64xf32> to vector<8x16xf32>
    %299 = arith.negf %298 : vector<8x16xf32>
    %300 = math.exp %299 : vector<8x16xf32>
    %cst_91 = arith.constant 1.000000e+00 : f32
    %301 = vector.broadcast %cst_91 : f32 to vector<8x16xf32>
    %302 = arith.addf %301, %300 : vector<8x16xf32>
    %303 = arith.divf %301, %302 : vector<8x16xf32>
    %304 = arith.mulf %295, %246 : vector<8x16xf32>
    %305 = arith.mulf %289, %297 : vector<8x16xf32>
    %306 = arith.addf %304, %305 : vector<8x16xf32>
    %307 = math.tanh %306 : vector<8x16xf32>
    %308 = arith.mulf %303, %307 : vector<8x16xf32>
    %cst_92 = arith.constant dense<0.000000e+00> : vector<8x128xf32>
    %309 = tpu.matmul %308, %11, %cst_92 {dimension_numbers = #tpu.dot_dimension_numbers<[1], [0], [0], [1], [0, 0, 1, 1], [], []>} : vector<8x16xf32>, vector<16x128xf32>, vector<8x128xf32> -> vector<8x128xf32>
    %310 = vector.broadcast %12 : vector<1x128xf32> to vector<8x128xf32>
    %311 = arith.addf %309, %310 : vector<8x128xf32>
    %c0_93 = arith.constant 0 : index
    %c4_94 = arith.constant 4 : index
    %c0_95 = arith.constant 0 : index
    %312 = vector.load %arg11[%c0_93, %c4_94, %c0_95] : memref<8x8x128xf32, #tpu.memory_space<vmem>>, vector<8x1x128xf32>
    %313 = vector.shape_cast %312 : vector<8x1x128xf32> to vector<8x128xf32>
    %314 = vector.shape_cast %311 : vector<8x128xf32> to vector<8x1x128xf32>
    tpu.vector_store %arg11[%c0_93, %c4_94, %c0_95], %314 {strides = array<i32>} : memref<8x8x128xf32, #tpu.memory_space<vmem>>, vector<8x1x128xf32>,
    %cst_96 = arith.constant dense<0.000000e+00> : vector<8x16xf32>
    %315 = tpu.matmul %308, %5, %cst_96 {dimension_numbers = #tpu.dot_dimension_numbers<[1], [0], [0], [1], [0, 0, 1, 1], [], []>} : vector<8x16xf32>, vector<16x16xf32>, vector<8x16xf32> -> vector<8x16xf32>
    %316 = vector.broadcast %6 : vector<1x16xf32> to vector<8x16xf32>
    %317 = arith.addf %315, %316 : vector<8x16xf32>
    %318 = vector.shape_cast %317 : vector<8x16xf32> to vector<8x1x16xf32>
    %319 = vector.broadcast %318 : vector<8x1x16xf32> to vector<8x16x16xf32>
    %320 = arith.addf %4, %319 : vector<8x16x16xf32>
    %321 = math.tanh %320 : vector<8x16x16xf32>
    %322 = vector.broadcast %8 : vector<1x1x16xf32> to vector<8x16x16xf32>
    %323 = arith.mulf %321, %322 : vector<8x16x16xf32>
    %cst_97 = arith.constant dense<0.000000e+00> : vector<8x16xf32>
    %324 = vector.multi_reduction <add>, %323, %cst_97 [2] : vector<8x16x16xf32> to vector<8x16xf32>
    %cst_98 = arith.constant dense<0xFF800000> : vector<8xf32>
    %325 = vector.multi_reduction <maximumf>, %324, %cst_98 [1] : vector<8x16xf32> to vector<8xf32>
    %326 = vector.shape_cast %325 : vector<8xf32> to vector<8x1xf32>
    %327 = vector.broadcast %326 : vector<8x1xf32> to vector<8x16xf32>
    %328 = arith.subf %324, %327 : vector<8x16xf32>
    %329 = math.exp %328 : vector<8x16xf32>
    %cst_99 = arith.constant dense<0.000000e+00> : vector<8xf32>
    %330 = vector.multi_reduction <add>, %329, %cst_99 [1] : vector<8x16xf32> to vector<8xf32>
    %331 = vector.shape_cast %330 : vector<8xf32> to vector<8x1xf32>
    %332 = tpu.reciprocal %331 {approx = true} : vector<8x1xf32> -> vector<8x1xf32>
    %333 = vector.broadcast %332 : vector<8x1xf32> to vector<8x16xf32>
    %334 = arith.mulf %329, %333 : vector<8x16xf32>
    %335 = vector.shape_cast %334 : vector<8x16xf32> to vector<8x1x16xf32>
    "tpu.trace_start"() <{level = 10 : i32, message = "bqn,bns->bqs"}> : () -> ()
    %cst_100 = arith.constant dense<0.000000e+00> : vector<8x1x8xf32>
    %336 = tpu.matmul %335, %0, %cst_100 {dimension_numbers = #tpu.dot_dimension_numbers<[2], [1], [1], [2], [0, 0, 0, 1, 1, 2], [0], [0]>} : vector<8x1x16xf32>, vector<8x16x8xf32>, vector<8x1x8xf32> -> vector<8x1x8xf32>
    "tpu.trace_stop"() : () -> ()
    %337 = vector.shape_cast %336 : vector<8x1x8xf32> to vector<8x8xf32>
    %c0_101 = arith.constant 0 : index
    %c5 = arith.constant 5 : index
    %c0_102 = arith.constant 0 : index
    %338 = vector.load %arg2[%c0_101, %c5, %c0_102] : memref<8x8x8xf32, #tpu.memory_space<vmem>>, vector<8x1x8xf32>
    %339 = vector.shape_cast %338 : vector<8x1x8xf32> to vector<8x8xf32>
    %340 = tpu.concatenate %337, %339, %308 in 1 : vector<8x8xf32>, vector<8x8xf32>, vector<8x16xf32> -> vector<8x32xf32>
    %cst_103 = arith.constant dense<0.000000e+00> : vector<8x64xf32>
    %341 = tpu.matmul %340, %9, %cst_103 {dimension_numbers = #tpu.dot_dimension_numbers<[1], [0], [0], [1], [0, 0, 1, 1], [], []>} : vector<8x32xf32>, vector<32x64xf32>, vector<8x64xf32> -> vector<8x64xf32>
    %342 = vector.broadcast %10 : vector<1x64xf32> to vector<8x64xf32>
    %343 = arith.addf %341, %342 : vector<8x64xf32>
    %344 = vector.extract_strided_slice %343 {offsets = [0, 0], sizes = [8, 16], strides = [1, 1]} : vector<8x64xf32> to vector<8x16xf32>
    %345 = arith.negf %344 : vector<8x16xf32>
    %346 = math.exp %345 : vector<8x16xf32>
    %cst_104 = arith.constant 1.000000e+00 : f32
    %347 = vector.broadcast %cst_104 : f32 to vector<8x16xf32>
    %348 = arith.addf %347, %346 : vector<8x16xf32>
    %349 = arith.divf %347, %348 : vector<8x16xf32>
    %350 = vector.extract_strided_slice %343 {offsets = [0, 16], sizes = [8, 16], strides = [1, 1]} : vector<8x64xf32> to vector<8x16xf32>
    %351 = arith.negf %350 : vector<8x16xf32>
    %352 = math.exp %351 : vector<8x16xf32>
    %cst_105 = arith.constant 1.000000e+00 : f32
    %353 = vector.broadcast %cst_105 : f32 to vector<8x16xf32>
    %354 = arith.addf %353, %352 : vector<8x16xf32>
    %355 = arith.divf %353, %354 : vector<8x16xf32>
    %356 = vector.extract_strided_slice %343 {offsets = [0, 32], sizes = [8, 16], strides = [1, 1]} : vector<8x64xf32> to vector<8x16xf32>
    %357 = math.tanh %356 : vector<8x16xf32>
    %358 = vector.extract_strided_slice %343 {offsets = [0, 48], sizes = [8, 16], strides = [1, 1]} : vector<8x64xf32> to vector<8x16xf32>
    %359 = arith.negf %358 : vector<8x16xf32>
    %360 = math.exp %359 : vector<8x16xf32>
    %cst_106 = arith.constant 1.000000e+00 : f32
    %361 = vector.broadcast %cst_106 : f32 to vector<8x16xf32>
    %362 = arith.addf %361, %360 : vector<8x16xf32>
    %363 = arith.divf %361, %362 : vector<8x16xf32>
    %364 = arith.mulf %355, %306 : vector<8x16xf32>
    %365 = arith.mulf %349, %357 : vector<8x16xf32>
    %366 = arith.addf %364, %365 : vector<8x16xf32>
    %367 = math.tanh %366 : vector<8x16xf32>
    %368 = arith.mulf %363, %367 : vector<8x16xf32>
    %cst_107 = arith.constant dense<0.000000e+00> : vector<8x128xf32>
    %369 = tpu.matmul %368, %11, %cst_107 {dimension_numbers = #tpu.dot_dimension_numbers<[1], [0], [0], [1], [0, 0, 1, 1], [], []>} : vector<8x16xf32>, vector<16x128xf32>, vector<8x128xf32> -> vector<8x128xf32>
    %370 = vector.broadcast %12 : vector<1x128xf32> to vector<8x128xf32>
    %371 = arith.addf %369, %370 : vector<8x128xf32>
    %c0_108 = arith.constant 0 : index
    %c5_109 = arith.constant 5 : index
    %c0_110 = arith.constant 0 : index
    %372 = vector.load %arg11[%c0_108, %c5_109, %c0_110] : memref<8x8x128xf32, #tpu.memory_space<vmem>>, vector<8x1x128xf32>
    %373 = vector.shape_cast %372 : vector<8x1x128xf32> to vector<8x128xf32>
    %374 = vector.shape_cast %371 : vector<8x128xf32> to vector<8x1x128xf32>
    tpu.vector_store %arg11[%c0_108, %c5_109, %c0_110], %374 {strides = array<i32>} : memref<8x8x128xf32, #tpu.memory_space<vmem>>, vector<8x1x128xf32>,
    %cst_111 = arith.constant dense<0.000000e+00> : vector<8x16xf32>
    %375 = tpu.matmul %368, %5, %cst_111 {dimension_numbers = #tpu.dot_dimension_numbers<[1], [0], [0], [1], [0, 0, 1, 1], [], []>} : vector<8x16xf32>, vector<16x16xf32>, vector<8x16xf32> -> vector<8x16xf32>
    %376 = vector.broadcast %6 : vector<1x16xf32> to vector<8x16xf32>
    %377 = arith.addf %375, %376 : vector<8x16xf32>
    %378 = vector.shape_cast %377 : vector<8x16xf32> to vector<8x1x16xf32>
    %379 = vector.broadcast %378 : vector<8x1x16xf32> to vector<8x16x16xf32>
    %380 = arith.addf %4, %379 : vector<8x16x16xf32>
    %381 = math.tanh %380 : vector<8x16x16xf32>
    %382 = vector.broadcast %8 : vector<1x1x16xf32> to vector<8x16x16xf32>
    %383 = arith.mulf %381, %382 : vector<8x16x16xf32>
    %cst_112 = arith.constant dense<0.000000e+00> : vector<8x16xf32>
    %384 = vector.multi_reduction <add>, %383, %cst_112 [2] : vector<8x16x16xf32> to vector<8x16xf32>
    %cst_113 = arith.constant dense<0xFF800000> : vector<8xf32>
    %385 = vector.multi_reduction <maximumf>, %384, %cst_113 [1] : vector<8x16xf32> to vector<8xf32>
    %386 = vector.shape_cast %385 : vector<8xf32> to vector<8x1xf32>
    %387 = vector.broadcast %386 : vector<8x1xf32> to vector<8x16xf32>
    %388 = arith.subf %384, %387 : vector<8x16xf32>
    %389 = math.exp %388 : vector<8x16xf32>
    %cst_114 = arith.constant dense<0.000000e+00> : vector<8xf32>
    %390 = vector.multi_reduction <add>, %389, %cst_114 [1] : vector<8x16xf32> to vector<8xf32>
    %391 = vector.shape_cast %390 : vector<8xf32> to vector<8x1xf32>
    %392 = tpu.reciprocal %391 {approx = true} : vector<8x1xf32> -> vector<8x1xf32>
    %393 = vector.broadcast %392 : vector<8x1xf32> to vector<8x16xf32>
    %394 = arith.mulf %389, %393 : vector<8x16xf32>
    %395 = vector.shape_cast %394 : vector<8x16xf32> to vector<8x1x16xf32>
    "tpu.trace_start"() <{level = 10 : i32, message = "bqn,bns->bqs"}> : () -> ()
    %cst_115 = arith.constant dense<0.000000e+00> : vector<8x1x8xf32>
    %396 = tpu.matmul %395, %0, %cst_115 {dimension_numbers = #tpu.dot_dimension_numbers<[2], [1], [1], [2], [0, 0, 0, 1, 1, 2], [0], [0]>} : vector<8x1x16xf32>, vector<8x16x8xf32>, vector<8x1x8xf32> -> vector<8x1x8xf32>
    "tpu.trace_stop"() : () -> ()
    %397 = vector.shape_cast %396 : vector<8x1x8xf32> to vector<8x8xf32>
    %c0_116 = arith.constant 0 : index
    %c6 = arith.constant 6 : index
    %c0_117 = arith.constant 0 : index
    %398 = vector.load %arg2[%c0_116, %c6, %c0_117] : memref<8x8x8xf32, #tpu.memory_space<vmem>>, vector<8x1x8xf32>
    %399 = vector.shape_cast %398 : vector<8x1x8xf32> to vector<8x8xf32>
    %400 = tpu.concatenate %397, %399, %368 in 1 : vector<8x8xf32>, vector<8x8xf32>, vector<8x16xf32> -> vector<8x32xf32>
    %cst_118 = arith.constant dense<0.000000e+00> : vector<8x64xf32>
    %401 = tpu.matmul %400, %9, %cst_118 {dimension_numbers = #tpu.dot_dimension_numbers<[1], [0], [0], [1], [0, 0, 1, 1], [], []>} : vector<8x32xf32>, vector<32x64xf32>, vector<8x64xf32> -> vector<8x64xf32>
    %402 = vector.broadcast %10 : vector<1x64xf32> to vector<8x64xf32>
    %403 = arith.addf %401, %402 : vector<8x64xf32>
    %404 = vector.extract_strided_slice %403 {offsets = [0, 0], sizes = [8, 16], strides = [1, 1]} : vector<8x64xf32> to vector<8x16xf32>
    %405 = arith.negf %404 : vector<8x16xf32>
    %406 = math.exp %405 : vector<8x16xf32>
    %cst_119 = arith.constant 1.000000e+00 : f32
    %407 = vector.broadcast %cst_119 : f32 to vector<8x16xf32>
    %408 = arith.addf %407, %406 : vector<8x16xf32>
    %409 = arith.divf %407, %408 : vector<8x16xf32>
    %410 = vector.extract_strided_slice %403 {offsets = [0, 16], sizes = [8, 16], strides = [1, 1]} : vector<8x64xf32> to vector<8x16xf32>
    %411 = arith.negf %410 : vector<8x16xf32>
    %412 = math.exp %411 : vector<8x16xf32>
    %cst_120 = arith.constant 1.000000e+00 : f32
    %413 = vector.broadcast %cst_120 : f32 to vector<8x16xf32>
    %414 = arith.addf %413, %412 : vector<8x16xf32>
    %415 = arith.divf %413, %414 : vector<8x16xf32>
    %416 = vector.extract_strided_slice %403 {offsets = [0, 32], sizes = [8, 16], strides = [1, 1]} : vector<8x64xf32> to vector<8x16xf32>
    %417 = math.tanh %416 : vector<8x16xf32>
    %418 = vector.extract_strided_slice %403 {offsets = [0, 48], sizes = [8, 16], strides = [1, 1]} : vector<8x64xf32> to vector<8x16xf32>
    %419 = arith.negf %418 : vector<8x16xf32>
    %420 = math.exp %419 : vector<8x16xf32>
    %cst_121 = arith.constant 1.000000e+00 : f32
    %421 = vector.broadcast %cst_121 : f32 to vector<8x16xf32>
    %422 = arith.addf %421, %420 : vector<8x16xf32>
    %423 = arith.divf %421, %422 : vector<8x16xf32>
    %424 = arith.mulf %415, %366 : vector<8x16xf32>
    %425 = arith.mulf %409, %417 : vector<8x16xf32>
    %426 = arith.addf %424, %425 : vector<8x16xf32>
    %427 = math.tanh %426 : vector<8x16xf32>
    %428 = arith.mulf %423, %427 : vector<8x16xf32>
    %cst_122 = arith.constant dense<0.000000e+00> : vector<8x128xf32>
    %429 = tpu.matmul %428, %11, %cst_122 {dimension_numbers = #tpu.dot_dimension_numbers<[1], [0], [0], [1], [0, 0, 1, 1], [], []>} : vector<8x16xf32>, vector<16x128xf32>, vector<8x128xf32> -> vector<8x128xf32>
    %430 = vector.broadcast %12 : vector<1x128xf32> to vector<8x128xf32>
    %431 = arith.addf %429, %430 : vector<8x128xf32>
    %c0_123 = arith.constant 0 : index
    %c6_124 = arith.constant 6 : index
    %c0_125 = arith.constant 0 : index
    %432 = vector.load %arg11[%c0_123, %c6_124, %c0_125] : memref<8x8x128xf32, #tpu.memory_space<vmem>>, vector<8x1x128xf32>
    %433 = vector.shape_cast %432 : vector<8x1x128xf32> to vector<8x128xf32>
    %434 = vector.shape_cast %431 : vector<8x128xf32> to vector<8x1x128xf32>
    tpu.vector_store %arg11[%c0_123, %c6_124, %c0_125], %434 {strides = array<i32>} : memref<8x8x128xf32, #tpu.memory_space<vmem>>, vector<8x1x128xf32>,
    %cst_126 = arith.constant dense<0.000000e+00> : vector<8x16xf32>
    %435 = tpu.matmul %428, %5, %cst_126 {dimension_numbers = #tpu.dot_dimension_numbers<[1], [0], [0], [1], [0, 0, 1, 1], [], []>} : vector<8x16xf32>, vector<16x16xf32>, vector<8x16xf32> -> vector<8x16xf32>
    %436 = vector.broadcast %6 : vector<1x16xf32> to vector<8x16xf32>
    %437 = arith.addf %435, %436 : vector<8x16xf32>
    %438 = vector.shape_cast %437 : vector<8x16xf32> to vector<8x1x16xf32>
    %439 = vector.broadcast %438 : vector<8x1x16xf32> to vector<8x16x16xf32>
    %440 = arith.addf %4, %439 : vector<8x16x16xf32>
    %441 = math.tanh %440 : vector<8x16x16xf32>
    %442 = vector.broadcast %8 : vector<1x1x16xf32> to vector<8x16x16xf32>
    %443 = arith.mulf %441, %442 : vector<8x16x16xf32>
    %cst_127 = arith.constant dense<0.000000e+00> : vector<8x16xf32>
    %444 = vector.multi_reduction <add>, %443, %cst_127 [2] : vector<8x16x16xf32> to vector<8x16xf32>
    %cst_128 = arith.constant dense<0xFF800000> : vector<8xf32>
    %445 = vector.multi_reduction <maximumf>, %444, %cst_128 [1] : vector<8x16xf32> to vector<8xf32>
    %446 = vector.shape_cast %445 : vector<8xf32> to vector<8x1xf32>
    %447 = vector.broadcast %446 : vector<8x1xf32> to vector<8x16xf32>
    %448 = arith.subf %444, %447 : vector<8x16xf32>
    %449 = math.exp %448 : vector<8x16xf32>
    %cst_129 = arith.constant dense<0.000000e+00> : vector<8xf32>
    %450 = vector.multi_reduction <add>, %449, %cst_129 [1] : vector<8x16xf32> to vector<8xf32>
    %451 = vector.shape_cast %450 : vector<8xf32> to vector<8x1xf32>
    %452 = tpu.reciprocal %451 {approx = true} : vector<8x1xf32> -> vector<8x1xf32>
    %453 = vector.broadcast %452 : vector<8x1xf32> to vector<8x16xf32>
    %454 = arith.mulf %449, %453 : vector<8x16xf32>
    %455 = vector.shape_cast %454 : vector<8x16xf32> to vector<8x1x16xf32>
    "tpu.trace_start"() <{level = 10 : i32, message = "bqn,bns->bqs"}> : () -> ()
    %cst_130 = arith.constant dense<0.000000e+00> : vector<8x1x8xf32>
    %456 = tpu.matmul %455, %0, %cst_130 {dimension_numbers = #tpu.dot_dimension_numbers<[2], [1], [1], [2], [0, 0, 0, 1, 1, 2], [0], [0]>} : vector<8x1x16xf32>, vector<8x16x8xf32>, vector<8x1x8xf32> -> vector<8x1x8xf32>
    "tpu.trace_stop"() : () -> ()
    %457 = vector.shape_cast %456 : vector<8x1x8xf32> to vector<8x8xf32>
    %c0_131 = arith.constant 0 : index
    %c7 = arith.constant 7 : index
    %c0_132 = arith.constant 0 : index
    %458 = vector.load %arg2[%c0_131, %c7, %c0_132] : memref<8x8x8xf32, #tpu.memory_space<vmem>>, vector<8x1x8xf32>
    %459 = vector.shape_cast %458 : vector<8x1x8xf32> to vector<8x8xf32>
    %460 = tpu.concatenate %457, %459, %428 in 1 : vector<8x8xf32>, vector<8x8xf32>, vector<8x16xf32> -> vector<8x32xf32>
    %cst_133 = arith.constant dense<0.000000e+00> : vector<8x64xf32>
    %461 = tpu.matmul %460, %9, %cst_133 {dimension_numbers = #tpu.dot_dimension_numbers<[1], [0], [0], [1], [0, 0, 1, 1], [], []>} : vector<8x32xf32>, vector<32x64xf32>, vector<8x64xf32> -> vector<8x64xf32>
    %462 = vector.broadcast %10 : vector<1x64xf32> to vector<8x64xf32>
    %463 = arith.addf %461, %462 : vector<8x64xf32>
    %464 = vector.extract_strided_slice %463 {offsets = [0, 0], sizes = [8, 16], strides = [1, 1]} : vector<8x64xf32> to vector<8x16xf32>
    %465 = arith.negf %464 : vector<8x16xf32>
    %466 = math.exp %465 : vector<8x16xf32>
    %cst_134 = arith.constant 1.000000e+00 : f32
    %467 = vector.broadcast %cst_134 : f32 to vector<8x16xf32>
    %468 = arith.addf %467, %466 : vector<8x16xf32>
    %469 = arith.divf %467, %468 : vector<8x16xf32>
    %470 = vector.extract_strided_slice %463 {offsets = [0, 16], sizes = [8, 16], strides = [1, 1]} : vector<8x64xf32> to vector<8x16xf32>
    %471 = arith.negf %470 : vector<8x16xf32>
    %472 = math.exp %471 : vector<8x16xf32>
    %cst_135 = arith.constant 1.000000e+00 : f32
    %473 = vector.broadcast %cst_135 : f32 to vector<8x16xf32>
    %474 = arith.addf %473, %472 : vector<8x16xf32>
    %475 = arith.divf %473, %474 : vector<8x16xf32>
    %476 = vector.extract_strided_slice %463 {offsets = [0, 32], sizes = [8, 16], strides = [1, 1]} : vector<8x64xf32> to vector<8x16xf32>
    %477 = math.tanh %476 : vector<8x16xf32>
    %478 = vector.extract_strided_slice %463 {offsets = [0, 48], sizes = [8, 16], strides = [1, 1]} : vector<8x64xf32> to vector<8x16xf32>
    %479 = arith.negf %478 : vector<8x16xf32>
    %480 = math.exp %479 : vector<8x16xf32>
    %cst_136 = arith.constant 1.000000e+00 : f32
    %481 = vector.broadcast %cst_136 : f32 to vector<8x16xf32>
    %482 = arith.addf %481, %480 : vector<8x16xf32>
    %483 = arith.divf %481, %482 : vector<8x16xf32>
    %484 = arith.mulf %475, %426 : vector<8x16xf32>
    %485 = arith.mulf %469, %477 : vector<8x16xf32>
    %486 = arith.addf %484, %485 : vector<8x16xf32>
    %487 = math.tanh %486 : vector<8x16xf32>
    %488 = arith.mulf %483, %487 : vector<8x16xf32>
    %cst_137 = arith.constant dense<0.000000e+00> : vector<8x128xf32>
    %489 = tpu.matmul %488, %11, %cst_137 {dimension_numbers = #tpu.dot_dimension_numbers<[1], [0], [0], [1], [0, 0, 1, 1], [], []>} : vector<8x16xf32>, vector<16x128xf32>, vector<8x128xf32> -> vector<8x128xf32>
    %490 = vector.broadcast %12 : vector<1x128xf32> to vector<8x128xf32>
    %491 = arith.addf %489, %490 : vector<8x128xf32>
    %c0_138 = arith.constant 0 : index
    %c7_139 = arith.constant 7 : index
    %c0_140 = arith.constant 0 : index
    %492 = vector.load %arg11[%c0_138, %c7_139, %c0_140] : memref<8x8x128xf32, #tpu.memory_space<vmem>>, vector<8x1x128xf32>
    %493 = vector.shape_cast %492 : vector<8x1x128xf32> to vector<8x128xf32>
    %494 = vector.shape_cast %491 : vector<8x128xf32> to vector<8x1x128xf32>
    tpu.vector_store %arg11[%c0_138, %c7_139, %c0_140], %494 {strides = array<i32>} : memref<8x8x128xf32, #tpu.memory_space<vmem>>, vector<8x1x128xf32>,
    return
  }
  func.func @transform_0(%arg0: i32) -> (i32, i32, i32) {
    %c0_i32 = arith.constant 0 : i32
    %c0_i32_0 = arith.constant 0 : i32
    %c0_i32_1 = arith.constant 0 : i32
    return %arg0, %c0_i32, %c0_i32_0 : i32, i32, i32
  }
  func.func @transform_1(%arg0: i32) -> (i32, i32, i32) {
    %c0_i32 = arith.constant 0 : i32
    %c0_i32_0 = arith.constant 0 : i32
    %c0_i32_1 = arith.constant 0 : i32
    return %arg0, %c0_i32, %c0_i32_0 : i32, i32, i32
  }
  func.func @transform_2(%arg0: i32) -> (i32, i32) {
    %c0_i32 = arith.constant 0 : i32
    %c0_i32_0 = arith.constant 0 : i32
    %c0_i32_1 = arith.constant 0 : i32
    return %c0_i32, %c0_i32_0 : i32, i32
  }
  func.func @transform_3(%arg0: i32) -> (i32, i32) {
    %c0_i32 = arith.constant 0 : i32
    %c0_i32_0 = arith.constant 0 : i32
    %c0_i32_1 = arith.constant 0 : i32
    return %c0_i32, %c0_i32_0 : i32, i32
  }
  func.func @transform_4(%arg0: i32) -> (i32, i32) {
    %c0_i32 = arith.constant 0 : i32
    %c0_i32_0 = arith.constant 0 : i32
    %c0_i32_1 = arith.constant 0 : i32
    return %c0_i32, %c0_i32_0 : i32, i32
  }
  func.func @transform_5(%arg0: i32) -> (i32, i32) {
    %c0_i32 = arith.constant 0 : i32
    %c0_i32_0 = arith.constant 0 : i32
    %c0_i32_1 = arith.constant 0 : i32
    return %c0_i32, %c0_i32_0 : i32, i32
  }
  func.func @transform_6(%arg0: i32) -> (i32, i32) {
    %c0_i32 = arith.constant 0 : i32
    %c0_i32_0 = arith.constant 0 : i32
    %c0_i32_1 = arith.constant 0 : i32
    return %c0_i32, %c0_i32_0 : i32, i32
  }
  func.func @transform_7(%arg0: i32) -> (i32, i32) {
    %c0_i32 = arith.constant 0 : i32
    %c0_i32_0 = arith.constant 0 : i32
    %c0_i32_1 = arith.constant 0 : i32
    return %c0_i32, %c0_i32_0 : i32, i32
  }
  func.func @transform_8(%arg0: i32) -> (i32, i32) {
    %c0_i32 = arith.constant 0 : i32
    %c0_i32_0 = arith.constant 0 : i32
    %c0_i32_1 = arith.constant 0 : i32
    return %c0_i32, %c0_i32_0 : i32, i32
  }
  func.func @transform_9(%arg0: i32) -> (i32, i32) {
    %c0_i32 = arith.constant 0 : i32
    %c0_i32_0 = arith.constant 0 : i32
    %c0_i32_1 = arith.constant 0 : i32
    return %c0_i32, %c0_i32_0 : i32, i32
  }
  func.func @transform_10(%arg0: i32) -> (i32, i32, i32) {
    %c0_i32 = arith.constant 0 : i32
    %c0_i32_0 = arith.constant 0 : i32
    %c0_i32_1 = arith.constant 0 : i32
    return %arg0, %c0_i32, %c0_i32_0 : i32, i32, i32
  }
}

</mosaic_0001>

<bundles_post_ra>
// kernel: tpu_custom_call.1
= control target key start
LH: loop header
LB: loop body
LE: loop exit
PB: predicated region body
PF: predicated region fallthrough
CT: control target
= control target key end

     0   :  { %vm53_vm0 = vcmask 64512   ;;  %v19222_v6 = vmov 0.0|0.0   ;;  %vm15657_vm1 = vmmov 0   ;;  %v19224_v11 = vmov 0.0   ;;  %s19211_s0 = inlined_call_operand.vmem [shape: f32[8,16,8], index: 0, kind: input, shape index: {}]   ;;  %s19212_s1 = inlined_call_operand.vmem [shape: f32[8,8,8], index: 1, kind: input, shape index: {}]   ;;  %s19213_s2 = inlined_call_operand.vmem [shape: f32[8,16], index: 2, kind: input, shape index: {}]   ;;  %s19214_s3 = inlined_call_operand.vmem [shape: f32[16,16], index: 3, kind: input, shape index: {}]   ;;  %s19215_s4 = inlined_call_operand.vmem [shape: f32[1,16], index: 4, kind: input, shape index: {}]   ;;  %s19216_s5 = inlined_call_operand.vmem [shape: f32[1,16], index: 5, kind: input, shape index: {}]   ;;  %s19217_s6 = inlined_call_operand.vmem [shape: f32[32,64], index: 6, kind: input, shape index: {}]   ;;  %s19218_s7 = inlined_call_operand.vmem [shape: f32[1,64], index: 7, kind: input, shape index: {}]   ;;  %s19219_s8 = inlined_call_operand.vmem [shape: f32[16,128], index: 8, kind: input, shape index: {}]   ;;  %s19220_s9 = inlined_call_operand.vmem [shape: f32[1,128], index: 9, kind: input, shape index: {}]   ;;  %s19221_s10 = inlined_call_operand.hbm [shape: f32[8,8,128], index: 10, kind: output, shape index: {}]  }
   0x1   :  { %v52_v0 = vld [vmem:[%s19213_s2] sm:$0xff]  ;;  %v37_v2 = vld [vmem:[%s19211_s0 + $0x8] sm:$0xff]  ;;  %v38_v5 = vld [vmem:[%s19211_s0 + $0x10] sm:$0xff]  ;;  %14710 = vmatprep.subr.bf16.mxu1 %v19222_v6  ;;  %14066 = vmatprep.mubr.msk.f32.mxu1 %vm15657_vm1, %v19224_v11 }
   0x2   :  { %v36_v1 = vld [vmem:[%s19211_s0] sm:$0xff]  ;;  %14036 = vmatprep.subr.mxu0 %v52_v0  ;;  %v248_v4 = vld [vmem:[%s19214_s3 + $0x8] sm:$0xff]  ;;  %v39_v8 = vld [vmem:[%s19211_s0 + $0x18] sm:$0xff] }
   0x3   :  { %14038 = vmatprep.mubr.msk.f32.mxu0 %vm53_vm0, %v36_v1  ;;  %v247_v3 = vld [vmem:[%s19214_s3] sm:$0xff]  ;;  %14037 = vmatpush3.msra.mxu0 %v52_v0  ;;  %v41_v10 = vld [vmem:[%s19211_s0 + $0x28] sm:$0xff]  ;;  %v15757_v12 = vpack.c.bf16 %v39_v8, %v38_v5  ;;  %v42_v14 = vld [vmem:[%s19211_s0 + $0x30] sm:$0xff]  ;;  %v15770_v17 = vpack.c.bf16 %v37_v2, %v36_v1 }
   0x4   :  { %v15743_v7 = vpack.c.bf16 %v248_v4, %v247_v3  ;;  %v40_v9 = vld [vmem:[%s19211_s0 + $0x20] sm:$0xff]  ;;  %14039 = vmatmul.mubr.msk.f32.vlgmr.msra.gmra.mrb[0].mxu0 %vm53_vm0, %v37_v2  ;;  %v43_v15 = vld [vmem:[%s19211_s0 + $0x38] sm:$0xff]  ;;  %v45_v19 = vld [vmem:[%s19211_s0 + $0x48] sm:$0xff]  ;;  %14734 = vmatprep.subr.bf16.mxu0 %v19222_v6 }
   0x5   :  { %19274 = vst [vmem:[#allocation6_spill] sm:$0xff] %v15757_v12  ;;  %v15759_v13 = vpack.c.bf16 %v41_v10, %v40_v9  ;;  %v44_v16 = vld [vmem:[%s19211_s0 + $0x40] sm:$0xff]  ;;  %14041 = vmatprep.mubr.msk.f32.mxu0 %vm53_vm0, %v38_v5  ;;  %v15774_v18 = vpack.c.bf16 %v43_v15, %v42_v14  ;;  %v46_v20 = vld [vmem:[%s19211_s0 + $0x50] sm:$0xff]  ;;  %v47_v21 = vld [vmem:[%s19211_s0 + $0x58] sm:$0xff] }
   0x6   :  { %19273 = vst [vmem:[#allocation5_spill] sm:$0xff] %v15743_v7  ;;  %14712 = vmatpush3.bf16.msra.mxu1 %v15743_v7  ;;  %v15785_v22 = vpack.c.bf16 %v45_v19, %v44_v16  ;;  %v15787_v23 = vpack.c.bf16 %v47_v21, %v46_v20  ;;  %v48_v24 = vld [vmem:[%s19211_s0 + $0x60] sm:$0xff]  ;;  %v49_v25 = vld [vmem:[%s19211_s0 + $0x68] sm:$0xff]  ;;  %v50_v27 = vld [vmem:[%s19211_s0 + $0x70] sm:$0xff] }
   0x7   :  { %14713 = vmatprep.subr.bf16.mxu1 %v19222_v6  ;;  %v15797_v26 = vpack.c.bf16 %v49_v25, %v48_v24  ;;  %v51_v28 = vld [vmem:[%s19211_s0 + $0x78] sm:$0xff] }
   0x8   :  { %15 = vsyncpa [#allocation3], 0  ;;  %14042 = vmatmul.mubr.msk.f32.gmra.mrb[2].mxu0 %vm53_vm0, %v39_v8  ;;  %v15807_v29 = vpack.c.bf16 %v51_v28, %v50_v27  ;;  %v15659_v30 = vmov 1966171168   ;;  %v344_v32 = vlaneseq  ;;  %v13608_v37 = vld [vmem:[%s19215_s4] ss:$0 sm:$0xff] }
   0x9   :  { %14067 = vmatmul.mubr.f32.vlgmr.msra.gmra.mrb[0].mxu1 %v19224_v11  ;;  %14044 = vmatprep.mubr.msk.f32.mxu0 %vm53_vm0, %v40_v9  ;;  %v342_v31 = vunpack.c.l.s4 %v15659_v30  ;;  %vm265_vm2 = vcmask 130048   ;;  %vm558_vm3 = vcmask 130112   ;;  %vm623_vm4 = vcmask 1041409   ;;  %s15661_s25 = smov 8   ;;  %s15662_s13 = smov 96  }
   0xa   :  { %19275 = vst [vmem:[#allocation7_spill] sm:$0xff] %v15807_v29  ;;  %14715 = vmatpush3.bf16.msra.mxu1 %v15770_v17  ;;  %14073 = vmatprep.mubr.msk.f32.mxu1 %vm15657_vm1, %v19224_v11  ;;  %v15830_v34 = vshrl.u32 %v344_v32, 7  ;;  %vm625_vm5 = vcmask 1042434   ;;  %vm627_vm6 = vcmask 1043459   ;;  %vm629_vm7 = vcmask 1044484   ;;  %s15663_s14 = smov 16  }
   0xb   :  { %14716 = vmatprep.subr.bf16.mxu1 %v19222_v6  ;;  %14736 = vmatpush3.bf16.msra.mxu0 %v15807_v29  ;;  %v343_v33 = vunpack.c.0.s8 %v342_v31  ;;  %vm631_vm8 = vcmask 1045509   ;;  %vm633_vm9 = vcmask 1046534   ;;  %vm635_vm10 = vcmask 1047559   ;;  %s15664_s19 = smov 32   ;;  %s15665_s20 = smov 80  }
   0xc   :  { %14045 = vmatmul.mubr.msk.f32.gmra.mrb[4].mxu0 %vm53_vm0, %v41_v10  ;;  %14743 = vmatprep.subr.bf16.mxu0 %v19222_v6  ;;  %v15848_v46 = vsub.s32 0, %v15830_v34  ;;  %vm1711_vm11 = vcmask 261120  }
   0xd   :  { %14047 = vmatprep.mubr.msk.f32.mxu0 %vm53_vm0, %v42_v14  ;;  %v15840_v38 = vsub.s32 %v343_v33, %v15830_v34 }
   0xf   :  { %19278 = vst [vmem:[#allocation10_spill] sm:$0xff] %v15840_v38 }
  0x10   :  { %14048 = vmatmul.mubr.msk.f32.gmra.mrb[6].mxu0 %vm53_vm0, %v43_v15 }
  0x11   :  { %14050 = vmatprep.mubr.msk.f32.mxu0 %vm53_vm0, %v44_v16 }
  0x14   :  { %14051 = vmatmul.mubr.msk.f32.gmra.mrb[8].mxu0 %vm53_vm0, %v45_v19 }
  0x15   :  { %14053 = vmatprep.mubr.msk.f32.mxu0 %vm53_vm0, %v46_v20 }
  0x18   :  { %14054 = vmatmul.mubr.msk.f32.gmra.mrb[10].mxu0 %vm53_vm0, %v47_v21 }
  0x19   :  { %14056 = vmatprep.mubr.msk.f32.mxu0 %vm53_vm0, %v48_v24 }
  0x1c   :  { %14057 = vmatmul.mubr.msk.f32.gmra.mrb[12].mxu0 %vm53_vm0, %v49_v25 }
  0x1d   :  { %14059 = vmatprep.mubr.msk.f32.mxu0 %vm53_vm0, %v50_v27 }
  0x20   :  { %14060 = vmatmul.mubr.msk.f32.gmra.mrb[14].mxu0 %vm53_vm0, %v51_v28 }
  0x21   :  { %14122 = vmatprep.mubr.msk.f32.mxu0 %vm15657_vm1, %v19224_v11 }
  0xd7   :  { %v15832_v35 = vpop.f32.mrb[0].mxu0 }
  0xd8   :  { %19276 = vst [vmem:[#allocation8_spill] sm:$0xff] %v15832_v35  ;;  %v15834_v36 = vpop.f32.mrb[1].mxu0 }
  0xd9   :  { %19277 = vst [vmem:[#allocation9_spill] sm:$0xff] %v15834_v36 }
  0xdb   :  { %v15842_v40 = vpop.f32.mrb[2].mxu0 }
  0xdc   :  { %v335_v39 = vpop.f32.mrb[0].mxu1  ;;  %19279 = vst [vmem:[#allocation11_spill] sm:$0xff] %v15842_v40  ;;  %v15844_v43 = vpop.f32.mrb[3].mxu0 }
  0xdd   :  { %v336_v41 = vadd.f32 %v13608_v37, %v335_v39  ;;  %v14068_v42 = vpop.f32.mrb[1].mxu1  ;;  %19280 = vst [vmem:[#allocation12_spill] sm:$0xff] %v15844_v43  ;;  %v15895_v37 = vld [vmem:[%s19216_s5] ss:$0 sm:$0xff] }
  0xdf   :  { %v340_v44 = vcombine.high %v336_v41, %v336_v41  ;;  %v347_v45 = vrot.slane %v336_v41, %v15840_v38  ;;  %v15850_v47 = vpop.f32.mrb[4].mxu0 }
  0xe0   :  { %19281 = vst [vmem:[#allocation13_spill] sm:$0xff] %v15850_v47  ;;  %v15854_v51 = vpop.f32.mrb[5].mxu0 }
  0xe1   :  { %v354_v48 = vrot.slane %v340_v44, %v15840_v38  ;;  %v355_v49 = vcombine.high %v347_v45, %v347_v45  ;;  %v363_v50 = vrot.slane %v347_v45, %v15840_v38  ;;  %19282 = vst [vmem:[#allocation14_spill] sm:$0xff] %v15854_v51 }
  0xe3   :  { %v356_v52 = vcombine.high %v354_v48, %v354_v48  ;;  %v370_v53 = vrot.slane %v354_v48, %v15840_v38  ;;  %v377_v54 = vrot.slane %v355_v49, %v15840_v38  ;;  %v385_v55 = vcombine.high %v363_v50, %v363_v50  ;;  %v15859_v57 = vpop.f32.mrb[6].mxu0 }
  0xe4   :  { %v392_v56 = vrot.slane %v363_v50, %v15848_v46  ;;  %19283 = vst [vmem:[#allocation15_spill] sm:$0xff] %v15859_v57  ;;  %v15862_v60 = vpop.f32.mrb[7].mxu0 }
  0xe5   :  { %v387_v58 = vcombine.high %v377_v54, %v377_v54  ;;  %v396_v59 = vrot.slane %v377_v54, %v15848_v46  ;;  %19284 = vst [vmem:[#allocation16_spill] sm:$0xff] %v15862_v60  ;;  %v400_v61 = vrot.slane %v385_v55, %v15848_v46  ;;  %v384_v0 = vrot.slane %v356_v52, %v15840_v38 }
  0xe6   :  { %v429_v62 = vadd.f32 %v392_v56, %v15834_v36  ;;  %v430_v63 = vadd.f32 %v15832_v35, %v392_v56  ;;  %v408_v2 = vrot.slane %v370_v53, %v15848_v46  ;;  %v386_v20 = vcombine.high %v370_v53, %v370_v53 }
  0xe7   :  { %v404_v1 = vrot.slane %v387_v58, %v15848_v46  ;;  %v15870_v3 = vpop.f32.mrb[8].mxu0  ;;  %v431_v4 = vadd.f32 %v396_v59, %v15844_v43  ;;  %v432_v5 = vadd.f32 %v15842_v40, %v396_v59  ;;  %v433_v8 = vadd.f32 %v400_v61, %v15854_v51 }
  0xe8   :  { %19285 = vst [vmem:[#allocation17_spill] sm:$0xff] %v15870_v3  ;;  %15012 = vtanh.f32 %v429_v62  ;;  %v15875_v9 = vpop.f32.mrb[9].mxu0  ;;  %v434_v10 = vadd.f32 %v15850_v47, %v400_v61  ;;  %v438_v19 = vadd.f32 %v15870_v3, %v408_v2  ;;  %v412_v21 = vrot.slane %v384_v0, %v15848_v46 }
  0xe9   :  { %19286 = vst [vmem:[#allocation18_spill] sm:$0xff] %v15875_v9  ;;  %15014 = vtanh.f32 %v430_v63  ;;  %v435_v14 = vadd.f32 %v404_v1, %v15862_v60  ;;  %v436_v15 = vadd.f32 %v15859_v57, %v404_v1  ;;  %v437_v16 = vadd.f32 %v408_v2, %v15875_v9 }
  0xea   :  { %15016 = vtanh.f32 %v431_v4  ;;  %v388_v30 = vcombine.high %v384_v0, %v384_v0  ;;  %v416_v31 = vrot.slane %v386_v20, %v15848_v46 }
  0xeb   :  { %15018 = vtanh.f32 %v432_v5  ;;  %v15883_v24 = vpop.f32.mrb[10].mxu0 }
  0xec   :  { %19287 = vst [vmem:[#allocation19_spill] sm:$0xff] %v15883_v24  ;;  %15020 = vtanh.f32 %v433_v8  ;;  %v15885_v25 = vpop.f32.mrb[11].mxu0  ;;  %v440_v27 = vadd.f32 %v15883_v24, %v412_v21  ;;  %v420_v48 = vrot.slane %v388_v30, %v15848_v46 }
  0xed   :  { %19288 = vst [vmem:[#allocation20_spill] sm:$0xff] %v15885_v25  ;;  %15022 = vtanh.f32 %v434_v10  ;;  %v439_v28 = vadd.f32 %v412_v21, %v15885_v25 }
  0xee   :  { %15024 = vtanh.f32 %v435_v14 }
  0xef   :  { %v15890_v33 = vpop.f32.mrb[12].mxu0  ;;  %15026 = vtanh.f32 %v436_v15 }
  0xf0   :  { %19289 = vst [vmem:[#allocation21_spill] sm:$0xff] %v15890_v33  ;;  %v15897_v39 = vpop.f32.mrb[13].mxu0  ;;  %v442_v41 = vadd.f32 %v15890_v33, %v416_v31  ;;  %15028 = vtanh.f32 %v437_v16 }
  0xf1   :  { %19290 = vst [vmem:[#allocation22_spill] sm:$0xff] %v15897_v39  ;;  %v441_v44 = vadd.f32 %v416_v31, %v15897_v39  ;;  %15030 = vtanh.f32 %v438_v19 }
  0xf2   :  { %v15013_v42 = vpop.eup %15012  ;;  %15032 = vtanh.f32 %v439_v28 }
  0xf3   :  { %v15015_v45 = vpop.eup %15014  ;;  %v467_v49 = vmul.f32 %v15013_v42, %v15895_v37  ;;  %v15903_v52 = vpop.f32.mrb[14].mxu0  ;;  %15034 = vtanh.f32 %v440_v27 }
  0xf4   :  { %v15017_v50 = vpop.eup %15016  ;;  %19291 = vst [vmem:[#allocation23_spill] sm:$0xff] %v15903_v52  ;;  %v15906_v55 = vpop.f32.mrb[15].mxu0  ;;  %v468_v58 = vmul.f32 %v15015_v45, %v15895_v37  ;;  %v444_v59 = vadd.f32 %v15903_v52, %v420_v48  ;;  %15036 = vtanh.f32 %v441_v44 }
  0xf5   :  { %v15019_v53 = vpop.eup %15018  ;;  %v483_v54 = vsel %vm265_vm2, %v467_v49, 0.0  ;;  %19292 = vst [vmem:[#allocation24_spill] sm:$0xff] %v15906_v55  ;;  %v469_v56 = vmul.f32 %v15017_v50, %v15895_v37  ;;  %v443_v62 = vadd.f32 %v420_v48, %v15906_v55  ;;  %15038 = vtanh.f32 %v442_v41 }
  0xf6   :  { %v15021_v61 = vpop.eup %15020  ;;  %484 = vadd.xlane.f32.xlu0 %v483_v54  ;;  %v470_v0 = vmul.f32 %v15019_v53, %v15895_v37  ;;  %v486_v2 = vsel %vm265_vm2, %v468_v58, 0.0 }
  0xf7   :  { %v489_v63 = vsel %vm265_vm2, %v469_v56, 0.0  ;;  %v15023_v1 = vpop.eup %15022  ;;  %v471_v4 = vmul.f32 %v15021_v61, %v15895_v37  ;;  %15040 = vtanh.f32 %v443_v62 }
  0xf8   :  { %490 = vadd.xlane.f32.xlu1 %v489_v63  ;;  %v15025_v5 = vpop.eup %15024  ;;  %v492_v8 = vsel %vm265_vm2, %v470_v0, 0.0  ;;  %v472_v10 = vmul.f32 %v15023_v1, %v15895_v37  ;;  %15042 = vtanh.f32 %v444_v59 }
  0xf9   :  { %v15027_v14 = vpop.eup %15026  ;;  %v495_v15 = vsel %vm265_vm2, %v471_v4, 0.0  ;;  %v473_v16 = vmul.f32 %v15025_v5, %v15895_v37 }
  0xfa   :  { %487 = vadd.xlane.f32.xlu0 %v486_v2  ;;  %v15029_v19 = vpop.eup %15028  ;;  %v498_v20 = vsel %vm265_vm2, %v472_v10, 0.0  ;;  %v474_v21 = vmul.f32 %v15027_v14, %v15895_v37 }
  0xfb   :  { %v15031_v28 = vpop.eup %15030  ;;  %v501_v27 = vsel %vm265_vm2, %v473_v16, 0.0  ;;  %v475_v30 = vmul.f32 %v15029_v19, %v15895_v37 }
  0xfc   :  { %493 = vadd.xlane.f32.xlu1 %v492_v8  ;;  %v15033_v31 = vpop.eup %15032  ;;  %v504_v42 = vsel %vm265_vm2, %v474_v21, 0.0  ;;  %v476_v44 = vmul.f32 %v15031_v28, %v15895_v37  ;;  %v548_v21 = vand.u32 127, %v344_v32 }
  0xfd   :  { %v15035_v45 = vpop.eup %15034  ;;  %v507_v41 = vsel %vm265_vm2, %v475_v30, 0.0  ;;  %v477_v48 = vmul.f32 %v15033_v31, %v15895_v37 }
  0xfe   :  { %496 = vadd.xlane.f32.xlu0 %v495_v15  ;;  %v15037_v49 = vpop.eup %15036  ;;  %v510_v50 = vsel %vm265_vm2, %v476_v44, 0.0  ;;  %v478_v53 = vmul.f32 %v15035_v45, %v15895_v37  ;;  %v15967_v45 = vsub.s32 %v548_v21, %v15830_v34 }
  0xff   :  { %v15039_v54 = vpop.eup %15038  ;;  %v513_v56 = vsel %vm265_vm2, %v477_v48, 0.0  ;;  %v479_v58 = vmul.f32 %v15037_v49, %v15895_v37 }
 0x100   :  { %499 = vadd.xlane.f32.xlu1 %v498_v20  ;;  %v516_v61 = vsel %vm265_vm2, %v478_v53, 0.0  ;;  %v480_v62 = vmul.f32 %v15039_v54, %v15895_v37 }
 0x101   :  { %v15041_v59 = vpop.eup %15040  ;;  %v519_v0 = vsel %vm265_vm2, %v479_v58, 0.0 }
 0x102   :  { %502 = vadd.xlane.f32.xlu0 %v501_v27  ;;  %v15043_v63 = vpop.eup %15042  ;;  %v481_v1 = vmul.f32 %v15041_v59, %v15895_v37  ;;  %v522_v2 = vsel %vm265_vm2, %v480_v62, 0.0  ;;  %v553_v27 = vadd.s32 4294967288, %v548_v21 }
 0x103   :  { %v482_v4 = vmul.f32 %v15043_v63, %v15895_v37 }
 0x104   :  { %505 = vadd.xlane.f32.xlu1 %v504_v42  ;;  %v525_v5 = vsel %vm265_vm2, %v481_v1, 0.0  ;;  %v15962_v42 = vsub.s32 %v553_v27, %v15830_v34 }
 0x105   :  { %v528_v8 = vsel %vm265_vm2, %v482_v4, 0.0 }
 0x106   :  { %508 = vadd.xlane.f32.xlu0 %v507_v41 }
 0x108   :  { %511 = vadd.xlane.f32.xlu1 %v510_v50 }
 0x10a   :  { %514 = vadd.xlane.f32.xlu0 %v513_v56 }
 0x10c   :  { %517 = vadd.xlane.f32.xlu1 %v516_v61 }
 0x10e   :  { %520 = vadd.xlane.f32.xlu0 %v519_v0 }
 0x110   :  { %523 = vadd.xlane.f32.xlu1 %v522_v2 }
 0x112   :  { %526 = vadd.xlane.f32.xlu0 %v525_v5 }
 0x114   :  { %529 = vadd.xlane.f32.xlu1 %v528_v8 }
 0x183   :  { %v15940_v10 = vpop.xlane.xlu0 %484 }
 0x184   :  { %v552_v59 = vrot.slane %v15940_v10, %v15967_v45 }
 0x185   :  { %v15942_v14 = vpop.xlane.xlu1 %490 }
 0x186   :  { %v563_v49 = vrot.slane %v15942_v14, %v15967_v45 }
 0x187   :  { %v15944_v15 = vpop.xlane.xlu0 %487 }
 0x188   :  { %v557_v50 = vrot.slane %v15944_v15, %v15962_v42 }
 0x189   :  { %v15946_v16 = vpop.xlane.xlu1 %493 }
 0x18a   :  { %v567_v41 = vrot.slane %v15946_v16, %v15962_v42  ;;  %v559_v4 = vsel %vm558_vm3, %v557_v50, %v552_v59 }
 0x18b   :  { %v15948_v19 = vpop.xlane.xlu0 %496 }
 0x18c   :  { %v572_v54 = vrot.slane %v15948_v19, %v15967_v45  ;;  %v568_v61 = vsel %vm558_vm3, %v567_v41, %v563_v49 }
 0x18d   :  { %v15950_v20 = vpop.xlane.xlu1 %499  ;;  %v624_v27 = vsel %vm623_vm4, %v568_v61, %v559_v4 }
 0x18e   :  { %v576_v32 = vrot.slane %v15950_v20, %v15962_v42 }
 0x18f   :  { %v15952_v37 = vpop.xlane.xlu0 %502 }
 0x190   :  { %v581_v62 = vrot.slane %v15952_v37, %v15967_v45  ;;  %v577_v0 = vsel %vm558_vm3, %v576_v32, %v572_v54 }
 0x191   :  { %v15955_v28 = vpop.xlane.xlu1 %505  ;;  %v626_v54 = vsel %vm625_vm5, %v577_v0, %v624_v27  ;;  %v16025_v27 = vsub.s32 1, %v15830_v34 }
 0x192   :  { %v585_v53 = vrot.slane %v15955_v28, %v15962_v42 }
 0x193   :  { %v15957_v30 = vpop.xlane.xlu0 %508 }
 0x194   :  { %v590_v1 = vrot.slane %v15957_v30, %v15967_v45  ;;  %v586_v5 = vsel %vm558_vm3, %v585_v53, %v581_v62 }
 0x195   :  { %v15959_v31 = vpop.xlane.xlu1 %511  ;;  %v628_v53 = vsel %vm627_vm6, %v586_v5, %v626_v54 }
 0x196   :  { %v594_v56 = vrot.slane %v15959_v31, %v15962_v42 }
 0x197   :  { %v15964_v44 = vpop.xlane.xlu0 %514 }
 0x198   :  { %v599_v8 = vrot.slane %v15964_v44, %v15967_v45  ;;  %v595_v41 = vsel %vm558_vm3, %v594_v56, %v590_v1 }
 0x199   :  { %v15973_v48 = vpop.xlane.xlu1 %517  ;;  %v630_v1 = vsel %vm629_vm7, %v595_v41, %v628_v53  ;;  %v16028_v41 = vsub.s32 5, %v15830_v34 }
 0x19a   :  { %v603_v63 = vrot.slane %v15973_v48, %v15962_v42 }
 0x19b   :  { %v15985_v58 = vpop.xlane.xlu0 %520 }
 0x19c   :  { %v608_v32 = vrot.slane %v15985_v58, %v15967_v45  ;;  %v604_v50 = vsel %vm558_vm3, %v603_v63, %v599_v8 }
 0x19d   :  { %v15997_v2 = vpop.xlane.xlu1 %523  ;;  %v632_v0 = vsel %vm631_vm8, %v604_v50, %v630_v1 }
 0x19e   :  { %v612_v21 = vrot.slane %v15997_v2, %v15962_v42 }
 0x19f   :  { %v527_v49 = vpop.xlane.xlu0 %526 }
 0x1a0   :  { %v613_v62 = vsel %vm558_vm3, %v612_v21, %v608_v32  ;;  %v617_v61 = vrot.slane %v527_v49, %v15967_v45  ;;  %v15660_v21 = vmov 0   ;;  %v16031_v32 = vsub.s32 6, %v15830_v34 }
 0x1a1   :  { %v16012_v59 = vpop.xlane.xlu1 %529  ;;  %v634_v4 = vsel %vm633_vm9, %v613_v62, %v632_v0  ;;  %15011 = vset.pattern.permute.xlu0 %v15660_v21  ;;  %15010 = vset.pattern.permute.xlu1 %v15660_v21 }
 0x1a2   :  { %v621_v56 = vrot.slane %v16012_v59, %v15962_v42 }
 0x1a4   :  { %v622_v63 = vsel %vm558_vm3, %v621_v56, %v617_v61  ;;  %v16039_v61 = vsub.s32 7, %v15830_v34 }
 0x1a5   :  { %v636_v5 = vsel %vm635_vm10, %v622_v63, %v634_v4  ;;  %v16047_v63 = vsub.s32 2, %v15830_v34 }
 0x1a6   :  { %v638_v8 = vsel %vm265_vm2, %v636_v5, -inf }
 0x1a7   :  { %639 = vmax.xlane.f32.xlu0 %v638_v8 }
 0x234   :  { %v640_v54 = vpop.xlane.xlu0 %639 }
 0x235   :  { %v645_v50 = vrot.slane %v640_v54, %v15848_v46  ;;  %v649_v53 = vrot.slane %v640_v54, %v16025_v27  ;;  %v16036_v62 = vrot.slane %v640_v54, %v16028_v41  ;;  %v16042_v56 = vrot.slane %v640_v54, %v16031_v32 }
 0x236   :  { %v16053_v6 = vrot.slane %v640_v54, %v16039_v61 }
 0x237   :  { %v683_v1 = vsub.f32 %v15944_v15, %v645_v50  ;;  %v682_v0 = vsub.f32 %v15940_v10, %v645_v50  ;;  %v692_v4 = vsub.f32 %v15964_v44, %v16036_v62  ;;  %v684_v5 = vsub.f32 %v15942_v14, %v649_v53 }
 0x238   :  { %v694_v15 = vsub.f32 %v15985_v58, %v16042_v56  ;;  %v653_v10 = vrot.slane %v640_v54, %v16047_v63  ;;  %v685_v29 = vsub.f32 %v15946_v16, %v649_v53  ;;  %v696_v14 = vsub.f32 %v527_v49, %v16053_v6 }
 0x239   :  { %v700_v8 = vmul.f32 1.442695, %v683_v1  ;;  %v698_v21 = vmul.f32 1.442695, %v682_v0  ;;  %v718_v11 = vmul.f32 1.442695, %v692_v4 }
 0x23a   :  { %v702_v50 = vmul.f32 1.442695, %v684_v5  ;;  %v722_v44 = vmul.f32 1.442695, %v694_v15  ;;  %v16061_v1 = vsub.s32 3, %v15830_v34  ;;  %v686_v4 = vsub.f32 %v15948_v19, %v653_v10 }
 0x23b   :  { %15044 = vpow2.f32 %v700_v8  ;;  %v704_v0 = vmul.f32 1.442695, %v685_v29  ;;  %v726_v8 = vmul.f32 1.442695, %v696_v14  ;;  %v687_v5 = vsub.f32 %v15950_v20, %v653_v10 }
 0x23c   :  { %15046 = vpow2.f32 %v698_v21  ;;  %v657_v58 = vrot.slane %v640_v54, %v16061_v1  ;;  %v706_v21 = vmul.f32 1.442695, %v686_v4  ;;  %v16073_v29 = vsub.s32 4, %v15830_v34 }
 0x23d   :  { %15048 = vpow2.f32 %v718_v11  ;;  %v708_v19 = vmul.f32 1.442695, %v687_v5 }
 0x23e   :  { %15050 = vpow2.f32 %v702_v50  ;;  %v688_v49 = vsub.f32 %v15952_v37, %v657_v58  ;;  %v661_v20 = vrot.slane %v640_v54, %v16073_v29  ;;  %v689_v50 = vsub.f32 %v15955_v28, %v657_v58 }
 0x23f   :  { %15052 = vpow2.f32 %v722_v44 }
 0x240   :  { %15054 = vpow2.f32 %v704_v0  ;;  %v710_v10 = vmul.f32 1.442695, %v688_v49  ;;  %v712_v37 = vmul.f32 1.442695, %v689_v50  ;;  %v690_v14 = vsub.f32 %v15957_v30, %v661_v20 }
 0x241   :  { %15056 = vpow2.f32 %v726_v8  ;;  %v691_v54 = vsub.f32 %v15959_v31, %v661_v20  ;;  %v693_v30 = vsub.f32 %v15973_v48, %v16036_v62  ;;  %v697_v20 = vsub.f32 %v16012_v59, %v16053_v6 }
 0x242   :  { %15058 = vpow2.f32 %v706_v21  ;;  %v714_v28 = vmul.f32 1.442695, %v690_v14 }
 0x243   :  { %15060 = vpow2.f32 %v708_v19  ;;  %v716_v58 = vmul.f32 1.442695, %v691_v54  ;;  %v720_v5 = vmul.f32 1.442695, %v693_v30  ;;  %v695_v19 = vsub.f32 %v15997_v2, %v16042_v56 }
 0x244   :  { %15062 = vpow2.f32 %v710_v10  ;;  %v728_v48 = vmul.f32 1.442695, %v697_v20 }
 0x245   :  { %v16066_v16 = vpop.eup %15044  ;;  %15064 = vpow2.f32 %v712_v37  ;;  %v724_v31 = vmul.f32 1.442695, %v695_v19 }
 0x246   :  { %v16068_v11 = vpop.eup %15046  ;;  %750 = vperm.xlu0 %15011, %v16066_v16   ;;  %15066 = vpow2.f32 %v714_v28 }
 0x247   :  { %747 = vperm.xlu1 %15010, %v16068_v11   ;;  %v16076_v53 = vpop.eup %15048  ;;  %15068 = vpow2.f32 %v716_v58 }
 0x248   :  { %v16078_v15 = vpop.eup %15050  ;;  %15070 = vpow2.f32 %v720_v5 }
 0x249   :  { %v16084_v34 = vpop.eup %15052  ;;  %15072 = vpow2.f32 %v724_v31 }
 0x24a   :  { %777 = vperm.xlu0 %15011, %v16076_v53   ;;  %v16086_v44 = vpop.eup %15054  ;;  %15074 = vpow2.f32 %v728_v48 }
 0x24b   :  { %753 = vperm.xlu1 %15010, %v16078_v15   ;;  %v16091_v0 = vpop.eup %15056 }
 0x24c   :  { %v16093_v4 = vpop.eup %15058 }
 0x24d   :  { %v16098_v8 = vpop.eup %15060 }
 0x24e   :  { %783 = vperm.xlu0 %15011, %v16084_v34   ;;  %v16103_v21 = vpop.eup %15062 }
 0x24f   :  { %756 = vperm.xlu1 %15010, %v16086_v44   ;;  %v16108_v49 = vpop.eup %15064 }
 0x250   :  { %v16113_v10 = vpop.eup %15066 }
 0x251   :  { %v16116_v62 = vpop.eup %15068 }
 0x252   :  { %789 = vperm.xlu0 %15011, %v16091_v0   ;;  %v16119_v2 = vpop.eup %15070 }
 0x253   :  { %759 = vperm.xlu1 %15010, %v16093_v4   ;;  %v16122_v56 = vpop.eup %15072 }
 0x254   :  { %v16125_v6 = vpop.eup %15074 }
 0x257   :  { %762 = vperm.xlu1 %15010, %v16098_v8  }
 0x25b   :  { %765 = vperm.xlu1 %15010, %v16103_v21  }
 0x25f   :  { %768 = vperm.xlu1 %15010, %v16108_v49  }
 0x263   :  { %771 = vperm.xlu1 %15010, %v16113_v10  }
 0x267   :  { %774 = vperm.xlu1 %15010, %v16116_v62  }
 0x26b   :  { %780 = vperm.xlu1 %15010, %v16119_v2  }
 0x26f   :  { %786 = vperm.xlu1 %15010, %v16122_v56  }
 0x273   :  { %792 = vperm.xlu1 %15010, %v16125_v6  }
 0x2c5   :  { %v751_v58 = vpop.permute.xlu0 %750 }
 0x2c6   :  { %v748_v59 = vpop.permute.xlu1 %747  ;;  %v801_v33 = vrot.slane %v751_v58, %v15962_v42 }
 0x2c7   :  { %v797_v39 = vrot.slane %v748_v59, %v15967_v45 }
 0x2c9   :  { %v778_v19 = vpop.permute.xlu0 %777  ;;  %v802_v59 = vsel %vm558_vm3, %v801_v33, %v797_v39 }
 0x2ca   :  { %v754_v50 = vpop.permute.xlu1 %753 }
 0x2cb   :  { %v806_v24 = vrot.slane %v754_v50, %v15967_v45  ;;  %v842_v50 = vrot.slane %v778_v19, %v15967_v45 }
 0x2cd   :  { %v784_v48 = vpop.permute.xlu0 %783 }
 0x2ce   :  { %v757_v37 = vpop.permute.xlu1 %756 }
 0x2cf   :  { %v810_v20 = vrot.slane %v757_v37, %v15962_v42 }
 0x2d1   :  { %v811_v57 = vsel %vm558_vm3, %v810_v20, %v806_v24 }
 0x2d2   :  { %v760_v14 = vpop.permute.xlu1 %759  ;;  %v866_v24 = vsel %vm623_vm4, %v811_v57, %v802_v59 }
 0x2d3   :  { %v815_v3 = vrot.slane %v760_v14, %v15967_v45 }
 0x2d6   :  { %v763_v28 = vpop.permute.xlu1 %762 }
 0x2d7   :  { %v819_v55 = vrot.slane %v763_v28, %v15962_v42 }
 0x2d9   :  { %v820_v28 = vsel %vm558_vm3, %v819_v55, %v815_v3 }
 0x2da   :  { %v766_v54 = vpop.permute.xlu1 %765  ;;  %v867_v3 = vsel %vm625_vm5, %v820_v28, %v866_v24 }
 0x2db   :  { %v824_v37 = vrot.slane %v766_v54, %v15967_v45  ;;  %v790_v54 = vpop.permute.xlu0 %789 }
 0x2de   :  { %v769_v30 = vpop.permute.xlu1 %768 }
 0x2df   :  { %v828_v25 = vrot.slane %v769_v30, %v15962_v42 }
 0x2e1   :  { %v829_v30 = vsel %vm558_vm3, %v828_v25, %v824_v37  ;;  %v860_v25 = vrot.slane %v790_v54, %v15967_v45 }
 0x2e2   :  { %v772_v5 = vpop.permute.xlu1 %771 }
 0x2e3   :  { %v833_v58 = vrot.slane %v772_v5, %v15967_v45  ;;  %v868_v5 = vsel %vm627_vm6, %v829_v30, %v867_v3 }
 0x2e6   :  { %v775_v31 = vpop.permute.xlu1 %774 }
 0x2e7   :  { %v837_v9 = vrot.slane %v775_v31, %v15962_v42  ;;  %v851_v31 = vrot.slane %v784_v48, %v15967_v45 }
 0x2ea   :  { %v781_v52 = vpop.permute.xlu1 %780 }
 0x2eb   :  { %v846_v60 = vrot.slane %v781_v52, %v15962_v42  ;;  %v838_v52 = vsel %vm558_vm3, %v837_v9, %v833_v58 }
 0x2ec   :  { %v869_v19 = vsel %vm629_vm7, %v838_v52, %v868_v5 }
 0x2ed   :  { %v847_v55 = vsel %vm558_vm3, %v846_v60, %v842_v50 }
 0x2ee   :  { %v787_v47 = vpop.permute.xlu1 %786  ;;  %v870_v57 = vsel %vm631_vm8, %v847_v55, %v869_v19 }
 0x2ef   :  { %v855_v14 = vrot.slane %v787_v47, %v15962_v42 }
 0x2f1   :  { %v856_v39 = vsel %vm558_vm3, %v855_v14, %v851_v31 }
 0x2f2   :  { %v793_v33 = vpop.permute.xlu1 %792  ;;  %v871_v9 = vsel %vm633_vm9, %v856_v39, %v870_v57  ;;  %v1654_v57 = vld [vmem:[%s19212_s1 + $0x38] sm:$0x1] }
 0x2f3   :  { %v864_v47 = vrot.slane %v793_v33, %v15962_v42 }
 0x2f5   :  { %v865_v20 = vsel %vm558_vm3, %v864_v47, %v860_v25  ;;  %v1653_v25 = vld [vmem:[%s19212_s1 + $0x30] sm:$0x1] }
 0x2f6   :  { %v872_v48 = vsel %vm635_vm10, %v865_v20, %v871_v9 }
 0x2f7   :  { %v874_v60 = vsel %vm265_vm2, %v872_v48, 0.0 }
 0x2f8   :  { %875 = vadd.xlane.f32.xlu0 %v874_v60 }
 0x385   :  { %v876_v37 = vpop.xlane.xlu0 %875 }
 0x386   :  { %15076 = vrcp.f32 %v876_v37 }
 0x390   :  { %v15077_v28 = vpop.eup %15076 }
 0x391   :  { %v898_v58 = vrot.slane %v15077_v28, %v16073_v29  ;;  %v882_v59 = vrot.slane %v15077_v28, %v15848_v46  ;;  %v910_v14 = vrot.slane %v15077_v28, %v16039_v61  ;;  %v886_v54 = vrot.slane %v15077_v28, %v16025_v27 }
 0x393   :  { %v927_v50 = vmul.f32 %v16113_v10, %v898_v58  ;;  %v919_v30 = vmul.f32 %v16068_v11, %v882_v59  ;;  %v933_v31 = vmul.f32 %v16091_v0, %v910_v14  ;;  %v920_v24 = vmul.f32 %v16066_v16, %v882_v59 }
 0x394   :  { %v921_v52 = vmul.f32 %v16078_v15, %v886_v54  ;;  %v922_v3 = vmul.f32 %v16086_v44, %v886_v54  ;;  %v890_v10 = vrot.slane %v15077_v28, %v16047_v63  ;;  %v894_v0 = vrot.slane %v15077_v28, %v16061_v1 }
 0x395   :  { %1294 = vperm.xlu0 %15011, %v927_v50   ;;  %938 = vperm.xlu1 %15010, %v919_v30   ;;  %v928_v15 = vmul.f32 %v16116_v62, %v898_v58  ;;  %v902_v44 = vrot.slane %v15077_v28, %v16028_v41  ;;  %v1647_v62 = vld [vmem:[%s19212_s1] sm:$0x1]  ;;  %v1698_v59 = vrot.slane %v1654_v57, 1 }
 0x396   :  { %v923_v11 = vmul.f32 %v16093_v4, %v890_v10  ;;  %v924_v55 = vmul.f32 %v16098_v8, %v890_v10  ;;  %v925_v16 = vmul.f32 %v16103_v21, %v894_v0  ;;  %v926_v5 = vmul.f32 %v16108_v49, %v894_v0 }
 0x397   :  { %v929_v33 = vmul.f32 %v16076_v53, %v902_v44  ;;  %v930_v4 = vmul.f32 %v16119_v2, %v902_v44  ;;  %v906_v8 = vrot.slane %v15077_v28, %v16031_v32  ;;  %v934_v49 = vmul.f32 %v16125_v6, %v910_v14  ;;  %v1648_v53 = vld [vmem:[%s19212_s1 + $0x8] sm:$0x1]  ;;  %v1649_v2 = vld [vmem:[%s19212_s1 + $0x10] sm:$0x1] }
 0x398   :  { %v1652_v6 = vld [vmem:[%s19212_s1 + $0x28] sm:$0x1]  ;;  %v1686_v47 = vrot.slane %v1648_v53, 7  ;;  %v1688_v19 = vrot.slane %v1649_v2, 6  ;;  %v1696_v28 = vrot.slane %v1653_v25, 2  ;;  %v19294_v0 = vmov 0.0|0.0  }
 0x399   :  { %1561 = vperm.xlu0 %15011, %v933_v31   ;;  %941 = vperm.xlu1 %15010, %v920_v24   ;;  %v931_v39 = vmul.f32 %v16084_v34, %v906_v8  ;;  %v932_v21 = vmul.f32 %v16122_v56, %v906_v8  ;;  %v1650_v34 = vld [vmem:[%s19212_s1 + $0x18] sm:$0x1]  ;;  %v1651_v56 = vld [vmem:[%s19212_s1 + $0x20] sm:$0x1]  ;;  %v1694_v60 = vrot.slane %v1652_v6, 3 }
 0x39a   :  { %v1690_v20 = vrot.slane %v1650_v34, 5  ;;  %v1692_v9 = vrot.slane %v1651_v56, 4  ;;  %v1687_v48 = vsel %vm623_vm4, %v1686_v47, %v1647_v62 }
 0x39b   :  { %v1689_v37 = vsel %vm625_vm5, %v1688_v19, %v1687_v48 }
 0x39c   :  { %v1691_v58 = vsel %vm627_vm6, %v1690_v20, %v1689_v37 }
 0x39d   :  { %1027 = vperm.xlu1 %15010, %v921_v52   ;;  %v1693_v50 = vsel %vm629_vm7, %v1692_v9, %v1691_v58 }
 0x39e   :  { %v1695_v30 = vsel %vm631_vm8, %v1694_v60, %v1693_v50 }
 0x39f   :  { %v1697_v14 = vsel %vm633_vm9, %v1696_v28, %v1695_v30 }
 0x3a0   :  { %v1699_v31 = vsel %vm635_vm10, %v1698_v59, %v1697_v14 }
 0x3a1   :  { %1030 = vperm.xlu1 %15010, %v922_v3   ;;  %1700 = vrot.lane.b32.xlu0 %v1699_v31, %s15661_s25 }
 0x3a5   :  { %1116 = vperm.xlu1 %15010, %v923_v11  }
 0x3a9   :  { %1119 = vperm.xlu1 %15010, %v924_v55   ;;  %v19293_v55 = vmov 0.0  }
 0x3ad   :  { %1205 = vperm.xlu1 %15010, %v925_v16  }
 0x3b1   :  { %1208 = vperm.xlu1 %15010, %v926_v5  }
 0x3b5   :  { %1297 = vperm.xlu1 %15010, %v928_v15  }
 0x3b9   :  { %1383 = vperm.xlu1 %15010, %v929_v33  }
 0x3bd   :  { %1386 = vperm.xlu1 %15010, %v930_v4  }
 0x3c1   :  { %1472 = vperm.xlu1 %15010, %v931_v39  }
 0x3c5   :  { %1475 = vperm.xlu1 %15010, %v932_v21  }
 0x3c9   :  { %1564 = vperm.xlu1 %15010, %v934_v49  }
 0x414   :  { %v939_v24 = vpop.permute.xlu1 %938  ;;  %v1295_v34 = vpop.permute.xlu0 %1294 }
 0x415   :  { %v946_v52 = vrot.slane %v939_v24, %v15967_v45  ;;  %v1302_v25 = vrot.slane %v1295_v34, %v15967_v45 }
 0x418   :  { %v942_v54 = vpop.permute.xlu1 %941  ;;  %v1562_v50 = vpop.permute.xlu0 %1561 }
 0x419   :  { %v950_v3 = vrot.slane %v942_v54, %v15962_v42  ;;  %v1569_v31 = vrot.slane %v1562_v50, %v15967_v45 }
 0x41b   :  { %v951_v10 = vsel %vm558_vm3, %v950_v3, %v946_v52  ;;  %v251_v52 = vld [vmem:[%s19217_s6] sm:$0xff]  ;;  %v252_v3 = vld [vmem:[%s19217_s6 + $0x8] sm:$0xff] }
 0x41c   :  { %14074 = vmatmul.mubr.msk.f32.vlgmr.msra.gmra.mrb[2].mxu1 %vm265_vm2, %v951_v10  ;;  %v1028_v11 = vpop.permute.xlu1 %1027  ;;  %v16282_v10 = vpack.c.bf16 %v252_v3, %v251_v52  ;;  %v13618_v3 = vld [vmem:[%s19218_s7] ss:$0 sm:$0xff] }
 0x41d   :  { %14718 = vmatpush3.bf16.msra.mxu1 %v15757_v12  ;;  %14080 = vmatprep.mubr.msk.f32.mxu1 %vm15657_vm1, %v19293_v55  ;;  %v1035_v5 = vrot.slane %v1028_v11, %v15967_v45  ;;  %v253_v11 = vld [vmem:[%s19217_s6 + $0x10] sm:$0xff] }
 0x41e   :  { %14719 = vmatprep.subr.bf16.mxu1 %v19294_v0 }
 0x420   :  { %v1031_v16 = vpop.permute.xlu1 %1030 }
 0x421   :  { %v1039_v15 = vrot.slane %v1031_v16, %v15962_v42  ;;  %v254_v16 = vld [vmem:[%s19217_s6 + $0x18] sm:$0xff] }
 0x423   :  { %v1040_v44 = vsel %vm558_vm3, %v1039_v15, %v1035_v5  ;;  %v16292_v5 = vpack.c.bf16 %v254_v16, %v253_v11 }
 0x424   :  { %14081 = vmatmul.mubr.msk.f32.vlgmr.msra.gmra.mrb[4].mxu1 %vm265_vm2, %v1040_v44  ;;  %v1117_v33 = vpop.permute.xlu1 %1116 }
 0x425   :  { %14721 = vmatpush3.bf16.msra.mxu1 %v15759_v13  ;;  %14087 = vmatprep.mubr.msk.f32.mxu1 %vm15657_vm1, %v19293_v55  ;;  %v1124_v8 = vrot.slane %v1117_v33, %v15967_v45 }
 0x426   :  { %14722 = vmatprep.subr.bf16.mxu1 %v19294_v0 }
 0x428   :  { %v1120_v4 = vpop.permute.xlu1 %1119 }
 0x429   :  { %v1128_v39 = vrot.slane %v1120_v4, %v15962_v42 }
 0x42b   :  { %v1129_v21 = vsel %vm558_vm3, %v1128_v39, %v1124_v8 }
 0x42c   :  { %14088 = vmatmul.mubr.msk.f32.vlgmr.msra.gmra.mrb[6].mxu1 %vm265_vm2, %v1129_v21  ;;  %v1206_v49 = vpop.permute.xlu1 %1205 }
 0x42d   :  { %14724 = vmatpush3.bf16.msra.mxu1 %v15774_v18  ;;  %14094 = vmatprep.mubr.msk.f32.mxu1 %vm15657_vm1, %v19293_v55  ;;  %v1213_v53 = vrot.slane %v1206_v49, %v15967_v45 }
 0x42e   :  { %14725 = vmatprep.subr.bf16.mxu1 %v19294_v0 }
 0x430   :  { %v1209_v62 = vpop.permute.xlu1 %1208 }
 0x431   :  { %v1217_v2 = vrot.slane %v1209_v62, %v15962_v42 }
 0x433   :  { %v1218_v56 = vsel %vm558_vm3, %v1217_v2, %v1213_v53 }
 0x434   :  { %14095 = vmatmul.mubr.msk.f32.vlgmr.msra.gmra.mrb[8].mxu1 %vm265_vm2, %v1218_v56  ;;  %v1298_v6 = vpop.permute.xlu1 %1297 }
 0x435   :  { %v1306_v47 = vrot.slane %v1298_v6, %v15962_v42  ;;  %14727 = vmatpush3.bf16.msra.mxu1 %v15785_v22  ;;  %14101 = vmatprep.mubr.msk.f32.mxu1 %vm15657_vm1, %v19293_v55 }
 0x436   :  { %14728 = vmatprep.subr.bf16.mxu1 %v19294_v0 }
 0x437   :  { %v1307_v19 = vsel %vm558_vm3, %v1306_v47, %v1302_v25 }
 0x438   :  { %14102 = vmatmul.mubr.msk.f32.vlgmr.msra.gmra.mrb[10].mxu1 %vm265_vm2, %v1307_v19  ;;  %v1384_v57 = vpop.permute.xlu1 %1383 }
 0x439   :  { %14730 = vmatpush3.bf16.msra.mxu1 %v15787_v23  ;;  %14108 = vmatprep.mubr.msk.f32.mxu1 %vm15657_vm1, %v19293_v55  ;;  %v1391_v9 = vrot.slane %v1384_v57, %v15967_v45 }
 0x43a   :  { %14731 = vmatprep.subr.bf16.mxu1 %v19294_v0 }
 0x43c   :  { %v1387_v20 = vpop.permute.xlu1 %1386 }
 0x43d   :  { %v1395_v48 = vrot.slane %v1387_v20, %v15962_v42 }
 0x43f   :  { %v1396_v60 = vsel %vm558_vm3, %v1395_v48, %v1391_v9 }
 0x440   :  { %14109 = vmatmul.mubr.msk.f32.vlgmr.msra.gmra.mrb[12].mxu1 %vm265_vm2, %v1396_v60  ;;  %v1473_v37 = vpop.permute.xlu1 %1472 }
 0x441   :  { %14733 = vmatpush3.bf16.msra.mxu1 %v15797_v26  ;;  %14115 = vmatprep.mubr.msk.f32.mxu1 %vm15657_vm1, %v19293_v55  ;;  %v1480_v58 = vrot.slane %v1473_v37, %v15967_v45 }
 0x442   :  { %14737 = vmatprep.subr.bf16.mxu1 %v19294_v0 }
 0x444   :  { %v1476_v28 = vpop.permute.xlu1 %1475 }
 0x445   :  { %v1484_v59 = vrot.slane %v1476_v28, %v15962_v42 }
 0x447   :  { %v1485_v30 = vsel %vm558_vm3, %v1484_v59, %v1480_v58 }
 0x448   :  { %14116 = vmatmul.mubr.msk.f32.vlgmr.msra.gmra.mrb[14].mxu1 %vm265_vm2, %v1485_v30  ;;  %v1565_v14 = vpop.permute.xlu1 %1564 }
 0x449   :  { %v1573_v24 = vrot.slane %v1565_v14, %v15962_v42  ;;  %14133 = vmatprep.mubr.msk.f32.mxu1 %vm15657_vm1, %v19293_v55  ;;  %14739 = vmatpush3.bf16.msra.mxu1 %v16282_v10 }
 0x44a   :  { %14740 = vmatprep.subr.bf16.mxu1 %v19294_v0 }
 0x44b   :  { %v1574_v54 = vsel %vm558_vm3, %v1573_v24, %v1569_v31  ;;  %v1701_v31 = vpop.permute.xlu0 %1700 }
 0x44c   :  { %14123 = vmatmul.mubr.msk.f32.vlgmr.msra.gmra.mrb[16].mxu0 %vm265_vm2, %v1574_v54 }
 0x44d   :  { %14140 = vmatprep.mubr.msk.f32.mxu0 %vm15657_vm1, %v19293_v55  ;;  %14742 = vmatpush3.bf16.msra.mxu1 %v16292_v5 }
 0x44e   :  { %14749 = vmatprep.subr.bf16.mxu1 %v19294_v0 }
 0x4ef   :  { %v1020_v15 = vpop.f32.mrb[2].mxu1 }
 0x4f0   :  { %v14075_v44 = vpop.f32.mrb[3].mxu1 }
 0x4f7   :  { %v1109_v33 = vpop.f32.mrb[4].mxu1 }
 0x4f8   :  { %v1663_v4 = vrot.slane %v1109_v33, 7  ;;  %v14082_v8 = vpop.f32.mrb[5].mxu1 }
 0x4fa   :  { %v1664_v39 = vsel %vm623_vm4, %v1663_v4, %v1020_v15 }
 0x4ff   :  { %v1198_v21 = vpop.f32.mrb[6].mxu1 }
 0x500   :  { %v1665_v49 = vrot.slane %v1198_v21, 6  ;;  %v14089_v62 = vpop.f32.mrb[7].mxu1 }
 0x502   :  { %v1666_v53 = vsel %vm625_vm5, %v1665_v49, %v1664_v39 }
 0x507   :  { %v1287_v2 = vpop.f32.mrb[8].mxu1 }
 0x508   :  { %v1667_v34 = vrot.slane %v1287_v2, 5  ;;  %v14096_v56 = vpop.f32.mrb[9].mxu1 }
 0x509   :  { %v257_v56 = vld [vmem:[%s19219_s8 + $0x8] sm:$0xff] }
 0x50a   :  { %v1668_v6 = vsel %vm627_vm6, %v1667_v34, %v1666_v53  ;;  %v256_v34 = vld [vmem:[%s19219_s8] sm:$0xff] }
 0x50b   :  { %v1376_v25 = vpop.f32.mrb[10].mxu1 }
 0x50c   :  { %v1669_v47 = vrot.slane %v1376_v25, 4  ;;  %v14103_v19 = vpop.f32.mrb[11].mxu1 }
 0x50e   :  { %v1670_v57 = vsel %vm629_vm7, %v1669_v47, %v1668_v6  ;;  %v16324_v6 = vpack.c.bf16 %v257_v56, %v256_v34 }
 0x510   :  { %14745 = vmatpush3.bf16.msra.mxu0 %v16324_v6 }
 0x511   :  { %14746 = vmatprep.subr.bf16.mxu0 %v19294_v0 }
 0x513   :  { %v1465_v20 = vpop.f32.mrb[12].mxu1 }
 0x514   :  { %v1671_v9 = vrot.slane %v1465_v20, 3  ;;  %v14110_v48 = vpop.f32.mrb[13].mxu1  ;;  %v13621_v20 = vld [vmem:[%s19220_s9] ss:$0 sm:$0xff] }
 0x516   :  { %v1672_v60 = vsel %vm631_vm8, %v1671_v9, %v1670_v57 }
 0x51b   :  { %v1554_v37 = vpop.f32.mrb[14].mxu1 }
 0x51c   :  { %v1673_v28 = vrot.slane %v1554_v37, 2  ;;  %v14117_v58 = vpop.f32.mrb[15].mxu1 }
 0x51e   :  { %v1674_v59 = vsel %vm633_vm9, %v1673_v28, %v1672_v60 }
 0x51f   :  { %v1643_v50 = vpop.f32.mrb[16].mxu0 }
 0x520   :  { %v1675_v30 = vrot.slane %v1643_v50, 1  ;;  %v14124_v14 = vpop.f32.mrb[17].mxu0 }
 0x521   :  { %v15604_v14 = vld [vmem:[%s19215_s4] ss:$0 sm:$0xff] }
 0x522   :  { %v1676_v24 = vsel %vm635_vm10, %v1675_v30, %v1674_v59 }
 0x523   :  { %v1703_v54 = vsel %vm53_vm0, %v1676_v24, %v1701_v31 }
 0x524   :  { %v1704_v52 = vsel %vm265_vm2, %v1703_v54, 0.0 }
 0x525   :  { %14134 = vmatmul.mubr.msk.f32.vlgmr.msra.gmra.mrb[16].mxu1 %vm1711_vm11, %v1704_v52 }
 0x526   :  { %14751 = vmatpush3.bf16.msra.mxu1 %v15770_v17  ;;  %14154 = vmatprep.mubr.msk.f32.mxu1 %vm15657_vm1, %v19293_v55 }
 0x527   :  { %14755 = vmatprep.subr.bf16.mxu1 %v19294_v0 }
 0x5f8   :  { %v1781_v11 = vpop.f32.mrb[16].mxu1 }
 0x5f9   :  { %v1782_v16 = vadd.f32 %v13618_v3, %v1781_v11  ;;  %v14135_v15 = vpop.f32.mrb[17].mxu1 }
 0x5fb   :  { %15078 = vtanh.f32 %v1782_v16  ;;  %v13620_v33 = vmul.f32 -1.442695, %v1782_v16 }
 0x5fd   :  { %15080 = vpow2.f32 %v13620_v33 }
 0x605   :  { %v15079_v44 = vpop.eup %15078 }
 0x606   :  { %1794 = vrot.lane.b32.xlu1 %v15079_v44, %s15662_s13 }
 0x607   :  { %v15081_v4 = vpop.eup %15080 }
 0x608   :  { %v1788_v8 = vadd.f32 1.0, %v15081_v4 }
 0x60a   :  { %15082 = vrcp.f32 %v1788_v8 }
 0x614   :  { %v15083_v39 = vpop.eup %15082 }
 0x615   :  { %v1792_v62 = vmul.f32 0.0, %v15083_v39 }
 0x678   :  { %v1795_v21 = vpop.permute.xlu1 %1794 }
 0x679   :  { %v1797_v49 = vmul.f32 %v15083_v39, %v1795_v21 }
 0x67b   :  { %1799 = vrot.lane.b32.xlu0 %v1797_v49, %s15663_s14 }
 0x6ed   :  { %v1800_v53 = vpop.permute.xlu0 %1799 }
 0x6ee   :  { %v16315_v2 = vadd.f32 %v1800_v53, %v1792_v62 }
 0x6f0   :  { %15084 = vtanh.f32 %v16315_v2 }
 0x6fa   :  { %v15085_v25 = vpop.eup %15084 }
 0x6fb   :  { %1805 = vrot.lane.b32.xlu1 %v15085_v25, %s15664_s19 }
 0x76d   :  { %v1806_v47 = vpop.permute.xlu1 %1805 }
 0x76e   :  { %v16329_v19 = vmul.f32 %v15083_v39, %v1806_v47 }
 0x770   :  { %1816 = vrot.lane.b32.xlu0 %v16329_v19, %s15665_s20 }
 0x7e2   :  { %v1817_v57 = vpop.permute.xlu0 %1816 }
 0x7e3   :  { %14141 = vmatmul.mubr.msk.f32.vlgmr.msra.gmra.mrb[18].mxu0 %vm265_vm2, %v1817_v57 }
 0x7e4   :  { %14748 = vmatpush3.bf16.msra.mxu0 %v15743_v7  ;;  %14147 = vmatprep.mubr.msk.f32.mxu0 %vm15657_vm1, %v19293_v55 }
 0x7e5   :  { %14752 = vmatprep.subr.bf16.mxu0 %v19294_v0 }
 0x7e7   :  { %14148 = vmatmul.mubr.msk.f32.vlgmr.msra.gmra.mrb[20].mxu0 %vm265_vm2, %v1817_v57 }
 0x7e8   :  { %14754 = vmatpush3.bf16.msra.mxu0 %v15757_v12  ;;  %14161 = vmatprep.mubr.msk.f32.mxu0 %vm15657_vm1, %v19293_v55 }
 0x7e9   :  { %14758 = vmatprep.subr.bf16.mxu0 %v19294_v0 }
 0x8b6   :  { %v1886_v9 = vpop.f32.mrb[18].mxu0 }
 0x8b7   :  { %v1887_v48 = vadd.f32 %v13621_v20, %v1886_v9  ;;  %v14142_v60 = vpop.f32.mrb[19].mxu0 }
 0x8b9   :  { %v1891_v37 = vcombine.high %v1887_v48, %v1887_v48  ;;  %v1898_v28 = vrot.slane %v1887_v48, %v15840_v38 }
 0x8ba   :  { %v2022_v58 = vpop.f32.mrb[20].mxu0 }
 0x8bb   :  { %v1905_v59 = vrot.slane %v1891_v37, %v15840_v38  ;;  %v1906_v50 = vcombine.high %v1898_v28, %v1898_v28  ;;  %v1914_v30 = vrot.slane %v1898_v28, %v15840_v38  ;;  %13623 = vst.sshfl [vmem:[#allocation2] sm:$0x1 pattern:$0x73625140] %v1898_v28  ;;  %v2023_v31 = vadd.f32 %v15604_v14, %v2022_v58  ;;  %v14149_v24 = vpop.f32.mrb[21].mxu0 }
 0x8bd   :  { %v1907_v54 = vcombine.high %v1905_v59, %v1905_v59  ;;  %v1921_v52 = vrot.slane %v1905_v59, %v15840_v38  ;;  %v1928_v3 = vrot.slane %v1906_v50, %v15840_v38  ;;  %v1936_v11 = vcombine.high %v1914_v30, %v1914_v30  ;;  %13624 = vst.sshfl [vmem:[#allocation2 + $0x8] sm:$0x1 pattern:$0x73625140] %v1906_v50 }
 0x8be   :  { %13625 = vst.sshfl [vmem:[#allocation2 + $0x20] sm:$0x1 pattern:$0x73625140] %v1905_v59  ;;  %v2027_v16 = vcombine.high %v2023_v31, %v2023_v31  ;;  %v2034_v15 = vrot.slane %v2023_v31, %v15840_v38 }
 0x8bf   :  { %v1935_v44 = vrot.slane %v1907_v54, %v15840_v38  ;;  %v1937_v33 = vcombine.high %v1921_v52, %v1921_v52  ;;  %v1938_v4 = vcombine.high %v1928_v3, %v1928_v3  ;;  %1950 = vst [vmem:[#allocation2 + $0x10] sm:$0x1] %v1936_v11  ;;  %13626 = vst.sshfl [vmem:[#allocation2 + $0x28] sm:$0x1 pattern:$0x73625140] %v1907_v54 }
 0x8c0   :  { %v2041_v8 = vrot.slane %v2027_v16, %v15840_v38  ;;  %v2042_v39 = vcombine.high %v2034_v15, %v2034_v15  ;;  %v2050_v21 = vrot.slane %v2034_v15, %v15840_v38  ;;  %v19295_v54 = vld [vmem:[#allocation13_spill] sm:$0xff]  ;;  %v19296_v11 = vld [vmem:[#allocation16_spill] sm:$0xff]  ;;  %v19297_v15 = vld [vmem:[#allocation15_spill] sm:$0xff] }
 0x8c1   :  { %v1939_v49 = vcombine.high %v1935_v44, %v1935_v44  ;;  %1951 = vst [vmem:[#allocation2 + $0x18] sm:$0x1] %v1938_v4  ;;  %1954 = vst [vmem:[#allocation2 + $0x30] sm:$0x1] %v1937_v33  ;;  %v19298_v33 = vld [vmem:[#allocation18_spill] sm:$0xff] }
 0x8c2   :  { %v2043_v62 = vcombine.high %v2041_v8, %v2041_v8  ;;  %v2057_v53 = vrot.slane %v2041_v8, %v15840_v38  ;;  %v2064_v34 = vrot.slane %v2042_v39, %v15840_v38  ;;  %v2072_v56 = vcombine.high %v2050_v21, %v2050_v21  ;;  %v19299_v8 = vld [vmem:[#allocation17_spill] sm:$0xff] }
 0x8c3   :  { %1955 = vst [vmem:[#allocation2 + $0x38] sm:$0x1] %v1939_v49  ;;  %v2079_v25 = vrot.slane %v2050_v21, %v15848_v46  ;;  %v19300_v21 = vld [vmem:[#allocation20_spill] sm:$0xff] }
 0x8c4   :  { %v2071_v47 = vrot.slane %v2043_v62, %v15840_v38  ;;  %v2073_v57 = vcombine.high %v2057_v53, %v2057_v53  ;;  %v2074_v20 = vcombine.high %v2064_v34, %v2064_v34  ;;  %v2083_v9 = vrot.slane %v2064_v34, %v15848_v46  ;;  %v19301_v62 = vld [vmem:[#allocation19_spill] sm:$0xff]  ;;  %v19302_v34 = vld [vmem:[#allocation22_spill] sm:$0xff] }
 0x8c5   :  { %v2087_v48 = vrot.slane %v2072_v56, %v15848_v46  ;;  %v2095_v60 = vrot.slane %v2057_v53, %v15848_v46  ;;  %v2116_v37 = vadd.f32 %v2079_v25, %v15834_v36  ;;  %v2117_v28 = vadd.f32 %v15832_v35, %v2079_v25  ;;  %v19303_v25 = vld [vmem:[#allocation21_spill] sm:$0xff] }
 0x8c6   :  { %v2075_v58 = vcombine.high %v2071_v47, %v2071_v47  ;;  %v2091_v59 = vrot.slane %v2074_v20, %v15848_v46  ;;  %v2099_v50 = vrot.slane %v2071_v47, %v15848_v46  ;;  %v2103_v30 = vrot.slane %v2073_v57, %v15848_v46  ;;  %v19304_v57 = vld [vmem:[#allocation23_spill] sm:$0xff] }
 0x8c7   :  { %v2118_v14 = vadd.f32 %v2083_v9, %v15844_v43  ;;  %v2119_v31 = vadd.f32 %v15842_v40, %v2083_v9  ;;  %v2120_v24 = vadd.f32 %v2087_v48, %v15854_v51  ;;  %v2121_v52 = vadd.f32 %v19295_v54, %v2087_v48  ;;  %v19305_v9 = vld [vmem:[#allocation24_spill] sm:$0xff] }
 0x8c8   :  { %v2107_v3 = vrot.slane %v2075_v58, %v15848_v46  ;;  %v2122_v16 = vadd.f32 %v2091_v59, %v19296_v11  ;;  %v2123_v44 = vadd.f32 %v19297_v15, %v2091_v59  ;;  %v2124_v4 = vadd.f32 %v2095_v60, %v19298_v33  ;;  %v16388_v59 = vld [vmem:[%s19216_s5] ss:$0 sm:$0xff] }
 0x8c9   :  { %v2125_v39 = vadd.f32 %v19299_v8, %v2095_v60  ;;  %v2126_v49 = vadd.f32 %v2099_v50, %v19300_v21  ;;  %v2127_v53 = vadd.f32 %v19301_v62, %v2099_v50  ;;  %v2128_v56 = vadd.f32 %v2103_v30, %v19302_v34 }
 0x8ca   :  { %v2129_v47 = vadd.f32 %v19303_v25, %v2103_v30  ;;  %15086 = vtanh.f32 %v2116_v37  ;;  %v2131_v20 = vadd.f32 %v19304_v57, %v2107_v3  ;;  %v2130_v48 = vadd.f32 %v2107_v3, %v19305_v9 }
 0x8cb   :  { %15088 = vtanh.f32 %v2117_v28 }
 0x8cc   :  { %15090 = vtanh.f32 %v2118_v14 }
 0x8cd   :  { %15092 = vtanh.f32 %v2119_v31 }
 0x8ce   :  { %15094 = vtanh.f32 %v2120_v24 }
 0x8cf   :  { %15096 = vtanh.f32 %v2121_v52 }
 0x8d0   :  { %15098 = vtanh.f32 %v2124_v4 }
 0x8d1   :  { %15100 = vtanh.f32 %v2125_v39 }
 0x8d2   :  { %15102 = vtanh.f32 %v2123_v44 }
 0x8d3   :  { %15104 = vtanh.f32 %v2122_v16 }
 0x8d4   :  { %v15087_v60 = vpop.eup %15086  ;;  %15106 = vtanh.f32 %v2127_v53 }
 0x8d5   :  { %v15089_v58 = vpop.eup %15088  ;;  %v2148_v37 = vmul.f32 %v16388_v59, %v15087_v60  ;;  %15108 = vtanh.f32 %v2126_v49 }
 0x8d6   :  { %v15091_v50 = vpop.eup %15090  ;;  %v2149_v30 = vmul.f32 %v16388_v59, %v15089_v58  ;;  %15110 = vtanh.f32 %v2129_v47 }
 0x8d7   :  { %v15093_v28 = vpop.eup %15092  ;;  %v2164_v14 = vsel %vm265_vm2, %v2148_v37, 0.0  ;;  %v2150_v3 = vmul.f32 %v16388_v59, %v15091_v50  ;;  %15112 = vtanh.f32 %v2128_v56 }
 0x8d8   :  { %v15095_v31 = vpop.eup %15094  ;;  %v2167_v24 = vsel %vm265_vm2, %v2149_v30, 0.0  ;;  %2165 = vadd.xlane.f32.xlu1 %v2164_v14  ;;  %v2151_v52 = vmul.f32 %v16388_v59, %v15093_v28  ;;  %15114 = vtanh.f32 %v2131_v20 }
 0x8d9   :  { %v15097_v4 = vpop.eup %15096  ;;  %2168 = vadd.xlane.f32.xlu0 %v2167_v24  ;;  %v2170_v16 = vsel %vm265_vm2, %v2150_v3, 0.0  ;;  %v2152_v58 = vmul.f32 %v16388_v59, %v15095_v31  ;;  %15116 = vtanh.f32 %v2130_v48 }
 0x8da   :  { %v2173_v44 = vsel %vm265_vm2, %v2151_v52, 0.0  ;;  %v2153_v39 = vmul.f32 %v16388_v59, %v15097_v4  ;;  %v15099_v60 = vpop.eup %15098 }
 0x8db   :  { %v15101_v37 = vpop.eup %15100  ;;  %v2176_v49 = vsel %vm265_vm2, %v2152_v58, 0.0  ;;  %v2156_v28 = vmul.f32 %v16388_v59, %v15099_v60 }
 0x8dc   :  { %2174 = vadd.xlane.f32.xlu1 %v2173_v44  ;;  %v2179_v50 = vsel %vm265_vm2, %v2153_v39, 0.0  ;;  %v2157_v30 = vmul.f32 %v16388_v59, %v15101_v37  ;;  %v15103_v53 = vpop.eup %15102 }
 0x8dd   :  { %2171 = vadd.xlane.f32.xlu0 %v2170_v16  ;;  %v15105_v14 = vpop.eup %15104  ;;  %v2155_v31 = vmul.f32 %v16388_v59, %v15103_v53  ;;  %v2188_v56 = vsel %vm265_vm2, %v2156_v28, 0.0 }
 0x8de   :  { %v2191_v24 = vsel %vm265_vm2, %v2157_v30, 0.0  ;;  %v15107_v47 = vpop.eup %15106  ;;  %v2154_v52 = vmul.f32 %v16388_v59, %v15105_v14 }
 0x8df   :  { %v15109_v3 = vpop.eup %15108  ;;  %v2185_v4 = vsel %vm265_vm2, %v2155_v31, 0.0  ;;  %v2159_v44 = vmul.f32 %v16388_v59, %v15107_v47 }
 0x8e0   :  { %2180 = vadd.xlane.f32.xlu1 %v2179_v50  ;;  %v15111_v39 = vpop.eup %15110  ;;  %v2182_v20 = vsel %vm265_vm2, %v2154_v52, 0.0  ;;  %v2158_v60 = vmul.f32 %v16388_v59, %v15109_v3 }
 0x8e1   :  { %2177 = vadd.xlane.f32.xlu0 %v2176_v49  ;;  %v15113_v16 = vpop.eup %15112  ;;  %v2197_v48 = vsel %vm265_vm2, %v2159_v44, 0.0  ;;  %v2161_v58 = vmul.f32 %v16388_v59, %v15111_v39 }
 0x8e2   :  { %v15115_v37 = vpop.eup %15114  ;;  %v2194_v50 = vsel %vm265_vm2, %v2158_v60, 0.0  ;;  %v2160_v30 = vmul.f32 %v16388_v59, %v15113_v16 }
 0x8e3   :  { %v15117_v53 = vpop.eup %15116  ;;  %v2203_v49 = vsel %vm265_vm2, %v2161_v58, 0.0  ;;  %v2163_v28 = vmul.f32 %v16388_v59, %v15115_v37 }
 0x8e4   :  { %2192 = vadd.xlane.f32.xlu1 %v2191_v24  ;;  %v2200_v14 = vsel %vm265_vm2, %v2160_v30, 0.0  ;;  %v2162_v24 = vmul.f32 %v16388_v59, %v15117_v53 }
 0x8e5   :  { %2189 = vadd.xlane.f32.xlu0 %v2188_v56  ;;  %v2209_v31 = vsel %vm265_vm2, %v2163_v28, 0.0 }
 0x8e6   :  { %v2206_v47 = vsel %vm265_vm2, %v2162_v24, 0.0 }
 0x8e8   :  { %2186 = vadd.xlane.f32.xlu1 %v2185_v4 }
 0x8e9   :  { %2183 = vadd.xlane.f32.xlu0 %v2182_v20 }
 0x8ec   :  { %2198 = vadd.xlane.f32.xlu1 %v2197_v48 }
 0x8ed   :  { %2195 = vadd.xlane.f32.xlu0 %v2194_v50 }
 0x8f0   :  { %2204 = vadd.xlane.f32.xlu1 %v2203_v49 }
 0x8f1   :  { %2201 = vadd.xlane.f32.xlu0 %v2200_v14 }
 0x8f4   :  { %2210 = vadd.xlane.f32.xlu1 %v2209_v31 }
 0x8f5   :  { %2207 = vadd.xlane.f32.xlu0 %v2206_v47 }
 0x965   :  { %v2166_v56 = vpop.xlane.xlu1 %2165 }
 0x966   :  { %v2169_v52 = vpop.xlane.xlu0 %2168  ;;  %v2231_v53 = vrot.slane %v2166_v56, %v15967_v45 }
 0x967   :  { %v2235_v30 = vrot.slane %v2169_v52, %v15962_v42 }
 0x969   :  { %v16422_v3 = vpop.xlane.xlu1 %2174  ;;  %v2236_v57 = vsel %vm558_vm3, %v2235_v30, %v2231_v53 }
 0x96a   :  { %v2172_v4 = vpop.xlane.xlu0 %2171  ;;  %v2244_v48 = vrot.slane %v16422_v3, %v15962_v42 }
 0x96b   :  { %v2240_v58 = vrot.slane %v2172_v4, %v15967_v45 }
 0x96d   :  { %v16424_v44 = vpop.xlane.xlu1 %2180  ;;  %v2245_v31 = vsel %vm558_vm3, %v2244_v48, %v2240_v58 }
 0x96e   :  { %v2178_v39 = vpop.xlane.xlu0 %2177  ;;  %v2253_v37 = vrot.slane %v16424_v44, %v15962_v42  ;;  %v2300_v21 = vsel %vm623_vm4, %v2245_v31, %v2236_v57 }
 0x96f   :  { %v2249_v50 = vrot.slane %v2178_v39, %v15967_v45 }
 0x971   :  { %v16426_v20 = vpop.xlane.xlu1 %2192  ;;  %v2254_v47 = vsel %vm558_vm3, %v2253_v37, %v2249_v50 }
 0x972   :  { %v16428_v60 = vpop.xlane.xlu0 %2189  ;;  %v2271_v8 = vrot.slane %v16426_v20, %v15962_v42  ;;  %v2301_v50 = vsel %vm625_vm5, %v2254_v47, %v2300_v21 }
 0x973   :  { %v2267_v48 = vrot.slane %v16428_v60, %v15967_v45 }
 0x975   :  { %v16430_v59 = vpop.xlane.xlu1 %2186 }
 0x976   :  { %v2184_v16 = vpop.xlane.xlu0 %2183  ;;  %v2262_v49 = vrot.slane %v16430_v59, %v15962_v42 }
 0x977   :  { %v2258_v28 = vrot.slane %v2184_v16, %v15967_v45 }
 0x979   :  { %v16443_v14 = vpop.xlane.xlu1 %2198  ;;  %v2263_v9 = vsel %vm558_vm3, %v2262_v49, %v2258_v28  ;;  %v2272_v28 = vsel %vm558_vm3, %v2271_v8, %v2267_v48 }
 0x97a   :  { %v16445_v24 = vpop.xlane.xlu0 %2195  ;;  %v2280_v25 = vrot.slane %v16443_v14, %v15962_v42  ;;  %v2302_v53 = vsel %vm627_vm6, %v2263_v9, %v2301_v50 }
 0x97b   :  { %v2276_v34 = vrot.slane %v16445_v24, %v15967_v45  ;;  %v2303_v47 = vsel %vm629_vm7, %v2272_v28, %v2302_v53 }
 0x97d   :  { %v16455_v62 = vpop.xlane.xlu1 %2204  ;;  %v2281_v57 = vsel %vm558_vm3, %v2280_v25, %v2276_v34 }
 0x97e   :  { %v2289_v58 = vrot.slane %v16455_v62, %v15962_v42  ;;  %v16464_v37 = vpop.xlane.xlu0 %2201  ;;  %v2304_v9 = vsel %vm631_vm8, %v2281_v57, %v2303_v47 }
 0x97f   :  { %v2285_v30 = vrot.slane %v16464_v37, %v15967_v45 }
 0x981   :  { %v16471_v49 = vpop.xlane.xlu1 %2210  ;;  %v2290_v15 = vsel %vm558_vm3, %v2289_v58, %v2285_v30 }
 0x982   :  { %v2298_v31 = vrot.slane %v16471_v49, %v15962_v42  ;;  %v16476_v33 = vpop.xlane.xlu0 %2207  ;;  %v2305_v25 = vsel %vm633_vm9, %v2290_v15, %v2304_v9 }
 0x983   :  { %v2294_v21 = vrot.slane %v16476_v33, %v15967_v45 }
 0x985   :  { %v2299_v34 = vsel %vm558_vm3, %v2298_v31, %v2294_v21 }
 0x986   :  { %v2306_v8 = vsel %vm635_vm10, %v2299_v34, %v2305_v25 }
 0x987   :  { %v2308_v48 = vsel %vm265_vm2, %v2306_v8, -inf }
 0x988   :  { %2309 = vmax.xlane.f32.xlu0 %v2308_v48 }
 0xa15   :  { %v2310_v50 = vpop.xlane.xlu0 %2309 }
 0xa16   :  { %v2315_v11 = vrot.slane %v2310_v50, %v15848_v46  ;;  %v2323_v58 = vrot.slane %v2310_v50, %v16047_v63  ;;  %v2319_v54 = vrot.slane %v2310_v50, %v16025_v27  ;;  %v2327_v57 = vrot.slane %v2310_v50, %v16061_v1 }
 0xa17   :  { %v2331_v47 = vrot.slane %v2310_v50, %v16073_v29 }
 0xa18   :  { %v2353_v30 = vsub.f32 %v2169_v52, %v2315_v11  ;;  %v2352_v53 = vsub.f32 %v2166_v56, %v2315_v11  ;;  %v2356_v31 = vsub.f32 %v2178_v39, %v2323_v58  ;;  %v2354_v21 = vsub.f32 %v2172_v4, %v2319_v54 }
 0xa19   :  { %v2358_v34 = vsub.f32 %v2184_v16, %v2327_v57  ;;  %v2355_v8 = vsub.f32 %v16422_v3, %v2319_v54  ;;  %v2335_v52 = vrot.slane %v2310_v50, %v16028_v41  ;;  %v2360_v11 = vsub.f32 %v16428_v60, %v2331_v47 }
 0xa1a   :  { %v2370_v28 = vmul.f32 1.442695, %v2353_v30  ;;  %v2368_v15 = vmul.f32 1.442695, %v2352_v53  ;;  %v2376_v9 = vmul.f32 1.442695, %v2356_v31  ;;  %v2357_v39 = vsub.f32 %v16424_v44, %v2323_v58 }
 0xa1b   :  { %v2372_v25 = vmul.f32 1.442695, %v2354_v21  ;;  %v2380_v48 = vmul.f32 1.442695, %v2358_v34  ;;  %v2374_v56 = vmul.f32 1.442695, %v2355_v8  ;;  %v2339_v4 = vrot.slane %v2310_v50, %v16031_v32 }
 0xa1c   :  { %15118 = vpow2.f32 %v2370_v28  ;;  %v2384_v16 = vmul.f32 1.442695, %v2360_v11  ;;  %v2362_v53 = vsub.f32 %v16445_v24, %v2335_v52  ;;  %v2378_v54 = vmul.f32 1.442695, %v2357_v39 }
 0xa1d   :  { %15120 = vpow2.f32 %v2368_v15  ;;  %v2359_v3 = vsub.f32 %v16430_v59, %v2327_v57  ;;  %v2343_v60 = vrot.slane %v2310_v50, %v16039_v61  ;;  %v2364_v44 = vsub.f32 %v16464_v37, %v2339_v4 }
 0xa1e   :  { %15122 = vpow2.f32 %v2376_v9  ;;  %v2388_v28 = vmul.f32 1.442695, %v2362_v53  ;;  %v2361_v24 = vsub.f32 %v16426_v20, %v2331_v47  ;;  %v2363_v37 = vsub.f32 %v16443_v14, %v2335_v52 }
 0xa1f   :  { %15124 = vpow2.f32 %v2372_v25  ;;  %v2382_v15 = vmul.f32 1.442695, %v2359_v3  ;;  %v2392_v59 = vmul.f32 1.442695, %v2364_v44  ;;  %v2366_v50 = vsub.f32 %v16476_v33, %v2343_v60 }
 0xa20   :  { %15126 = vpow2.f32 %v2380_v48  ;;  %v2386_v9 = vmul.f32 1.442695, %v2361_v24  ;;  %v2365_v33 = vsub.f32 %v16455_v62, %v2339_v4  ;;  %v2390_v25 = vmul.f32 1.442695, %v2363_v37 }
 0xa21   :  { %15128 = vpow2.f32 %v2374_v56  ;;  %v2396_v20 = vmul.f32 1.442695, %v2366_v50  ;;  %v2367_v52 = vsub.f32 %v16471_v49, %v2343_v60 }
 0xa22   :  { %15130 = vpow2.f32 %v2384_v16  ;;  %v2394_v48 = vmul.f32 1.442695, %v2365_v33 }
 0xa23   :  { %15132 = vpow2.f32 %v2378_v54  ;;  %v2398_v56 = vmul.f32 1.442695, %v2367_v52 }
 0xa24   :  { %15134 = vpow2.f32 %v2388_v28 }
 0xa25   :  { %15136 = vpow2.f32 %v2382_v15 }
 0xa26   :  { %v16496_v30 = vpop.eup %15118  ;;  %15138 = vpow2.f32 %v2392_v59 }
 0xa27   :  { %2420 = vperm.xlu0 %15011, %v16496_v30   ;;  %v16504_v58 = vpop.eup %15120  ;;  %15140 = vpow2.f32 %v2386_v9 }
 0xa28   :  { %v16506_v31 = vpop.eup %15122  ;;  %2417 = vperm.xlu1 %15010, %v16504_v58   ;;  %15142 = vpow2.f32 %v2396_v20 }
 0xa29   :  { %v16512_v57 = vpop.eup %15124  ;;  %15144 = vpow2.f32 %v2390_v25 }
 0xa2a   :  { %v16514_v21 = vpop.eup %15126  ;;  %15146 = vpow2.f32 %v2394_v48 }
 0xa2b   :  { %2429 = vperm.xlu0 %15011, %v16506_v31   ;;  %v16519_v47 = vpop.eup %15128  ;;  %15148 = vpow2.f32 %v2398_v56 }
 0xa2c   :  { %2423 = vperm.xlu1 %15010, %v16512_v57   ;;  %v16521_v34 = vpop.eup %15130 }
 0xa2d   :  { %v16526_v14 = vpop.eup %15132 }
 0xa2e   :  { %v16528_v8 = vpop.eup %15134 }
 0xa2f   :  { %2435 = vperm.xlu0 %15011, %v16514_v21   ;;  %v16533_v11 = vpop.eup %15136 }
 0xa30   :  { %2426 = vperm.xlu1 %15010, %v16519_v47   ;;  %v16535_v62 = vpop.eup %15138 }
 0xa31   :  { %v16539_v39 = vpop.eup %15140 }
 0xa32   :  { %v16541_v4 = vpop.eup %15142 }
 0xa33   :  { %2441 = vperm.xlu0 %15011, %v16521_v34   ;;  %v16545_v49 = vpop.eup %15144 }
 0xa34   :  { %2432 = vperm.xlu1 %15010, %v16526_v14   ;;  %v16548_v16 = vpop.eup %15146 }
 0xa35   :  { %v15149_v53 = vpop.eup %15148 }
 0xa37   :  { %2447 = vperm.xlu0 %15011, %v16528_v8  }
 0xa38   :  { %2438 = vperm.xlu1 %15010, %v16533_v11  }
 0xa3b   :  { %2453 = vperm.xlu0 %15011, %v16535_v62  }
 0xa3c   :  { %2444 = vperm.xlu1 %15010, %v16539_v39  }
 0xa3f   :  { %2459 = vperm.xlu0 %15011, %v16541_v4  }
 0xa40   :  { %2450 = vperm.xlu1 %15010, %v16545_v49  }
 0xa44   :  { %2456 = vperm.xlu1 %15010, %v16548_v16  }
 0xa48   :  { %2462 = vperm.xlu1 %15010, %v15149_v53  }
 0xaa6   :  { %v2421_v54 = vpop.permute.xlu0 %2420 }
 0xaa7   :  { %v2418_v3 = vpop.permute.xlu1 %2417  ;;  %v2471_v48 = vrot.slane %v2421_v54, %v15962_v42 }
 0xaa8   :  { %v2467_v56 = vrot.slane %v2418_v3, %v15967_v45 }
 0xaaa   :  { %v2430_v60 = vpop.permute.xlu0 %2429  ;;  %v2472_v3 = vsel %vm558_vm3, %v2471_v48, %v2467_v56 }
 0xaab   :  { %v2424_v28 = vpop.permute.xlu1 %2423  ;;  %v2485_v43 = vrot.slane %v2430_v60, %v15967_v45 }
 0xaac   :  { %v2476_v51 = vrot.slane %v2424_v28, %v15967_v45 }
 0xaae   :  { %v2436_v44 = vpop.permute.xlu0 %2435 }
 0xaaf   :  { %v2427_v24 = vpop.permute.xlu1 %2426  ;;  %v2494_v36 = vrot.slane %v2436_v44, %v15967_v45 }
 0xab0   :  { %v2480_v20 = vrot.slane %v2427_v24, %v15962_v42 }
 0xab2   :  { %v2442_v15 = vpop.permute.xlu0 %2441  ;;  %v2481_v24 = vsel %vm558_vm3, %v2480_v20, %v2476_v51 }
 0xab3   :  { %v2433_v59 = vpop.permute.xlu1 %2432  ;;  %v2503_v38 = vrot.slane %v2442_v15, %v15967_v45 }
 0xab4   :  { %v2489_v33 = vrot.slane %v2433_v59, %v15962_v42 }
 0xab6   :  { %v2448_v37 = vpop.permute.xlu0 %2447  ;;  %v2490_v54 = vsel %vm558_vm3, %v2489_v33, %v2485_v43 }
 0xab7   :  { %v2439_v50 = vpop.permute.xlu1 %2438  ;;  %v2512_v28 = vrot.slane %v2448_v37, %v15967_v45 }
 0xab8   :  { %v2498_v40 = vrot.slane %v2439_v50, %v15962_v42 }
 0xaba   :  { %v2454_v25 = vpop.permute.xlu0 %2453  ;;  %v2499_v50 = vsel %vm558_vm3, %v2498_v40, %v2494_v36 }
 0xabb   :  { %v2445_v9 = vpop.permute.xlu1 %2444  ;;  %v2521_v44 = vrot.slane %v2454_v25, %v15967_v45 }
 0xabc   :  { %v2507_v35 = vrot.slane %v2445_v9, %v15962_v42  ;;  %v2536_v9 = vsel %vm623_vm4, %v2481_v24, %v2472_v3 }
 0xabd   :  { %v2537_v15 = vsel %vm625_vm5, %v2490_v54, %v2536_v9 }
 0xabe   :  { %v2508_v51 = vsel %vm558_vm3, %v2507_v35, %v2503_v38  ;;  %v2460_v20 = vpop.permute.xlu0 %2459  ;;  %v2538_v33 = vsel %vm627_vm6, %v2499_v50, %v2537_v15 }
 0xabf   :  { %v2451_v52 = vpop.permute.xlu1 %2450  ;;  %v2530_v36 = vrot.slane %v2460_v20, %v15967_v45  ;;  %v2539_v40 = vsel %vm629_vm7, %v2508_v51, %v2538_v33 }
 0xac0   :  { %v2516_v59 = vrot.slane %v2451_v52, %v15962_v42 }
 0xac2   :  { %v2517_v43 = vsel %vm558_vm3, %v2516_v59, %v2512_v28 }
 0xac3   :  { %v2457_v12 = vpop.permute.xlu1 %2456  ;;  %v2540_v25 = vsel %vm631_vm8, %v2517_v43, %v2539_v40  ;;  %v3324_v40 = vld [vmem:[%s19212_s1 + $0x39] sm:$0x1] }
 0xac4   :  { %v2525_v60 = vrot.slane %v2457_v12, %v15962_v42 }
 0xac6   :  { %v2526_v37 = vsel %vm558_vm3, %v2525_v60, %v2521_v44 }
 0xac7   :  { %v2463_v52 = vpop.permute.xlu1 %2462  ;;  %v2541_v38 = vsel %vm633_vm9, %v2526_v37, %v2540_v25  ;;  %v3323_v37 = vld [vmem:[%s19212_s1 + $0x31] sm:$0x1] }
 0xac8   :  { %v2534_v12 = vrot.slane %v2463_v52, %v15962_v42 }
 0xaca   :  { %v2535_v35 = vsel %vm558_vm3, %v2534_v12, %v2530_v36 }
 0xacb   :  { %v2542_v48 = vsel %vm635_vm10, %v2535_v35, %v2541_v38 }
 0xacc   :  { %v2544_v56 = vsel %vm265_vm2, %v2542_v48, 0.0 }
 0xacd   :  { %2545 = vadd.xlane.f32.xlu0 %v2544_v56 }
 0xb5a   :  { %v2546_v24 = vpop.xlane.xlu0 %2545 }
 0xb5b   :  { %15150 = vrcp.f32 %v2546_v24  ;;  %v3366_v24 = vrot.slane %v3323_v37, 2 }
 0xb65   :  { %v15151_v59 = vpop.eup %15150 }
 0xb66   :  { %v2568_v54 = vrot.slane %v15151_v59, %v16073_v29  ;;  %v2552_v3 = vrot.slane %v15151_v59, %v15848_v46  ;;  %v2580_v60 = vrot.slane %v15151_v59, %v16039_v61  ;;  %v2556_v51 = vrot.slane %v15151_v59, %v16025_v27 }
 0xb68   :  { %v2597_v28 = vmul.f32 %v16521_v34, %v2568_v54  ;;  %v2589_v50 = vmul.f32 %v16504_v58, %v2552_v3  ;;  %v2604_v9 = vmul.f32 %v15149_v53, %v2580_v60  ;;  %v2590_v44 = vmul.f32 %v16496_v30, %v2552_v3 }
 0xb69   :  { %v2591_v20 = vmul.f32 %v16512_v57, %v2556_v51  ;;  %v2592_v34 = vmul.f32 %v16519_v47, %v2556_v51  ;;  %v2560_v58 = vrot.slane %v15151_v59, %v16047_v63  ;;  %v2564_v53 = vrot.slane %v15151_v59, %v16061_v1 }
 0xb6a   :  { %2964 = vperm.xlu0 %15011, %v2597_v28   ;;  %2608 = vperm.xlu1 %15010, %v2589_v50   ;;  %v2572_v47 = vrot.slane %v15151_v59, %v16028_v41 }
 0xb6b   :  { %v2593_v15 = vmul.f32 %v16506_v31, %v2560_v58  ;;  %v2594_v30 = vmul.f32 %v16526_v14, %v2560_v58  ;;  %v2595_v43 = vmul.f32 %v16514_v21, %v2564_v53  ;;  %v2596_v57 = vmul.f32 %v16533_v11, %v2564_v53 }
 0xb6c   :  { %v2599_v33 = vmul.f32 %v16528_v8, %v2572_v47  ;;  %v2600_v31 = vmul.f32 %v16545_v49, %v2572_v47  ;;  %v2576_v14 = vrot.slane %v15151_v59, %v16031_v32  ;;  %v2603_v11 = vmul.f32 %v16541_v4, %v2580_v60  ;;  %v3318_v8 = vld [vmem:[%s19212_s1 + $0x9] sm:$0x1]  ;;  %v3319_v49 = vld [vmem:[%s19212_s1 + $0x11] sm:$0x1]  ;;  %v3321_v4 = vld [vmem:[%s19212_s1 + $0x21] sm:$0x1] }
 0xb6d   :  { %v3356_v36 = vrot.slane %v3318_v8, 7  ;;  %v3358_v12 = vrot.slane %v3319_v49, 6  ;;  %v3362_v35 = vrot.slane %v3321_v4, 4 }
 0xb6e   :  { %3234 = vperm.xlu0 %15011, %v2604_v9   ;;  %2611 = vperm.xlu1 %15010, %v2590_v44   ;;  %v2601_v52 = vmul.f32 %v16535_v62, %v2576_v14  ;;  %v2602_v21 = vmul.f32 %v16548_v16, %v2576_v14  ;;  %v3320_v62 = vld [vmem:[%s19212_s1 + $0x19] sm:$0x1]  ;;  %v3322_v16 = vld [vmem:[%s19212_s1 + $0x29] sm:$0x1] }
 0xb6f   :  { %v3360_v25 = vrot.slane %v3320_v62, 5  ;;  %v3364_v48 = vrot.slane %v3322_v16, 3 }
 0xb72   :  { %3373 = vrot.lane.b32.xlu0 %v16329_v19, %s15662_s13  ;;  %2697 = vperm.xlu1 %15010, %v2591_v20   ;;  %v2598_v19 = vmul.f32 %v16539_v39, %v2568_v54  ;;  %v3317_v39 = vld [vmem:[%s19212_s1 + $0x1] sm:$0x1]  ;;  %v3368_v54 = vrot.slane %v3324_v40, 1 }
 0xb73   :  { %v3357_v38 = vsel %vm623_vm4, %v3356_v36, %v3317_v39 }
 0xb74   :  { %v3359_v56 = vsel %vm625_vm5, %v3358_v12, %v3357_v38  ;;  %v19306_v38 = vld [vmem:[#allocation7_spill] sm:$0xff] }
 0xb75   :  { %v3361_v59 = vsel %vm627_vm6, %v3360_v25, %v3359_v56 }
 0xb76   :  { %2700 = vperm.xlu1 %15010, %v2592_v34   ;;  %v3363_v3 = vsel %vm629_vm7, %v3362_v35, %v3361_v59 }
 0xb77   :  { %v3365_v28 = vsel %vm631_vm8, %v3364_v48, %v3363_v3 }
 0xb78   :  { %v3367_v50 = vsel %vm633_vm9, %v3366_v24, %v3365_v28 }
 0xb79   :  { %v3369_v60 = vsel %vm635_vm10, %v3368_v54, %v3367_v50 }
 0xb7a   :  { %2786 = vperm.xlu1 %15010, %v2593_v15  }
 0xb7e   :  { %2789 = vperm.xlu1 %15010, %v2594_v30  }
 0xb82   :  { %2875 = vperm.xlu1 %15010, %v2595_v43  }
 0xb86   :  { %2878 = vperm.xlu1 %15010, %v2596_v57  }
 0xb8a   :  { %2967 = vperm.xlu1 %15010, %v2598_v19  }
 0xb8e   :  { %3053 = vperm.xlu1 %15010, %v2599_v33  }
 0xb92   :  { %3056 = vperm.xlu1 %15010, %v2600_v31  }
 0xb96   :  { %3142 = vperm.xlu1 %15010, %v2601_v52  }
 0xb9a   :  { %3145 = vperm.xlu1 %15010, %v2602_v21  }
 0xb9e   :  { %3231 = vperm.xlu1 %15010, %v2603_v11  }
 0xba2   :  { %3370 = vrot.lane.b32.xlu1 %v3369_v60, %s15661_s25 }
 0xbe9   :  { %v2609_v9 = vpop.permute.xlu1 %2608  ;;  %v2965_v39 = vpop.permute.xlu0 %2964 }
 0xbea   :  { %v2616_v51 = vrot.slane %v2609_v9, %v15967_v45  ;;  %v2972_v62 = vrot.slane %v2965_v39, %v15967_v45 }
 0xbed   :  { %v2612_v44 = vpop.permute.xlu1 %2611  ;;  %v3235_v59 = vpop.permute.xlu0 %3234 }
 0xbee   :  { %v2620_v20 = vrot.slane %v2612_v44, %v15962_v42  ;;  %v3243_v28 = vrot.slane %v3235_v59, %v15962_v42 }
 0xbf0   :  { %v2621_v34 = vsel %vm558_vm3, %v2620_v20, %v2616_v51 }
 0xbf1   :  { %14155 = vmatmul.mubr.msk.f32.vlgmr.msra.gmra.mrb[18].mxu1 %vm265_vm2, %v2621_v34  ;;  %v2698_v58 = vpop.permute.xlu1 %2697 }
 0xbf2   :  { %14757 = vmatpush3.bf16.msra.mxu1 %v15759_v13  ;;  %14168 = vmatprep.mubr.msk.f32.mxu1 %vm15657_vm1, %v19293_v55  ;;  %v2705_v30 = vrot.slane %v2698_v58, %v15967_v45 }
 0xbf3   :  { %14761 = vmatprep.subr.bf16.mxu1 %v19294_v0 }
 0xbf5   :  { %v2701_v15 = vpop.permute.xlu1 %2700 }
 0xbf6   :  { %v2709_v53 = vrot.slane %v2701_v15, %v15962_v42 }
 0xbf8   :  { %v2710_v43 = vsel %vm558_vm3, %v2709_v53, %v2705_v30 }
 0xbf9   :  { %14162 = vmatmul.mubr.msk.f32.vlgmr.msra.gmra.mrb[22].mxu0 %vm265_vm2, %v2710_v43  ;;  %v2787_v57 = vpop.permute.xlu1 %2786 }
 0xbfa   :  { %14760 = vmatpush3.bf16.msra.mxu0 %v15774_v18  ;;  %14175 = vmatprep.mubr.msk.f32.mxu0 %vm15657_vm1, %v19293_v55  ;;  %v2794_v47 = vrot.slane %v2787_v57, %v15967_v45 }
 0xbfb   :  { %14764 = vmatprep.subr.bf16.mxu0 %v19294_v0 }
 0xbfd   :  { %v2790_v19 = vpop.permute.xlu1 %2789 }
 0xbfe   :  { %v2798_v33 = vrot.slane %v2790_v19, %v15962_v42 }
 0xc00   :  { %v2799_v31 = vsel %vm558_vm3, %v2798_v33, %v2794_v47 }
 0xc01   :  { %14169 = vmatmul.mubr.msk.f32.vlgmr.msra.gmra.mrb[20].mxu1 %vm265_vm2, %v2799_v31  ;;  %v2876_v14 = vpop.permute.xlu1 %2875 }
 0xc02   :  { %14763 = vmatpush3.bf16.msra.mxu1 %v15785_v22  ;;  %14182 = vmatprep.mubr.msk.f32.mxu1 %vm15657_vm1, %v19293_v55  ;;  %v2883_v21 = vrot.slane %v2876_v14, %v15967_v45 }
 0xc03   :  { %14767 = vmatprep.subr.bf16.mxu1 %v19294_v0 }
 0xc05   :  { %v2879_v52 = vpop.permute.xlu1 %2878 }
 0xc06   :  { %v2887_v11 = vrot.slane %v2879_v52, %v15962_v42 }
 0xc08   :  { %v2888_v8 = vsel %vm558_vm3, %v2887_v11, %v2883_v21 }
 0xc09   :  { %14176 = vmatmul.mubr.msk.f32.vlgmr.msra.gmra.mrb[24].mxu0 %vm265_vm2, %v2888_v8  ;;  %v2968_v49 = vpop.permute.xlu1 %2967 }
 0xc0a   :  { %v2976_v4 = vrot.slane %v2968_v49, %v15962_v42  ;;  %14766 = vmatpush3.bf16.msra.mxu0 %v15787_v23  ;;  %14189 = vmatprep.mubr.msk.f32.mxu0 %vm15657_vm1, %v19293_v55 }
 0xc0b   :  { %14770 = vmatprep.subr.bf16.mxu0 %v19294_v0 }
 0xc0c   :  { %v2977_v16 = vsel %vm558_vm3, %v2976_v4, %v2972_v62 }
 0xc0d   :  { %14183 = vmatmul.mubr.msk.f32.vlgmr.msra.gmra.mrb[22].mxu1 %vm265_vm2, %v2977_v16  ;;  %v3054_v37 = vpop.permute.xlu1 %3053 }
 0xc0e   :  { %14769 = vmatpush3.bf16.msra.mxu1 %v15797_v26  ;;  %14196 = vmatprep.mubr.msk.f32.mxu1 %vm15657_vm1, %v19293_v55  ;;  %v3061_v12 = vrot.slane %v3054_v37, %v15967_v45 }
 0xc0f   :  { %14773 = vmatprep.subr.bf16.mxu1 %v19294_v0 }
 0xc11   :  { %v3057_v36 = vpop.permute.xlu1 %3056 }
 0xc12   :  { %v3065_v40 = vrot.slane %v3057_v36, %v15962_v42 }
 0xc14   :  { %v3066_v25 = vsel %vm558_vm3, %v3065_v40, %v3061_v12 }
 0xc15   :  { %14190 = vmatmul.mubr.msk.f32.vlgmr.msra.gmra.mrb[26].mxu0 %vm265_vm2, %v3066_v25  ;;  %v3143_v35 = vpop.permute.xlu1 %3142 }
 0xc16   :  { %14772 = vmatpush3.bf16.msra.mxu0 %v19306_v38  ;;  %14203 = vmatprep.mubr.msk.f32.mxu0 %vm15657_vm1, %v19293_v55  ;;  %v3150_v56 = vrot.slane %v3143_v35, %v15967_v45 }
 0xc17   :  { %14779 = vmatprep.subr.bf16.mxu0 %v19294_v0 }
 0xc19   :  { %v3146_v48 = vpop.permute.xlu1 %3145 }
 0xc1a   :  { %v3154_v24 = vrot.slane %v3146_v48, %v15962_v42  ;;  %v3374_v48 = vpop.permute.xlu0 %3373 }
 0xc1c   :  { %v3155_v54 = vsel %vm558_vm3, %v3154_v24, %v3150_v56 }
 0xc1d   :  { %14197 = vmatmul.mubr.msk.f32.vlgmr.msra.gmra.mrb[24].mxu1 %vm265_vm2, %v3155_v54  ;;  %v3232_v3 = vpop.permute.xlu1 %3231  ;;  %v15606_v54 = vld [vmem:[%s19218_s7] ss:$0 sm:$0xff] }
 0xc1e   :  { %v3239_v50 = vrot.slane %v3232_v3, %v15967_v45  ;;  %14775 = vmatpush3.bf16.msra.mxu1 %v16282_v10  ;;  %14214 = vmatprep.mubr.msk.f32.mxu1 %vm15657_vm1, %v19293_v55 }
 0xc1f   :  { %14776 = vmatprep.subr.bf16.mxu1 %v19294_v0 }
 0xc20   :  { %v3244_v60 = vsel %vm558_vm3, %v3243_v28, %v3239_v50 }
 0xc21   :  { %14204 = vmatmul.mubr.msk.f32.vlgmr.msra.gmra.mrb[28].mxu0 %vm265_vm2, %v3244_v60  ;;  %v3371_v25 = vpop.permute.xlu1 %3370 }
 0xc22   :  { %14778 = vmatpush3.bf16.msra.mxu1 %v16292_v5  ;;  %14781 = vmatpush3.bf16.msra.mxu0 %v16324_v6 }
 0xc23   :  { %14221 = vmatprep.mubr.msk.f32.mxu0 %vm15657_vm1, %v19293_v55  ;;  %14782 = vmatprep.subr.bf16.mxu0 %v19294_v0 }
 0xc24   :  { %14785 = vmatprep.subr.bf16.mxu1 %v19294_v0 }
 0xcc4   :  { %v2690_v9 = vpop.f32.mrb[18].mxu1 }
 0xcc5   :  { %v14156_v44 = vpop.f32.mrb[19].mxu1 }
 0xccc   :  { %v2779_v51 = vpop.f32.mrb[22].mxu0 }
 0xccd   :  { %v3333_v20 = vrot.slane %v2779_v51, 7  ;;  %v14163_v34 = vpop.f32.mrb[23].mxu0 }
 0xccf   :  { %v3334_v58 = vsel %vm623_vm4, %v3333_v20, %v2690_v9 }
 0xcd4   :  { %v2868_v15 = vpop.f32.mrb[20].mxu1 }
 0xcd5   :  { %v3335_v30 = vrot.slane %v2868_v15, 6  ;;  %v14170_v53 = vpop.f32.mrb[21].mxu1 }
 0xcd7   :  { %v3336_v43 = vsel %vm625_vm5, %v3335_v30, %v3334_v58 }
 0xcdc   :  { %v2957_v57 = vpop.f32.mrb[24].mxu0 }
 0xcdd   :  { %v3337_v19 = vrot.slane %v2957_v57, 5  ;;  %v14177_v47 = vpop.f32.mrb[25].mxu0 }
 0xcdf   :  { %v3338_v33 = vsel %vm627_vm6, %v3337_v19, %v3336_v43 }
 0xce0   :  { %v3046_v31 = vpop.f32.mrb[22].mxu1 }
 0xce1   :  { %v3339_v14 = vrot.slane %v3046_v31, 4  ;;  %v14184_v52 = vpop.f32.mrb[23].mxu1 }
 0xce3   :  { %v3340_v21 = vsel %vm629_vm7, %v3339_v14, %v3338_v33  ;;  %v15607_v33 = vld [vmem:[%s19220_s9] ss:$0 sm:$0xff] }
 0xce8   :  { %v3135_v11 = vpop.f32.mrb[26].mxu0 }
 0xce9   :  { %v3341_v39 = vrot.slane %v3135_v11, 3  ;;  %v14191_v8 = vpop.f32.mrb[27].mxu0 }
 0xceb   :  { %v3342_v49 = vsel %vm631_vm8, %v3341_v39, %v3340_v21  ;;  %v19308_v21 = vld [vmem:[#allocation10_spill] sm:$0xff] }
 0xcf0   :  { %v3224_v62 = vpop.f32.mrb[24].mxu1 }
 0xcf1   :  { %v3343_v4 = vrot.slane %v3224_v62, 2  ;;  %v14198_v16 = vpop.f32.mrb[25].mxu1 }
 0xcf3   :  { %v3344_v37 = vsel %vm633_vm9, %v3343_v4, %v3342_v49  ;;  %v15608_v4 = vld [vmem:[%s19215_s4] ss:$0 sm:$0xff] }
 0xcf4   :  { %v3313_v36 = vpop.f32.mrb[28].mxu0 }
 0xcf5   :  { %v3345_v12 = vrot.slane %v3313_v36, 1  ;;  %v14205_v40 = vpop.f32.mrb[29].mxu0 }
 0xcf7   :  { %v3346_v35 = vsel %vm635_vm10, %v3345_v12, %v3344_v37 }
 0xcf8   :  { %v3376_v56 = vsel %vm53_vm0, %v3346_v35, %v3371_v25 }
 0xcf9   :  { %v3377_v24 = vsel %vm265_vm2, %v3376_v56, %v3374_v48 }
 0xcfa   :  { %14215 = vmatmul.mubr.msk.f32.vlgmr.msra.gmra.mrb[26].mxu1 %vm1711_vm11, %v3377_v24 }
 0xcfb   :  { %14787 = vmatpush3.bf16.msra.mxu1 %v15770_v17  ;;  %14235 = vmatprep.mubr.msk.f32.mxu1 %vm15657_vm1, %v19293_v55 }
 0xcfc   :  { %14791 = vmatprep.subr.bf16.mxu1 %v19294_v0 }
 0xdcd   :  { %v3447_v59 = vpop.f32.mrb[26].mxu1 }
 0xdce   :  { %v3448_v3 = vadd.f32 %v15606_v54, %v3447_v59  ;;  %v14216_v28 = vpop.f32.mrb[27].mxu1 }
 0xdd0   :  { %15152 = vtanh.f32 %v3448_v3  ;;  %v13637_v60 = vmul.f32 -1.442695, %v3448_v3 }
 0xdd2   :  { %15154 = vpow2.f32 %v13637_v60 }
 0xdda   :  { %v15153_v50 = vpop.eup %15152 }
 0xddb   :  { %3460 = vrot.lane.b32.xlu1 %v15153_v50, %s15662_s13 }
 0xddc   :  { %v15155_v9 = vpop.eup %15154 }
 0xddd   :  { %v3454_v44 = vadd.f32 1.0, %v15155_v9 }
 0xddf   :  { %15156 = vrcp.f32 %v3454_v44 }
 0xde9   :  { %v15157_v51 = vpop.eup %15156 }
 0xdea   :  { %v3458_v58 = vmul.f32 %v15157_v51, %v16315_v2  ;;  %v19307_v2 = vld [vmem:[#allocation6_spill] sm:$0xff] }
 0xe4d   :  { %v3461_v20 = vpop.permute.xlu1 %3460 }
 0xe4e   :  { %v3463_v34 = vmul.f32 %v15157_v51, %v3461_v20 }
 0xe50   :  { %3465 = vrot.lane.b32.xlu0 %v3463_v34, %s15663_s14 }
 0xec2   :  { %v3466_v15 = vpop.permute.xlu0 %3465 }
 0xec3   :  { %v16726_v30 = vadd.f32 %v3466_v15, %v3458_v58 }
 0xec5   :  { %15158 = vtanh.f32 %v16726_v30 }
 0xecf   :  { %v15159_v53 = vpop.eup %15158 }
 0xed0   :  { %3471 = vrot.lane.b32.xlu1 %v15159_v53, %s15664_s19 }
 0xf42   :  { %v3472_v43 = vpop.permute.xlu1 %3471 }
 0xf43   :  { %v16730_v57 = vmul.f32 %v15157_v51, %v3472_v43 }
 0xf45   :  { %3476 = vrot.lane.b32.xlu0 %v16730_v57, %s15665_s20 }
 0xfb7   :  { %v3477_v19 = vpop.permute.xlu0 %3476 }
 0xfb8   :  { %14222 = vmatmul.mubr.msk.f32.vlgmr.msra.gmra.mrb[30].mxu0 %vm265_vm2, %v3477_v19 }
 0xfb9   :  { %14784 = vmatpush3.bf16.msra.mxu0 %v15743_v7  ;;  %14228 = vmatprep.mubr.msk.f32.mxu0 %vm15657_vm1, %v19293_v55 }
 0xfba   :  { %14788 = vmatprep.subr.bf16.mxu0 %v19294_v0 }
 0xfbc   :  { %14229 = vmatmul.mubr.msk.f32.vlgmr.msra.gmra.mrb[32].mxu0 %vm265_vm2, %v3477_v19 }
 0xfbd   :  { %14790 = vmatpush3.bf16.msra.mxu0 %v19307_v2  ;;  %14242 = vmatprep.mubr.msk.f32.mxu0 %vm15657_vm1, %v19293_v55 }
 0xfbe   :  { %14794 = vmatprep.subr.bf16.mxu0 %v19294_v0 }
0x108b   :  { %v3546_v47 = vpop.f32.mrb[30].mxu0 }
0x108c   :  { %v3547_v31 = vadd.f32 %v15607_v33, %v3546_v47  ;;  %v14223_v14 = vpop.f32.mrb[31].mxu0  ;;  %v19309_v47 = vld [vmem:[#allocation9_spill] sm:$0xff] }
0x108e   :  { %v3551_v52 = vcombine.high %v3547_v31, %v3547_v31  ;;  %v3558_v11 = vrot.slane %v3547_v31, %v19308_v21  ;;  %v19310_v31 = vld [vmem:[#allocation8_spill] sm:$0xff] }
0x108f   :  { %v3682_v39 = vpop.f32.mrb[32].mxu0 }
0x1090   :  { %v3565_v8 = vrot.slane %v3551_v52, %v19308_v21  ;;  %v3566_v49 = vcombine.high %v3558_v11, %v3558_v11  ;;  %v3574_v62 = vrot.slane %v3558_v11, %v19308_v21  ;;  %13639 = vst.sshfl [vmem:[#allocation2 + $0x1] sm:$0x1 pattern:$0x73625140] %v3558_v11  ;;  %v3683_v16 = vadd.f32 %v15608_v4, %v3682_v39  ;;  %v14230_v37 = vpop.f32.mrb[33].mxu0  ;;  %v19312_v4 = vld [vmem:[#allocation11_spill] sm:$0xff] }
0x1091   :  { %v19313_v37 = vld [vmem:[#allocation14_spill] sm:$0xff] }
0x1092   :  { %v3567_v36 = vcombine.high %v3565_v8, %v3565_v8  ;;  %v3581_v12 = vrot.slane %v3565_v8, %v19308_v21  ;;  %v3588_v40 = vrot.slane %v3566_v49, %v19308_v21  ;;  %v3596_v25 = vcombine.high %v3574_v62, %v3574_v62  ;;  %13640 = vst.sshfl [vmem:[#allocation2 + $0x9] sm:$0x1 pattern:$0x73625140] %v3566_v49  ;;  %v19311_v49 = vld [vmem:[#allocation12_spill] sm:$0xff] }
0x1093   :  { %13641 = vst.sshfl [vmem:[#allocation2 + $0x21] sm:$0x1 pattern:$0x73625140] %v3565_v8  ;;  %v3687_v35 = vcombine.high %v3683_v16, %v3683_v16  ;;  %v3694_v48 = vrot.slane %v3683_v16, %v19308_v21 }
0x1094   :  { %v3595_v56 = vrot.slane %v3567_v36, %v19308_v21  ;;  %v3597_v24 = vcombine.high %v3581_v12, %v3581_v12  ;;  %v3598_v59 = vcombine.high %v3588_v40, %v3588_v40  ;;  %3610 = vst [vmem:[#allocation2 + $0x11] sm:$0x1] %v3596_v25  ;;  %13642 = vst.sshfl [vmem:[#allocation2 + $0x29] sm:$0x1 pattern:$0x73625140] %v3567_v36 }
0x1095   :  { %v3701_v54 = vrot.slane %v3687_v35, %v19308_v21  ;;  %v3702_v3 = vcombine.high %v3694_v48, %v3694_v48  ;;  %v3710_v28 = vrot.slane %v3694_v48, %v19308_v21  ;;  %v19314_v12 = vld [vmem:[#allocation13_spill] sm:$0xff]  ;;  %v19315_v35 = vld [vmem:[#allocation16_spill] sm:$0xff] }
0x1096   :  { %v3599_v50 = vcombine.high %v3595_v56, %v3595_v56  ;;  %3611 = vst [vmem:[#allocation2 + $0x19] sm:$0x1] %v3598_v59  ;;  %3614 = vst [vmem:[#allocation2 + $0x31] sm:$0x1] %v3597_v24  ;;  %v19316_v56 = vld [vmem:[#allocation15_spill] sm:$0xff]  ;;  %v19317_v59 = vld [vmem:[#allocation18_spill] sm:$0xff] }
0x1097   :  { %v3703_v60 = vcombine.high %v3701_v54, %v3701_v54  ;;  %v3717_v9 = vrot.slane %v3701_v54, %v19308_v21  ;;  %v3724_v44 = vrot.slane %v3702_v3, %v19308_v21  ;;  %v3732_v51 = vcombine.high %v3710_v28, %v3710_v28  ;;  %v19318_v3 = vld [vmem:[#allocation17_spill] sm:$0xff] }
0x1098   :  { %3615 = vst [vmem:[#allocation2 + $0x39] sm:$0x1] %v3599_v50  ;;  %v3739_v20 = vrot.slane %v3710_v28, %v15848_v46  ;;  %v19319_v50 = vld [vmem:[#allocation20_spill] sm:$0xff] }
0x1099   :  { %v3731_v34 = vrot.slane %v3703_v60, %v19308_v21  ;;  %v3733_v58 = vcombine.high %v3717_v9, %v3717_v9  ;;  %v3734_v15 = vcombine.high %v3724_v44, %v3724_v44  ;;  %v3743_v53 = vrot.slane %v3724_v44, %v15848_v46 }
0x109a   :  { %v3747_v43 = vrot.slane %v3732_v51, %v15848_v46  ;;  %v3755_v19 = vrot.slane %v3717_v9, %v15848_v46  ;;  %v3776_v33 = vadd.f32 %v3739_v20, %v19309_v47  ;;  %v3777_v14 = vadd.f32 %v19310_v31, %v3739_v20  ;;  %v19320_v9 = vld [vmem:[#allocation19_spill] sm:$0xff]  ;;  %v19321_v51 = vld [vmem:[#allocation22_spill] sm:$0xff] }
0x109b   :  { %v3735_v52 = vcombine.high %v3731_v34, %v3731_v34  ;;  %v3751_v11 = vrot.slane %v3734_v15, %v15848_v46  ;;  %v3759_v39 = vrot.slane %v3731_v34, %v15848_v46  ;;  %v3763_v8 = vrot.slane %v3733_v58, %v15848_v46  ;;  %v19322_v34 = vld [vmem:[#allocation21_spill] sm:$0xff]  ;;  %v19323_v15 = vld [vmem:[#allocation24_spill] sm:$0xff] }
0x109c   :  { %v3778_v62 = vadd.f32 %v3743_v53, %v19311_v49  ;;  %v3779_v16 = vadd.f32 %v19312_v4, %v3743_v53  ;;  %v3780_v36 = vadd.f32 %v3747_v43, %v19313_v37  ;;  %v3781_v40 = vadd.f32 %v19314_v12, %v3747_v43  ;;  %v19324_v43 = vld [vmem:[#allocation23_spill] sm:$0xff] }
0x109d   :  { %v3767_v25 = vrot.slane %v3735_v52, %v15848_v46  ;;  %v3782_v48 = vadd.f32 %v3751_v11, %v19315_v35  ;;  %v3783_v24 = vadd.f32 %v19316_v56, %v3751_v11  ;;  %v3784_v54 = vadd.f32 %v3755_v19, %v19317_v59 }
0x109e   :  { %v3785_v28 = vadd.f32 %v19318_v3, %v3755_v19  ;;  %v3786_v60 = vadd.f32 %v3759_v39, %v19319_v50  ;;  %v3787_v44 = vadd.f32 %v19320_v9, %v3759_v39  ;;  %v3788_v20 = vadd.f32 %v3763_v8, %v19321_v51  ;;  %v16789_v39 = vld [vmem:[%s19216_s5] ss:$0 sm:$0xff] }
0x109f   :  { %v3789_v58 = vadd.f32 %v19322_v34, %v3763_v8  ;;  %v3790_v53 = vadd.f32 %v3767_v25, %v19323_v15  ;;  %v3791_v52 = vadd.f32 %v19324_v43, %v3767_v25  ;;  %15160 = vtanh.f32 %v3776_v33 }
0x10a0   :  { %15162 = vtanh.f32 %v3777_v14 }
0x10a1   :  { %15164 = vtanh.f32 %v3778_v62 }
0x10a2   :  { %15166 = vtanh.f32 %v3780_v36 }
0x10a3   :  { %15168 = vtanh.f32 %v3779_v16 }
0x10a4   :  { %15170 = vtanh.f32 %v3782_v48 }
0x10a5   :  { %15172 = vtanh.f32 %v3784_v54 }
0x10a6   :  { %15174 = vtanh.f32 %v3781_v40 }
0x10a7   :  { %15176 = vtanh.f32 %v3786_v60 }
0x10a8   :  { %15178 = vtanh.f32 %v3785_v28 }
0x10a9   :  { %v15161_v19 = vpop.eup %15160  ;;  %15180 = vtanh.f32 %v3788_v20 }
0x10aa   :  { %v15163_v11 = vpop.eup %15162  ;;  %v3808_v8 = vmul.f32 %v16789_v39, %v15161_v19  ;;  %15182 = vtanh.f32 %v3783_v24 }
0x10ab   :  { %v15165_v15 = vpop.eup %15164  ;;  %v3809_v33 = vmul.f32 %v16789_v39, %v15163_v11  ;;  %15184 = vtanh.f32 %v3790_v53 }
0x10ac   :  { %v3824_v14 = vsel %vm265_vm2, %v3808_v8, 0.0  ;;  %v15167_v62 = vpop.eup %15166  ;;  %v3810_v36 = vmul.f32 %v16789_v39, %v15165_v15  ;;  %15186 = vtanh.f32 %v3787_v44 }
0x10ad   :  { %v3827_v16 = vsel %vm265_vm2, %v3809_v33, 0.0  ;;  %3825 = vadd.xlane.f32.xlu1 %v3824_v14  ;;  %v15169_v40 = vpop.eup %15168  ;;  %v3812_v25 = vmul.f32 %v16789_v39, %v15167_v62  ;;  %15188 = vtanh.f32 %v3789_v58 }
0x10ae   :  { %3828 = vadd.xlane.f32.xlu0 %v3827_v16  ;;  %v15171_v48 = vpop.eup %15170  ;;  %v3830_v28 = vsel %vm265_vm2, %v3810_v36, 0.0  ;;  %v3811_v19 = vmul.f32 %v16789_v39, %v15169_v40  ;;  %15190 = vtanh.f32 %v3791_v52 }
0x10af   :  { %v3836_v54 = vsel %vm265_vm2, %v3812_v25, 0.0  ;;  %v15173_v60 = vpop.eup %15172  ;;  %v3814_v20 = vmul.f32 %v16789_v39, %v15171_v48 }
0x10b0   :  { %v15175_v11 = vpop.eup %15174  ;;  %v3816_v8 = vmul.f32 %v16789_v39, %v15173_v60  ;;  %v3833_v24 = vsel %vm265_vm2, %v3811_v19, 0.0 }
0x10b1   :  { %3837 = vadd.xlane.f32.xlu1 %v3836_v54  ;;  %v15177_v33 = vpop.eup %15176  ;;  %v3813_v14 = vmul.f32 %v16789_v39, %v15175_v11  ;;  %v3842_v16 = vsel %vm265_vm2, %v3814_v20, 0.0 }
0x10b2   :  { %3831 = vadd.xlane.f32.xlu0 %v3830_v28  ;;  %v3848_v15 = vsel %vm265_vm2, %v3816_v8, 0.0  ;;  %v15179_v62 = vpop.eup %15178  ;;  %v3818_v36 = vmul.f32 %v16789_v39, %v15177_v33 }
0x10b3   :  { %v15181_v40 = vpop.eup %15180  ;;  %v3839_v44 = vsel %vm265_vm2, %v3813_v14, 0.0  ;;  %v3817_v53 = vmul.f32 %v16789_v39, %v15179_v62 }
0x10b4   :  { %v15183_v25 = vpop.eup %15182  ;;  %v3854_v48 = vsel %vm265_vm2, %v3818_v36, 0.0  ;;  %v3820_v54 = vmul.f32 %v16789_v39, %v15181_v40 }
0x10b5   :  { %3849 = vadd.xlane.f32.xlu1 %v3848_v15  ;;  %v15185_v60 = vpop.eup %15184  ;;  %v3851_v58 = vsel %vm265_vm2, %v3817_v53, 0.0  ;;  %v3815_v28 = vmul.f32 %v16789_v39, %v15183_v25 }
0x10b6   :  { %3834 = vadd.xlane.f32.xlu0 %v3833_v24  ;;  %v15187_v19 = vpop.eup %15186  ;;  %v3860_v11 = vsel %vm265_vm2, %v3820_v54, 0.0  ;;  %v3822_v8 = vmul.f32 %v16789_v39, %v15185_v60 }
0x10b7   :  { %v3845_v15 = vsel %vm265_vm2, %v3815_v28, 0.0  ;;  %v3819_v20 = vmul.f32 %v16789_v39, %v15187_v19  ;;  %v15189_v33 = vpop.eup %15188 }
0x10b8   :  { %v3866_v52 = vsel %vm265_vm2, %v3822_v8, 0.0  ;;  %v3821_v14 = vmul.f32 %v16789_v39, %v15189_v33  ;;  %v15191_v62 = vpop.eup %15190 }
0x10b9   :  { %3843 = vadd.xlane.f32.xlu1 %v3842_v16  ;;  %v3857_v24 = vsel %vm265_vm2, %v3819_v20, 0.0  ;;  %v3823_v36 = vmul.f32 %v16789_v39, %v15191_v62 }
0x10ba   :  { %3840 = vadd.xlane.f32.xlu0 %v3839_v44  ;;  %v3863_v16 = vsel %vm265_vm2, %v3821_v14, 0.0 }
0x10bb   :  { %v3869_v40 = vsel %vm265_vm2, %v3823_v36, 0.0 }
0x10bd   :  { %3855 = vadd.xlane.f32.xlu1 %v3854_v48 }
0x10be   :  { %3852 = vadd.xlane.f32.xlu0 %v3851_v58 }
0x10c1   :  { %3861 = vadd.xlane.f32.xlu1 %v3860_v11 }
0x10c2   :  { %3846 = vadd.xlane.f32.xlu0 %v3845_v15 }
0x10c5   :  { %3867 = vadd.xlane.f32.xlu1 %v3866_v52 }
0x10c6   :  { %3858 = vadd.xlane.f32.xlu0 %v3857_v24 }
0x10ca   :  { %3864 = vadd.xlane.f32.xlu0 %v3863_v16 }
0x10ce   :  { %3870 = vadd.xlane.f32.xlu0 %v3869_v40 }
0x113a   :  { %v3826_v44 = vpop.xlane.xlu1 %3825 }
0x113b   :  { %v3829_v53 = vpop.xlane.xlu0 %3828  ;;  %v3891_v33 = vrot.slane %v3826_v44, %v15967_v45 }
0x113c   :  { %v3895_v20 = vrot.slane %v3829_v53, %v15962_v42 }
0x113e   :  { %v3838_v25 = vpop.xlane.xlu1 %3837  ;;  %v3896_v34 = vsel %vm558_vm3, %v3895_v20, %v3891_v33 }
0x113f   :  { %v16823_v48 = vpop.xlane.xlu0 %3831  ;;  %v3909_v14 = vrot.slane %v3838_v25, %v15967_v45 }
0x1140   :  { %v3900_v52 = vrot.slane %v16823_v48, %v15967_v45 }
0x1142   :  { %v16825_v54 = vpop.xlane.xlu1 %3849 }
0x1143   :  { %v16827_v60 = vpop.xlane.xlu0 %3834  ;;  %v3927_v20 = vrot.slane %v16825_v54, %v15967_v45 }
0x1144   :  { %v3904_v8 = vrot.slane %v16827_v60, %v15962_v42 }
0x1146   :  { %v16831_v28 = vpop.xlane.xlu1 %3843  ;;  %v3905_v36 = vsel %vm558_vm3, %v3904_v8, %v3900_v52 }
0x1147   :  { %v16829_v58 = vpop.xlane.xlu0 %3840  ;;  %v3918_v40 = vrot.slane %v16831_v28, %v15967_v45  ;;  %v3960_v50 = vsel %vm623_vm4, %v3905_v36, %v3896_v34 }
0x1148   :  { %v3913_v15 = vrot.slane %v16829_v58, %v15962_v42 }
0x114a   :  { %v16835_v39 = vpop.xlane.xlu1 %3855  ;;  %v3914_v43 = vsel %vm558_vm3, %v3913_v15, %v3909_v14 }
0x114b   :  { %v16833_v19 = vpop.xlane.xlu0 %3852  ;;  %v3961_v8 = vsel %vm625_vm5, %v3914_v43, %v3960_v50  ;;  %v3936_v52 = vrot.slane %v16835_v39, %v15967_v45 }
0x114c   :  { %v3931_v3 = vrot.slane %v16833_v19, %v15962_v42 }
0x114e   :  { %v16850_v62 = vpop.xlane.xlu1 %3861  ;;  %v3932_v50 = vsel %vm558_vm3, %v3931_v3, %v3927_v20 }
0x114f   :  { %v16837_v11 = vpop.xlane.xlu0 %3846  ;;  %v3945_v34 = vrot.slane %v16850_v62, %v15967_v45 }
0x1150   :  { %v3922_v24 = vrot.slane %v16837_v11, %v15962_v42 }
0x1152   :  { %v3923_v51 = vsel %vm558_vm3, %v3922_v24, %v3918_v40  ;;  %v16877_v24 = vpop.xlane.xlu1 %3867 }
0x1153   :  { %v16852_v16 = vpop.xlane.xlu0 %3858  ;;  %v3962_v33 = vsel %vm627_vm6, %v3923_v51, %v3961_v8  ;;  %v3954_v40 = vrot.slane %v16877_v24, %v15967_v45 }
0x1154   :  { %v3940_v9 = vrot.slane %v16852_v16, %v15962_v42  ;;  %v3963_v51 = vsel %vm629_vm7, %v3932_v50, %v3962_v33 }
0x1156   :  { %v3941_v14 = vsel %vm558_vm3, %v3940_v9, %v3936_v52 }
0x1157   :  { %v16865_v59 = vpop.xlane.xlu0 %3864  ;;  %v3964_v8 = vsel %vm631_vm8, %v3941_v14, %v3963_v51 }
0x1158   :  { %v3949_v15 = vrot.slane %v16865_v59, %v15962_v42 }
0x115a   :  { %v3950_v36 = vsel %vm558_vm3, %v3949_v15, %v3945_v34 }
0x115b   :  { %v16881_v43 = vpop.xlane.xlu0 %3870  ;;  %v3965_v9 = vsel %vm633_vm9, %v3950_v36, %v3964_v8 }
0x115c   :  { %v3958_v56 = vrot.slane %v16881_v43, %v15962_v42 }
0x115e   :  { %v3959_v35 = vsel %vm558_vm3, %v3958_v56, %v3954_v40 }
0x115f   :  { %v3966_v3 = vsel %vm635_vm10, %v3959_v35, %v3965_v9 }
0x1160   :  { %v3968_v52 = vsel %vm265_vm2, %v3966_v3, -inf }
0x1161   :  { %3969 = vmax.xlane.f32.xlu1 %v3968_v52 }
0x11ee   :  { %v3970_v15 = vpop.xlane.xlu1 %3969 }
0x11ef   :  { %v3975_v20 = vrot.slane %v3970_v15, %v15848_v46  ;;  %v3983_v34 = vrot.slane %v3970_v15, %v16047_v63  ;;  %v3979_v12 = vrot.slane %v3970_v15, %v16025_v27  ;;  %v3987_v14 = vrot.slane %v3970_v15, %v16061_v1 }
0x11f0   :  { %v3991_v35 = vrot.slane %v3970_v15, %v16073_v29  ;;  %v3999_v52 = vrot.slane %v3970_v15, %v16031_v32 }
0x11f1   :  { %v4012_v37 = vsub.f32 %v3826_v44, %v3975_v20  ;;  %v4013_v33 = vsub.f32 %v3829_v53, %v3975_v20  ;;  %v4016_v50 = vsub.f32 %v3838_v25, %v3983_v34  ;;  %v4014_v56 = vsub.f32 %v16823_v48, %v3979_v12 }
0x11f2   :  { %v4018_v51 = vsub.f32 %v16831_v28, %v3987_v14  ;;  %v4015_v9 = vsub.f32 %v16827_v60, %v3979_v12  ;;  %v3995_v44 = vrot.slane %v3970_v15, %v16028_v41  ;;  %v4020_v53 = vsub.f32 %v16825_v54, %v3991_v35 }
0x11f3   :  { %v4028_v36 = vmul.f32 1.442695, %v4012_v37  ;;  %v4030_v40 = vmul.f32 1.442695, %v4013_v33  ;;  %v4036_v8 = vmul.f32 1.442695, %v4016_v50  ;;  %v4017_v48 = vsub.f32 %v16829_v58, %v3983_v34 }
0x11f4   :  { %v4032_v3 = vmul.f32 1.442695, %v4014_v56  ;;  %v4040_v25 = vmul.f32 1.442695, %v4018_v51  ;;  %v4034_v37 = vmul.f32 1.442695, %v4015_v9  ;;  %v4022_v28 = vsub.f32 %v16835_v39, %v3995_v44 }
0x11f5   :  { %15192 = vpow2.f32 %v4028_v36  ;;  %v4044_v20 = vmul.f32 1.442695, %v4020_v53  ;;  %v4019_v12 = vsub.f32 %v16837_v11, %v3987_v14  ;;  %v4038_v60 = vmul.f32 1.442695, %v4017_v48 }
0x11f6   :  { %15194 = vpow2.f32 %v4030_v40  ;;  %v4003_v54 = vrot.slane %v3970_v15, %v16039_v61  ;;  %v4024_v58 = vsub.f32 %v16850_v62, %v3999_v52  ;;  %v4048_v34 = vmul.f32 1.442695, %v4022_v28 }
0x11f7   :  { %15196 = vpow2.f32 %v4036_v8  ;;  %v4021_v39 = vsub.f32 %v16833_v19, %v3991_v35  ;;  %v4042_v11 = vmul.f32 1.442695, %v4019_v12  ;;  %v4023_v62 = vsub.f32 %v16852_v16, %v3995_v44 }
0x11f8   :  { %15198 = vpow2.f32 %v4032_v3  ;;  %v4026_v36 = vsub.f32 %v16877_v24, %v4003_v54  ;;  %v4052_v15 = vmul.f32 1.442695, %v4024_v58  ;;  %v4025_v24 = vsub.f32 %v16865_v59, %v3999_v52 }
0x11f9   :  { %15200 = vpow2.f32 %v4040_v25  ;;  %v4046_v40 = vmul.f32 1.442695, %v4021_v39  ;;  %v4050_v8 = vmul.f32 1.442695, %v4023_v62  ;;  %v4027_v16 = vsub.f32 %v16881_v43, %v4003_v54 }
0x11fa   :  { %15202 = vpow2.f32 %v4034_v37  ;;  %v4056_v35 = vmul.f32 1.442695, %v4026_v36  ;;  %v4054_v44 = vmul.f32 1.442695, %v4025_v24 }
0x11fb   :  { %15204 = vpow2.f32 %v4044_v20  ;;  %v4058_v59 = vmul.f32 1.442695, %v4027_v16 }
0x11fc   :  { %15206 = vpow2.f32 %v4038_v60 }
0x11fd   :  { %15208 = vpow2.f32 %v4048_v34 }
0x11fe   :  { %15210 = vpow2.f32 %v4042_v11 }
0x11ff   :  { %v16908_v33 = vpop.eup %15192  ;;  %15212 = vpow2.f32 %v4052_v15 }
0x1200   :  { %v16910_v50 = vpop.eup %15194  ;;  %4077 = vperm.xlu0 %15011, %v16908_v33   ;;  %15214 = vpow2.f32 %v4046_v40 }
0x1201   :  { %4080 = vperm.xlu1 %15010, %v16910_v50   ;;  %v16917_v14 = vpop.eup %15196  ;;  %15216 = vpow2.f32 %v4056_v35 }
0x1202   :  { %v16919_v56 = vpop.eup %15198  ;;  %15218 = vpow2.f32 %v4050_v8 }
0x1203   :  { %v16925_v51 = vpop.eup %15200  ;;  %15220 = vpow2.f32 %v4054_v44 }
0x1204   :  { %4089 = vperm.xlu0 %15011, %v16917_v14   ;;  %v16927_v19 = vpop.eup %15202  ;;  %15222 = vpow2.f32 %v4058_v59 }
0x1205   :  { %4083 = vperm.xlu1 %15010, %v16919_v56   ;;  %v16932_v9 = vpop.eup %15204 }
0x1206   :  { %v16934_v3 = vpop.eup %15206 }
0x1207   :  { %v16939_v53 = vpop.eup %15208 }
0x1208   :  { %4095 = vperm.xlu0 %15011, %v16925_v51   ;;  %v16941_v25 = vpop.eup %15210 }
0x1209   :  { %4086 = vperm.xlu1 %15010, %v16927_v19   ;;  %v16945_v48 = vpop.eup %15212 }
0x120a   :  { %v16947_v37 = vpop.eup %15214 }
0x120b   :  { %v16951_v43 = vpop.eup %15216 }
0x120c   :  { %4101 = vperm.xlu0 %15011, %v16932_v9   ;;  %v16953_v52 = vpop.eup %15218 }
0x120d   :  { %4092 = vperm.xlu1 %15010, %v16934_v3   ;;  %v16957_v28 = vpop.eup %15220 }
0x120e   :  { %v16960_v20 = vpop.eup %15222 }
0x1210   :  { %4107 = vperm.xlu0 %15011, %v16939_v53  }
0x1211   :  { %4098 = vperm.xlu1 %15010, %v16941_v25  }
0x1214   :  { %4113 = vperm.xlu0 %15011, %v16945_v48  }
0x1215   :  { %4104 = vperm.xlu1 %15010, %v16947_v37  }
0x1218   :  { %4119 = vperm.xlu0 %15011, %v16951_v43  }
0x1219   :  { %4110 = vperm.xlu1 %15010, %v16953_v52  }
0x121d   :  { %4116 = vperm.xlu1 %15010, %v16957_v28  }
0x1221   :  { %4122 = vperm.xlu1 %15010, %v16960_v20  }
0x127f   :  { %v4078_v12 = vpop.permute.xlu0 %4077 }
0x1280   :  { %v4081_v60 = vpop.permute.xlu1 %4080  ;;  %v4127_v59 = vrot.slane %v4078_v12, %v15967_v45 }
0x1281   :  { %v4131_v44 = vrot.slane %v4081_v60, %v15962_v42 }
0x1283   :  { %v4090_v54 = vpop.permute.xlu0 %4089  ;;  %v4132_v12 = vsel %vm558_vm3, %v4131_v44, %v4127_v59 }
0x1284   :  { %v4084_v58 = vpop.permute.xlu1 %4083  ;;  %v4145_v31 = vrot.slane %v4090_v54, %v15967_v45 }
0x1285   :  { %v4136_v4 = vrot.slane %v4084_v58, %v15967_v45 }
0x1287   :  { %v4096_v34 = vpop.permute.xlu0 %4095 }
0x1288   :  { %v4087_v39 = vpop.permute.xlu1 %4086 }
0x1289   :  { %v4140_v35 = vrot.slane %v4087_v39, %v15962_v42  ;;  %v4154_v39 = vrot.slane %v4096_v34, %v15967_v45 }
0x128b   :  { %v4102_v36 = vpop.permute.xlu0 %4101  ;;  %v4141_v21 = vsel %vm558_vm3, %v4140_v35, %v4136_v4 }
0x128c   :  { %v4093_v11 = vpop.permute.xlu1 %4092  ;;  %v4163_v60 = vrot.slane %v4102_v36, %v15967_v45 }
0x128d   :  { %v4149_v24 = vrot.slane %v4093_v11, %v15962_v42 }
0x128f   :  { %v4108_v62 = vpop.permute.xlu0 %4107  ;;  %v4150_v2 = vsel %vm558_vm3, %v4149_v24, %v4145_v31 }
0x1290   :  { %v4099_v15 = vpop.permute.xlu1 %4098 }
0x1291   :  { %v4158_v49 = vrot.slane %v4099_v15, %v15962_v42  ;;  %v4172_v15 = vrot.slane %v4108_v62, %v15967_v45 }
0x1293   :  { %v4114_v8 = vpop.permute.xlu0 %4113  ;;  %v4159_v58 = vsel %vm558_vm3, %v4158_v49, %v4154_v39 }
0x1294   :  { %v4105_v40 = vpop.permute.xlu1 %4104  ;;  %v4181_v34 = vrot.slane %v4114_v8, %v15967_v45 }
0x1295   :  { %v4167_v47 = vrot.slane %v4105_v40, %v15962_v42  ;;  %v4196_v40 = vsel %vm623_vm4, %v4141_v21, %v4132_v12 }
0x1296   :  { %v4197_v31 = vsel %vm625_vm5, %v4150_v2, %v4196_v40 }
0x1297   :  { %v4168_v4 = vsel %vm558_vm3, %v4167_v47, %v4163_v60  ;;  %v4120_v35 = vpop.permute.xlu0 %4119  ;;  %v4198_v24 = vsel %vm627_vm6, %v4159_v58, %v4197_v31 }
0x1298   :  { %v4111_v16 = vpop.permute.xlu1 %4110  ;;  %v4199_v62 = vsel %vm629_vm7, %v4168_v4, %v4198_v24 }
0x1299   :  { %v4176_v11 = vrot.slane %v4111_v16, %v15962_v42 }
0x129b   :  { %v4177_v36 = vsel %vm558_vm3, %v4176_v11, %v4172_v15 }
0x129c   :  { %v4117_v7 = vpop.permute.xlu1 %4116  ;;  %v4200_v47 = vsel %vm631_vm8, %v4177_v36, %v4199_v62  ;;  %v4983_v62 = vld [vmem:[%s19212_s1 + $0x32] sm:$0x1] }
0x129d   :  { %v4185_v54 = vrot.slane %v4117_v7, %v15962_v42  ;;  %v4190_v7 = vrot.slane %v4120_v35, %v15967_v45 }
0x129f   :  { %v4186_v16 = vsel %vm558_vm3, %v4185_v54, %v4181_v34 }
0x12a0   :  { %v4123_v49 = vpop.permute.xlu1 %4122  ;;  %v4201_v44 = vsel %vm633_vm9, %v4186_v16, %v4200_v47 }
0x12a1   :  { %v4194_v21 = vrot.slane %v4123_v49, %v15962_v42 }
0x12a3   :  { %v4195_v8 = vsel %vm558_vm3, %v4194_v21, %v4190_v7 }
0x12a4   :  { %v4202_v2 = vsel %vm635_vm10, %v4195_v8, %v4201_v44 }
0x12a5   :  { %v4204_v59 = vsel %vm265_vm2, %v4202_v2, 0.0 }
0x12a6   :  { %4205 = vadd.xlane.f32.xlu0 %v4204_v59 }
0x1333   :  { %v4206_v39 = vpop.xlane.xlu0 %4205 }
0x1334   :  { %15224 = vrcp.f32 %v4206_v39  ;;  %v5026_v39 = vrot.slane %v4983_v62, 2 }
0x133e   :  { %v15225_v11 = vpop.eup %15224 }
0x133f   :  { %v4224_v60 = vrot.slane %v15225_v11, %v16061_v1  ;;  %v4212_v12 = vrot.slane %v15225_v11, %v15848_v46  ;;  %v4240_v54 = vrot.slane %v15225_v11, %v16039_v61  ;;  %v4216_v34 = vrot.slane %v15225_v11, %v16025_v27 }
0x1341   :  { %v4256_v58 = vmul.f32 %v16941_v25, %v4224_v60  ;;  %v4249_v15 = vmul.f32 %v16908_v33, %v4212_v12  ;;  %v4263_v40 = vmul.f32 %v16951_v43, %v4240_v54  ;;  %v4250_v4 = vmul.f32 %v16910_v50, %v4212_v12 }
0x1342   :  { %v4251_v35 = vmul.f32 %v16919_v56, %v4216_v34  ;;  %v4252_v31 = vmul.f32 %v16927_v19, %v4216_v34  ;;  %v4220_v25 = vrot.slane %v15225_v11, %v16047_v63  ;;  %v4255_v50 = vmul.f32 %v16925_v51, %v4224_v60 }
0x1343   :  { %4538 = vperm.xlu0 %15011, %v4256_v58   ;;  %4268 = vperm.xlu1 %15010, %v4249_v15   ;;  %v4228_v43 = vrot.slane %v15225_v11, %v16073_v29  ;;  %v4232_v19 = vrot.slane %v15225_v11, %v16028_v41 }
0x1344   :  { %v4253_v33 = vmul.f32 %v16917_v14, %v4220_v25  ;;  %v4254_v36 = vmul.f32 %v16934_v3, %v4220_v25  ;;  %v4236_v3 = vrot.slane %v15225_v11, %v16031_v32 }
0x1345   :  { %v4257_v24 = vmul.f32 %v16932_v9, %v4228_v43  ;;  %v4258_v56 = vmul.f32 %v16947_v37, %v4228_v43  ;;  %v4259_v16 = vmul.f32 %v16939_v53, %v4232_v19  ;;  %v4260_v14 = vmul.f32 %v16953_v52, %v4232_v19  ;;  %v4977_v37 = vld [vmem:[%s19212_s1 + $0x2] sm:$0x1]  ;;  %v4978_v53 = vld [vmem:[%s19212_s1 + $0xa] sm:$0x1]  ;;  %v4979_v52 = vld [vmem:[%s19212_s1 + $0x12] sm:$0x1] }
0x1346   :  { %v4261_v51 = vmul.f32 %v16945_v48, %v4236_v3  ;;  %v4262_v49 = vmul.f32 %v16957_v28, %v4236_v3  ;;  %v4264_v9 = vmul.f32 %v16960_v20, %v4240_v54  ;;  %v4980_v48 = vld [vmem:[%s19212_s1 + $0x1a] sm:$0x1]  ;;  %v4981_v28 = vld [vmem:[%s19212_s1 + $0x22] sm:$0x1]  ;;  %v4982_v20 = vld [vmem:[%s19212_s1 + $0x2a] sm:$0x1] }
0x1347   :  { %4891 = vperm.xlu0 %15011, %v4263_v40   ;;  %4271 = vperm.xlu1 %15010, %v4250_v4   ;;  %v5016_v7 = vrot.slane %v4978_v53, 7  ;;  %v5018_v21 = vrot.slane %v4979_v52, 6  ;;  %v5020_v47 = vrot.slane %v4980_v48, 5  ;;  %v5022_v8 = vrot.slane %v4981_v28, 4 }
0x1348   :  { %v5024_v2 = vrot.slane %v4982_v20, 3 }
0x1349   :  { %v5017_v44 = vsel %vm623_vm4, %v5016_v7, %v4977_v37 }
0x134a   :  { %v5019_v59 = vsel %vm625_vm5, %v5018_v21, %v5017_v44 }
0x134b   :  { %4357 = vperm.xlu1 %15010, %v4251_v35   ;;  %v5021_v11 = vsel %vm627_vm6, %v5020_v47, %v5019_v59 }
0x134c   :  { %v5023_v12 = vsel %vm629_vm7, %v5022_v8, %v5021_v11 }
0x134d   :  { %v5025_v58 = vsel %vm631_vm8, %v5024_v2, %v5023_v12 }
0x134e   :  { %v5027_v15 = vsel %vm633_vm9, %v5026_v39, %v5025_v58 }
0x134f   :  { %4360 = vperm.xlu1 %15010, %v4252_v31  }
0x1353   :  { %4446 = vperm.xlu1 %15010, %v4253_v33  }
0x1357   :  { %4449 = vperm.xlu1 %15010, %v4254_v36  }
0x135b   :  { %4535 = vperm.xlu1 %15010, %v4255_v50  }
0x135f   :  { %4624 = vperm.xlu1 %15010, %v4257_v24  }
0x1363   :  { %4627 = vperm.xlu1 %15010, %v4258_v56  }
0x1367   :  { %4713 = vperm.xlu1 %15010, %v4259_v16  }
0x136b   :  { %4716 = vperm.xlu1 %15010, %v4260_v14  }
0x136f   :  { %4802 = vperm.xlu1 %15010, %v4261_v51  }
0x1373   :  { %4805 = vperm.xlu1 %15010, %v4262_v49  }
0x1377   :  { %4894 = vperm.xlu1 %15010, %v4264_v9  }
0x137b   :  { %5033 = vrot.lane.b32.xlu1 %v16730_v57, %s15662_s13  ;;  %v4984_v57 = vld [vmem:[%s19212_s1 + $0x3a] sm:$0x1] }
0x137c   :  { %v5028_v60 = vrot.slane %v4984_v57, 1 }
0x137e   :  { %v5029_v54 = vsel %vm635_vm10, %v5028_v60, %v5027_v15 }
0x137f   :  { %5030 = vrot.lane.b32.xlu0 %v5029_v54, %s15661_s25 }
0x13c2   :  { %v4269_v40 = vpop.permute.xlu1 %4268  ;;  %v4539_v14 = vpop.permute.xlu0 %4538 }
0x13c3   :  { %v4276_v34 = vrot.slane %v4269_v40, %v15967_v45  ;;  %v4547_v49 = vrot.slane %v4539_v14, %v15962_v42 }
0x13c6   :  { %v4272_v4 = vpop.permute.xlu1 %4271  ;;  %v4892_v39 = vpop.permute.xlu0 %4891 }
0x13c7   :  { %v4280_v35 = vrot.slane %v4272_v4, %v15962_v42  ;;  %v4899_v12 = vrot.slane %v4892_v39, %v15967_v45  ;;  %v15610_v39 = vld [vmem:[%s19218_s7] ss:$0 sm:$0xff] }
0x13c9   :  { %v4281_v31 = vsel %vm558_vm3, %v4280_v35, %v4276_v34 }
0x13ca   :  { %14236 = vmatmul.mubr.msk.f32.vlgmr.msra.gmra.mrb[28].mxu1 %vm265_vm2, %v4281_v31  ;;  %v4358_v25 = vpop.permute.xlu1 %4357 }
0x13cb   :  { %14793 = vmatpush3.bf16.msra.mxu1 %v15759_v13  ;;  %14249 = vmatprep.mubr.msk.f32.mxu1 %vm15657_vm1, %v19293_v55  ;;  %v4365_v36 = vrot.slane %v4358_v25, %v15967_v45 }
0x13cc   :  { %14797 = vmatprep.subr.bf16.mxu1 %v19294_v0 }
0x13ce   :  { %v4361_v33 = vpop.permute.xlu1 %4360 }
0x13cf   :  { %v4369_v50 = vrot.slane %v4361_v33, %v15962_v42 }
0x13d1   :  { %v4370_v43 = vsel %vm558_vm3, %v4369_v50, %v4365_v36 }
0x13d2   :  { %14243 = vmatmul.mubr.msk.f32.vlgmr.msra.gmra.mrb[34].mxu0 %vm265_vm2, %v4370_v43  ;;  %v4447_v24 = vpop.permute.xlu1 %4446 }
0x13d3   :  { %14796 = vmatpush3.bf16.msra.mxu0 %v15774_v18  ;;  %14256 = vmatprep.mubr.msk.f32.mxu0 %vm15657_vm1, %v19293_v55  ;;  %v4454_v19 = vrot.slane %v4447_v24, %v15967_v45 }
0x13d4   :  { %14800 = vmatprep.subr.bf16.mxu0 %v19294_v0 }
0x13d6   :  { %v4450_v56 = vpop.permute.xlu1 %4449 }
0x13d7   :  { %v4458_v16 = vrot.slane %v4450_v56, %v15962_v42 }
0x13d9   :  { %v4459_v3 = vsel %vm558_vm3, %v4458_v16, %v4454_v19 }
0x13da   :  { %14250 = vmatmul.mubr.msk.f32.vlgmr.msra.gmra.mrb[30].mxu1 %vm265_vm2, %v4459_v3  ;;  %v4536_v51 = vpop.permute.xlu1 %4535 }
0x13db   :  { %v4543_v9 = vrot.slane %v4536_v51, %v15967_v45  ;;  %14799 = vmatpush3.bf16.msra.mxu1 %v15785_v22  ;;  %14263 = vmatprep.mubr.msk.f32.mxu1 %vm15657_vm1, %v19293_v55 }
0x13dc   :  { %14803 = vmatprep.subr.bf16.mxu1 %v19294_v0 }
0x13dd   :  { %v4548_v37 = vsel %vm558_vm3, %v4547_v49, %v4543_v9 }
0x13de   :  { %14257 = vmatmul.mubr.msk.f32.vlgmr.msra.gmra.mrb[36].mxu0 %vm265_vm2, %v4548_v37  ;;  %v4625_v53 = vpop.permute.xlu1 %4624 }
0x13df   :  { %14802 = vmatpush3.bf16.msra.mxu0 %v15787_v23  ;;  %14270 = vmatprep.mubr.msk.f32.mxu0 %vm15657_vm1, %v19293_v55  ;;  %v4632_v48 = vrot.slane %v4625_v53, %v15967_v45 }
0x13e0   :  { %14806 = vmatprep.subr.bf16.mxu0 %v19294_v0 }
0x13e2   :  { %v4628_v52 = vpop.permute.xlu1 %4627 }
0x13e3   :  { %v4636_v28 = vrot.slane %v4628_v52, %v15962_v42 }
0x13e5   :  { %v4637_v20 = vsel %vm558_vm3, %v4636_v28, %v4632_v48 }
0x13e6   :  { %14264 = vmatmul.mubr.msk.f32.vlgmr.msra.gmra.mrb[32].mxu1 %vm265_vm2, %v4637_v20  ;;  %v4714_v62 = vpop.permute.xlu1 %4713 }
0x13e7   :  { %14805 = vmatpush3.bf16.msra.mxu1 %v15797_v26  ;;  %14277 = vmatprep.mubr.msk.f32.mxu1 %vm15657_vm1, %v19293_v55  ;;  %v4721_v21 = vrot.slane %v4714_v62, %v15967_v45 }
0x13e8   :  { %14809 = vmatprep.subr.bf16.mxu1 %v19294_v0 }
0x13ea   :  { %v4717_v7 = vpop.permute.xlu1 %4716 }
0x13eb   :  { %v4725_v57 = vrot.slane %v4717_v7, %v15962_v42 }
0x13ed   :  { %v4726_v47 = vsel %vm558_vm3, %v4725_v57, %v4721_v21 }
0x13ee   :  { %14271 = vmatmul.mubr.msk.f32.vlgmr.msra.gmra.mrb[38].mxu0 %vm265_vm2, %v4726_v47  ;;  %v4803_v8 = vpop.permute.xlu1 %4802 }
0x13ef   :  { %14808 = vmatpush3.bf16.msra.mxu0 %v19306_v38  ;;  %14284 = vmatprep.mubr.msk.f32.mxu0 %vm15657_vm1, %v19293_v55  ;;  %v4810_v2 = vrot.slane %v4803_v8, %v15967_v45 }
0x13f0   :  { %14815 = vmatprep.subr.bf16.mxu0 %v19294_v0 }
0x13f1   :  { %v5031_v57 = vpop.permute.xlu0 %5030 }
0x13f2   :  { %v4806_v44 = vpop.permute.xlu1 %4805 }
0x13f3   :  { %v4814_v59 = vrot.slane %v4806_v44, %v15962_v42 }
0x13f5   :  { %v4815_v11 = vsel %vm558_vm3, %v4814_v59, %v4810_v2 }
0x13f6   :  { %14278 = vmatmul.mubr.msk.f32.vlgmr.msra.gmra.mrb[34].mxu1 %vm265_vm2, %v4815_v11  ;;  %v4895_v60 = vpop.permute.xlu1 %4894 }
0x13f7   :  { %v4903_v58 = vrot.slane %v4895_v60, %v15962_v42  ;;  %14811 = vmatpush3.bf16.msra.mxu1 %v16282_v10  ;;  %14295 = vmatprep.mubr.msk.f32.mxu1 %vm15657_vm1, %v19293_v55 }
0x13f8   :  { %14812 = vmatprep.subr.bf16.mxu1 %v19294_v0 }
0x13f9   :  { %v4904_v15 = vsel %vm558_vm3, %v4903_v58, %v4899_v12 }
0x13fa   :  { %14285 = vmatmul.mubr.msk.f32.vlgmr.msra.gmra.mrb[40].mxu0 %vm265_vm2, %v4904_v15  ;;  %v5034_v8 = vpop.permute.xlu1 %5033 }
0x13fb   :  { %14814 = vmatpush3.bf16.msra.mxu1 %v16292_v5  ;;  %14817 = vmatpush3.bf16.msra.mxu0 %v16324_v6 }
0x13fc   :  { %14302 = vmatprep.mubr.msk.f32.mxu0 %vm15657_vm1, %v19293_v55  ;;  %14818 = vmatprep.subr.bf16.mxu0 %v19294_v0 }
0x13fd   :  { %14821 = vmatprep.subr.bf16.mxu1 %v19294_v0 }
0x149d   :  { %v4350_v54 = vpop.f32.mrb[28].mxu1 }
0x149e   :  { %v14237_v40 = vpop.f32.mrb[29].mxu1 }
0x14a5   :  { %v4439_v4 = vpop.f32.mrb[34].mxu0 }
0x14a6   :  { %v4993_v34 = vrot.slane %v4439_v4, 7  ;;  %v14244_v35 = vpop.f32.mrb[35].mxu0 }
0x14a8   :  { %v4994_v31 = vsel %vm623_vm4, %v4993_v34, %v4350_v54 }
0x14ad   :  { %v4528_v25 = vpop.f32.mrb[30].mxu1 }
0x14ae   :  { %v4995_v33 = vrot.slane %v4528_v25, 6  ;;  %v14251_v36 = vpop.f32.mrb[31].mxu1 }
0x14b0   :  { %v4996_v50 = vsel %vm625_vm5, %v4995_v33, %v4994_v31 }
0x14b1   :  { %v4617_v43 = vpop.f32.mrb[36].mxu0 }
0x14b2   :  { %v4997_v24 = vrot.slane %v4617_v43, 5  ;;  %v14258_v56 = vpop.f32.mrb[37].mxu0 }
0x14b4   :  { %v4998_v19 = vsel %vm627_vm6, %v4997_v24, %v4996_v50  ;;  %v19325_v24 = vld [vmem:[#allocation5_spill] sm:$0xff] }
0x14b9   :  { %v4706_v16 = vpop.f32.mrb[32].mxu1 }
0x14ba   :  { %v4999_v14 = vrot.slane %v4706_v16, 4  ;;  %v14265_v3 = vpop.f32.mrb[33].mxu1 }
0x14bc   :  { %v5000_v51 = vsel %vm629_vm7, %v4999_v14, %v4998_v19  ;;  %v15611_v19 = vld [vmem:[%s19220_s9] ss:$0 sm:$0xff] }
0x14c1   :  { %v4795_v49 = vpop.f32.mrb[38].mxu0 }
0x14c2   :  { %v5001_v9 = vrot.slane %v4795_v49, 3  ;;  %v14272_v37 = vpop.f32.mrb[39].mxu0 }
0x14c4   :  { %v5002_v53 = vsel %vm631_vm8, %v5001_v9, %v5000_v51  ;;  %v19327_v51 = vld [vmem:[#allocation10_spill] sm:$0xff] }
0x14c9   :  { %v4884_v52 = vpop.f32.mrb[34].mxu1 }
0x14ca   :  { %v5003_v48 = vrot.slane %v4884_v52, 2  ;;  %v14279_v28 = vpop.f32.mrb[35].mxu1 }
0x14cc   :  { %v5004_v20 = vsel %vm633_vm9, %v5003_v48, %v5002_v53  ;;  %v15612_v48 = vld [vmem:[%s19215_s4] ss:$0 sm:$0xff] }
0x14cd   :  { %v4973_v62 = vpop.f32.mrb[40].mxu0 }
0x14ce   :  { %v5005_v7 = vrot.slane %v4973_v62, 1  ;;  %v14286_v21 = vpop.f32.mrb[41].mxu0 }
0x14d0   :  { %v5006_v47 = vsel %vm635_vm10, %v5005_v7, %v5004_v20 }
0x14d1   :  { %v5036_v44 = vsel %vm53_vm0, %v5006_v47, %v5031_v57 }
0x14d2   :  { %v5037_v2 = vsel %vm265_vm2, %v5036_v44, %v5034_v8 }
0x14d3   :  { %14296 = vmatmul.mubr.msk.f32.vlgmr.msra.gmra.mrb[36].mxu1 %vm1711_vm11, %v5037_v2 }
0x14d4   :  { %14823 = vmatpush3.bf16.msra.mxu1 %v15770_v17  ;;  %14316 = vmatprep.mubr.msk.f32.mxu1 %vm15657_vm1, %v19293_v55 }
0x14d5   :  { %14827 = vmatprep.subr.bf16.mxu1 %v19294_v0 }
0x15a6   :  { %v5107_v59 = vpop.f32.mrb[36].mxu1 }
0x15a7   :  { %v5108_v11 = vadd.f32 %v15610_v39, %v5107_v59  ;;  %v14297_v60 = vpop.f32.mrb[37].mxu1 }
0x15a9   :  { %15226 = vtanh.f32 %v5108_v11  ;;  %v13653_v58 = vmul.f32 -1.442695, %v5108_v11 }
0x15ab   :  { %15228 = vpow2.f32 %v13653_v58 }
0x15b3   :  { %v15227_v12 = vpop.eup %15226 }
0x15b4   :  { %5120 = vrot.lane.b32.xlu0 %v15227_v12, %s15662_s13 }
0x15b5   :  { %v15229_v15 = vpop.eup %15228 }
0x15b6   :  { %v5114_v54 = vadd.f32 1.0, %v15229_v15 }
0x15b8   :  { %15230 = vrcp.f32 %v5114_v54 }
0x15c2   :  { %v15231_v40 = vpop.eup %15230 }
0x15c3   :  { %v5118_v35 = vmul.f32 %v15231_v40, %v16726_v30  ;;  %v19326_v30 = vld [vmem:[#allocation6_spill] sm:$0xff] }
0x1626   :  { %v5121_v4 = vpop.permute.xlu0 %5120 }
0x1627   :  { %v5123_v34 = vmul.f32 %v15231_v40, %v5121_v4 }
0x1629   :  { %5125 = vrot.lane.b32.xlu1 %v5123_v34, %s15663_s14 }
0x169b   :  { %v5126_v31 = vpop.permute.xlu1 %5125 }
0x169c   :  { %v17139_v25 = vadd.f32 %v5126_v31, %v5118_v35 }
0x169e   :  { %15232 = vtanh.f32 %v17139_v25 }
0x16a8   :  { %v15233_v33 = vpop.eup %15232 }
0x16a9   :  { %5131 = vrot.lane.b32.xlu0 %v15233_v33, %s15664_s19 }
0x171b   :  { %v5132_v36 = vpop.permute.xlu0 %5131 }
0x171c   :  { %v17143_v50 = vmul.f32 %v15231_v40, %v5132_v36 }
0x171e   :  { %5136 = vrot.lane.b32.xlu1 %v17143_v50, %s15665_s20 }
0x1790   :  { %v5137_v43 = vpop.permute.xlu1 %5136 }
0x1791   :  { %14303 = vmatmul.mubr.msk.f32.vlgmr.msra.gmra.mrb[42].mxu0 %vm265_vm2, %v5137_v43 }
0x1792   :  { %14820 = vmatpush3.bf16.msra.mxu0 %v19325_v24  ;;  %14309 = vmatprep.mubr.msk.f32.mxu0 %vm15657_vm1, %v19293_v55 }
0x1793   :  { %14824 = vmatprep.subr.bf16.mxu0 %v19294_v0 }
0x1795   :  { %14310 = vmatmul.mubr.msk.f32.vlgmr.msra.gmra.mrb[44].mxu0 %vm265_vm2, %v5137_v43 }
0x1796   :  { %14826 = vmatpush3.bf16.msra.mxu0 %v19326_v30  ;;  %14323 = vmatprep.mubr.msk.f32.mxu0 %vm15657_vm1, %v19293_v55 }
0x1797   :  { %14830 = vmatprep.subr.bf16.mxu0 %v19294_v0 }
0x1864   :  { %v5206_v56 = vpop.f32.mrb[42].mxu0 }
0x1865   :  { %v5207_v16 = vadd.f32 %v15611_v19, %v5206_v56  ;;  %v14304_v14 = vpop.f32.mrb[43].mxu0  ;;  %v19328_v56 = vld [vmem:[#allocation9_spill] sm:$0xff] }
0x1867   :  { %v5211_v3 = vcombine.high %v5207_v16, %v5207_v16  ;;  %v5218_v49 = vrot.slane %v5207_v16, %v19327_v51  ;;  %v19329_v16 = vld [vmem:[#allocation8_spill] sm:$0xff] }
0x1868   :  { %v5342_v9 = vpop.f32.mrb[44].mxu0 }
0x1869   :  { %v5225_v37 = vrot.slane %v5211_v3, %v19327_v51  ;;  %v5226_v53 = vcombine.high %v5218_v49, %v5218_v49  ;;  %v5234_v52 = vrot.slane %v5218_v49, %v19327_v51  ;;  %13655 = vst.sshfl [vmem:[#allocation2 + $0x2] sm:$0x1 pattern:$0x73625140] %v5218_v49  ;;  %v5343_v28 = vadd.f32 %v15612_v48, %v5342_v9  ;;  %v14311_v20 = vpop.f32.mrb[45].mxu0  ;;  %v19331_v48 = vld [vmem:[#allocation11_spill] sm:$0xff] }
0x186a   :  { %v19332_v20 = vld [vmem:[#allocation14_spill] sm:$0xff] }
0x186b   :  { %v5227_v62 = vcombine.high %v5225_v37, %v5225_v37  ;;  %v5241_v7 = vrot.slane %v5225_v37, %v19327_v51  ;;  %v5248_v21 = vrot.slane %v5226_v53, %v19327_v51  ;;  %v5256_v57 = vcombine.high %v5234_v52, %v5234_v52  ;;  %13656 = vst.sshfl [vmem:[#allocation2 + $0xa] sm:$0x1 pattern:$0x73625140] %v5226_v53  ;;  %v19330_v53 = vld [vmem:[#allocation12_spill] sm:$0xff] }
0x186c   :  { %13657 = vst.sshfl [vmem:[#allocation2 + $0x22] sm:$0x1 pattern:$0x73625140] %v5225_v37  ;;  %v5347_v47 = vcombine.high %v5343_v28, %v5343_v28  ;;  %v5354_v8 = vrot.slane %v5343_v28, %v19327_v51 }
0x186d   :  { %v5255_v44 = vrot.slane %v5227_v62, %v19327_v51  ;;  %v5257_v2 = vcombine.high %v5241_v7, %v5241_v7  ;;  %v5258_v59 = vcombine.high %v5248_v21, %v5248_v21  ;;  %5270 = vst [vmem:[#allocation2 + $0x12] sm:$0x1] %v5256_v57  ;;  %13658 = vst.sshfl [vmem:[#allocation2 + $0x2a] sm:$0x1 pattern:$0x73625140] %v5227_v62 }
0x186e   :  { %v5361_v39 = vrot.slane %v5347_v47, %v19327_v51  ;;  %v5362_v11 = vcombine.high %v5354_v8, %v5354_v8  ;;  %v5370_v60 = vrot.slane %v5354_v8, %v19327_v51  ;;  %v19333_v7 = vld [vmem:[#allocation13_spill] sm:$0xff]  ;;  %v19334_v47 = vld [vmem:[#allocation16_spill] sm:$0xff] }
0x186f   :  { %v5259_v12 = vcombine.high %v5255_v44, %v5255_v44  ;;  %5271 = vst [vmem:[#allocation2 + $0x1a] sm:$0x1] %v5258_v59  ;;  %5274 = vst [vmem:[#allocation2 + $0x32] sm:$0x1] %v5257_v2  ;;  %v19335_v44 = vld [vmem:[#allocation15_spill] sm:$0xff]  ;;  %v19336_v59 = vld [vmem:[#allocation18_spill] sm:$0xff] }
0x1870   :  { %v5363_v58 = vcombine.high %v5361_v39, %v5361_v39  ;;  %v5377_v15 = vrot.slane %v5361_v39, %v19327_v51  ;;  %v5384_v54 = vrot.slane %v5362_v11, %v19327_v51  ;;  %v5392_v40 = vcombine.high %v5370_v60, %v5370_v60  ;;  %v19337_v11 = vld [vmem:[#allocation17_spill] sm:$0xff] }
0x1871   :  { %5275 = vst [vmem:[#allocation2 + $0x3a] sm:$0x1] %v5259_v12  ;;  %v5399_v4 = vrot.slane %v5370_v60, %v15848_v46  ;;  %v19338_v12 = vld [vmem:[#allocation20_spill] sm:$0xff] }
0x1872   :  { %v5391_v34 = vrot.slane %v5363_v58, %v19327_v51  ;;  %v5393_v35 = vcombine.high %v5377_v15, %v5377_v15  ;;  %v5394_v31 = vcombine.high %v5384_v54, %v5384_v54  ;;  %v5403_v33 = vrot.slane %v5384_v54, %v15848_v46 }
0x1873   :  { %v5407_v36 = vrot.slane %v5392_v40, %v15848_v46  ;;  %v5415_v43 = vrot.slane %v5377_v15, %v15848_v46  ;;  %v5436_v19 = vadd.f32 %v5399_v4, %v19328_v56  ;;  %v5437_v14 = vadd.f32 %v19329_v16, %v5399_v4  ;;  %v19339_v15 = vld [vmem:[#allocation19_spill] sm:$0xff]  ;;  %v19340_v40 = vld [vmem:[#allocation22_spill] sm:$0xff] }
0x1874   :  { %v5395_v3 = vcombine.high %v5391_v34, %v5391_v34  ;;  %v5411_v49 = vrot.slane %v5394_v31, %v15848_v46  ;;  %v5419_v9 = vrot.slane %v5391_v34, %v15848_v46  ;;  %v5423_v37 = vrot.slane %v5393_v35, %v15848_v46  ;;  %v19341_v34 = vld [vmem:[#allocation21_spill] sm:$0xff]  ;;  %v19342_v31 = vld [vmem:[#allocation24_spill] sm:$0xff] }
0x1875   :  { %v5438_v52 = vadd.f32 %v5403_v33, %v19330_v53  ;;  %v5439_v28 = vadd.f32 %v19331_v48, %v5403_v33  ;;  %v5440_v62 = vadd.f32 %v5407_v36, %v19332_v20  ;;  %v5441_v21 = vadd.f32 %v19333_v7, %v5407_v36  ;;  %v19343_v36 = vld [vmem:[#allocation23_spill] sm:$0xff] }
0x1876   :  { %v5427_v57 = vrot.slane %v5395_v3, %v15848_v46  ;;  %v5442_v8 = vadd.f32 %v5411_v49, %v19334_v47  ;;  %v5443_v2 = vadd.f32 %v19335_v44, %v5411_v49  ;;  %v5444_v39 = vadd.f32 %v5415_v43, %v19336_v59 }
0x1877   :  { %v5445_v60 = vadd.f32 %v19337_v11, %v5415_v43  ;;  %v5446_v58 = vadd.f32 %v5419_v9, %v19338_v12  ;;  %v5447_v54 = vadd.f32 %v19339_v15, %v5419_v9  ;;  %v5448_v4 = vadd.f32 %v5423_v37, %v19340_v40  ;;  %v17202_v9 = vld [vmem:[%s19216_s5] ss:$0 sm:$0xff] }
0x1878   :  { %v5449_v35 = vadd.f32 %v19341_v34, %v5423_v37  ;;  %v5450_v33 = vadd.f32 %v5427_v57, %v19342_v31  ;;  %v5451_v3 = vadd.f32 %v19343_v36, %v5427_v57  ;;  %15234 = vtanh.f32 %v5436_v19 }
0x1879   :  { %15236 = vtanh.f32 %v5437_v14 }
0x187a   :  { %15238 = vtanh.f32 %v5438_v52 }
0x187b   :  { %15240 = vtanh.f32 %v5439_v28 }
0x187c   :  { %15242 = vtanh.f32 %v5440_v62 }
0x187d   :  { %15244 = vtanh.f32 %v5441_v21 }
0x187e   :  { %15246 = vtanh.f32 %v5444_v39 }
0x187f   :  { %15248 = vtanh.f32 %v5442_v8 }
0x1880   :  { %15250 = vtanh.f32 %v5445_v60 }
0x1881   :  { %15252 = vtanh.f32 %v5446_v58 }
0x1882   :  { %v15235_v43 = vpop.eup %15234  ;;  %15254 = vtanh.f32 %v5443_v2 }
0x1883   :  { %v15237_v49 = vpop.eup %15236  ;;  %v5468_v37 = vmul.f32 %v17202_v9, %v15235_v43  ;;  %15256 = vtanh.f32 %v5448_v4 }
0x1884   :  { %v15239_v31 = vpop.eup %15238  ;;  %v5469_v19 = vmul.f32 %v17202_v9, %v15237_v49  ;;  %15258 = vtanh.f32 %v5447_v54 }
0x1885   :  { %v15241_v14 = vpop.eup %15240  ;;  %v5484_v52 = vsel %vm265_vm2, %v5468_v37, 0.0  ;;  %v5470_v28 = vmul.f32 %v17202_v9, %v15239_v31  ;;  %15260 = vtanh.f32 %v5450_v33 }
0x1886   :  { %v15243_v62 = vpop.eup %15242  ;;  %v5487_v21 = vsel %vm265_vm2, %v5469_v19, 0.0  ;;  %5485 = vadd.xlane.f32.xlu0 %v5484_v52  ;;  %v5471_v60 = vmul.f32 %v17202_v9, %v15241_v14  ;;  %15262 = vtanh.f32 %v5449_v35 }
0x1887   :  { %5488 = vadd.xlane.f32.xlu1 %v5487_v21  ;;  %v5472_v57 = vmul.f32 %v17202_v9, %v15243_v62  ;;  %v15245_v8 = vpop.eup %15244  ;;  %v5490_v39 = vsel %vm265_vm2, %v5470_v28, 0.0  ;;  %15264 = vtanh.f32 %v5451_v3 }
0x1888   :  { %v15247_v43 = vpop.eup %15246  ;;  %v5493_v37 = vsel %vm265_vm2, %v5471_v60, 0.0  ;;  %v5473_v19 = vmul.f32 %v17202_v9, %v15245_v8 }
0x1889   :  { %v5496_v58 = vsel %vm265_vm2, %v5472_v57, 0.0  ;;  %v15249_v49 = vpop.eup %15248  ;;  %v5476_v31 = vmul.f32 %v17202_v9, %v15247_v43 }
0x188a   :  { %5491 = vadd.xlane.f32.xlu0 %v5490_v39  ;;  %v15251_v2 = vpop.eup %15250  ;;  %v5474_v14 = vmul.f32 %v17202_v9, %v15249_v49  ;;  %v5499_v28 = vsel %vm265_vm2, %v5473_v19, 0.0 }
0x188b   :  { %5497 = vadd.xlane.f32.xlu1 %v5496_v58  ;;  %v5508_v4 = vsel %vm265_vm2, %v5476_v31, 0.0  ;;  %v15253_v52 = vpop.eup %15252  ;;  %v5477_v62 = vmul.f32 %v17202_v9, %v15251_v2 }
0x188c   :  { %v15255_v21 = vpop.eup %15254  ;;  %v5502_v54 = vsel %vm265_vm2, %v5474_v14, 0.0  ;;  %v5478_v57 = vmul.f32 %v17202_v9, %v15253_v52 }
0x188d   :  { %v15257_v33 = vpop.eup %15256  ;;  %v5511_v8 = vsel %vm265_vm2, %v5477_v62, 0.0  ;;  %v5475_v39 = vmul.f32 %v17202_v9, %v15255_v21 }
0x188e   :  { %5494 = vadd.xlane.f32.xlu0 %v5493_v37  ;;  %v15259_v60 = vpop.eup %15258  ;;  %v5514_v35 = vsel %vm265_vm2, %v5478_v57, 0.0  ;;  %v5480_v43 = vmul.f32 %v17202_v9, %v15257_v33 }
0x188f   :  { %5509 = vadd.xlane.f32.xlu1 %v5508_v4  ;;  %v15261_v58 = vpop.eup %15260  ;;  %v5505_v49 = vsel %vm265_vm2, %v5475_v39, 0.0  ;;  %v5479_v31 = vmul.f32 %v17202_v9, %v15259_v60 }
0x1890   :  { %v15263_v37 = vpop.eup %15262  ;;  %v5520_v3 = vsel %vm265_vm2, %v5480_v43, 0.0  ;;  %v5482_v19 = vmul.f32 %v17202_v9, %v15261_v58 }
0x1891   :  { %v5517_v2 = vsel %vm265_vm2, %v5479_v31, 0.0  ;;  %v5481_v4 = vmul.f32 %v17202_v9, %v15263_v37  ;;  %v15265_v14 = vpop.eup %15264 }
0x1892   :  { %5500 = vadd.xlane.f32.xlu0 %v5499_v28  ;;  %v5526_v52 = vsel %vm265_vm2, %v5482_v19, 0.0  ;;  %v5483_v62 = vmul.f32 %v17202_v9, %v15265_v14 }
0x1893   :  { %5503 = vadd.xlane.f32.xlu1 %v5502_v54  ;;  %v5523_v28 = vsel %vm265_vm2, %v5481_v4, 0.0 }
0x1894   :  { %v5529_v21 = vsel %vm265_vm2, %v5483_v62, 0.0 }
0x1896   :  { %5512 = vadd.xlane.f32.xlu0 %v5511_v8 }
0x1897   :  { %5515 = vadd.xlane.f32.xlu1 %v5514_v35 }
0x189a   :  { %5506 = vadd.xlane.f32.xlu0 %v5505_v49 }
0x189b   :  { %5521 = vadd.xlane.f32.xlu1 %v5520_v3 }
0x189e   :  { %5518 = vadd.xlane.f32.xlu0 %v5517_v2 }
0x189f   :  { %5527 = vadd.xlane.f32.xlu1 %v5526_v52 }
0x18a2   :  { %5524 = vadd.xlane.f32.xlu0 %v5523_v28 }
0x18a6   :  { %5530 = vadd.xlane.f32.xlu0 %v5529_v21 }
0x1913   :  { %v5486_v54 = vpop.xlane.xlu0 %5485 }
0x1914   :  { %v5489_v57 = vpop.xlane.xlu1 %5488  ;;  %v5551_v19 = vrot.slane %v5486_v54, %v15967_v45 }
0x1915   :  { %v5555_v3 = vrot.slane %v5489_v57, %v15962_v42 }
0x1917   :  { %v17236_v33 = vpop.xlane.xlu0 %5491  ;;  %v5556_v34 = vsel %vm558_vm3, %v5555_v3, %v5551_v19 }
0x1918   :  { %v17238_v8 = vpop.xlane.xlu1 %5497  ;;  %v5560_v2 = vrot.slane %v17236_v33, %v15967_v45 }
0x1919   :  { %v5569_v14 = vrot.slane %v17238_v8, %v15967_v45 }
0x191b   :  { %v5495_v39 = vpop.xlane.xlu0 %5494 }
0x191c   :  { %v17240_v60 = vpop.xlane.xlu1 %5509  ;;  %v5564_v31 = vrot.slane %v5495_v39, %v15962_v42 }
0x191d   :  { %v5587_v3 = vrot.slane %v17240_v60, %v15967_v45 }
0x191e   :  { %v5565_v62 = vsel %vm558_vm3, %v5564_v31, %v5560_v2 }
0x191f   :  { %v17242_v35 = vpop.xlane.xlu0 %5500  ;;  %v5620_v12 = vsel %vm623_vm4, %v5565_v62, %v5556_v34 }
0x1920   :  { %v17244_v43 = vpop.xlane.xlu1 %5503  ;;  %v5573_v37 = vrot.slane %v17242_v35, %v15962_v42 }
0x1921   :  { %v5578_v21 = vrot.slane %v17244_v43, %v15967_v45 }
0x1922   :  { %v5574_v36 = vsel %vm558_vm3, %v5573_v37, %v5569_v14 }
0x1923   :  { %v17246_v58 = vpop.xlane.xlu0 %5512  ;;  %v5621_v31 = vsel %vm625_vm5, %v5574_v36, %v5620_v12 }
0x1924   :  { %v17248_v9 = vpop.xlane.xlu1 %5515  ;;  %v5591_v11 = vrot.slane %v17246_v58, %v15962_v42 }
0x1925   :  { %v5596_v2 = vrot.slane %v17248_v9, %v15967_v45 }
0x1926   :  { %v5592_v12 = vsel %vm558_vm3, %v5591_v11, %v5587_v3 }
0x1927   :  { %v17250_v49 = vpop.xlane.xlu0 %5506 }
0x1928   :  { %v5582_v4 = vrot.slane %v17250_v49, %v15962_v42  ;;  %v17263_v52 = vpop.xlane.xlu1 %5521 }
0x1929   :  { %v5605_v34 = vrot.slane %v17263_v52, %v15967_v45 }
0x192a   :  { %v5583_v40 = vsel %vm558_vm3, %v5582_v4, %v5578_v21 }
0x192b   :  { %v17265_v28 = vpop.xlane.xlu0 %5518  ;;  %v5622_v19 = vsel %vm627_vm6, %v5583_v40, %v5621_v31 }
0x192c   :  { %v5600_v15 = vrot.slane %v17265_v28, %v15962_v42  ;;  %v17290_v4 = vpop.xlane.xlu1 %5527  ;;  %v5623_v40 = vsel %vm629_vm7, %v5592_v12, %v5622_v19 }
0x192d   :  { %v5614_v21 = vrot.slane %v17290_v4, %v15967_v45 }
0x192e   :  { %v5601_v14 = vsel %vm558_vm3, %v5600_v15, %v5596_v2 }
0x192f   :  { %v17278_v59 = vpop.xlane.xlu0 %5524  ;;  %v5624_v31 = vsel %vm631_vm8, %v5601_v14, %v5623_v40 }
0x1930   :  { %v5609_v37 = vrot.slane %v17278_v59, %v15962_v42 }
0x1932   :  { %v5610_v62 = vsel %vm558_vm3, %v5609_v37, %v5605_v34 }
0x1933   :  { %v17294_v36 = vpop.xlane.xlu0 %5530  ;;  %v5625_v15 = vsel %vm633_vm9, %v5610_v62, %v5624_v31 }
0x1934   :  { %v5618_v44 = vrot.slane %v17294_v36, %v15962_v42 }
0x1936   :  { %v5619_v47 = vsel %vm558_vm3, %v5618_v44, %v5614_v21 }
0x1937   :  { %v5626_v11 = vsel %vm635_vm10, %v5619_v47, %v5625_v15 }
0x1938   :  { %v5628_v2 = vsel %vm265_vm2, %v5626_v11, -inf }
0x1939   :  { %5629 = vmax.xlane.f32.xlu1 %v5628_v2 }
0x19c6   :  { %v5630_v37 = vpop.xlane.xlu1 %5629 }
0x19c7   :  { %v5635_v3 = vrot.slane %v5630_v37, %v15848_v46  ;;  %v5639_v34 = vrot.slane %v5630_v37, %v16025_v27  ;;  %v5643_v19 = vrot.slane %v5630_v37, %v16047_v63  ;;  %v5647_v62 = vrot.slane %v5630_v37, %v16061_v1 }
0x19c9   :  { %v5672_v7 = vsub.f32 %v5486_v54, %v5635_v3  ;;  %v5673_v20 = vsub.f32 %v5489_v57, %v5635_v3  ;;  %v5675_v12 = vsub.f32 %v5495_v39, %v5639_v34  ;;  %v5674_v14 = vsub.f32 %v17236_v33, %v5639_v34 }
0x19ca   :  { %v5677_v47 = vsub.f32 %v17242_v35, %v5643_v19  ;;  %v5676_v31 = vsub.f32 %v17238_v8, %v5643_v19  ;;  %v5651_v54 = vrot.slane %v5630_v37, %v16073_v29  ;;  %v5679_v57 = vsub.f32 %v17250_v49, %v5647_v62 }
0x19cb   :  { %v5688_v44 = vmul.f32 1.442695, %v5672_v7  ;;  %v5690_v21 = vmul.f32 1.442695, %v5673_v20  ;;  %v5694_v40 = vmul.f32 1.442695, %v5675_v12  ;;  %v5678_v33 = vsub.f32 %v17244_v43, %v5647_v62 }
0x19cc   :  { %v5692_v15 = vmul.f32 1.442695, %v5674_v14  ;;  %v5698_v39 = vmul.f32 1.442695, %v5677_v47  ;;  %v5696_v20 = vmul.f32 1.442695, %v5676_v31  ;;  %v5655_v7 = vrot.slane %v5630_v37, %v16028_v41 }
0x19cd   :  { %15266 = vpow2.f32 %v5688_v44  ;;  %v5681_v35 = vsub.f32 %v17246_v58, %v5651_v54  ;;  %v5702_v11 = vmul.f32 1.442695, %v5679_v57  ;;  %v5680_v8 = vsub.f32 %v17240_v60, %v5651_v54 }
0x19ce   :  { %15268 = vpow2.f32 %v5690_v21  ;;  %v5700_v2 = vmul.f32 1.442695, %v5678_v33  ;;  %v5659_v43 = vrot.slane %v5630_v37, %v16031_v32  ;;  %v5683_v49 = vsub.f32 %v17265_v28, %v5655_v7 }
0x19cf   :  { %15270 = vpow2.f32 %v5694_v40  ;;  %v5706_v19 = vmul.f32 1.442695, %v5681_v35  ;;  %v5682_v58 = vsub.f32 %v17248_v9, %v5655_v7  ;;  %v5704_v60 = vmul.f32 1.442695, %v5680_v8 }
0x19d0   :  { %15272 = vpow2.f32 %v5692_v15  ;;  %v5663_v44 = vrot.slane %v5630_v37, %v16039_v61  ;;  %v5685_v21 = vsub.f32 %v17278_v59, %v5659_v43  ;;  %v5710_v28 = vmul.f32 1.442695, %v5683_v49 }
0x19d1   :  { %15274 = vpow2.f32 %v5698_v39  ;;  %v5684_v62 = vsub.f32 %v17263_v52, %v5659_v43  ;;  %v5708_v9 = vmul.f32 1.442695, %v5682_v58 }
0x19d2   :  { %15276 = vpow2.f32 %v5696_v20  ;;  %v5687_v31 = vsub.f32 %v17294_v36, %v5663_v44  ;;  %v5714_v37 = vmul.f32 1.442695, %v5685_v21  ;;  %v5686_v59 = vsub.f32 %v17290_v4, %v5663_v44 }
0x19d3   :  { %15278 = vpow2.f32 %v5702_v11  ;;  %v5712_v15 = vmul.f32 1.442695, %v5684_v62 }
0x19d4   :  { %15280 = vpow2.f32 %v5700_v2  ;;  %v5718_v57 = vmul.f32 1.442695, %v5687_v31  ;;  %v5716_v36 = vmul.f32 1.442695, %v5686_v59 }
0x19d5   :  { %15282 = vpow2.f32 %v5706_v19 }
0x19d6   :  { %15284 = vpow2.f32 %v5704_v60 }
0x19d7   :  { %v17320_v3 = vpop.eup %15266  ;;  %15286 = vpow2.f32 %v5710_v28 }
0x19d8   :  { %v17322_v34 = vpop.eup %15268  ;;  %5737 = vperm.xlu0 %15011, %v17320_v3   ;;  %15288 = vpow2.f32 %v5708_v9 }
0x19d9   :  { %5740 = vperm.xlu1 %15010, %v17322_v34   ;;  %v17329_v12 = vpop.eup %15270  ;;  %15290 = vpow2.f32 %v5714_v37 }
0x19da   :  { %v17331_v14 = vpop.eup %15272  ;;  %15292 = vpow2.f32 %v5712_v15 }
0x19db   :  { %v17338_v47 = vpop.eup %15274  ;;  %15294 = vpow2.f32 %v5718_v57 }
0x19dc   :  { %5746 = vperm.xlu0 %15011, %v17329_v12   ;;  %v17340_v40 = vpop.eup %15276  ;;  %15296 = vpow2.f32 %v5716_v36 }
0x19dd   :  { %5743 = vperm.xlu1 %15010, %v17331_v14   ;;  %v17346_v54 = vpop.eup %15278 }
0x19de   :  { %v17348_v52 = vpop.eup %15280 }
0x19df   :  { %v17352_v39 = vpop.eup %15282 }
0x19e0   :  { %5752 = vperm.xlu0 %15011, %v17338_v47   ;;  %v17354_v33 = vpop.eup %15284 }
0x19e1   :  { %5749 = vperm.xlu1 %15010, %v17340_v40   ;;  %v17358_v4 = vpop.eup %15286 }
0x19e2   :  { %v17360_v20 = vpop.eup %15288 }
0x19e3   :  { %v17364_v7 = vpop.eup %15290 }
0x19e4   :  { %5758 = vperm.xlu0 %15011, %v17346_v54   ;;  %v17366_v35 = vpop.eup %15292 }
0x19e5   :  { %5755 = vperm.xlu1 %15010, %v17348_v52   ;;  %v17370_v11 = vpop.eup %15294 }
0x19e6   :  { %v15297_v8 = vpop.eup %15296 }
0x19e8   :  { %5764 = vperm.xlu0 %15011, %v17352_v39  }
0x19e9   :  { %5761 = vperm.xlu1 %15010, %v17354_v33  }
0x19ec   :  { %5770 = vperm.xlu0 %15011, %v17358_v4  }
0x19ed   :  { %5767 = vperm.xlu1 %15010, %v17360_v20  }
0x19f0   :  { %5776 = vperm.xlu0 %15011, %v17364_v7  }
0x19f1   :  { %5773 = vperm.xlu1 %15010, %v17366_v35  }
0x19f4   :  { %5782 = vperm.xlu0 %15011, %v17370_v11  }
0x19f5   :  { %5779 = vperm.xlu1 %15010, %v15297_v8  }
0x1a57   :  { %v5738_v2 = vpop.permute.xlu0 %5737 }
0x1a58   :  { %v5741_v43 = vpop.permute.xlu1 %5740  ;;  %v5787_v48 = vrot.slane %v5738_v2, %v15967_v45 }
0x1a59   :  { %v5791_v36 = vrot.slane %v5741_v43, %v15962_v42 }
0x1a5b   :  { %v5747_v49 = vpop.permute.xlu0 %5746 }
0x1a5c   :  { %v5744_v19 = vpop.permute.xlu1 %5743  ;;  %v5800_v31 = vrot.slane %v5747_v49, %v15962_v42 }
0x1a5d   :  { %v5796_v9 = vrot.slane %v5744_v19, %v15967_v45 }
0x1a5f   :  { %v5753_v58 = vpop.permute.xlu0 %5752  ;;  %v5801_v49 = vsel %vm558_vm3, %v5800_v31, %v5796_v9 }
0x1a60   :  { %v5750_v60 = vpop.permute.xlu1 %5749  ;;  %v5809_v15 = vrot.slane %v5753_v58, %v15962_v42 }
0x1a61   :  { %v5805_v59 = vrot.slane %v5750_v60, %v15967_v45 }
0x1a63   :  { %v5759_v44 = vpop.permute.xlu0 %5758  ;;  %v5810_v30 = vsel %vm558_vm3, %v5809_v15, %v5805_v59 }
0x1a64   :  { %v5756_v21 = vpop.permute.xlu1 %5755  ;;  %v5818_v16 = vrot.slane %v5759_v44, %v15962_v42 }
0x1a65   :  { %v5814_v53 = vrot.slane %v5756_v21, %v15967_v45  ;;  %v5792_v21 = vsel %vm558_vm3, %v5791_v36, %v5787_v48 }
0x1a67   :  { %v5765_v28 = vpop.permute.xlu0 %5764  ;;  %v5819_v44 = vsel %vm558_vm3, %v5818_v16, %v5814_v53 }
0x1a68   :  { %v5762_v62 = vpop.permute.xlu1 %5761  ;;  %v5827_v19 = vrot.slane %v5765_v28, %v15962_v42  ;;  %v5856_v28 = vsel %vm623_vm4, %v5801_v49, %v5792_v21 }
0x1a69   :  { %v5823_v56 = vrot.slane %v5762_v62, %v15967_v45  ;;  %v5857_v31 = vsel %vm625_vm5, %v5810_v30, %v5856_v28 }
0x1a6a   :  { %v5858_v59 = vsel %vm627_vm6, %v5819_v44, %v5857_v31 }
0x1a6b   :  { %v5771_v37 = vpop.permute.xlu0 %5770  ;;  %v5828_v9 = vsel %vm558_vm3, %v5827_v19, %v5823_v56 }
0x1a6c   :  { %v5768_v57 = vpop.permute.xlu1 %5767  ;;  %v5836_v60 = vrot.slane %v5771_v37, %v15962_v42  ;;  %v5859_v16 = vsel %vm629_vm7, %v5828_v9, %v5858_v59 }
0x1a6d   :  { %v5832_v51 = vrot.slane %v5768_v57, %v15967_v45 }
0x1a6f   :  { %v5777_v58 = vpop.permute.xlu0 %5776  ;;  %v5837_v37 = vsel %vm558_vm3, %v5836_v60, %v5832_v51 }
0x1a70   :  { %v5774_v43 = vpop.permute.xlu1 %5773  ;;  %v5845_v2 = vrot.slane %v5777_v58, %v15962_v42  ;;  %v5860_v36 = vsel %vm631_vm8, %v5837_v37, %v5859_v16  ;;  %v6643_v16 = vld [vmem:[%s19212_s1 + $0x33] sm:$0x1] }
0x1a71   :  { %v5841_v62 = vrot.slane %v5774_v43, %v15967_v45 }
0x1a73   :  { %v5783_v57 = vpop.permute.xlu0 %5782  ;;  %v5846_v15 = vsel %vm558_vm3, %v5845_v2, %v5841_v62 }
0x1a74   :  { %v5780_v58 = vpop.permute.xlu1 %5779  ;;  %v5854_v48 = vrot.slane %v5783_v57, %v15962_v42  ;;  %v5861_v30 = vsel %vm633_vm9, %v5846_v15, %v5860_v36 }
0x1a75   :  { %v5850_v53 = vrot.slane %v5780_v58, %v15967_v45 }
0x1a77   :  { %v5855_v56 = vsel %vm558_vm3, %v5854_v48, %v5850_v53 }
0x1a78   :  { %v5862_v51 = vsel %vm635_vm10, %v5855_v56, %v5861_v30 }
0x1a79   :  { %v5864_v19 = vsel %vm265_vm2, %v5862_v51, 0.0 }
0x1a7a   :  { %5865 = vadd.xlane.f32.xlu1 %v5864_v19 }
0x1b07   :  { %v5866_v49 = vpop.xlane.xlu1 %5865 }
0x1b08   :  { %15298 = vrcp.f32 %v5866_v49 }
0x1b12   :  { %v15299_v60 = vpop.eup %15298 }
0x1b13   :  { %v5888_v43 = vrot.slane %v15299_v60, %v16073_v29  ;;  %v5872_v2 = vrot.slane %v15299_v60, %v15848_v46  ;;  %v5900_v62 = vrot.slane %v15299_v60, %v16039_v61  ;;  %v5876_v31 = vrot.slane %v15299_v60, %v16025_v27 }
0x1b15   :  { %v5918_v21 = vmul.f32 %v17352_v39, %v5888_v43  ;;  %v5909_v44 = vmul.f32 %v17320_v3, %v5872_v2  ;;  %v5923_v28 = vmul.f32 %v15297_v8, %v5900_v62  ;;  %v5910_v9 = vmul.f32 %v17322_v34, %v5872_v2 }
0x1b16   :  { %v5911_v37 = vmul.f32 %v17331_v14, %v5876_v31  ;;  %v5912_v57 = vmul.f32 %v17329_v12, %v5876_v31  ;;  %v5880_v39 = vrot.slane %v15299_v60, %v16047_v63  ;;  %v5884_v8 = vrot.slane %v15299_v60, %v16061_v1 }
0x1b17   :  { %6287 = vperm.xlu1 %15010, %v5918_v21   ;;  %5928 = vperm.xlu0 %15011, %v5909_v44   ;;  %v5917_v14 = vmul.f32 %v17354_v33, %v5888_v43  ;;  %v5892_v12 = vrot.slane %v15299_v60, %v16028_v41  ;;  %v6637_v33 = vld [vmem:[%s19212_s1 + $0x3] sm:$0x1] }
0x1b18   :  { %v5913_v3 = vmul.f32 %v17340_v40, %v5880_v39  ;;  %v5914_v59 = vmul.f32 %v17338_v47, %v5880_v39  ;;  %v5915_v34 = vmul.f32 %v17348_v52, %v5884_v8  ;;  %v5916_v15 = vmul.f32 %v17346_v54, %v5884_v8 }
0x1b19   :  { %v5919_v58 = vmul.f32 %v17360_v20, %v5892_v12  ;;  %v5920_v40 = vmul.f32 %v17358_v4, %v5892_v12  ;;  %v5896_v47 = vrot.slane %v15299_v60, %v16031_v32  ;;  %v5924_v54 = vmul.f32 %v17370_v11, %v5900_v62  ;;  %v6638_v4 = vld [vmem:[%s19212_s1 + $0xb] sm:$0x1]  ;;  %v6639_v20 = vld [vmem:[%s19212_s1 + $0x13] sm:$0x1] }
0x1b1a   :  { %v6642_v11 = vld [vmem:[%s19212_s1 + $0x2b] sm:$0x1]  ;;  %v6676_v53 = vrot.slane %v6638_v4, 7  ;;  %v6678_v36 = vrot.slane %v6639_v20, 6  ;;  %v6686_v60 = vrot.slane %v6643_v16, 2 }
0x1b1b   :  { %6551 = vperm.xlu1 %15010, %v5923_v28   ;;  %5931 = vperm.xlu0 %15011, %v5910_v9   ;;  %v5921_v48 = vmul.f32 %v17366_v35, %v5896_v47  ;;  %v5922_v52 = vmul.f32 %v17364_v7, %v5896_v47  ;;  %v6640_v7 = vld [vmem:[%s19212_s1 + $0x1b] sm:$0x1]  ;;  %v6641_v35 = vld [vmem:[%s19212_s1 + $0x23] sm:$0x1]  ;;  %v6684_v19 = vrot.slane %v6642_v11, 3 }
0x1b1c   :  { %v6680_v56 = vrot.slane %v6640_v7, 5  ;;  %v6682_v30 = vrot.slane %v6641_v35, 4  ;;  %v6677_v51 = vsel %vm623_vm4, %v6676_v53, %v6637_v33 }
0x1b1d   :  { %v6679_v49 = vsel %vm625_vm5, %v6678_v36, %v6677_v51 }
0x1b1e   :  { %v6681_v43 = vsel %vm627_vm6, %v6680_v56, %v6679_v49 }
0x1b1f   :  { %6017 = vperm.xlu0 %15011, %v5911_v37   ;;  %v6683_v21 = vsel %vm629_vm7, %v6682_v30, %v6681_v43 }
0x1b20   :  { %v6685_v44 = vsel %vm631_vm8, %v6684_v19, %v6683_v21 }
0x1b21   :  { %v6687_v62 = vsel %vm633_vm9, %v6686_v60, %v6685_v44 }
0x1b23   :  { %6020 = vperm.xlu0 %15011, %v5912_v57  }
0x1b27   :  { %6106 = vperm.xlu0 %15011, %v5913_v3  }
0x1b2b   :  { %6109 = vperm.xlu0 %15011, %v5914_v59  }
0x1b2f   :  { %6195 = vperm.xlu0 %15011, %v5915_v34  }
0x1b33   :  { %6198 = vperm.xlu0 %15011, %v5916_v15  }
0x1b37   :  { %6284 = vperm.xlu0 %15011, %v5917_v14  }
0x1b3b   :  { %6373 = vperm.xlu0 %15011, %v5919_v58  }
0x1b3f   :  { %6376 = vperm.xlu0 %15011, %v5920_v40  }
0x1b43   :  { %6462 = vperm.xlu0 %15011, %v5921_v48  }
0x1b47   :  { %6465 = vperm.xlu0 %15011, %v5922_v52  }
0x1b4b   :  { %6554 = vperm.xlu0 %15011, %v5924_v54  }
0x1b4f   :  { %6693 = vrot.lane.b32.xlu0 %v17143_v50, %s15662_s13  ;;  %v6644_v50 = vld [vmem:[%s19212_s1 + $0x3b] sm:$0x1] }
0x1b50   :  { %v6688_v2 = vrot.slane %v6644_v50, 1 }
0x1b52   :  { %v6689_v28 = vsel %vm635_vm10, %v6688_v2, %v6687_v62 }
0x1b53   :  { %6690 = vrot.lane.b32.xlu1 %v6689_v28, %s15661_s25 }
0x1b96   :  { %v5929_v9 = vpop.permute.xlu0 %5928  ;;  %v6288_v4 = vpop.permute.xlu1 %6287 }
0x1b97   :  { %v5936_v37 = vrot.slane %v5929_v9, %v15967_v45  ;;  %v6296_v35 = vrot.slane %v6288_v4, %v15962_v42 }
0x1b9a   :  { %v5932_v31 = vpop.permute.xlu0 %5931  ;;  %v6552_v43 = vpop.permute.xlu1 %6551 }
0x1b9b   :  { %v5940_v57 = vrot.slane %v5932_v31, %v15962_v42  ;;  %v6559_v44 = vrot.slane %v6552_v43, %v15967_v45 }
0x1b9d   :  { %v5941_v39 = vsel %vm558_vm3, %v5940_v57, %v5936_v37 }
0x1b9e   :  { %14317 = vmatmul.mubr.msk.f32.vlgmr.msra.gmra.mrb[38].mxu1 %vm265_vm2, %v5941_v39  ;;  %v6018_v3 = vpop.permute.xlu0 %6017 }
0x1b9f   :  { %14829 = vmatpush3.bf16.msra.mxu1 %v15759_v13  ;;  %14330 = vmatprep.mubr.msk.f32.mxu1 %vm15657_vm1, %v19293_v55  ;;  %v6025_v8 = vrot.slane %v6018_v3, %v15967_v45 }
0x1ba0   :  { %14833 = vmatprep.subr.bf16.mxu1 %v19294_v0 }
0x1ba2   :  { %v6021_v59 = vpop.permute.xlu0 %6020 }
0x1ba3   :  { %v6029_v34 = vrot.slane %v6021_v59, %v15962_v42 }
0x1ba5   :  { %v6030_v15 = vsel %vm558_vm3, %v6029_v34, %v6025_v8 }
0x1ba6   :  { %14324 = vmatmul.mubr.msk.f32.vlgmr.msra.gmra.mrb[46].mxu0 %vm265_vm2, %v6030_v15  ;;  %v6107_v14 = vpop.permute.xlu0 %6106 }
0x1ba7   :  { %14832 = vmatpush3.bf16.msra.mxu0 %v15774_v18  ;;  %14337 = vmatprep.mubr.msk.f32.mxu0 %vm15657_vm1, %v19293_v55  ;;  %v6114_v58 = vrot.slane %v6107_v14, %v15967_v45 }
0x1ba8   :  { %14836 = vmatprep.subr.bf16.mxu0 %v19294_v0 }
0x1baa   :  { %v6110_v12 = vpop.permute.xlu0 %6109 }
0x1bab   :  { %v6118_v40 = vrot.slane %v6110_v12, %v15962_v42 }
0x1bad   :  { %v6119_v47 = vsel %vm558_vm3, %v6118_v40, %v6114_v58 }
0x1bae   :  { %14331 = vmatmul.mubr.msk.f32.vlgmr.msra.gmra.mrb[40].mxu1 %vm265_vm2, %v6119_v47  ;;  %v6196_v48 = vpop.permute.xlu0 %6195 }
0x1baf   :  { %14835 = vmatpush3.bf16.msra.mxu1 %v15785_v22  ;;  %14344 = vmatprep.mubr.msk.f32.mxu1 %vm15657_vm1, %v19293_v55  ;;  %v6203_v54 = vrot.slane %v6196_v48, %v15967_v45 }
0x1bb0   :  { %14839 = vmatprep.subr.bf16.mxu1 %v19294_v0 }
0x1bb2   :  { %v6199_v52 = vpop.permute.xlu0 %6198 }
0x1bb3   :  { %v6207_v33 = vrot.slane %v6199_v52, %v15962_v42 }
0x1bb5   :  { %v6208_v20 = vsel %vm558_vm3, %v6207_v33, %v6203_v54 }
0x1bb6   :  { %14338 = vmatmul.mubr.msk.f32.vlgmr.msra.gmra.mrb[48].mxu0 %vm265_vm2, %v6208_v20  ;;  %v6285_v7 = vpop.permute.xlu0 %6284 }
0x1bb7   :  { %v6292_v11 = vrot.slane %v6285_v7, %v15967_v45  ;;  %14838 = vmatpush3.bf16.msra.mxu0 %v15787_v23  ;;  %14351 = vmatprep.mubr.msk.f32.mxu0 %vm15657_vm1, %v19293_v55 }
0x1bb8   :  { %14842 = vmatprep.subr.bf16.mxu0 %v19294_v0 }
0x1bb9   :  { %v6297_v16 = vsel %vm558_vm3, %v6296_v35, %v6292_v11 }
0x1bba   :  { %14345 = vmatmul.mubr.msk.f32.vlgmr.msra.gmra.mrb[42].mxu1 %vm265_vm2, %v6297_v16  ;;  %v6374_v53 = vpop.permute.xlu0 %6373 }
0x1bbb   :  { %14841 = vmatpush3.bf16.msra.mxu1 %v15797_v26  ;;  %14358 = vmatprep.mubr.msk.f32.mxu1 %vm15657_vm1, %v19293_v55  ;;  %v6381_v50 = vrot.slane %v6374_v53, %v15967_v45 }
0x1bbc   :  { %14845 = vmatprep.subr.bf16.mxu1 %v19294_v0 }
0x1bbe   :  { %v6377_v36 = vpop.permute.xlu0 %6376 }
0x1bbf   :  { %v6385_v56 = vrot.slane %v6377_v36, %v15962_v42 }
0x1bc1   :  { %v6386_v30 = vsel %vm558_vm3, %v6385_v56, %v6381_v50 }
0x1bc2   :  { %14352 = vmatmul.mubr.msk.f32.vlgmr.msra.gmra.mrb[50].mxu0 %vm265_vm2, %v6386_v30  ;;  %v6463_v51 = vpop.permute.xlu0 %6462 }
0x1bc3   :  { %14844 = vmatpush3.bf16.msra.mxu0 %v19306_v38  ;;  %14365 = vmatprep.mubr.msk.f32.mxu0 %vm15657_vm1, %v19293_v55  ;;  %v6470_v49 = vrot.slane %v6463_v51, %v15967_v45 }
0x1bc4   :  { %14851 = vmatprep.subr.bf16.mxu0 %v19294_v0 }
0x1bc5   :  { %v6691_v30 = vpop.permute.xlu1 %6690 }
0x1bc6   :  { %v6466_v19 = vpop.permute.xlu0 %6465 }
0x1bc7   :  { %v6474_v60 = vrot.slane %v6466_v19, %v15962_v42 }
0x1bc9   :  { %v6475_v2 = vsel %vm558_vm3, %v6474_v60, %v6470_v49 }
0x1bca   :  { %14359 = vmatmul.mubr.msk.f32.vlgmr.msra.gmra.mrb[44].mxu1 %vm265_vm2, %v6475_v2  ;;  %v6555_v21 = vpop.permute.xlu0 %6554  ;;  %v15614_v2 = vld [vmem:[%s19218_s7] ss:$0 sm:$0xff] }
0x1bcb   :  { %v6563_v62 = vrot.slane %v6555_v21, %v15962_v42  ;;  %14847 = vmatpush3.bf16.msra.mxu1 %v16282_v10  ;;  %14376 = vmatprep.mubr.msk.f32.mxu1 %vm15657_vm1, %v19293_v55 }
0x1bcc   :  { %14848 = vmatprep.subr.bf16.mxu1 %v19294_v0 }
0x1bcd   :  { %v6564_v28 = vsel %vm558_vm3, %v6563_v62, %v6559_v44 }
0x1bce   :  { %14366 = vmatmul.mubr.msk.f32.vlgmr.msra.gmra.mrb[52].mxu0 %vm265_vm2, %v6564_v28  ;;  %v6694_v19 = vpop.permute.xlu0 %6693 }
0x1bcf   :  { %14850 = vmatpush3.bf16.msra.mxu1 %v16292_v5  ;;  %14853 = vmatpush3.bf16.msra.mxu0 %v16324_v6 }
0x1bd0   :  { %14383 = vmatprep.mubr.msk.f32.mxu0 %vm15657_vm1, %v19293_v55  ;;  %14854 = vmatprep.subr.bf16.mxu0 %v19294_v0 }
0x1bd1   :  { %14857 = vmatprep.subr.bf16.mxu1 %v19294_v0 }
0x1c71   :  { %v6010_v9 = vpop.f32.mrb[38].mxu1 }
0x1c72   :  { %v14318_v31 = vpop.f32.mrb[39].mxu1 }
0x1c79   :  { %v6099_v37 = vpop.f32.mrb[46].mxu0 }
0x1c7a   :  { %v6653_v57 = vrot.slane %v6099_v37, 7  ;;  %v14325_v39 = vpop.f32.mrb[47].mxu0 }
0x1c7c   :  { %v6654_v3 = vsel %vm623_vm4, %v6653_v57, %v6010_v9 }
0x1c81   :  { %v6188_v59 = vpop.f32.mrb[40].mxu1 }
0x1c82   :  { %v6655_v8 = vrot.slane %v6188_v59, 6  ;;  %v14332_v34 = vpop.f32.mrb[41].mxu1 }
0x1c84   :  { %v6656_v15 = vsel %vm625_vm5, %v6655_v8, %v6654_v3 }
0x1c89   :  { %v6277_v14 = vpop.f32.mrb[48].mxu0 }
0x1c8a   :  { %v6657_v12 = vrot.slane %v6277_v14, 5  ;;  %v14339_v58 = vpop.f32.mrb[49].mxu0 }
0x1c8c   :  { %v6658_v40 = vsel %vm627_vm6, %v6657_v12, %v6656_v15 }
0x1c8d   :  { %v6366_v47 = vpop.f32.mrb[42].mxu1 }
0x1c8e   :  { %v6659_v48 = vrot.slane %v6366_v47, 4  ;;  %v14346_v52 = vpop.f32.mrb[43].mxu1 }
0x1c90   :  { %v6660_v54 = vsel %vm629_vm7, %v6659_v48, %v6658_v40  ;;  %v15615_v40 = vld [vmem:[%s19220_s9] ss:$0 sm:$0xff] }
0x1c95   :  { %v6455_v33 = vpop.f32.mrb[50].mxu0 }
0x1c96   :  { %v6661_v4 = vrot.slane %v6455_v33, 3  ;;  %v14353_v20 = vpop.f32.mrb[51].mxu0 }
0x1c98   :  { %v6662_v7 = vsel %vm631_vm8, %v6661_v4, %v6660_v54  ;;  %v19345_v54 = vld [vmem:[#allocation10_spill] sm:$0xff] }
0x1c9d   :  { %v6544_v35 = vpop.f32.mrb[44].mxu1 }
0x1c9e   :  { %v6663_v11 = vrot.slane %v6544_v35, 2  ;;  %v14360_v16 = vpop.f32.mrb[45].mxu1 }
0x1ca0   :  { %v6664_v53 = vsel %vm633_vm9, %v6663_v11, %v6662_v7  ;;  %v15616_v11 = vld [vmem:[%s19215_s4] ss:$0 sm:$0xff] }
0x1ca1   :  { %v6633_v36 = vpop.f32.mrb[52].mxu0 }
0x1ca2   :  { %v6665_v50 = vrot.slane %v6633_v36, 1  ;;  %v14367_v56 = vpop.f32.mrb[53].mxu0 }
0x1ca4   :  { %v6666_v51 = vsel %vm635_vm10, %v6665_v50, %v6664_v53 }
0x1ca5   :  { %v6696_v49 = vsel %vm53_vm0, %v6666_v51, %v6691_v30 }
0x1ca6   :  { %v6697_v60 = vsel %vm265_vm2, %v6696_v49, %v6694_v19 }
0x1ca7   :  { %14377 = vmatmul.mubr.msk.f32.vlgmr.msra.gmra.mrb[46].mxu1 %vm1711_vm11, %v6697_v60 }
0x1ca8   :  { %14859 = vmatpush3.bf16.msra.mxu1 %v15770_v17  ;;  %14397 = vmatprep.mubr.msk.f32.mxu1 %vm15657_vm1, %v19293_v55 }
0x1ca9   :  { %14863 = vmatprep.subr.bf16.mxu1 %v19294_v0 }
0x1d7a   :  { %v6767_v43 = vpop.f32.mrb[46].mxu1 }
0x1d7b   :  { %v6768_v21 = vadd.f32 %v15614_v2, %v6767_v43  ;;  %v14378_v44 = vpop.f32.mrb[47].mxu1 }
0x1d7d   :  { %15300 = vtanh.f32 %v6768_v21  ;;  %v13669_v28 = vmul.f32 -1.442695, %v6768_v21 }
0x1d7f   :  { %15302 = vpow2.f32 %v13669_v28 }
0x1d87   :  { %v15301_v62 = vpop.eup %15300 }
0x1d88   :  { %6780 = vrot.lane.b32.xlu1 %v15301_v62, %s15662_s13 }
0x1d89   :  { %v15303_v9 = vpop.eup %15302 }
0x1d8a   :  { %v6774_v31 = vadd.f32 1.0, %v15303_v9 }
0x1d8c   :  { %15304 = vrcp.f32 %v6774_v31 }
0x1d96   :  { %v15305_v37 = vpop.eup %15304 }
0x1d97   :  { %v6778_v3 = vmul.f32 %v15305_v37, %v17139_v25  ;;  %v19344_v25 = vld [vmem:[#allocation6_spill] sm:$0xff] }
0x1dfa   :  { %v6781_v57 = vpop.permute.xlu1 %6780 }
0x1dfb   :  { %v6783_v39 = vmul.f32 %v15305_v37, %v6781_v57 }
0x1dfd   :  { %6785 = vrot.lane.b32.xlu0 %v6783_v39, %s15663_s14 }
0x1e6f   :  { %v6786_v59 = vpop.permute.xlu0 %6785 }
0x1e70   :  { %v17548_v8 = vadd.f32 %v6786_v59, %v6778_v3 }
0x1e72   :  { %15306 = vtanh.f32 %v17548_v8 }
0x1e7c   :  { %v15307_v34 = vpop.eup %15306 }
0x1e7d   :  { %6791 = vrot.lane.b32.xlu1 %v15307_v34, %s15664_s19 }
0x1eef   :  { %v6792_v15 = vpop.permute.xlu1 %6791 }
0x1ef0   :  { %v17552_v14 = vmul.f32 %v15305_v37, %v6792_v15 }
0x1ef2   :  { %6796 = vrot.lane.b32.xlu0 %v17552_v14, %s15665_s20 }
0x1f64   :  { %v6797_v12 = vpop.permute.xlu0 %6796 }
0x1f65   :  { %14384 = vmatmul.mubr.msk.f32.vlgmr.msra.gmra.mrb[54].mxu0 %vm265_vm2, %v6797_v12 }
0x1f66   :  { %14856 = vmatpush3.bf16.msra.mxu0 %v19325_v24  ;;  %14390 = vmatprep.mubr.msk.f32.mxu0 %vm15657_vm1, %v19293_v55 }
0x1f67   :  { %14860 = vmatprep.subr.bf16.mxu0 %v19294_v0 }
0x1f69   :  { %14391 = vmatmul.mubr.msk.f32.vlgmr.msra.gmra.mrb[56].mxu0 %vm265_vm2, %v6797_v12 }
0x1f6a   :  { %14862 = vmatpush3.bf16.msra.mxu0 %v19344_v25  ;;  %14404 = vmatprep.mubr.msk.f32.mxu0 %vm15657_vm1, %v19293_v55 }
0x1f6b   :  { %14866 = vmatprep.subr.bf16.mxu0 %v19294_v0 }
0x2038   :  { %v6866_v58 = vpop.f32.mrb[54].mxu0 }
0x2039   :  { %v6867_v47 = vadd.f32 %v15615_v40, %v6866_v58  ;;  %v14385_v48 = vpop.f32.mrb[55].mxu0  ;;  %v19346_v58 = vld [vmem:[#allocation9_spill] sm:$0xff] }
0x203b   :  { %v6871_v52 = vcombine.high %v6867_v47, %v6867_v47  ;;  %v6878_v33 = vrot.slane %v6867_v47, %v19345_v54  ;;  %v19347_v47 = vld [vmem:[#allocation8_spill] sm:$0xff] }
0x203c   :  { %v7002_v4 = vpop.f32.mrb[56].mxu0 }
0x203d   :  { %v6885_v20 = vrot.slane %v6871_v52, %v19345_v54  ;;  %v6886_v7 = vcombine.high %v6878_v33, %v6878_v33  ;;  %v6894_v35 = vrot.slane %v6878_v33, %v19345_v54  ;;  %13671 = vst.sshfl [vmem:[#allocation2 + $0x3] sm:$0x1 pattern:$0x73625140] %v6878_v33  ;;  %v7003_v16 = vadd.f32 %v15616_v11, %v7002_v4  ;;  %v14392_v53 = vpop.f32.mrb[57].mxu0  ;;  %v19349_v11 = vld [vmem:[#allocation11_spill] sm:$0xff] }
0x203e   :  { %v19350_v53 = vld [vmem:[#allocation14_spill] sm:$0xff] }
0x203f   :  { %v6887_v36 = vcombine.high %v6885_v20, %v6885_v20  ;;  %v6901_v50 = vrot.slane %v6885_v20, %v19345_v54  ;;  %v6908_v56 = vrot.slane %v6886_v7, %v19345_v54  ;;  %v6916_v30 = vcombine.high %v6894_v35, %v6894_v35  ;;  %13672 = vst.sshfl [vmem:[#allocation2 + $0xb] sm:$0x1 pattern:$0x73625140] %v6886_v7  ;;  %v19348_v7 = vld [vmem:[#allocation12_spill] sm:$0xff] }
0x2040   :  { %13673 = vst.sshfl [vmem:[#allocation2 + $0x23] sm:$0x1 pattern:$0x73625140] %v6885_v20  ;;  %v7007_v51 = vcombine.high %v7003_v16, %v7003_v16  ;;  %v7014_v19 = vrot.slane %v7003_v16, %v19345_v54 }
0x2041   :  { %v6915_v49 = vrot.slane %v6887_v36, %v19345_v54  ;;  %v6917_v60 = vcombine.high %v6901_v50, %v6901_v50  ;;  %v6918_v43 = vcombine.high %v6908_v56, %v6908_v56  ;;  %6930 = vst [vmem:[#allocation2 + $0x13] sm:$0x1] %v6916_v30  ;;  %13674 = vst.sshfl [vmem:[#allocation2 + $0x2b] sm:$0x1 pattern:$0x73625140] %v6887_v36 }
0x2042   :  { %v7021_v2 = vrot.slane %v7007_v51, %v19345_v54  ;;  %v7022_v21 = vcombine.high %v7014_v19, %v7014_v19  ;;  %v7030_v44 = vrot.slane %v7014_v19, %v19345_v54  ;;  %v19351_v50 = vld [vmem:[#allocation13_spill] sm:$0xff]  ;;  %v19352_v51 = vld [vmem:[#allocation16_spill] sm:$0xff] }
0x2043   :  { %v6919_v62 = vcombine.high %v6915_v49, %v6915_v49  ;;  %6931 = vst [vmem:[#allocation2 + $0x1b] sm:$0x1] %v6918_v43  ;;  %6934 = vst [vmem:[#allocation2 + $0x33] sm:$0x1] %v6917_v60  ;;  %v19353_v49 = vld [vmem:[#allocation15_spill] sm:$0xff]  ;;  %v19354_v43 = vld [vmem:[#allocation18_spill] sm:$0xff] }
0x2044   :  { %v7023_v28 = vcombine.high %v7021_v2, %v7021_v2  ;;  %v7037_v9 = vrot.slane %v7021_v2, %v19345_v54  ;;  %v7044_v31 = vrot.slane %v7022_v21, %v19345_v54  ;;  %v7052_v37 = vcombine.high %v7030_v44, %v7030_v44  ;;  %v19355_v21 = vld [vmem:[#allocation17_spill] sm:$0xff] }
0x2045   :  { %6935 = vst [vmem:[#allocation2 + $0x3b] sm:$0x1] %v6919_v62  ;;  %v7059_v57 = vrot.slane %v7030_v44, %v15848_v46  ;;  %v19356_v62 = vld [vmem:[#allocation20_spill] sm:$0xff] }
0x2046   :  { %v7051_v39 = vrot.slane %v7023_v28, %v19345_v54  ;;  %v7053_v3 = vcombine.high %v7037_v9, %v7037_v9  ;;  %v7054_v59 = vcombine.high %v7044_v31, %v7044_v31  ;;  %v7063_v34 = vrot.slane %v7044_v31, %v15848_v46 }
0x2047   :  { %v7067_v15 = vrot.slane %v7052_v37, %v15848_v46  ;;  %v7075_v12 = vrot.slane %v7037_v9, %v15848_v46  ;;  %v7096_v40 = vadd.f32 %v7059_v57, %v19346_v58  ;;  %v7097_v48 = vadd.f32 %v19347_v47, %v7059_v57  ;;  %v19357_v9 = vld [vmem:[#allocation19_spill] sm:$0xff]  ;;  %v19358_v37 = vld [vmem:[#allocation22_spill] sm:$0xff] }
0x2048   :  { %v7055_v52 = vcombine.high %v7051_v39, %v7051_v39  ;;  %v7071_v33 = vrot.slane %v7054_v59, %v15848_v46  ;;  %v7079_v4 = vrot.slane %v7051_v39, %v15848_v46  ;;  %v7083_v20 = vrot.slane %v7053_v3, %v15848_v46  ;;  %v19359_v39 = vld [vmem:[#allocation21_spill] sm:$0xff]  ;;  %v19360_v59 = vld [vmem:[#allocation24_spill] sm:$0xff] }
0x2049   :  { %v7098_v35 = vadd.f32 %v7063_v34, %v19348_v7  ;;  %v7099_v16 = vadd.f32 %v19349_v11, %v7063_v34  ;;  %v7100_v36 = vadd.f32 %v7067_v15, %v19350_v53  ;;  %v7101_v56 = vadd.f32 %v19351_v50, %v7067_v15  ;;  %v19361_v15 = vld [vmem:[#allocation23_spill] sm:$0xff] }
0x204a   :  { %v7087_v30 = vrot.slane %v7055_v52, %v15848_v46  ;;  %v7102_v19 = vadd.f32 %v7071_v33, %v19352_v51  ;;  %v7103_v60 = vadd.f32 %v19353_v49, %v7071_v33  ;;  %v7104_v2 = vadd.f32 %v7075_v12, %v19354_v43 }
0x204b   :  { %v7105_v44 = vadd.f32 %v19355_v21, %v7075_v12  ;;  %v7106_v28 = vadd.f32 %v7079_v4, %v19356_v62  ;;  %v7107_v31 = vadd.f32 %v19357_v9, %v7079_v4  ;;  %v7108_v57 = vadd.f32 %v7083_v20, %v19358_v37  ;;  %v17611_v4 = vld [vmem:[%s19216_s5] ss:$0 sm:$0xff] }
0x204c   :  { %v7109_v3 = vadd.f32 %v19359_v39, %v7083_v20  ;;  %v7110_v34 = vadd.f32 %v7087_v30, %v19360_v59  ;;  %v7111_v52 = vadd.f32 %v19361_v15, %v7087_v30  ;;  %15308 = vtanh.f32 %v7096_v40 }
0x204d   :  { %15310 = vtanh.f32 %v7097_v48 }
0x204e   :  { %15312 = vtanh.f32 %v7098_v35 }
0x204f   :  { %15314 = vtanh.f32 %v7100_v36 }
0x2050   :  { %15316 = vtanh.f32 %v7099_v16 }
0x2051   :  { %15318 = vtanh.f32 %v7102_v19 }
0x2052   :  { %15320 = vtanh.f32 %v7104_v2 }
0x2053   :  { %15322 = vtanh.f32 %v7101_v56 }
0x2054   :  { %15324 = vtanh.f32 %v7106_v28 }
0x2055   :  { %15326 = vtanh.f32 %v7105_v44 }
0x2056   :  { %v15309_v12 = vpop.eup %15308  ;;  %15328 = vtanh.f32 %v7108_v57 }
0x2057   :  { %v15311_v33 = vpop.eup %15310  ;;  %v7128_v20 = vmul.f32 %v17611_v4, %v15309_v12  ;;  %15330 = vtanh.f32 %v7103_v60 }
0x2058   :  { %v15313_v59 = vpop.eup %15312  ;;  %v7129_v40 = vmul.f32 %v17611_v4, %v15311_v33  ;;  %15332 = vtanh.f32 %v7110_v34 }
0x2059   :  { %v7144_v48 = vsel %vm265_vm2, %v7128_v20, 0.0  ;;  %v15315_v35 = vpop.eup %15314  ;;  %v7130_v36 = vmul.f32 %v17611_v4, %v15313_v59  ;;  %15334 = vtanh.f32 %v7107_v31 }
0x205a   :  { %v7147_v16 = vsel %vm265_vm2, %v7129_v40, 0.0  ;;  %7145 = vadd.xlane.f32.xlu1 %v7144_v48  ;;  %v15317_v56 = vpop.eup %15316  ;;  %v7132_v30 = vmul.f32 %v17611_v4, %v15315_v35  ;;  %15336 = vtanh.f32 %v7109_v3 }
0x205b   :  { %7148 = vadd.xlane.f32.xlu0 %v7147_v16  ;;  %v15319_v19 = vpop.eup %15318  ;;  %v7150_v44 = vsel %vm265_vm2, %v7130_v36, 0.0  ;;  %v7131_v12 = vmul.f32 %v17611_v4, %v15317_v56  ;;  %15338 = vtanh.f32 %v7111_v52 }
0x205c   :  { %v7156_v2 = vsel %vm265_vm2, %v7132_v30, 0.0  ;;  %v15321_v28 = vpop.eup %15320  ;;  %v7134_v57 = vmul.f32 %v17611_v4, %v15319_v19 }
0x205d   :  { %v15323_v33 = vpop.eup %15322  ;;  %v7136_v20 = vmul.f32 %v17611_v4, %v15321_v28  ;;  %v7153_v60 = vsel %vm265_vm2, %v7131_v12, 0.0 }
0x205e   :  { %7157 = vadd.xlane.f32.xlu1 %v7156_v2  ;;  %v15325_v40 = vpop.eup %15324  ;;  %v7133_v48 = vmul.f32 %v17611_v4, %v15323_v33  ;;  %v7162_v16 = vsel %vm265_vm2, %v7134_v57, 0.0 }
0x205f   :  { %7151 = vadd.xlane.f32.xlu0 %v7150_v44  ;;  %v7168_v59 = vsel %vm265_vm2, %v7136_v20, 0.0  ;;  %v15327_v35 = vpop.eup %15326  ;;  %v7138_v36 = vmul.f32 %v17611_v4, %v15325_v40 }
0x2060   :  { %v15329_v56 = vpop.eup %15328  ;;  %v7159_v31 = vsel %vm265_vm2, %v7133_v48, 0.0  ;;  %v7137_v34 = vmul.f32 %v17611_v4, %v15327_v35 }
0x2061   :  { %v15331_v30 = vpop.eup %15330  ;;  %v7174_v19 = vsel %vm265_vm2, %v7138_v36, 0.0  ;;  %v7140_v2 = vmul.f32 %v17611_v4, %v15329_v56 }
0x2062   :  { %7169 = vadd.xlane.f32.xlu1 %v7168_v59  ;;  %v15333_v28 = vpop.eup %15332  ;;  %v7171_v3 = vsel %vm265_vm2, %v7137_v34, 0.0  ;;  %v7135_v44 = vmul.f32 %v17611_v4, %v15331_v30 }
0x2063   :  { %7154 = vadd.xlane.f32.xlu0 %v7153_v60  ;;  %v15335_v12 = vpop.eup %15334  ;;  %v7180_v33 = vsel %vm265_vm2, %v7140_v2, 0.0  ;;  %v7142_v20 = vmul.f32 %v17611_v4, %v15333_v28 }
0x2064   :  { %v7165_v59 = vsel %vm265_vm2, %v7135_v44, 0.0  ;;  %v7139_v57 = vmul.f32 %v17611_v4, %v15335_v12  ;;  %v15337_v40 = vpop.eup %15336 }
0x2065   :  { %v7186_v52 = vsel %vm265_vm2, %v7142_v20, 0.0  ;;  %v7141_v48 = vmul.f32 %v17611_v4, %v15337_v40  ;;  %v15339_v35 = vpop.eup %15338 }
0x2066   :  { %7163 = vadd.xlane.f32.xlu1 %v7162_v16  ;;  %v7177_v60 = vsel %vm265_vm2, %v7139_v57, 0.0  ;;  %v7143_v36 = vmul.f32 %v17611_v4, %v15339_v35 }
0x2067   :  { %7160 = vadd.xlane.f32.xlu0 %v7159_v31  ;;  %v7183_v16 = vsel %vm265_vm2, %v7141_v48, 0.0 }
0x2068   :  { %v7189_v56 = vsel %vm265_vm2, %v7143_v36, 0.0 }
0x206a   :  { %7175 = vadd.xlane.f32.xlu1 %v7174_v19 }
0x206b   :  { %7172 = vadd.xlane.f32.xlu0 %v7171_v3 }
0x206e   :  { %7181 = vadd.xlane.f32.xlu1 %v7180_v33 }
0x206f   :  { %7166 = vadd.xlane.f32.xlu0 %v7165_v59 }
0x2072   :  { %7187 = vadd.xlane.f32.xlu1 %v7186_v52 }
0x2073   :  { %7178 = vadd.xlane.f32.xlu0 %v7177_v60 }
0x2077   :  { %7184 = vadd.xlane.f32.xlu0 %v7183_v16 }
0x207b   :  { %7190 = vadd.xlane.f32.xlu0 %v7189_v56 }
0x20e7   :  { %v7146_v31 = vpop.xlane.xlu1 %7145 }
0x20e8   :  { %v7149_v34 = vpop.xlane.xlu0 %7148  ;;  %v7211_v40 = vrot.slane %v7146_v31, %v15967_v45 }
0x20e9   :  { %v7215_v57 = vrot.slane %v7149_v34, %v15962_v42 }
0x20eb   :  { %v7158_v30 = vpop.xlane.xlu1 %7157  ;;  %v7216_v39 = vsel %vm558_vm3, %v7215_v57, %v7211_v40 }
0x20ec   :  { %v17645_v19 = vpop.xlane.xlu0 %7151  ;;  %v7229_v48 = vrot.slane %v7158_v30, %v15967_v45 }
0x20ed   :  { %v7220_v52 = vrot.slane %v17645_v19, %v15967_v45 }
0x20ef   :  { %v17647_v2 = vpop.xlane.xlu1 %7169 }
0x20f0   :  { %v17649_v28 = vpop.xlane.xlu0 %7154  ;;  %v7247_v57 = vrot.slane %v17647_v2, %v15967_v45 }
0x20f1   :  { %v7224_v20 = vrot.slane %v17649_v28, %v15962_v42 }
0x20f3   :  { %v17653_v44 = vpop.xlane.xlu1 %7163  ;;  %v7225_v36 = vsel %vm558_vm3, %v7224_v20, %v7220_v52 }
0x20f4   :  { %v17651_v3 = vpop.xlane.xlu0 %7160  ;;  %v7238_v56 = vrot.slane %v17653_v44, %v15967_v45  ;;  %v7280_v62 = vsel %vm623_vm4, %v7225_v36, %v7216_v39 }
0x20f5   :  { %v7233_v59 = vrot.slane %v17651_v3, %v15962_v42 }
0x20f7   :  { %v17657_v4 = vpop.xlane.xlu1 %7175  ;;  %v7234_v15 = vsel %vm558_vm3, %v7233_v59, %v7229_v48 }
0x20f8   :  { %v17655_v12 = vpop.xlane.xlu0 %7172  ;;  %v7281_v20 = vsel %vm625_vm5, %v7234_v15, %v7280_v62  ;;  %v7256_v52 = vrot.slane %v17657_v4, %v15967_v45 }
0x20f9   :  { %v7251_v21 = vrot.slane %v17655_v12, %v15962_v42 }
0x20fb   :  { %v17672_v35 = vpop.xlane.xlu1 %7181  ;;  %v7252_v62 = vsel %vm558_vm3, %v7251_v21, %v7247_v57 }
0x20fc   :  { %v17659_v33 = vpop.xlane.xlu0 %7166  ;;  %v7265_v39 = vrot.slane %v17672_v35, %v15967_v45 }
0x20fd   :  { %v7242_v60 = vrot.slane %v17659_v33, %v15962_v42 }
0x20ff   :  { %v7243_v37 = vsel %vm558_vm3, %v7242_v60, %v7238_v56  ;;  %v17699_v60 = vpop.xlane.xlu1 %7187 }
0x2100   :  { %v17674_v16 = vpop.xlane.xlu0 %7178  ;;  %v7282_v40 = vsel %vm627_vm6, %v7243_v37, %v7281_v20  ;;  %v7274_v56 = vrot.slane %v17699_v60, %v15967_v45 }
0x2101   :  { %v7260_v9 = vrot.slane %v17674_v16, %v15962_v42  ;;  %v7283_v37 = vsel %vm629_vm7, %v7252_v62, %v7282_v40 }
0x2103   :  { %v7261_v48 = vsel %vm558_vm3, %v7260_v9, %v7256_v52 }
0x2104   :  { %v17687_v43 = vpop.xlane.xlu0 %7184  ;;  %v7284_v20 = vsel %vm631_vm8, %v7261_v48, %v7283_v37 }
0x2105   :  { %v7269_v59 = vrot.slane %v17687_v43, %v15962_v42 }
0x2107   :  { %v7270_v36 = vsel %vm558_vm3, %v7269_v59, %v7265_v39 }
0x2108   :  { %v17703_v15 = vpop.xlane.xlu0 %7190  ;;  %v7285_v9 = vsel %vm633_vm9, %v7270_v36, %v7284_v20 }
0x2109   :  { %v7278_v49 = vrot.slane %v17703_v15, %v15962_v42 }
0x210b   :  { %v7279_v51 = vsel %vm558_vm3, %v7278_v49, %v7274_v56 }
0x210c   :  { %v7286_v21 = vsel %vm635_vm10, %v7279_v51, %v7285_v9 }
0x210d   :  { %v7288_v52 = vsel %vm265_vm2, %v7286_v21, -inf }
0x210e   :  { %7289 = vmax.xlane.f32.xlu1 %v7288_v52 }
0x219b   :  { %v7290_v59 = vpop.xlane.xlu1 %7289 }
0x219c   :  { %v7295_v57 = vrot.slane %v7290_v59, %v15848_v46  ;;  %v7303_v39 = vrot.slane %v7290_v59, %v16047_v63  ;;  %v7299_v50 = vrot.slane %v7290_v59, %v16025_v27  ;;  %v7307_v48 = vrot.slane %v7290_v59, %v16061_v1 }
0x219d   :  { %v7311_v51 = vrot.slane %v7290_v59, %v16073_v29  ;;  %v7319_v52 = vrot.slane %v7290_v59, %v16031_v32 }
0x219e   :  { %v7332_v53 = vsub.f32 %v7146_v31, %v7295_v57  ;;  %v7333_v40 = vsub.f32 %v7149_v34, %v7295_v57  ;;  %v7336_v62 = vsub.f32 %v7158_v30, %v7303_v39  ;;  %v7334_v49 = vsub.f32 %v17645_v19, %v7299_v50 }
0x219f   :  { %v7338_v37 = vsub.f32 %v17653_v44, %v7307_v48  ;;  %v7335_v9 = vsub.f32 %v17649_v28, %v7299_v50  ;;  %v7315_v31 = vrot.slane %v7290_v59, %v16028_v41  ;;  %v7340_v34 = vsub.f32 %v17647_v2, %v7311_v51 }
0x21a0   :  { %v7348_v36 = vmul.f32 1.442695, %v7332_v53  ;;  %v7350_v56 = vmul.f32 1.442695, %v7333_v40  ;;  %v7356_v20 = vmul.f32 1.442695, %v7336_v62  ;;  %v7337_v19 = vsub.f32 %v17651_v3, %v7303_v39 }
0x21a1   :  { %v7352_v21 = vmul.f32 1.442695, %v7334_v49  ;;  %v7360_v30 = vmul.f32 1.442695, %v7338_v37  ;;  %v7354_v53 = vmul.f32 1.442695, %v7335_v9  ;;  %v7342_v44 = vsub.f32 %v17657_v4, %v7315_v31 }
0x21a2   :  { %15340 = vpow2.f32 %v7348_v36  ;;  %v7364_v57 = vmul.f32 1.442695, %v7340_v34  ;;  %v7339_v50 = vsub.f32 %v17659_v33, %v7307_v48  ;;  %v7358_v28 = vmul.f32 1.442695, %v7337_v19 }
0x21a3   :  { %15342 = vpow2.f32 %v7350_v56  ;;  %v7323_v2 = vrot.slane %v7290_v59, %v16039_v61  ;;  %v7344_v3 = vsub.f32 %v17672_v35, %v7319_v52  ;;  %v7368_v39 = vmul.f32 1.442695, %v7342_v44 }
0x21a4   :  { %15344 = vpow2.f32 %v7356_v20  ;;  %v7341_v4 = vsub.f32 %v17655_v12, %v7311_v51  ;;  %v7362_v33 = vmul.f32 1.442695, %v7339_v50  ;;  %v7343_v35 = vsub.f32 %v17674_v16, %v7315_v31 }
0x21a5   :  { %15346 = vpow2.f32 %v7352_v21  ;;  %v7346_v36 = vsub.f32 %v17699_v60, %v7323_v2  ;;  %v7372_v59 = vmul.f32 1.442695, %v7344_v3  ;;  %v7345_v60 = vsub.f32 %v17687_v43, %v7319_v52 }
0x21a6   :  { %15348 = vpow2.f32 %v7360_v30  ;;  %v7366_v56 = vmul.f32 1.442695, %v7341_v4  ;;  %v7370_v20 = vmul.f32 1.442695, %v7343_v35  ;;  %v7347_v16 = vsub.f32 %v17703_v15, %v7323_v2 }
0x21a7   :  { %15350 = vpow2.f32 %v7354_v53  ;;  %v7376_v51 = vmul.f32 1.442695, %v7346_v36  ;;  %v7374_v31 = vmul.f32 1.442695, %v7345_v60 }
0x21a8   :  { %15352 = vpow2.f32 %v7364_v57  ;;  %v7378_v43 = vmul.f32 1.442695, %v7347_v16 }
0x21a9   :  { %15354 = vpow2.f32 %v7358_v28 }
0x21aa   :  { %15356 = vpow2.f32 %v7368_v39 }
0x21ab   :  { %15358 = vpow2.f32 %v7362_v33 }
0x21ac   :  { %v17730_v40 = vpop.eup %15340  ;;  %15360 = vpow2.f32 %v7372_v59 }
0x21ad   :  { %v17732_v62 = vpop.eup %15342  ;;  %7397 = vperm.xlu0 %15011, %v17730_v40   ;;  %15362 = vpow2.f32 %v7366_v56 }
0x21ae   :  { %7400 = vperm.xlu1 %15010, %v17732_v62   ;;  %v17739_v48 = vpop.eup %15344  ;;  %15364 = vpow2.f32 %v7376_v51 }
0x21af   :  { %v17741_v49 = vpop.eup %15346  ;;  %15366 = vpow2.f32 %v7370_v20 }
0x21b0   :  { %v17747_v37 = vpop.eup %15348  ;;  %15368 = vpow2.f32 %v7374_v31 }
0x21b1   :  { %7409 = vperm.xlu0 %15011, %v17739_v48   ;;  %v17749_v12 = vpop.eup %15350  ;;  %15370 = vpow2.f32 %v7378_v43 }
0x21b2   :  { %7403 = vperm.xlu1 %15010, %v17741_v49   ;;  %v17754_v9 = vpop.eup %15352 }
0x21b3   :  { %v17756_v21 = vpop.eup %15354 }
0x21b4   :  { %v17761_v34 = vpop.eup %15356 }
0x21b5   :  { %7415 = vperm.xlu0 %15011, %v17747_v37   ;;  %v17763_v30 = vpop.eup %15358 }
0x21b6   :  { %7406 = vperm.xlu1 %15010, %v17749_v12   ;;  %v17767_v19 = vpop.eup %15360 }
0x21b7   :  { %v17769_v53 = vpop.eup %15362 }
0x21b8   :  { %v17773_v15 = vpop.eup %15364 }
0x21b9   :  { %7421 = vperm.xlu0 %15011, %v17754_v9   ;;  %v17775_v52 = vpop.eup %15366 }
0x21ba   :  { %7412 = vperm.xlu1 %15010, %v17756_v21   ;;  %v17779_v44 = vpop.eup %15368 }
0x21bb   :  { %v17782_v57 = vpop.eup %15370 }
0x21bd   :  { %7427 = vperm.xlu0 %15011, %v17761_v34  }
0x21be   :  { %7418 = vperm.xlu1 %15010, %v17763_v30  }
0x21c1   :  { %7433 = vperm.xlu0 %15011, %v17767_v19  }
0x21c2   :  { %7424 = vperm.xlu1 %15010, %v17769_v53  }
0x21c5   :  { %7439 = vperm.xlu0 %15011, %v17773_v15  }
0x21c6   :  { %7430 = vperm.xlu1 %15010, %v17775_v52  }
0x21ca   :  { %7436 = vperm.xlu1 %15010, %v17779_v44  }
0x21ce   :  { %7442 = vperm.xlu1 %15010, %v17782_v57  }
0x222c   :  { %v7398_v50 = vpop.permute.xlu0 %7397 }
0x222d   :  { %v7401_v28 = vpop.permute.xlu1 %7400  ;;  %v7447_v43 = vrot.slane %v7398_v50, %v15967_v45 }
0x222e   :  { %v7451_v31 = vrot.slane %v7401_v28, %v15962_v42 }
0x2230   :  { %v7410_v2 = vpop.permute.xlu0 %7409  ;;  %v7452_v50 = vsel %vm558_vm3, %v7451_v31, %v7447_v43 }
0x2231   :  { %v7404_v3 = vpop.permute.xlu1 %7403  ;;  %v7465_v47 = vrot.slane %v7410_v2, %v15967_v45 }
0x2232   :  { %v7456_v11 = vrot.slane %v7404_v3, %v15967_v45 }
0x2234   :  { %v7416_v39 = vpop.permute.xlu0 %7415 }
0x2235   :  { %v7407_v4 = vpop.permute.xlu1 %7406 }
0x2236   :  { %v7460_v51 = vrot.slane %v7407_v4, %v15962_v42  ;;  %v7474_v4 = vrot.slane %v7416_v39, %v15967_v45 }
0x2238   :  { %v7422_v36 = vpop.permute.xlu0 %7421  ;;  %v7461_v54 = vsel %vm558_vm3, %v7460_v51, %v7456_v11 }
0x2239   :  { %v7413_v33 = vpop.permute.xlu1 %7412  ;;  %v7483_v28 = vrot.slane %v7422_v36, %v15967_v45 }
0x223a   :  { %v7469_v60 = vrot.slane %v7413_v33, %v15962_v42 }
0x223c   :  { %v7428_v35 = vpop.permute.xlu0 %7427  ;;  %v7470_v25 = vsel %vm558_vm3, %v7469_v60, %v7465_v47 }
0x223d   :  { %v7419_v59 = vpop.permute.xlu1 %7418 }
0x223e   :  { %v7478_v7 = vrot.slane %v7419_v59, %v15962_v42  ;;  %v7492_v59 = vrot.slane %v7428_v35, %v15967_v45 }
0x2240   :  { %v7434_v20 = vpop.permute.xlu0 %7433  ;;  %v7479_v3 = vsel %vm558_vm3, %v7478_v7, %v7474_v4 }
0x2241   :  { %v7425_v56 = vpop.permute.xlu1 %7424  ;;  %v7501_v39 = vrot.slane %v7434_v20, %v15967_v45 }
0x2242   :  { %v7487_v58 = vrot.slane %v7425_v56, %v15962_v42  ;;  %v7516_v56 = vsel %vm623_vm4, %v7461_v54, %v7452_v50 }
0x2243   :  { %v7517_v47 = vsel %vm625_vm5, %v7470_v25, %v7516_v56 }
0x2244   :  { %v7488_v11 = vsel %vm558_vm3, %v7487_v58, %v7483_v28  ;;  %v7440_v51 = vpop.permute.xlu0 %7439  ;;  %v7518_v60 = vsel %vm627_vm6, %v7479_v3, %v7517_v47 }
0x2245   :  { %v7431_v16 = vpop.permute.xlu1 %7430  ;;  %v7519_v35 = vsel %vm629_vm7, %v7488_v11, %v7518_v60 }
0x2246   :  { %v7496_v33 = vrot.slane %v7431_v16, %v15962_v42 }
0x2248   :  { %v7497_v36 = vsel %vm558_vm3, %v7496_v33, %v7492_v59 }
0x2249   :  { %v7437_v24 = vpop.permute.xlu1 %7436  ;;  %v7520_v58 = vsel %vm631_vm8, %v7497_v36, %v7519_v35  ;;  %v8303_v35 = vld [vmem:[%s19212_s1 + $0x34] sm:$0x1] }
0x224a   :  { %v7505_v2 = vrot.slane %v7437_v24, %v15962_v42  ;;  %v7510_v24 = vrot.slane %v7440_v51, %v15967_v45 }
0x224c   :  { %v7506_v16 = vsel %vm558_vm3, %v7505_v2, %v7501_v39 }
0x224d   :  { %v7443_v7 = vpop.permute.xlu1 %7442  ;;  %v7521_v31 = vsel %vm633_vm9, %v7506_v16, %v7520_v58 }
0x224e   :  { %v7514_v54 = vrot.slane %v7443_v7, %v15962_v42 }
0x2250   :  { %v7515_v20 = vsel %vm558_vm3, %v7514_v54, %v7510_v24 }
0x2251   :  { %v7522_v25 = vsel %vm635_vm10, %v7515_v20, %v7521_v31 }
0x2252   :  { %v7524_v43 = vsel %vm265_vm2, %v7522_v25, 0.0 }
0x2253   :  { %7525 = vadd.xlane.f32.xlu0 %v7524_v43 }
0x22e0   :  { %v7526_v4 = vpop.xlane.xlu0 %7525 }
0x22e1   :  { %15372 = vrcp.f32 %v7526_v4  ;;  %v8346_v4 = vrot.slane %v8303_v35, 2 }
0x22eb   :  { %v15373_v33 = vpop.eup %15372 }
0x22ec   :  { %v7544_v28 = vrot.slane %v15373_v33, %v16061_v1  ;;  %v7532_v50 = vrot.slane %v15373_v33, %v15848_v46  ;;  %v7560_v2 = vrot.slane %v15373_v33, %v16039_v61  ;;  %v7536_v39 = vrot.slane %v15373_v33, %v16025_v27 }
0x22ee   :  { %v7576_v3 = vmul.f32 %v17763_v30, %v7544_v28  ;;  %v7569_v59 = vmul.f32 %v17730_v40, %v7532_v50  ;;  %v7583_v56 = vmul.f32 %v17773_v15, %v7560_v2  ;;  %v7570_v11 = vmul.f32 %v17732_v62, %v7532_v50 }
0x22ef   :  { %v7571_v51 = vmul.f32 %v17741_v49, %v7536_v39  ;;  %v7572_v47 = vmul.f32 %v17749_v12, %v7536_v39  ;;  %v7540_v30 = vrot.slane %v15373_v33, %v16047_v63  ;;  %v7575_v62 = vmul.f32 %v17747_v37, %v7544_v28 }
0x22f0   :  { %7858 = vperm.xlu0 %15011, %v7576_v3   ;;  %7588 = vperm.xlu1 %15010, %v7569_v59   ;;  %v7548_v15 = vrot.slane %v15373_v33, %v16073_v29  ;;  %v7552_v12 = vrot.slane %v15373_v33, %v16028_v41 }
0x22f1   :  { %v7573_v40 = vmul.f32 %v17739_v48, %v7540_v30  ;;  %v7574_v36 = vmul.f32 %v17756_v21, %v7540_v30  ;;  %v7556_v21 = vrot.slane %v15373_v33, %v16031_v32 }
0x22f2   :  { %v7577_v60 = vmul.f32 %v17754_v9, %v7548_v15  ;;  %v7578_v49 = vmul.f32 %v17769_v53, %v7548_v15  ;;  %v7579_v16 = vmul.f32 %v17761_v34, %v7552_v12  ;;  %v7580_v48 = vmul.f32 %v17775_v52, %v7552_v12  ;;  %v8297_v53 = vld [vmem:[%s19212_s1 + $0x4] sm:$0x1]  ;;  %v8298_v34 = vld [vmem:[%s19212_s1 + $0xc] sm:$0x1]  ;;  %v8299_v52 = vld [vmem:[%s19212_s1 + $0x14] sm:$0x1] }
0x22f3   :  { %v7581_v37 = vmul.f32 %v17767_v19, %v7556_v21  ;;  %v7582_v7 = vmul.f32 %v17779_v44, %v7556_v21  ;;  %v7584_v9 = vmul.f32 %v17782_v57, %v7560_v2  ;;  %v8300_v19 = vld [vmem:[%s19212_s1 + $0x1c] sm:$0x1]  ;;  %v8301_v44 = vld [vmem:[%s19212_s1 + $0x24] sm:$0x1]  ;;  %v8302_v57 = vld [vmem:[%s19212_s1 + $0x2c] sm:$0x1] }
0x22f4   :  { %8211 = vperm.xlu0 %15011, %v7583_v56   ;;  %7591 = vperm.xlu1 %15010, %v7570_v11   ;;  %v8336_v24 = vrot.slane %v8298_v34, 7  ;;  %v8338_v54 = vrot.slane %v8299_v52, 6  ;;  %v8340_v58 = vrot.slane %v8300_v19, 5  ;;  %v8342_v20 = vrot.slane %v8301_v44, 4 }
0x22f5   :  { %v8344_v25 = vrot.slane %v8302_v57, 3 }
0x22f6   :  { %v8337_v31 = vsel %vm623_vm4, %v8336_v24, %v8297_v53 }
0x22f7   :  { %v8339_v43 = vsel %vm625_vm5, %v8338_v54, %v8337_v31 }
0x22f8   :  { %7677 = vperm.xlu1 %15010, %v7571_v51   ;;  %v8341_v33 = vsel %vm627_vm6, %v8340_v58, %v8339_v43 }
0x22f9   :  { %v8343_v50 = vsel %vm629_vm7, %v8342_v20, %v8341_v33 }
0x22fa   :  { %v8345_v3 = vsel %vm631_vm8, %v8344_v25, %v8343_v50 }
0x22fb   :  { %v8347_v59 = vsel %vm633_vm9, %v8346_v4, %v8345_v3 }
0x22fc   :  { %7680 = vperm.xlu1 %15010, %v7572_v47  }
0x2300   :  { %7766 = vperm.xlu1 %15010, %v7573_v40  }
0x2304   :  { %7769 = vperm.xlu1 %15010, %v7574_v36  }
0x2308   :  { %7855 = vperm.xlu1 %15010, %v7575_v62  }
0x230c   :  { %7944 = vperm.xlu1 %15010, %v7577_v60  }
0x2310   :  { %7947 = vperm.xlu1 %15010, %v7578_v49  }
0x2314   :  { %8033 = vperm.xlu1 %15010, %v7579_v16  }
0x2318   :  { %8036 = vperm.xlu1 %15010, %v7580_v48  }
0x231c   :  { %8122 = vperm.xlu1 %15010, %v7581_v37  }
0x2320   :  { %8125 = vperm.xlu1 %15010, %v7582_v7  }
0x2324   :  { %8214 = vperm.xlu1 %15010, %v7584_v9  }
0x2328   :  { %8353 = vrot.lane.b32.xlu1 %v17552_v14, %s15662_s13  ;;  %v8304_v14 = vld [vmem:[%s19212_s1 + $0x3c] sm:$0x1] }
0x2329   :  { %v8348_v28 = vrot.slane %v8304_v14, 1 }
0x232b   :  { %v8349_v2 = vsel %vm635_vm10, %v8348_v28, %v8347_v59 }
0x232c   :  { %8350 = vrot.lane.b32.xlu0 %v8349_v2, %s15661_s25 }
0x236f   :  { %v7589_v56 = vpop.permute.xlu1 %7588  ;;  %v7859_v48 = vpop.permute.xlu0 %7858 }
0x2370   :  { %v7596_v39 = vrot.slane %v7589_v56, %v15967_v45  ;;  %v7867_v7 = vrot.slane %v7859_v48, %v15962_v42 }
0x2373   :  { %v7592_v11 = vpop.permute.xlu1 %7591  ;;  %v8212_v4 = vpop.permute.xlu0 %8211 }
0x2374   :  { %v7600_v51 = vrot.slane %v7592_v11, %v15962_v42  ;;  %v8219_v50 = vrot.slane %v8212_v4, %v15967_v45  ;;  %v15618_v4 = vld [vmem:[%s19218_s7] ss:$0 sm:$0xff] }
0x2376   :  { %v7601_v47 = vsel %vm558_vm3, %v7600_v51, %v7596_v39 }
0x2377   :  { %14398 = vmatmul.mubr.msk.f32.vlgmr.msra.gmra.mrb[48].mxu1 %vm265_vm2, %v7601_v47  ;;  %v7678_v30 = vpop.permute.xlu1 %7677 }
0x2378   :  { %14865 = vmatpush3.bf16.msra.mxu1 %v15759_v13  ;;  %14411 = vmatprep.mubr.msk.f32.mxu1 %vm15657_vm1, %v19293_v55  ;;  %v7685_v36 = vrot.slane %v7678_v30, %v15967_v45 }
0x2379   :  { %14869 = vmatprep.subr.bf16.mxu1 %v19294_v0 }
0x237b   :  { %v7681_v40 = vpop.permute.xlu1 %7680 }
0x237c   :  { %v7689_v62 = vrot.slane %v7681_v40, %v15962_v42 }
0x237e   :  { %v7690_v15 = vsel %vm558_vm3, %v7689_v62, %v7685_v36 }
0x237f   :  { %14405 = vmatmul.mubr.msk.f32.vlgmr.msra.gmra.mrb[58].mxu0 %vm265_vm2, %v7690_v15  ;;  %v7767_v60 = vpop.permute.xlu1 %7766 }
0x2380   :  { %14868 = vmatpush3.bf16.msra.mxu0 %v15774_v18  ;;  %14418 = vmatprep.mubr.msk.f32.mxu0 %vm15657_vm1, %v19293_v55  ;;  %v7774_v12 = vrot.slane %v7767_v60, %v15967_v45 }
0x2381   :  { %14872 = vmatprep.subr.bf16.mxu0 %v19294_v0 }
0x2383   :  { %v7770_v49 = vpop.permute.xlu1 %7769 }
0x2384   :  { %v7778_v16 = vrot.slane %v7770_v49, %v15962_v42 }
0x2386   :  { %v7779_v21 = vsel %vm558_vm3, %v7778_v16, %v7774_v12 }
0x2387   :  { %14412 = vmatmul.mubr.msk.f32.vlgmr.msra.gmra.mrb[50].mxu1 %vm265_vm2, %v7779_v21  ;;  %v7856_v37 = vpop.permute.xlu1 %7855 }
0x2388   :  { %v7863_v9 = vrot.slane %v7856_v37, %v15967_v45  ;;  %14871 = vmatpush3.bf16.msra.mxu1 %v15785_v22  ;;  %14425 = vmatprep.mubr.msk.f32.mxu1 %vm15657_vm1, %v19293_v55 }
0x2389   :  { %14875 = vmatprep.subr.bf16.mxu1 %v19294_v0 }
0x238a   :  { %v7868_v53 = vsel %vm558_vm3, %v7867_v7, %v7863_v9 }
0x238b   :  { %14419 = vmatmul.mubr.msk.f32.vlgmr.msra.gmra.mrb[60].mxu0 %vm265_vm2, %v7868_v53  ;;  %v7945_v34 = vpop.permute.xlu1 %7944 }
0x238c   :  { %14874 = vmatpush3.bf16.msra.mxu0 %v15787_v23  ;;  %14432 = vmatprep.mubr.msk.f32.mxu0 %vm15657_vm1, %v19293_v55  ;;  %v7952_v19 = vrot.slane %v7945_v34, %v15967_v45 }
0x238d   :  { %14878 = vmatprep.subr.bf16.mxu0 %v19294_v0 }
0x238f   :  { %v7948_v52 = vpop.permute.xlu1 %7947 }
0x2390   :  { %v7956_v44 = vrot.slane %v7948_v52, %v15962_v42 }
0x2392   :  { %v7957_v57 = vsel %vm558_vm3, %v7956_v44, %v7952_v19 }
0x2393   :  { %14426 = vmatmul.mubr.msk.f32.vlgmr.msra.gmra.mrb[52].mxu1 %vm265_vm2, %v7957_v57  ;;  %v8034_v35 = vpop.permute.xlu1 %8033 }
0x2394   :  { %14877 = vmatpush3.bf16.msra.mxu1 %v15797_v26  ;;  %14439 = vmatprep.mubr.msk.f32.mxu1 %vm15657_vm1, %v19293_v55  ;;  %v8041_v54 = vrot.slane %v8034_v35, %v15967_v45 }
0x2395   :  { %14881 = vmatprep.subr.bf16.mxu1 %v19294_v0 }
0x2397   :  { %v8037_v24 = vpop.permute.xlu1 %8036 }
0x2398   :  { %v8045_v14 = vrot.slane %v8037_v24, %v15962_v42 }
0x239a   :  { %v8046_v58 = vsel %vm558_vm3, %v8045_v14, %v8041_v54 }
0x239b   :  { %14433 = vmatmul.mubr.msk.f32.vlgmr.msra.gmra.mrb[62].mxu0 %vm265_vm2, %v8046_v58  ;;  %v8123_v20 = vpop.permute.xlu1 %8122 }
0x239c   :  { %14880 = vmatpush3.bf16.msra.mxu0 %v19306_v38  ;;  %14446 = vmatprep.mubr.msk.f32.mxu0 %vm15657_vm1, %v19293_v55  ;;  %v8130_v25 = vrot.slane %v8123_v20, %v15967_v45 }
0x239d   :  { %14887 = vmatprep.subr.bf16.mxu0 %v19294_v0 }
0x239e   :  { %v8351_v14 = vpop.permute.xlu0 %8350 }
0x239f   :  { %v8126_v31 = vpop.permute.xlu1 %8125 }
0x23a0   :  { %v8134_v43 = vrot.slane %v8126_v31, %v15962_v42 }
0x23a2   :  { %v8135_v33 = vsel %vm558_vm3, %v8134_v43, %v8130_v25 }
0x23a3   :  { %14440 = vmatmul.mubr.msk.f32.vlgmr.msra.gmra.mrb[54].mxu1 %vm265_vm2, %v8135_v33  ;;  %v8215_v28 = vpop.permute.xlu1 %8214 }
0x23a4   :  { %v8223_v3 = vrot.slane %v8215_v28, %v15962_v42  ;;  %14883 = vmatpush3.bf16.msra.mxu1 %v16282_v10  ;;  %14457 = vmatprep.mubr.msk.f32.mxu1 %vm15657_vm1, %v19293_v55 }
0x23a5   :  { %14884 = vmatprep.subr.bf16.mxu1 %v19294_v0 }
0x23a6   :  { %v8224_v59 = vsel %vm558_vm3, %v8223_v3, %v8219_v50 }
0x23a7   :  { %14447 = vmatmul.mubr.msk.f32.vlgmr.msra.gmra.mrb[64].mxu0 %vm265_vm2, %v8224_v59  ;;  %v8354_v20 = vpop.permute.xlu1 %8353 }
0x23a8   :  { %14886 = vmatpush3.bf16.msra.mxu1 %v16292_v5  ;;  %14889 = vmatpush3.bf16.msra.mxu0 %v16324_v6 }
0x23a9   :  { %14464 = vmatprep.mubr.msk.f32.mxu0 %vm15657_vm1, %v19293_v55  ;;  %14890 = vmatprep.subr.bf16.mxu0 %v19294_v0 }
0x23aa   :  { %14893 = vmatprep.subr.bf16.mxu1 %v19294_v0 }
0x244a   :  { %v7670_v2 = vpop.f32.mrb[48].mxu1 }
0x244b   :  { %v14399_v56 = vpop.f32.mrb[49].mxu1 }
0x2452   :  { %v7759_v11 = vpop.f32.mrb[58].mxu0 }
0x2453   :  { %v8313_v39 = vrot.slane %v7759_v11, 7  ;;  %v14406_v51 = vpop.f32.mrb[59].mxu0 }
0x2455   :  { %v8314_v47 = vsel %vm623_vm4, %v8313_v39, %v7670_v2 }
0x245a   :  { %v7848_v30 = vpop.f32.mrb[50].mxu1 }
0x245b   :  { %v8315_v40 = vrot.slane %v7848_v30, 6  ;;  %v14413_v36 = vpop.f32.mrb[51].mxu1 }
0x245d   :  { %v8316_v62 = vsel %vm625_vm5, %v8315_v40, %v8314_v47 }
0x245e   :  { %v7937_v15 = vpop.f32.mrb[60].mxu0 }
0x245f   :  { %v8317_v60 = vrot.slane %v7937_v15, 5  ;;  %v14420_v49 = vpop.f32.mrb[61].mxu0 }
0x2461   :  { %v8318_v12 = vsel %vm627_vm6, %v8317_v60, %v8316_v62  ;;  %v19362_v60 = vld [vmem:[#allocation5_spill] sm:$0xff] }
0x2466   :  { %v8026_v16 = vpop.f32.mrb[52].mxu1 }
0x2467   :  { %v8319_v48 = vrot.slane %v8026_v16, 4  ;;  %v14427_v21 = vpop.f32.mrb[53].mxu1 }
0x2469   :  { %v8320_v37 = vsel %vm629_vm7, %v8319_v48, %v8318_v12  ;;  %v15619_v12 = vld [vmem:[%s19220_s9] ss:$0 sm:$0xff] }
0x246e   :  { %v8115_v7 = vpop.f32.mrb[62].mxu0 }
0x246f   :  { %v8321_v9 = vrot.slane %v8115_v7, 3  ;;  %v14434_v53 = vpop.f32.mrb[63].mxu0 }
0x2471   :  { %v8322_v34 = vsel %vm631_vm8, %v8321_v9, %v8320_v37  ;;  %v19364_v37 = vld [vmem:[#allocation10_spill] sm:$0xff] }
0x2476   :  { %v8204_v52 = vpop.f32.mrb[54].mxu1 }
0x2477   :  { %v8323_v19 = vrot.slane %v8204_v52, 2  ;;  %v14441_v44 = vpop.f32.mrb[55].mxu1 }
0x2479   :  { %v8324_v57 = vsel %vm633_vm9, %v8323_v19, %v8322_v34  ;;  %v15620_v19 = vld [vmem:[%s19215_s4] ss:$0 sm:$0xff] }
0x247a   :  { %v8293_v35 = vpop.f32.mrb[64].mxu0 }
0x247b   :  { %v8325_v24 = vrot.slane %v8293_v35, 1  ;;  %v14448_v54 = vpop.f32.mrb[65].mxu0 }
0x247d   :  { %v8326_v58 = vsel %vm635_vm10, %v8325_v24, %v8324_v57 }
0x247e   :  { %v8356_v31 = vsel %vm53_vm0, %v8326_v58, %v8351_v14 }
0x247f   :  { %v8357_v25 = vsel %vm265_vm2, %v8356_v31, %v8354_v20 }
0x2480   :  { %14458 = vmatmul.mubr.msk.f32.vlgmr.msra.gmra.mrb[56].mxu1 %vm1711_vm11, %v8357_v25 }
0x2481   :  { %14895 = vmatpush3.bf16.msra.mxu1 %v15770_v17  ;;  %14478 = vmatprep.mubr.msk.f32.mxu1 %vm15657_vm1, %v19293_v55 }
0x2482   :  { %14899 = vmatprep.subr.bf16.mxu1 %v19294_v0 }
0x2553   :  { %v8427_v43 = vpop.f32.mrb[56].mxu1 }
0x2554   :  { %v8428_v33 = vadd.f32 %v15618_v4, %v8427_v43  ;;  %v14459_v28 = vpop.f32.mrb[57].mxu1 }
0x2556   :  { %15374 = vtanh.f32 %v8428_v33  ;;  %v13685_v3 = vmul.f32 -1.442695, %v8428_v33 }
0x2558   :  { %15376 = vpow2.f32 %v13685_v3 }
0x2560   :  { %v15375_v50 = vpop.eup %15374 }
0x2561   :  { %8440 = vrot.lane.b32.xlu0 %v15375_v50, %s15662_s13 }
0x2562   :  { %v15377_v59 = vpop.eup %15376 }
0x2563   :  { %v8434_v2 = vadd.f32 1.0, %v15377_v59 }
0x2565   :  { %15378 = vrcp.f32 %v8434_v2 }
0x256f   :  { %v15379_v56 = vpop.eup %15378 }
0x2570   :  { %v8438_v51 = vmul.f32 %v15379_v56, %v17548_v8  ;;  %v19363_v8 = vld [vmem:[#allocation6_spill] sm:$0xff] }
0x25d3   :  { %v8441_v11 = vpop.permute.xlu0 %8440 }
0x25d4   :  { %v8443_v39 = vmul.f32 %v15379_v56, %v8441_v11 }
0x25d6   :  { %8445 = vrot.lane.b32.xlu1 %v8443_v39, %s15663_s14 }
0x2648   :  { %v8446_v47 = vpop.permute.xlu1 %8445 }
0x2649   :  { %v17961_v30 = vadd.f32 %v8446_v47, %v8438_v51 }
0x264b   :  { %15380 = vtanh.f32 %v17961_v30 }
0x2655   :  { %v15381_v40 = vpop.eup %15380 }
0x2656   :  { %8451 = vrot.lane.b32.xlu0 %v15381_v40, %s15664_s19 }
0x26c8   :  { %v8452_v36 = vpop.permute.xlu0 %8451 }
0x26c9   :  { %v17965_v62 = vmul.f32 %v15379_v56, %v8452_v36 }
0x26cb   :  { %8456 = vrot.lane.b32.xlu1 %v17965_v62, %s15665_s20 }
0x273d   :  { %v8457_v15 = vpop.permute.xlu1 %8456 }
0x273e   :  { %14465 = vmatmul.mubr.msk.f32.vlgmr.msra.gmra.mrb[66].mxu0 %vm265_vm2, %v8457_v15 }
0x273f   :  { %14892 = vmatpush3.bf16.msra.mxu0 %v19362_v60  ;;  %14471 = vmatprep.mubr.msk.f32.mxu0 %vm15657_vm1, %v19293_v55 }
0x2740   :  { %14896 = vmatprep.subr.bf16.mxu0 %v19294_v0 }
0x2742   :  { %14472 = vmatmul.mubr.msk.f32.vlgmr.msra.gmra.mrb[68].mxu0 %vm265_vm2, %v8457_v15 }
0x2743   :  { %14898 = vmatpush3.bf16.msra.mxu0 %v19363_v8  ;;  %14485 = vmatprep.mubr.msk.f32.mxu0 %vm15657_vm1, %v19293_v55 }
0x2744   :  { %14902 = vmatprep.subr.bf16.mxu0 %v19294_v0 }
0x2811   :  { %v8526_v49 = vpop.f32.mrb[66].mxu0 }
0x2812   :  { %v8527_v16 = vadd.f32 %v15619_v12, %v8526_v49  ;;  %v14466_v48 = vpop.f32.mrb[67].mxu0  ;;  %v19365_v49 = vld [vmem:[#allocation9_spill] sm:$0xff] }
0x2814   :  { %v8531_v21 = vcombine.high %v8527_v16, %v8527_v16  ;;  %v8538_v7 = vrot.slane %v8527_v16, %v19364_v37  ;;  %v19366_v16 = vld [vmem:[#allocation8_spill] sm:$0xff] }
0x2815   :  { %v8662_v9 = vpop.f32.mrb[68].mxu0 }
0x2816   :  { %v8545_v53 = vrot.slane %v8531_v21, %v19364_v37  ;;  %v8546_v34 = vcombine.high %v8538_v7, %v8538_v7  ;;  %v8554_v52 = vrot.slane %v8538_v7, %v19364_v37  ;;  %13687 = vst.sshfl [vmem:[#allocation2 + $0x4] sm:$0x1 pattern:$0x73625140] %v8538_v7  ;;  %v8663_v44 = vadd.f32 %v15620_v19, %v8662_v9  ;;  %v14473_v57 = vpop.f32.mrb[69].mxu0  ;;  %v19368_v19 = vld [vmem:[#allocation11_spill] sm:$0xff] }
0x2817   :  { %v19369_v57 = vld [vmem:[#allocation14_spill] sm:$0xff] }
0x2818   :  { %v8547_v35 = vcombine.high %v8545_v53, %v8545_v53  ;;  %v8561_v24 = vrot.slane %v8545_v53, %v19364_v37  ;;  %v8568_v54 = vrot.slane %v8546_v34, %v19364_v37  ;;  %v8576_v14 = vcombine.high %v8554_v52, %v8554_v52  ;;  %13688 = vst.sshfl [vmem:[#allocation2 + $0xc] sm:$0x1 pattern:$0x73625140] %v8546_v34  ;;  %v19367_v34 = vld [vmem:[#allocation12_spill] sm:$0xff] }
0x2819   :  { %13689 = vst.sshfl [vmem:[#allocation2 + $0x24] sm:$0x1 pattern:$0x73625140] %v8545_v53  ;;  %v8667_v58 = vcombine.high %v8663_v44, %v8663_v44  ;;  %v8674_v20 = vrot.slane %v8663_v44, %v19364_v37 }
0x281a   :  { %v8575_v31 = vrot.slane %v8547_v35, %v19364_v37  ;;  %v8577_v25 = vcombine.high %v8561_v24, %v8561_v24  ;;  %v8578_v43 = vcombine.high %v8568_v54, %v8568_v54  ;;  %8590 = vst [vmem:[#allocation2 + $0x14] sm:$0x1] %v8576_v14  ;;  %13690 = vst.sshfl [vmem:[#allocation2 + $0x2c] sm:$0x1 pattern:$0x73625140] %v8547_v35 }
0x281b   :  { %v8681_v4 = vrot.slane %v8667_v58, %v19364_v37  ;;  %v8682_v33 = vcombine.high %v8674_v20, %v8674_v20  ;;  %v8690_v28 = vrot.slane %v8674_v20, %v19364_v37  ;;  %v19370_v24 = vld [vmem:[#allocation13_spill] sm:$0xff]  ;;  %v19371_v58 = vld [vmem:[#allocation16_spill] sm:$0xff] }
0x281c   :  { %v8579_v50 = vcombine.high %v8575_v31, %v8575_v31  ;;  %8591 = vst [vmem:[#allocation2 + $0x1c] sm:$0x1] %v8578_v43  ;;  %8594 = vst [vmem:[#allocation2 + $0x34] sm:$0x1] %v8577_v25  ;;  %v19372_v31 = vld [vmem:[#allocation15_spill] sm:$0xff]  ;;  %v19373_v43 = vld [vmem:[#allocation18_spill] sm:$0xff] }
0x281d   :  { %v8683_v3 = vcombine.high %v8681_v4, %v8681_v4  ;;  %v8697_v59 = vrot.slane %v8681_v4, %v19364_v37  ;;  %v8704_v2 = vrot.slane %v8682_v33, %v19364_v37  ;;  %v8712_v56 = vcombine.high %v8690_v28, %v8690_v28  ;;  %v19374_v33 = vld [vmem:[#allocation17_spill] sm:$0xff] }
0x281e   :  { %8595 = vst [vmem:[#allocation2 + $0x3c] sm:$0x1] %v8579_v50  ;;  %v8719_v11 = vrot.slane %v8690_v28, %v15848_v46  ;;  %v19375_v50 = vld [vmem:[#allocation20_spill] sm:$0xff] }
0x281f   :  { %v8711_v39 = vrot.slane %v8683_v3, %v19364_v37  ;;  %v8713_v51 = vcombine.high %v8697_v59, %v8697_v59  ;;  %v8714_v47 = vcombine.high %v8704_v2, %v8704_v2  ;;  %v8723_v40 = vrot.slane %v8704_v2, %v15848_v46 }
0x2820   :  { %v8727_v36 = vrot.slane %v8712_v56, %v15848_v46  ;;  %v8735_v15 = vrot.slane %v8697_v59, %v15848_v46  ;;  %v8756_v12 = vadd.f32 %v8719_v11, %v19365_v49  ;;  %v8757_v48 = vadd.f32 %v19366_v16, %v8719_v11  ;;  %v19376_v59 = vld [vmem:[#allocation19_spill] sm:$0xff]  ;;  %v19377_v56 = vld [vmem:[#allocation22_spill] sm:$0xff] }
0x2821   :  { %v8715_v21 = vcombine.high %v8711_v39, %v8711_v39  ;;  %v8731_v7 = vrot.slane %v8714_v47, %v15848_v46  ;;  %v8739_v9 = vrot.slane %v8711_v39, %v15848_v46  ;;  %v8743_v53 = vrot.slane %v8713_v51, %v15848_v46  ;;  %v19378_v39 = vld [vmem:[#allocation21_spill] sm:$0xff]  ;;  %v19379_v47 = vld [vmem:[#allocation24_spill] sm:$0xff] }
0x2822   :  { %v8758_v52 = vadd.f32 %v8723_v40, %v19367_v34  ;;  %v8759_v44 = vadd.f32 %v19368_v19, %v8723_v40  ;;  %v8760_v35 = vadd.f32 %v8727_v36, %v19369_v57  ;;  %v8761_v54 = vadd.f32 %v19370_v24, %v8727_v36  ;;  %v19380_v36 = vld [vmem:[#allocation23_spill] sm:$0xff] }
0x2823   :  { %v8747_v14 = vrot.slane %v8715_v21, %v15848_v46  ;;  %v8762_v20 = vadd.f32 %v8731_v7, %v19371_v58  ;;  %v8763_v25 = vadd.f32 %v19372_v31, %v8731_v7  ;;  %v8764_v4 = vadd.f32 %v8735_v15, %v19373_v43 }
0x2824   :  { %v8765_v28 = vadd.f32 %v19374_v33, %v8735_v15  ;;  %v8766_v3 = vadd.f32 %v8739_v9, %v19375_v50  ;;  %v8767_v2 = vadd.f32 %v19376_v59, %v8739_v9  ;;  %v8768_v11 = vadd.f32 %v8743_v53, %v19377_v56  ;;  %v18024_v9 = vld [vmem:[%s19216_s5] ss:$0 sm:$0xff] }
0x2825   :  { %v8769_v51 = vadd.f32 %v19378_v39, %v8743_v53  ;;  %v8770_v40 = vadd.f32 %v8747_v14, %v19379_v47  ;;  %v8771_v21 = vadd.f32 %v19380_v36, %v8747_v14  ;;  %15382 = vtanh.f32 %v8756_v12 }
0x2826   :  { %15384 = vtanh.f32 %v8757_v48 }
0x2827   :  { %15386 = vtanh.f32 %v8758_v52 }
0x2828   :  { %15388 = vtanh.f32 %v8759_v44 }
0x2829   :  { %15390 = vtanh.f32 %v8760_v35 }
0x282a   :  { %15392 = vtanh.f32 %v8761_v54 }
0x282b   :  { %15394 = vtanh.f32 %v8764_v4 }
0x282c   :  { %15396 = vtanh.f32 %v8762_v20 }
0x282d   :  { %15398 = vtanh.f32 %v8765_v28 }
0x282e   :  { %15400 = vtanh.f32 %v8766_v3 }
0x282f   :  { %v15383_v15 = vpop.eup %15382  ;;  %15402 = vtanh.f32 %v8763_v25 }
0x2830   :  { %v15385_v7 = vpop.eup %15384  ;;  %v8788_v53 = vmul.f32 %v18024_v9, %v15383_v15  ;;  %15404 = vtanh.f32 %v8768_v11 }
0x2831   :  { %v15387_v47 = vpop.eup %15386  ;;  %v8789_v12 = vmul.f32 %v18024_v9, %v15385_v7  ;;  %15406 = vtanh.f32 %v8767_v2 }
0x2832   :  { %v15389_v48 = vpop.eup %15388  ;;  %v8804_v52 = vsel %vm265_vm2, %v8788_v53, 0.0  ;;  %v8790_v44 = vmul.f32 %v18024_v9, %v15387_v47  ;;  %15408 = vtanh.f32 %v8770_v40 }
0x2833   :  { %v15391_v35 = vpop.eup %15390  ;;  %v8807_v54 = vsel %vm265_vm2, %v8789_v12, 0.0  ;;  %8805 = vadd.xlane.f32.xlu0 %v8804_v52  ;;  %v8791_v28 = vmul.f32 %v18024_v9, %v15389_v48  ;;  %15410 = vtanh.f32 %v8769_v51 }
0x2834   :  { %8808 = vadd.xlane.f32.xlu1 %v8807_v54  ;;  %v8792_v14 = vmul.f32 %v18024_v9, %v15391_v35  ;;  %v15393_v20 = vpop.eup %15392  ;;  %v8810_v4 = vsel %vm265_vm2, %v8790_v44, 0.0  ;;  %15412 = vtanh.f32 %v8771_v21 }
0x2835   :  { %v15395_v15 = vpop.eup %15394  ;;  %v8813_v53 = vsel %vm265_vm2, %v8791_v28, 0.0  ;;  %v8793_v12 = vmul.f32 %v18024_v9, %v15393_v20 }
0x2836   :  { %v8816_v3 = vsel %vm265_vm2, %v8792_v14, 0.0  ;;  %v15397_v7 = vpop.eup %15396  ;;  %v8796_v47 = vmul.f32 %v18024_v9, %v15395_v15 }
0x2837   :  { %8811 = vadd.xlane.f32.xlu0 %v8810_v4  ;;  %v15399_v25 = vpop.eup %15398  ;;  %v8794_v48 = vmul.f32 %v18024_v9, %v15397_v7  ;;  %v8819_v44 = vsel %vm265_vm2, %v8793_v12, 0.0 }
0x2838   :  { %8817 = vadd.xlane.f32.xlu1 %v8816_v3  ;;  %v8828_v11 = vsel %vm265_vm2, %v8796_v47, 0.0  ;;  %v15401_v52 = vpop.eup %15400  ;;  %v8797_v35 = vmul.f32 %v18024_v9, %v15399_v25 }
0x2839   :  { %v15403_v54 = vpop.eup %15402  ;;  %v8822_v2 = vsel %vm265_vm2, %v8794_v48, 0.0  ;;  %v8798_v14 = vmul.f32 %v18024_v9, %v15401_v52 }
0x283a   :  { %v15405_v40 = vpop.eup %15404  ;;  %v8831_v20 = vsel %vm265_vm2, %v8797_v35, 0.0  ;;  %v8795_v4 = vmul.f32 %v18024_v9, %v15403_v54 }
0x283b   :  { %8814 = vadd.xlane.f32.xlu0 %v8813_v53  ;;  %v15407_v28 = vpop.eup %15406  ;;  %v8834_v51 = vsel %vm265_vm2, %v8798_v14, 0.0  ;;  %v8800_v15 = vmul.f32 %v18024_v9, %v15405_v40 }
0x283c   :  { %8829 = vadd.xlane.f32.xlu1 %v8828_v11  ;;  %v15409_v3 = vpop.eup %15408  ;;  %v8825_v7 = vsel %vm265_vm2, %v8795_v4, 0.0  ;;  %v8799_v47 = vmul.f32 %v18024_v9, %v15407_v28 }
0x283d   :  { %v15411_v53 = vpop.eup %15410  ;;  %v8840_v21 = vsel %vm265_vm2, %v8800_v15, 0.0  ;;  %v8802_v12 = vmul.f32 %v18024_v9, %v15409_v3 }
0x283e   :  { %v8837_v25 = vsel %vm265_vm2, %v8799_v47, 0.0  ;;  %v8801_v11 = vmul.f32 %v18024_v9, %v15411_v53  ;;  %v15413_v48 = vpop.eup %15412 }
0x283f   :  { %8820 = vadd.xlane.f32.xlu0 %v8819_v44  ;;  %v8846_v52 = vsel %vm265_vm2, %v8802_v12, 0.0  ;;  %v8803_v35 = vmul.f32 %v18024_v9, %v15413_v48 }
0x2840   :  { %8823 = vadd.xlane.f32.xlu1 %v8822_v2  ;;  %v8843_v44 = vsel %vm265_vm2, %v8801_v11, 0.0 }
0x2841   :  { %v8849_v54 = vsel %vm265_vm2, %v8803_v35, 0.0 }
0x2843   :  { %8832 = vadd.xlane.f32.xlu0 %v8831_v20 }
0x2844   :  { %8835 = vadd.xlane.f32.xlu1 %v8834_v51 }
0x2847   :  { %8826 = vadd.xlane.f32.xlu0 %v8825_v7 }
0x2848   :  { %8841 = vadd.xlane.f32.xlu1 %v8840_v21 }
0x284b   :  { %8838 = vadd.xlane.f32.xlu0 %v8837_v25 }
0x284c   :  { %8847 = vadd.xlane.f32.xlu1 %v8846_v52 }
0x284f   :  { %8844 = vadd.xlane.f32.xlu0 %v8843_v44 }
0x2853   :  { %8850 = vadd.xlane.f32.xlu0 %v8849_v54 }
0x28c0   :  { %v8806_v2 = vpop.xlane.xlu0 %8805 }
0x28c1   :  { %v8809_v14 = vpop.xlane.xlu1 %8808  ;;  %v8871_v12 = vrot.slane %v8806_v2, %v15967_v45 }
0x28c2   :  { %v8875_v21 = vrot.slane %v8809_v14, %v15962_v42 }
0x28c4   :  { %v18058_v40 = vpop.xlane.xlu0 %8811  ;;  %v8876_v39 = vsel %vm558_vm3, %v8875_v21, %v8871_v12 }
0x28c5   :  { %v18060_v20 = vpop.xlane.xlu1 %8817  ;;  %v8880_v25 = vrot.slane %v18058_v40, %v15967_v45 }
0x28c6   :  { %v8889_v48 = vrot.slane %v18060_v20, %v15967_v45 }
0x28c8   :  { %v8815_v4 = vpop.xlane.xlu0 %8814 }
0x28c9   :  { %v18062_v28 = vpop.xlane.xlu1 %8829  ;;  %v8884_v47 = vrot.slane %v8815_v4, %v15962_v42 }
0x28ca   :  { %v8907_v21 = vrot.slane %v18062_v28, %v15967_v45 }
0x28cb   :  { %v8885_v35 = vsel %vm558_vm3, %v8884_v47, %v8880_v25 }
0x28cc   :  { %v18064_v51 = vpop.xlane.xlu0 %8820  ;;  %v8940_v50 = vsel %vm623_vm4, %v8885_v35, %v8876_v39 }
0x28cd   :  { %v18066_v15 = vpop.xlane.xlu1 %8823  ;;  %v8893_v53 = vrot.slane %v18064_v51, %v15962_v42 }
0x28ce   :  { %v8898_v54 = vrot.slane %v18066_v15, %v15967_v45 }
0x28cf   :  { %v8894_v36 = vsel %vm558_vm3, %v8893_v53, %v8889_v48 }
0x28d0   :  { %v18068_v3 = vpop.xlane.xlu0 %8832  ;;  %v8941_v47 = vsel %vm625_vm5, %v8894_v36, %v8940_v50 }
0x28d1   :  { %v18070_v9 = vpop.xlane.xlu1 %8835  ;;  %v8911_v33 = vrot.slane %v18068_v3, %v15962_v42 }
0x28d2   :  { %v8916_v25 = vrot.slane %v18070_v9, %v15967_v45 }
0x28d3   :  { %v8912_v50 = vsel %vm558_vm3, %v8911_v33, %v8907_v21 }
0x28d4   :  { %v18072_v7 = vpop.xlane.xlu0 %8826 }
0x28d5   :  { %v8902_v11 = vrot.slane %v18072_v7, %v15962_v42  ;;  %v18085_v52 = vpop.xlane.xlu1 %8841 }
0x28d6   :  { %v8925_v39 = vrot.slane %v18085_v52, %v15967_v45 }
0x28d7   :  { %v8903_v56 = vsel %vm558_vm3, %v8902_v11, %v8898_v54 }
0x28d8   :  { %v18087_v44 = vpop.xlane.xlu0 %8838  ;;  %v8942_v12 = vsel %vm627_vm6, %v8903_v56, %v8941_v47 }
0x28d9   :  { %v8920_v59 = vrot.slane %v18087_v44, %v15962_v42  ;;  %v18112_v11 = vpop.xlane.xlu1 %8847  ;;  %v8943_v56 = vsel %vm629_vm7, %v8912_v50, %v8942_v12 }
0x28da   :  { %v8934_v54 = vrot.slane %v18112_v11, %v15967_v45 }
0x28db   :  { %v8921_v48 = vsel %vm558_vm3, %v8920_v59, %v8916_v25 }
0x28dc   :  { %v18100_v43 = vpop.xlane.xlu0 %8844  ;;  %v8944_v47 = vsel %vm631_vm8, %v8921_v48, %v8943_v56 }
0x28dd   :  { %v8929_v53 = vrot.slane %v18100_v43, %v15962_v42 }
0x28df   :  { %v8930_v35 = vsel %vm558_vm3, %v8929_v53, %v8925_v39 }
0x28e0   :  { %v18116_v36 = vpop.xlane.xlu0 %8850  ;;  %v8945_v59 = vsel %vm633_vm9, %v8930_v35, %v8944_v47 }
0x28e1   :  { %v8938_v31 = vrot.slane %v18116_v36, %v15962_v42 }
0x28e3   :  { %v8939_v58 = vsel %vm558_vm3, %v8938_v31, %v8934_v54 }
0x28e4   :  { %v8946_v33 = vsel %vm635_vm10, %v8939_v58, %v8945_v59 }
0x28e5   :  { %v8948_v25 = vsel %vm265_vm2, %v8946_v33, -inf }
0x28e6   :  { %8949 = vmax.xlane.f32.xlu1 %v8948_v25 }
0x2973   :  { %v8950_v53 = vpop.xlane.xlu1 %8949 }
0x2974   :  { %v8955_v21 = vrot.slane %v8950_v53, %v15848_v46  ;;  %v8959_v39 = vrot.slane %v8950_v53, %v16025_v27  ;;  %v8963_v12 = vrot.slane %v8950_v53, %v16047_v63  ;;  %v8967_v35 = vrot.slane %v8950_v53, %v16061_v1 }
0x2976   :  { %v8992_v24 = vsub.f32 %v8806_v2, %v8955_v21  ;;  %v8993_v57 = vsub.f32 %v8809_v14, %v8955_v21  ;;  %v8995_v50 = vsub.f32 %v8815_v4, %v8959_v39  ;;  %v8994_v48 = vsub.f32 %v18058_v40, %v8959_v39 }
0x2977   :  { %v8997_v58 = vsub.f32 %v18064_v51, %v8963_v12  ;;  %v8996_v47 = vsub.f32 %v18060_v20, %v8963_v12  ;;  %v8971_v2 = vrot.slane %v8950_v53, %v16073_v29  ;;  %v8999_v14 = vsub.f32 %v18072_v7, %v8967_v35 }
0x2978   :  { %v9008_v31 = vmul.f32 1.442695, %v8992_v24  ;;  %v9010_v54 = vmul.f32 1.442695, %v8993_v57  ;;  %v9014_v56 = vmul.f32 1.442695, %v8995_v50  ;;  %v8998_v40 = vsub.f32 %v18066_v15, %v8967_v35 }
0x2979   :  { %v9012_v59 = vmul.f32 1.442695, %v8994_v48  ;;  %v9018_v4 = vmul.f32 1.442695, %v8997_v58  ;;  %v9016_v57 = vmul.f32 1.442695, %v8996_v47  ;;  %v8975_v24 = vrot.slane %v8950_v53, %v16028_v41 }
0x297a   :  { %15414 = vpow2.f32 %v9008_v31  ;;  %v9001_v51 = vsub.f32 %v18068_v3, %v8971_v2  ;;  %v9022_v33 = vmul.f32 1.442695, %v8999_v14  ;;  %v9000_v20 = vsub.f32 %v18062_v28, %v8971_v2 }
0x297b   :  { %15416 = vpow2.f32 %v9010_v54  ;;  %v9020_v25 = vmul.f32 1.442695, %v8998_v40  ;;  %v8979_v15 = vrot.slane %v8950_v53, %v16031_v32  ;;  %v9003_v7 = vsub.f32 %v18087_v44, %v8975_v24 }
0x297c   :  { %15418 = vpow2.f32 %v9014_v56  ;;  %v9026_v12 = vmul.f32 1.442695, %v9001_v51  ;;  %v9002_v3 = vsub.f32 %v18070_v9, %v8975_v24  ;;  %v9024_v28 = vmul.f32 1.442695, %v9000_v20 }
0x297d   :  { %15420 = vpow2.f32 %v9012_v59  ;;  %v8983_v31 = vrot.slane %v8950_v53, %v16039_v61  ;;  %v9005_v54 = vsub.f32 %v18100_v43, %v8979_v15  ;;  %v9030_v44 = vmul.f32 1.442695, %v9003_v7 }
0x297e   :  { %15422 = vpow2.f32 %v9018_v4  ;;  %v9004_v35 = vsub.f32 %v18085_v52, %v8979_v15  ;;  %v9028_v9 = vmul.f32 1.442695, %v9002_v3 }
0x297f   :  { %15424 = vpow2.f32 %v9016_v57  ;;  %v9007_v47 = vsub.f32 %v18116_v36, %v8983_v31  ;;  %v9034_v53 = vmul.f32 1.442695, %v9005_v54  ;;  %v9006_v43 = vsub.f32 %v18112_v11, %v8983_v31 }
0x2980   :  { %15426 = vpow2.f32 %v9022_v33  ;;  %v9032_v59 = vmul.f32 1.442695, %v9004_v35 }
0x2981   :  { %15428 = vpow2.f32 %v9020_v25  ;;  %v9038_v14 = vmul.f32 1.442695, %v9007_v47  ;;  %v9036_v36 = vmul.f32 1.442695, %v9006_v43 }
0x2982   :  { %15430 = vpow2.f32 %v9026_v12 }
0x2983   :  { %15432 = vpow2.f32 %v9024_v28 }
0x2984   :  { %v18142_v21 = vpop.eup %15414  ;;  %15434 = vpow2.f32 %v9030_v44 }
0x2985   :  { %v18144_v39 = vpop.eup %15416  ;;  %9057 = vperm.xlu0 %15011, %v18142_v21   ;;  %15436 = vpow2.f32 %v9028_v9 }
0x2986   :  { %9060 = vperm.xlu1 %15010, %v18144_v39   ;;  %v18151_v50 = vpop.eup %15418  ;;  %15438 = vpow2.f32 %v9034_v53 }
0x2987   :  { %v18153_v48 = vpop.eup %15420  ;;  %15440 = vpow2.f32 %v9032_v59 }
0x2988   :  { %v18160_v58 = vpop.eup %15422  ;;  %15442 = vpow2.f32 %v9038_v14 }
0x2989   :  { %9066 = vperm.xlu0 %15011, %v18151_v50   ;;  %v18162_v56 = vpop.eup %15424  ;;  %15444 = vpow2.f32 %v9036_v36 }
0x298a   :  { %9063 = vperm.xlu1 %15010, %v18153_v48   ;;  %v18168_v2 = vpop.eup %15426 }
0x298b   :  { %v18170_v52 = vpop.eup %15428 }
0x298c   :  { %v18174_v4 = vpop.eup %15430 }
0x298d   :  { %9072 = vperm.xlu0 %15011, %v18160_v58   ;;  %v18176_v40 = vpop.eup %15432 }
0x298e   :  { %9069 = vperm.xlu1 %15010, %v18162_v56   ;;  %v18180_v11 = vpop.eup %15434 }
0x298f   :  { %v18182_v57 = vpop.eup %15436 }
0x2990   :  { %v18186_v24 = vpop.eup %15438 }
0x2991   :  { %9078 = vperm.xlu0 %15011, %v18168_v2   ;;  %v18188_v51 = vpop.eup %15440 }
0x2992   :  { %9075 = vperm.xlu1 %15010, %v18170_v52   ;;  %v18192_v33 = vpop.eup %15442 }
0x2993   :  { %v15445_v20 = vpop.eup %15444 }
0x2995   :  { %9084 = vperm.xlu0 %15011, %v18174_v4  }
0x2996   :  { %9081 = vperm.xlu1 %15010, %v18176_v40  }
0x2999   :  { %9090 = vperm.xlu0 %15011, %v18180_v11  }
0x299a   :  { %9087 = vperm.xlu1 %15010, %v18182_v57  }
0x299d   :  { %9096 = vperm.xlu0 %15011, %v18186_v24  }
0x299e   :  { %9093 = vperm.xlu1 %15010, %v18188_v51  }
0x29a1   :  { %9102 = vperm.xlu0 %15011, %v18192_v33  }
0x29a2   :  { %9099 = vperm.xlu1 %15010, %v15445_v20  }
0x2a04   :  { %v9058_v25 = vpop.permute.xlu0 %9057 }
0x2a05   :  { %v9061_v15 = vpop.permute.xlu1 %9060  ;;  %v9107_v19 = vrot.slane %v9058_v25, %v15967_v45 }
0x2a06   :  { %v9111_v36 = vrot.slane %v9061_v15, %v15962_v42 }
0x2a08   :  { %v9067_v7 = vpop.permute.xlu0 %9066 }
0x2a09   :  { %v9064_v12 = vpop.permute.xlu1 %9063  ;;  %v9120_v47 = vrot.slane %v9067_v7, %v15962_v42 }
0x2a0a   :  { %v9116_v9 = vrot.slane %v9064_v12, %v15967_v45 }
0x2a0c   :  { %v9073_v3 = vpop.permute.xlu0 %9072  ;;  %v9121_v7 = vsel %vm558_vm3, %v9120_v47, %v9116_v9 }
0x2a0d   :  { %v9070_v28 = vpop.permute.xlu1 %9069  ;;  %v9129_v59 = vrot.slane %v9073_v3, %v15962_v42 }
0x2a0e   :  { %v9125_v43 = vrot.slane %v9070_v28, %v15967_v45 }
0x2a10   :  { %v9079_v31 = vpop.permute.xlu0 %9078  ;;  %v9130_v8 = vsel %vm558_vm3, %v9129_v59, %v9125_v43 }
0x2a11   :  { %v9076_v54 = vpop.permute.xlu1 %9075  ;;  %v9138_v16 = vrot.slane %v9079_v31, %v15962_v42 }
0x2a12   :  { %v9134_v34 = vrot.slane %v9076_v54, %v15967_v45  ;;  %v9112_v54 = vsel %vm558_vm3, %v9111_v36, %v9107_v19 }
0x2a14   :  { %v9085_v44 = vpop.permute.xlu0 %9084  ;;  %v9139_v31 = vsel %vm558_vm3, %v9138_v16, %v9134_v34 }
0x2a15   :  { %v9082_v35 = vpop.permute.xlu1 %9081  ;;  %v9147_v12 = vrot.slane %v9085_v44, %v15962_v42  ;;  %v9176_v44 = vsel %vm623_vm4, %v9121_v7, %v9112_v54 }
0x2a16   :  { %v9143_v49 = vrot.slane %v9082_v35, %v15967_v45  ;;  %v9177_v47 = vsel %vm625_vm5, %v9130_v8, %v9176_v44 }
0x2a17   :  { %v9178_v43 = vsel %vm627_vm6, %v9139_v31, %v9177_v47 }
0x2a18   :  { %v9091_v53 = vpop.permute.xlu0 %9090  ;;  %v9148_v9 = vsel %vm558_vm3, %v9147_v12, %v9143_v49 }
0x2a19   :  { %v9088_v14 = vpop.permute.xlu1 %9087  ;;  %v9156_v28 = vrot.slane %v9091_v53, %v15962_v42  ;;  %v9179_v16 = vsel %vm629_vm7, %v9148_v9, %v9178_v43 }
0x2a1a   :  { %v9152_v37 = vrot.slane %v9088_v14, %v15967_v45 }
0x2a1c   :  { %v9097_v3 = vpop.permute.xlu0 %9096  ;;  %v9157_v53 = vsel %vm558_vm3, %v9156_v28, %v9152_v37 }
0x2a1d   :  { %v9094_v15 = vpop.permute.xlu1 %9093  ;;  %v9165_v25 = vrot.slane %v9097_v3, %v15962_v42  ;;  %v9180_v36 = vsel %vm631_vm8, %v9157_v53, %v9179_v16  ;;  %v9963_v16 = vld [vmem:[%s19212_s1 + $0x35] sm:$0x1] }
0x2a1e   :  { %v9161_v35 = vrot.slane %v9094_v15, %v15967_v45 }
0x2a20   :  { %v9103_v14 = vpop.permute.xlu0 %9102  ;;  %v9166_v59 = vsel %vm558_vm3, %v9165_v25, %v9161_v35 }
0x2a21   :  { %v9100_v3 = vpop.permute.xlu1 %9099  ;;  %v9174_v19 = vrot.slane %v9103_v14, %v15962_v42  ;;  %v9181_v8 = vsel %vm633_vm9, %v9166_v59, %v9180_v36 }
0x2a22   :  { %v9170_v34 = vrot.slane %v9100_v3, %v15967_v45 }
0x2a24   :  { %v9175_v49 = vsel %vm558_vm3, %v9174_v19, %v9170_v34 }
0x2a25   :  { %v9182_v37 = vsel %vm635_vm10, %v9175_v49, %v9181_v8 }
0x2a26   :  { %v9184_v12 = vsel %vm265_vm2, %v9182_v37, 0.0 }
0x2a27   :  { %9185 = vadd.xlane.f32.xlu1 %v9184_v12 }
0x2ab4   :  { %v9186_v7 = vpop.xlane.xlu1 %9185 }
0x2ab5   :  { %15446 = vrcp.f32 %v9186_v7 }
0x2abf   :  { %v15447_v28 = vpop.eup %15446 }
0x2ac0   :  { %v9208_v15 = vrot.slane %v15447_v28, %v16073_v29  ;;  %v9192_v25 = vrot.slane %v15447_v28, %v15848_v46  ;;  %v9220_v35 = vrot.slane %v15447_v28, %v16039_v61  ;;  %v9196_v47 = vrot.slane %v15447_v28, %v16025_v27 }
0x2ac2   :  { %v9238_v54 = vmul.f32 %v18174_v4, %v9208_v15  ;;  %v9229_v31 = vmul.f32 %v18142_v21, %v9192_v25  ;;  %v9243_v44 = vmul.f32 %v15445_v20, %v9220_v35  ;;  %v9230_v9 = vmul.f32 %v18144_v39, %v9192_v25 }
0x2ac3   :  { %v9231_v53 = vmul.f32 %v18153_v48, %v9196_v47  ;;  %v9232_v14 = vmul.f32 %v18151_v50, %v9196_v47  ;;  %v9200_v4 = vrot.slane %v15447_v28, %v16047_v63  ;;  %v9204_v20 = vrot.slane %v15447_v28, %v16061_v1 }
0x2ac4   :  { %9607 = vperm.xlu1 %15010, %v9238_v54   ;;  %9248 = vperm.xlu0 %15011, %v9229_v31   ;;  %v9237_v48 = vmul.f32 %v18176_v40, %v9208_v15  ;;  %v9212_v50 = vrot.slane %v15447_v28, %v16028_v41  ;;  %v9957_v40 = vld [vmem:[%s19212_s1 + $0x5] sm:$0x1] }
0x2ac5   :  { %v9233_v21 = vmul.f32 %v18162_v56, %v9200_v4  ;;  %v9234_v43 = vmul.f32 %v18160_v58, %v9200_v4  ;;  %v9235_v39 = vmul.f32 %v18170_v52, %v9204_v20  ;;  %v9236_v59 = vmul.f32 %v18168_v2, %v9204_v20 }
0x2ac6   :  { %v9239_v3 = vmul.f32 %v18182_v57, %v9212_v50  ;;  %v9240_v56 = vmul.f32 %v18180_v11, %v9212_v50  ;;  %v9216_v58 = vrot.slane %v15447_v28, %v16031_v32  ;;  %v9244_v2 = vmul.f32 %v18192_v33, %v9220_v35  ;;  %v9958_v11 = vld [vmem:[%s19212_s1 + $0xd] sm:$0x1]  ;;  %v9959_v57 = vld [vmem:[%s19212_s1 + $0x15] sm:$0x1] }
0x2ac7   :  { %v9962_v33 = vld [vmem:[%s19212_s1 + $0x2d] sm:$0x1]  ;;  %v9996_v34 = vrot.slane %v9958_v11, 7  ;;  %v9998_v36 = vrot.slane %v9959_v57, 6  ;;  %v10006_v28 = vrot.slane %v9963_v16, 2 }
0x2ac8   :  { %9871 = vperm.xlu1 %15010, %v9243_v44   ;;  %9251 = vperm.xlu0 %15011, %v9230_v9   ;;  %v9241_v19 = vmul.f32 %v18188_v51, %v9216_v58  ;;  %v9242_v52 = vmul.f32 %v18186_v24, %v9216_v58  ;;  %v9960_v24 = vld [vmem:[%s19212_s1 + $0x1d] sm:$0x1]  ;;  %v9961_v51 = vld [vmem:[%s19212_s1 + $0x25] sm:$0x1]  ;;  %v10004_v12 = vrot.slane %v9962_v33, 3 }
0x2ac9   :  { %v10000_v49 = vrot.slane %v9960_v24, 5  ;;  %v10002_v8 = vrot.slane %v9961_v51, 4  ;;  %v9997_v37 = vsel %vm623_vm4, %v9996_v34, %v9957_v40 }
0x2aca   :  { %v9999_v7 = vsel %vm625_vm5, %v9998_v36, %v9997_v37 }
0x2acb   :  { %v10001_v15 = vsel %vm627_vm6, %v10000_v49, %v9999_v7 }
0x2acc   :  { %9337 = vperm.xlu0 %15011, %v9231_v53   ;;  %v10003_v54 = vsel %vm629_vm7, %v10002_v8, %v10001_v15 }
0x2acd   :  { %v10005_v31 = vsel %vm631_vm8, %v10004_v12, %v10003_v54 }
0x2ace   :  { %v10007_v35 = vsel %vm633_vm9, %v10006_v28, %v10005_v31 }
0x2ad0   :  { %9340 = vperm.xlu0 %15011, %v9232_v14  }
0x2ad4   :  { %9426 = vperm.xlu0 %15011, %v9233_v21  }
0x2ad8   :  { %9429 = vperm.xlu0 %15011, %v9234_v43  }
0x2adc   :  { %9515 = vperm.xlu0 %15011, %v9235_v39  }
0x2ae0   :  { %9518 = vperm.xlu0 %15011, %v9236_v59  }
0x2ae4   :  { %9604 = vperm.xlu0 %15011, %v9237_v48  }
0x2ae8   :  { %9693 = vperm.xlu0 %15011, %v9239_v3  }
0x2aec   :  { %9696 = vperm.xlu0 %15011, %v9240_v56  }
0x2af0   :  { %9782 = vperm.xlu0 %15011, %v9241_v19  }
0x2af4   :  { %9785 = vperm.xlu0 %15011, %v9242_v52  }
0x2af8   :  { %9874 = vperm.xlu0 %15011, %v9244_v2  }
0x2afc   :  { %10013 = vrot.lane.b32.xlu0 %v17965_v62, %s15662_s13  ;;  %v9964_v62 = vld [vmem:[%s19212_s1 + $0x3d] sm:$0x1] }
0x2afd   :  { %v10008_v25 = vrot.slane %v9964_v62, 1 }
0x2aff   :  { %v10009_v44 = vsel %vm635_vm10, %v10008_v25, %v10007_v35 }
0x2b00   :  { %10010 = vrot.lane.b32.xlu1 %v10009_v44, %s15661_s25 }
0x2b43   :  { %v9249_v9 = vpop.permute.xlu0 %9248  ;;  %v9608_v11 = vpop.permute.xlu1 %9607 }
0x2b44   :  { %v9256_v53 = vrot.slane %v9249_v9, %v15967_v45  ;;  %v9616_v51 = vrot.slane %v9608_v11, %v15962_v42 }
0x2b47   :  { %v9252_v47 = vpop.permute.xlu0 %9251  ;;  %v9872_v15 = vpop.permute.xlu1 %9871 }
0x2b48   :  { %v9260_v14 = vrot.slane %v9252_v47, %v15962_v42  ;;  %v9879_v31 = vrot.slane %v9872_v15, %v15967_v45 }
0x2b4a   :  { %v9261_v4 = vsel %vm558_vm3, %v9260_v14, %v9256_v53 }
0x2b4b   :  { %14479 = vmatmul.mubr.msk.f32.vlgmr.msra.gmra.mrb[58].mxu1 %vm265_vm2, %v9261_v4  ;;  %v9338_v21 = vpop.permute.xlu0 %9337 }
0x2b4c   :  { %14901 = vmatpush3.bf16.msra.mxu1 %v15759_v13  ;;  %14492 = vmatprep.mubr.msk.f32.mxu1 %vm15657_vm1, %v19293_v55  ;;  %v9345_v20 = vrot.slane %v9338_v21, %v15967_v45 }
0x2b4d   :  { %14905 = vmatprep.subr.bf16.mxu1 %v19294_v0 }
0x2b4f   :  { %v9341_v43 = vpop.permute.xlu0 %9340 }
0x2b50   :  { %v9349_v39 = vrot.slane %v9341_v43, %v15962_v42 }
0x2b52   :  { %v9350_v59 = vsel %vm558_vm3, %v9349_v39, %v9345_v20 }
0x2b53   :  { %14486 = vmatmul.mubr.msk.f32.vlgmr.msra.gmra.mrb[70].mxu0 %vm265_vm2, %v9350_v59  ;;  %v9427_v48 = vpop.permute.xlu0 %9426 }
0x2b54   :  { %14904 = vmatpush3.bf16.msra.mxu0 %v15774_v18  ;;  %14499 = vmatprep.mubr.msk.f32.mxu0 %vm15657_vm1, %v19293_v55  ;;  %v9434_v3 = vrot.slane %v9427_v48, %v15967_v45 }
0x2b55   :  { %14908 = vmatprep.subr.bf16.mxu0 %v19294_v0 }
0x2b57   :  { %v9430_v50 = vpop.permute.xlu0 %9429 }
0x2b58   :  { %v9438_v56 = vrot.slane %v9430_v50, %v15962_v42 }
0x2b5a   :  { %v9439_v58 = vsel %vm558_vm3, %v9438_v56, %v9434_v3 }
0x2b5b   :  { %14493 = vmatmul.mubr.msk.f32.vlgmr.msra.gmra.mrb[60].mxu1 %vm265_vm2, %v9439_v58  ;;  %v9516_v19 = vpop.permute.xlu0 %9515 }
0x2b5c   :  { %14907 = vmatpush3.bf16.msra.mxu1 %v15785_v22  ;;  %14506 = vmatprep.mubr.msk.f32.mxu1 %vm15657_vm1, %v19293_v55  ;;  %v9523_v2 = vrot.slane %v9516_v19, %v15967_v45 }
0x2b5d   :  { %14911 = vmatprep.subr.bf16.mxu1 %v19294_v0 }
0x2b5f   :  { %v9519_v52 = vpop.permute.xlu0 %9518 }
0x2b60   :  { %v9527_v40 = vrot.slane %v9519_v52, %v15962_v42 }
0x2b62   :  { %v9528_v57 = vsel %vm558_vm3, %v9527_v40, %v9523_v2 }
0x2b63   :  { %14500 = vmatmul.mubr.msk.f32.vlgmr.msra.gmra.mrb[72].mxu0 %vm265_vm2, %v9528_v57  ;;  %v9605_v24 = vpop.permute.xlu0 %9604 }
0x2b64   :  { %v9612_v33 = vrot.slane %v9605_v24, %v15967_v45  ;;  %14910 = vmatpush3.bf16.msra.mxu0 %v15787_v23  ;;  %14513 = vmatprep.mubr.msk.f32.mxu0 %vm15657_vm1, %v19293_v55 }
0x2b65   :  { %14914 = vmatprep.subr.bf16.mxu0 %v19294_v0 }
0x2b66   :  { %v9617_v16 = vsel %vm558_vm3, %v9616_v51, %v9612_v33 }
0x2b67   :  { %14507 = vmatmul.mubr.msk.f32.vlgmr.msra.gmra.mrb[62].mxu1 %vm265_vm2, %v9617_v16  ;;  %v9694_v34 = vpop.permute.xlu0 %9693 }
0x2b68   :  { %14913 = vmatpush3.bf16.msra.mxu1 %v15797_v26  ;;  %14520 = vmatprep.mubr.msk.f32.mxu1 %vm15657_vm1, %v19293_v55  ;;  %v9701_v62 = vrot.slane %v9694_v34, %v15967_v45 }
0x2b69   :  { %14917 = vmatprep.subr.bf16.mxu1 %v19294_v0 }
0x2b6b   :  { %v9697_v36 = vpop.permute.xlu0 %9696 }
0x2b6c   :  { %v9705_v49 = vrot.slane %v9697_v36, %v15962_v42 }
0x2b6e   :  { %v9706_v8 = vsel %vm558_vm3, %v9705_v49, %v9701_v62 }
0x2b6f   :  { %14514 = vmatmul.mubr.msk.f32.vlgmr.msra.gmra.mrb[74].mxu0 %vm265_vm2, %v9706_v8  ;;  %v9783_v37 = vpop.permute.xlu0 %9782 }
0x2b70   :  { %14916 = vmatpush3.bf16.msra.mxu0 %v19306_v38  ;;  %14527 = vmatprep.mubr.msk.f32.mxu0 %vm15657_vm1, %v19293_v55  ;;  %v9790_v7 = vrot.slane %v9783_v37, %v15967_v45 }
0x2b71   :  { %14923 = vmatprep.subr.bf16.mxu0 %v19294_v0 }
0x2b72   :  { %v10011_v8 = vpop.permute.xlu1 %10010 }
0x2b73   :  { %v9786_v12 = vpop.permute.xlu0 %9785 }
0x2b74   :  { %v9794_v28 = vrot.slane %v9786_v12, %v15962_v42 }
0x2b76   :  { %v9795_v25 = vsel %vm558_vm3, %v9794_v28, %v9790_v7 }
0x2b77   :  { %14521 = vmatmul.mubr.msk.f32.vlgmr.msra.gmra.mrb[64].mxu1 %vm265_vm2, %v9795_v25  ;;  %v9875_v54 = vpop.permute.xlu0 %9874  ;;  %v15622_v25 = vld [vmem:[%s19218_s7] ss:$0 sm:$0xff] }
0x2b78   :  { %v9883_v35 = vrot.slane %v9875_v54, %v15962_v42  ;;  %14919 = vmatpush3.bf16.msra.mxu1 %v16282_v10  ;;  %14538 = vmatprep.mubr.msk.f32.mxu1 %vm15657_vm1, %v19293_v55 }
0x2b79   :  { %14920 = vmatprep.subr.bf16.mxu1 %v19294_v0 }
0x2b7a   :  { %v9884_v44 = vsel %vm558_vm3, %v9883_v35, %v9879_v31 }
0x2b7b   :  { %14528 = vmatmul.mubr.msk.f32.vlgmr.msra.gmra.mrb[76].mxu0 %vm265_vm2, %v9884_v44  ;;  %v10014_v12 = vpop.permute.xlu0 %10013 }
0x2b7c   :  { %14922 = vmatpush3.bf16.msra.mxu1 %v16292_v5  ;;  %14925 = vmatpush3.bf16.msra.mxu0 %v16324_v6 }
0x2b7d   :  { %14545 = vmatprep.mubr.msk.f32.mxu0 %vm15657_vm1, %v19293_v55  ;;  %14926 = vmatprep.subr.bf16.mxu0 %v19294_v0 }
0x2b7e   :  { %14929 = vmatprep.subr.bf16.mxu1 %v19294_v0 }
0x2c1e   :  { %v9330_v9 = vpop.f32.mrb[58].mxu1 }
0x2c1f   :  { %v14480_v47 = vpop.f32.mrb[59].mxu1 }
0x2c26   :  { %v9419_v53 = vpop.f32.mrb[70].mxu0 }
0x2c27   :  { %v9973_v14 = vrot.slane %v9419_v53, 7  ;;  %v14487_v4 = vpop.f32.mrb[71].mxu0 }
0x2c29   :  { %v9974_v21 = vsel %vm623_vm4, %v9973_v14, %v9330_v9 }
0x2c2e   :  { %v9508_v43 = vpop.f32.mrb[60].mxu1 }
0x2c2f   :  { %v9975_v20 = vrot.slane %v9508_v43, 6  ;;  %v14494_v39 = vpop.f32.mrb[61].mxu1 }
0x2c31   :  { %v9976_v59 = vsel %vm625_vm5, %v9975_v20, %v9974_v21 }
0x2c36   :  { %v9597_v48 = vpop.f32.mrb[72].mxu0 }
0x2c37   :  { %v9977_v50 = vrot.slane %v9597_v48, 5  ;;  %v14501_v3 = vpop.f32.mrb[73].mxu0 }
0x2c39   :  { %v9978_v56 = vsel %vm627_vm6, %v9977_v50, %v9976_v59 }
0x2c3a   :  { %v9686_v58 = vpop.f32.mrb[62].mxu1 }
0x2c3b   :  { %v9979_v19 = vrot.slane %v9686_v58, 4  ;;  %v14508_v52 = vpop.f32.mrb[63].mxu1 }
0x2c3d   :  { %v9980_v2 = vsel %vm629_vm7, %v9979_v19, %v9978_v56  ;;  %v15623_v56 = vld [vmem:[%s19220_s9] ss:$0 sm:$0xff] }
0x2c42   :  { %v9775_v40 = vpop.f32.mrb[74].mxu0 }
0x2c43   :  { %v9981_v11 = vrot.slane %v9775_v40, 3  ;;  %v14515_v57 = vpop.f32.mrb[75].mxu0 }
0x2c45   :  { %v9982_v24 = vsel %vm631_vm8, %v9981_v11, %v9980_v2  ;;  %v19382_v2 = vld [vmem:[#allocation10_spill] sm:$0xff] }
0x2c4a   :  { %v9864_v51 = vpop.f32.mrb[64].mxu1 }
0x2c4b   :  { %v9983_v33 = vrot.slane %v9864_v51, 2  ;;  %v14522_v16 = vpop.f32.mrb[65].mxu1 }
0x2c4d   :  { %v9984_v34 = vsel %vm633_vm9, %v9983_v33, %v9982_v24  ;;  %v15624_v33 = vld [vmem:[%s19215_s4] ss:$0 sm:$0xff] }
0x2c4e   :  { %v9953_v36 = vpop.f32.mrb[76].mxu0 }
0x2c4f   :  { %v9985_v62 = vrot.slane %v9953_v36, 1  ;;  %v14529_v49 = vpop.f32.mrb[77].mxu0 }
0x2c51   :  { %v9986_v37 = vsel %vm635_vm10, %v9985_v62, %v9984_v34 }
0x2c52   :  { %v10016_v7 = vsel %vm53_vm0, %v9986_v37, %v10011_v8 }
0x2c53   :  { %v10017_v28 = vsel %vm265_vm2, %v10016_v7, %v10014_v12 }
0x2c54   :  { %14539 = vmatmul.mubr.msk.f32.vlgmr.msra.gmra.mrb[66].mxu1 %vm1711_vm11, %v10017_v28 }
0x2c55   :  { %14931 = vmatpush3.bf16.msra.mxu1 %v15770_v17  ;;  %14559 = vmatprep.mubr.msk.f32.mxu1 %vm15657_vm1, %v19293_v55 }
0x2c56   :  { %14935 = vmatprep.subr.bf16.mxu1 %v19294_v0 }
0x2d27   :  { %v10087_v15 = vpop.f32.mrb[66].mxu1 }
0x2d28   :  { %v10088_v54 = vadd.f32 %v15622_v25, %v10087_v15  ;;  %v14540_v31 = vpop.f32.mrb[67].mxu1 }
0x2d2a   :  { %15448 = vtanh.f32 %v10088_v54  ;;  %v13701_v44 = vmul.f32 -1.442695, %v10088_v54 }
0x2d2c   :  { %15450 = vpow2.f32 %v13701_v44 }
0x2d34   :  { %v15449_v35 = vpop.eup %15448 }
0x2d35   :  { %10100 = vrot.lane.b32.xlu1 %v15449_v35, %s15662_s13 }
0x2d36   :  { %v15451_v9 = vpop.eup %15450 }
0x2d37   :  { %v10094_v47 = vadd.f32 1.0, %v15451_v9 }
0x2d39   :  { %15452 = vrcp.f32 %v10094_v47 }
0x2d43   :  { %v15453_v53 = vpop.eup %15452 }
0x2d44   :  { %v10098_v21 = vmul.f32 %v15453_v53, %v17961_v30  ;;  %v19381_v30 = vld [vmem:[#allocation6_spill] sm:$0xff] }
0x2da7   :  { %v10101_v14 = vpop.permute.xlu1 %10100 }
0x2da8   :  { %v10103_v4 = vmul.f32 %v15453_v53, %v10101_v14 }
0x2daa   :  { %10105 = vrot.lane.b32.xlu0 %v10103_v4, %s15663_s14 }
0x2e1c   :  { %v10106_v43 = vpop.permute.xlu0 %10105 }
0x2e1d   :  { %v18370_v20 = vadd.f32 %v10106_v43, %v10098_v21 }
0x2e1f   :  { %15454 = vtanh.f32 %v18370_v20 }
0x2e29   :  { %v15455_v39 = vpop.eup %15454 }
0x2e2a   :  { %10111 = vrot.lane.b32.xlu1 %v15455_v39, %s15664_s19 }
0x2e9c   :  { %v10112_v59 = vpop.permute.xlu1 %10111 }
0x2e9d   :  { %v18374_v48 = vmul.f32 %v15453_v53, %v10112_v59 }
0x2e9f   :  { %10116 = vrot.lane.b32.xlu0 %v18374_v48, %s15665_s20 }
0x2f11   :  { %v10117_v50 = vpop.permute.xlu0 %10116 }
0x2f12   :  { %14546 = vmatmul.mubr.msk.f32.vlgmr.msra.gmra.mrb[78].mxu0 %vm265_vm2, %v10117_v50 }
0x2f13   :  { %14928 = vmatpush3.bf16.msra.mxu0 %v19362_v60  ;;  %14552 = vmatprep.mubr.msk.f32.mxu0 %vm15657_vm1, %v19293_v55 }
0x2f14   :  { %14932 = vmatprep.subr.bf16.mxu0 %v19294_v0 }
0x2f16   :  { %14553 = vmatmul.mubr.msk.f32.vlgmr.msra.gmra.mrb[80].mxu0 %vm265_vm2, %v10117_v50 }
0x2f17   :  { %14934 = vmatpush3.bf16.msra.mxu0 %v19381_v30  ;;  %14566 = vmatprep.mubr.msk.f32.mxu0 %vm15657_vm1, %v19293_v55 }
0x2f18   :  { %14938 = vmatprep.subr.bf16.mxu0 %v19294_v0 }
0x2fe5   :  { %v10186_v3 = vpop.f32.mrb[78].mxu0 }
0x2fe6   :  { %v10187_v58 = vadd.f32 %v15623_v56, %v10186_v3  ;;  %v14547_v19 = vpop.f32.mrb[79].mxu0  ;;  %v19383_v3 = vld [vmem:[#allocation9_spill] sm:$0xff] }
0x2fe8   :  { %v10191_v52 = vcombine.high %v10187_v58, %v10187_v58  ;;  %v10198_v40 = vrot.slane %v10187_v58, %v19382_v2  ;;  %v19384_v58 = vld [vmem:[#allocation8_spill] sm:$0xff] }
0x2fe9   :  { %v10322_v11 = vpop.f32.mrb[80].mxu0 }
0x2fea   :  { %v10205_v57 = vrot.slane %v10191_v52, %v19382_v2  ;;  %v10206_v24 = vcombine.high %v10198_v40, %v10198_v40  ;;  %v10214_v51 = vrot.slane %v10198_v40, %v19382_v2  ;;  %13703 = vst.sshfl [vmem:[#allocation2 + $0x5] sm:$0x1 pattern:$0x73625140] %v10198_v40  ;;  %v10323_v16 = vadd.f32 %v15624_v33, %v10322_v11  ;;  %v14554_v34 = vpop.f32.mrb[81].mxu0  ;;  %v19386_v33 = vld [vmem:[#allocation11_spill] sm:$0xff] }
0x2feb   :  { %v19387_v34 = vld [vmem:[#allocation14_spill] sm:$0xff] }
0x2fec   :  { %v10207_v36 = vcombine.high %v10205_v57, %v10205_v57  ;;  %v10221_v62 = vrot.slane %v10205_v57, %v19382_v2  ;;  %v10228_v49 = vrot.slane %v10206_v24, %v19382_v2  ;;  %v10236_v8 = vcombine.high %v10214_v51, %v10214_v51  ;;  %13704 = vst.sshfl [vmem:[#allocation2 + $0xd] sm:$0x1 pattern:$0x73625140] %v10206_v24  ;;  %v19385_v24 = vld [vmem:[#allocation12_spill] sm:$0xff] }
0x2fed   :  { %13705 = vst.sshfl [vmem:[#allocation2 + $0x25] sm:$0x1 pattern:$0x73625140] %v10205_v57  ;;  %v10327_v37 = vcombine.high %v10323_v16, %v10323_v16  ;;  %v10334_v12 = vrot.slane %v10323_v16, %v19382_v2 }
0x2fee   :  { %v10235_v7 = vrot.slane %v10207_v36, %v19382_v2  ;;  %v10237_v28 = vcombine.high %v10221_v62, %v10221_v62  ;;  %v10238_v15 = vcombine.high %v10228_v49, %v10228_v49  ;;  %10250 = vst [vmem:[#allocation2 + $0x15] sm:$0x1] %v10236_v8  ;;  %13706 = vst.sshfl [vmem:[#allocation2 + $0x2d] sm:$0x1 pattern:$0x73625140] %v10207_v36 }
0x2fef   :  { %v10341_v25 = vrot.slane %v10327_v37, %v19382_v2  ;;  %v10342_v54 = vcombine.high %v10334_v12, %v10334_v12  ;;  %v10350_v31 = vrot.slane %v10334_v12, %v19382_v2  ;;  %v19388_v62 = vld [vmem:[#allocation13_spill] sm:$0xff]  ;;  %v19389_v37 = vld [vmem:[#allocation16_spill] sm:$0xff] }
0x2ff0   :  { %v10239_v35 = vcombine.high %v10235_v7, %v10235_v7  ;;  %10251 = vst [vmem:[#allocation2 + $0x1d] sm:$0x1] %v10238_v15  ;;  %10254 = vst [vmem:[#allocation2 + $0x35] sm:$0x1] %v10237_v28  ;;  %v19390_v7 = vld [vmem:[#allocation15_spill] sm:$0xff]  ;;  %v19391_v15 = vld [vmem:[#allocation18_spill] sm:$0xff] }
0x2ff1   :  { %v10343_v44 = vcombine.high %v10341_v25, %v10341_v25  ;;  %v10357_v9 = vrot.slane %v10341_v25, %v19382_v2  ;;  %v10364_v47 = vrot.slane %v10342_v54, %v19382_v2  ;;  %v10372_v53 = vcombine.high %v10350_v31, %v10350_v31  ;;  %v19392_v54 = vld [vmem:[#allocation17_spill] sm:$0xff] }
0x2ff2   :  { %10255 = vst [vmem:[#allocation2 + $0x3d] sm:$0x1] %v10239_v35  ;;  %v10379_v14 = vrot.slane %v10350_v31, %v15848_v46  ;;  %v19393_v35 = vld [vmem:[#allocation20_spill] sm:$0xff] }
0x2ff3   :  { %v10371_v4 = vrot.slane %v10343_v44, %v19382_v2  ;;  %v10373_v21 = vcombine.high %v10357_v9, %v10357_v9  ;;  %v10374_v43 = vcombine.high %v10364_v47, %v10364_v47  ;;  %v10383_v39 = vrot.slane %v10364_v47, %v15848_v46 }
0x2ff4   :  { %v10387_v59 = vrot.slane %v10372_v53, %v15848_v46  ;;  %v10395_v50 = vrot.slane %v10357_v9, %v15848_v46  ;;  %v10416_v56 = vadd.f32 %v10379_v14, %v19383_v3  ;;  %v10417_v19 = vadd.f32 %v19384_v58, %v10379_v14  ;;  %v19394_v9 = vld [vmem:[#allocation19_spill] sm:$0xff]  ;;  %v19395_v53 = vld [vmem:[#allocation22_spill] sm:$0xff] }
0x2ff5   :  { %v10375_v52 = vcombine.high %v10371_v4, %v10371_v4  ;;  %v10391_v40 = vrot.slane %v10374_v43, %v15848_v46  ;;  %v10399_v11 = vrot.slane %v10371_v4, %v15848_v46  ;;  %v10403_v57 = vrot.slane %v10373_v21, %v15848_v46  ;;  %v19396_v4 = vld [vmem:[#allocation21_spill] sm:$0xff]  ;;  %v19397_v43 = vld [vmem:[#allocation24_spill] sm:$0xff] }
0x2ff6   :  { %v10418_v51 = vadd.f32 %v10383_v39, %v19385_v24  ;;  %v10419_v16 = vadd.f32 %v19386_v33, %v10383_v39  ;;  %v10420_v36 = vadd.f32 %v10387_v59, %v19387_v34  ;;  %v10421_v49 = vadd.f32 %v19388_v62, %v10387_v59  ;;  %v19398_v59 = vld [vmem:[#allocation23_spill] sm:$0xff] }
0x2ff7   :  { %v10407_v8 = vrot.slane %v10375_v52, %v15848_v46  ;;  %v10422_v12 = vadd.f32 %v10391_v40, %v19389_v37  ;;  %v10423_v28 = vadd.f32 %v19390_v7, %v10391_v40  ;;  %v10424_v25 = vadd.f32 %v10395_v50, %v19391_v15 }
0x2ff8   :  { %v10425_v31 = vadd.f32 %v19392_v54, %v10395_v50  ;;  %v10426_v44 = vadd.f32 %v10399_v11, %v19393_v35  ;;  %v10427_v47 = vadd.f32 %v19394_v9, %v10399_v11  ;;  %v10428_v14 = vadd.f32 %v10403_v57, %v19395_v53  ;;  %v18433_v11 = vld [vmem:[%s19216_s5] ss:$0 sm:$0xff] }
0x2ff9   :  { %v10429_v21 = vadd.f32 %v19396_v4, %v10403_v57  ;;  %v10430_v39 = vadd.f32 %v10407_v8, %v19397_v43  ;;  %v10431_v52 = vadd.f32 %v19398_v59, %v10407_v8  ;;  %15456 = vtanh.f32 %v10416_v56 }
0x2ffa   :  { %15458 = vtanh.f32 %v10417_v19 }
0x2ffb   :  { %15460 = vtanh.f32 %v10418_v51 }
0x2ffc   :  { %15462 = vtanh.f32 %v10420_v36 }
0x2ffd   :  { %15464 = vtanh.f32 %v10419_v16 }
0x2ffe   :  { %15466 = vtanh.f32 %v10422_v12 }
0x2fff   :  { %15468 = vtanh.f32 %v10424_v25 }
0x3000   :  { %15470 = vtanh.f32 %v10421_v49 }
0x3001   :  { %15472 = vtanh.f32 %v10426_v44 }
0x3002   :  { %15474 = vtanh.f32 %v10425_v31 }
0x3003   :  { %v15457_v50 = vpop.eup %15456  ;;  %15476 = vtanh.f32 %v10428_v14 }
0x3004   :  { %v15459_v40 = vpop.eup %15458  ;;  %v10448_v57 = vmul.f32 %v18433_v11, %v15457_v50  ;;  %15478 = vtanh.f32 %v10423_v28 }
0x3005   :  { %v15461_v43 = vpop.eup %15460  ;;  %v10449_v56 = vmul.f32 %v18433_v11, %v15459_v40  ;;  %15480 = vtanh.f32 %v10430_v39 }
0x3006   :  { %v10464_v19 = vsel %vm265_vm2, %v10448_v57, 0.0  ;;  %v15463_v51 = vpop.eup %15462  ;;  %v10450_v36 = vmul.f32 %v18433_v11, %v15461_v43  ;;  %15482 = vtanh.f32 %v10427_v47 }
0x3007   :  { %v10467_v16 = vsel %vm265_vm2, %v10449_v56, 0.0  ;;  %10465 = vadd.xlane.f32.xlu1 %v10464_v19  ;;  %v15465_v49 = vpop.eup %15464  ;;  %v10452_v8 = vmul.f32 %v18433_v11, %v15463_v51  ;;  %15484 = vtanh.f32 %v10429_v21 }
0x3008   :  { %10468 = vadd.xlane.f32.xlu0 %v10467_v16  ;;  %v15467_v12 = vpop.eup %15466  ;;  %v10470_v31 = vsel %vm265_vm2, %v10450_v36, 0.0  ;;  %v10451_v50 = vmul.f32 %v18433_v11, %v15465_v49  ;;  %15486 = vtanh.f32 %v10431_v52 }
0x3009   :  { %v10476_v25 = vsel %vm265_vm2, %v10452_v8, 0.0  ;;  %v15469_v44 = vpop.eup %15468  ;;  %v10454_v14 = vmul.f32 %v18433_v11, %v15467_v12 }
0x300a   :  { %v15471_v40 = vpop.eup %15470  ;;  %v10456_v57 = vmul.f32 %v18433_v11, %v15469_v44  ;;  %v10473_v28 = vsel %vm265_vm2, %v10451_v50, 0.0 }
0x300b   :  { %10477 = vadd.xlane.f32.xlu1 %v10476_v25  ;;  %v15473_v56 = vpop.eup %15472  ;;  %v10453_v19 = vmul.f32 %v18433_v11, %v15471_v40  ;;  %v10482_v16 = vsel %vm265_vm2, %v10454_v14, 0.0 }
0x300c   :  { %10471 = vadd.xlane.f32.xlu0 %v10470_v31  ;;  %v10488_v43 = vsel %vm265_vm2, %v10456_v57, 0.0  ;;  %v15475_v51 = vpop.eup %15474  ;;  %v10458_v36 = vmul.f32 %v18433_v11, %v15473_v56 }
0x300d   :  { %v15477_v49 = vpop.eup %15476  ;;  %v10479_v47 = vsel %vm265_vm2, %v10453_v19, 0.0  ;;  %v10457_v39 = vmul.f32 %v18433_v11, %v15475_v51 }
0x300e   :  { %v15479_v8 = vpop.eup %15478  ;;  %v10494_v12 = vsel %vm265_vm2, %v10458_v36, 0.0  ;;  %v10460_v25 = vmul.f32 %v18433_v11, %v15477_v49 }
0x300f   :  { %10489 = vadd.xlane.f32.xlu1 %v10488_v43  ;;  %v15481_v44 = vpop.eup %15480  ;;  %v10491_v21 = vsel %vm265_vm2, %v10457_v39, 0.0  ;;  %v10455_v31 = vmul.f32 %v18433_v11, %v15479_v8 }
0x3010   :  { %10474 = vadd.xlane.f32.xlu0 %v10473_v28  ;;  %v15483_v50 = vpop.eup %15482  ;;  %v10500_v40 = vsel %vm265_vm2, %v10460_v25, 0.0  ;;  %v10462_v57 = vmul.f32 %v18433_v11, %v15481_v44 }
0x3011   :  { %v10485_v43 = vsel %vm265_vm2, %v10455_v31, 0.0  ;;  %v10459_v14 = vmul.f32 %v18433_v11, %v15483_v50  ;;  %v15485_v56 = vpop.eup %15484 }
0x3012   :  { %v10506_v52 = vsel %vm265_vm2, %v10462_v57, 0.0  ;;  %v10461_v19 = vmul.f32 %v18433_v11, %v15485_v56  ;;  %v15487_v51 = vpop.eup %15486 }
0x3013   :  { %10483 = vadd.xlane.f32.xlu1 %v10482_v16  ;;  %v10497_v28 = vsel %vm265_vm2, %v10459_v14, 0.0  ;;  %v10463_v36 = vmul.f32 %v18433_v11, %v15487_v51 }
0x3014   :  { %10480 = vadd.xlane.f32.xlu0 %v10479_v47  ;;  %v10503_v16 = vsel %vm265_vm2, %v10461_v19, 0.0 }
0x3015   :  { %v10509_v49 = vsel %vm265_vm2, %v10463_v36, 0.0 }
0x3017   :  { %10495 = vadd.xlane.f32.xlu1 %v10494_v12 }
0x3018   :  { %10492 = vadd.xlane.f32.xlu0 %v10491_v21 }
0x301b   :  { %10501 = vadd.xlane.f32.xlu1 %v10500_v40 }
0x301c   :  { %10486 = vadd.xlane.f32.xlu0 %v10485_v43 }
0x301f   :  { %10507 = vadd.xlane.f32.xlu1 %v10506_v52 }
0x3020   :  { %10498 = vadd.xlane.f32.xlu0 %v10497_v28 }
0x3024   :  { %10504 = vadd.xlane.f32.xlu0 %v10503_v16 }
0x3028   :  { %10510 = vadd.xlane.f32.xlu0 %v10509_v49 }
0x3094   :  { %v10466_v47 = vpop.xlane.xlu1 %10465 }
0x3095   :  { %v10469_v39 = vpop.xlane.xlu0 %10468  ;;  %v10531_v56 = vrot.slane %v10466_v47, %v15967_v45 }
0x3096   :  { %v10535_v14 = vrot.slane %v10469_v39, %v15962_v42 }
0x3098   :  { %v10478_v8 = vpop.xlane.xlu1 %10477  ;;  %v10536_v4 = vsel %vm558_vm3, %v10535_v14, %v10531_v56 }
0x3099   :  { %v18467_v12 = vpop.xlane.xlu0 %10471  ;;  %v10549_v19 = vrot.slane %v10478_v8, %v15967_v45 }
0x309a   :  { %v10540_v52 = vrot.slane %v18467_v12, %v15967_v45 }
0x309c   :  { %v18469_v25 = vpop.xlane.xlu1 %10489 }
0x309d   :  { %v18471_v44 = vpop.xlane.xlu0 %10474  ;;  %v10567_v14 = vrot.slane %v18469_v25, %v15967_v45 }
0x309e   :  { %v10544_v57 = vrot.slane %v18471_v44, %v15962_v42 }
0x30a0   :  { %v18475_v31 = vpop.xlane.xlu1 %10483  ;;  %v10545_v36 = vsel %vm558_vm3, %v10544_v57, %v10540_v52 }
0x30a1   :  { %v18473_v21 = vpop.xlane.xlu0 %10480  ;;  %v10558_v49 = vrot.slane %v18475_v31, %v15967_v45  ;;  %v10600_v35 = vsel %vm623_vm4, %v10545_v36, %v10536_v4 }
0x30a2   :  { %v10553_v43 = vrot.slane %v18473_v21, %v15962_v42 }
0x30a4   :  { %v18479_v11 = vpop.xlane.xlu1 %10495  ;;  %v10554_v59 = vsel %vm558_vm3, %v10553_v43, %v10549_v19 }
0x30a5   :  { %v18477_v50 = vpop.xlane.xlu0 %10492  ;;  %v10601_v57 = vsel %vm625_vm5, %v10554_v59, %v10600_v35  ;;  %v10576_v52 = vrot.slane %v18479_v11, %v15967_v45 }
0x30a6   :  { %v10571_v54 = vrot.slane %v18477_v50, %v15962_v42 }
0x30a8   :  { %v18494_v51 = vpop.xlane.xlu1 %10501  ;;  %v10572_v35 = vsel %vm558_vm3, %v10571_v54, %v10567_v14 }
0x30a9   :  { %v18481_v40 = vpop.xlane.xlu0 %10486  ;;  %v10585_v4 = vrot.slane %v18494_v51, %v15967_v45 }
0x30aa   :  { %v10562_v28 = vrot.slane %v18481_v40, %v15962_v42 }
0x30ac   :  { %v10563_v53 = vsel %vm558_vm3, %v10562_v28, %v10558_v49  ;;  %v18521_v28 = vpop.xlane.xlu1 %10507 }
0x30ad   :  { %v18496_v16 = vpop.xlane.xlu0 %10498  ;;  %v10602_v56 = vsel %vm627_vm6, %v10563_v53, %v10601_v57  ;;  %v10594_v49 = vrot.slane %v18521_v28, %v15967_v45 }
0x30ae   :  { %v10580_v9 = vrot.slane %v18496_v16, %v15962_v42  ;;  %v10603_v53 = vsel %vm629_vm7, %v10572_v35, %v10602_v56 }
0x30b0   :  { %v10581_v19 = vsel %vm558_vm3, %v10580_v9, %v10576_v52 }
0x30b1   :  { %v18509_v15 = vpop.xlane.xlu0 %10504  ;;  %v10604_v57 = vsel %vm631_vm8, %v10581_v19, %v10603_v53 }
0x30b2   :  { %v10589_v43 = vrot.slane %v18509_v15, %v15962_v42 }
0x30b4   :  { %v10590_v59 = vsel %vm558_vm3, %v10589_v43, %v10585_v4 }
0x30b5   :  { %v18526_v36 = vpop.xlane.xlu0 %10510  ;;  %v10605_v9 = vsel %vm633_vm9, %v10590_v59, %v10604_v57 }
0x30b6   :  { %v10598_v7 = vrot.slane %v18526_v36, %v15962_v42 }
0x30b8   :  { %v10599_v37 = vsel %vm558_vm3, %v10598_v7, %v10594_v49 }
0x30b9   :  { %v10606_v54 = vsel %vm635_vm10, %v10599_v37, %v10605_v9 }
0x30ba   :  { %v10608_v52 = vsel %vm265_vm2, %v10606_v54, -inf }
0x30bb   :  { %10609 = vmax.xlane.f32.xlu1 %v10608_v52 }
0x3148   :  { %v10610_v43 = vpop.xlane.xlu1 %10609 }
0x3149   :  { %v10615_v14 = vrot.slane %v10610_v43, %v15848_v46  ;;  %v10623_v4 = vrot.slane %v10610_v43, %v16047_v63  ;;  %v10619_v62 = vrot.slane %v10610_v43, %v16025_v27  ;;  %v10627_v19 = vrot.slane %v10610_v43, %v16061_v1 }
0x314a   :  { %v10631_v37 = vrot.slane %v10610_v43, %v16073_v29  ;;  %v10639_v52 = vrot.slane %v10610_v43, %v16031_v32 }
0x314b   :  { %v10652_v34 = vsub.f32 %v10466_v47, %v10615_v14  ;;  %v10653_v56 = vsub.f32 %v10469_v39, %v10615_v14  ;;  %v10656_v35 = vsub.f32 %v10478_v8, %v10623_v4  ;;  %v10654_v7 = vsub.f32 %v18467_v12, %v10619_v62 }
0x314c   :  { %v10658_v53 = vsub.f32 %v18475_v31, %v10627_v19  ;;  %v10655_v9 = vsub.f32 %v18471_v44, %v10619_v62  ;;  %v10635_v47 = vrot.slane %v10610_v43, %v16028_v41  ;;  %v10660_v39 = vsub.f32 %v18469_v25, %v10631_v37 }
0x314d   :  { %v10668_v59 = vmul.f32 1.442695, %v10652_v34  ;;  %v10670_v49 = vmul.f32 1.442695, %v10653_v56  ;;  %v10676_v57 = vmul.f32 1.442695, %v10656_v35  ;;  %v10657_v12 = vsub.f32 %v18473_v21, %v10623_v4 }
0x314e   :  { %v10672_v54 = vmul.f32 1.442695, %v10654_v7  ;;  %v10680_v8 = vmul.f32 1.442695, %v10658_v53  ;;  %v10674_v34 = vmul.f32 1.442695, %v10655_v9  ;;  %v10662_v31 = vsub.f32 %v18479_v11, %v10635_v47 }
0x314f   :  { %15488 = vpow2.f32 %v10668_v59  ;;  %v10684_v14 = vmul.f32 1.442695, %v10660_v39  ;;  %v10659_v62 = vsub.f32 %v18481_v40, %v10627_v19  ;;  %v10678_v44 = vmul.f32 1.442695, %v10657_v12 }
0x3150   :  { %15490 = vpow2.f32 %v10670_v49  ;;  %v10643_v25 = vrot.slane %v10610_v43, %v16039_v61  ;;  %v10664_v21 = vsub.f32 %v18494_v51, %v10639_v52  ;;  %v10688_v4 = vmul.f32 1.442695, %v10662_v31 }
0x3151   :  { %15492 = vpow2.f32 %v10676_v57  ;;  %v10661_v11 = vsub.f32 %v18477_v50, %v10631_v37  ;;  %v10682_v40 = vmul.f32 1.442695, %v10659_v62  ;;  %v10663_v51 = vsub.f32 %v18496_v16, %v10635_v47 }
0x3152   :  { %15494 = vpow2.f32 %v10672_v54  ;;  %v10666_v59 = vsub.f32 %v18521_v28, %v10643_v25  ;;  %v10692_v43 = vmul.f32 1.442695, %v10664_v21  ;;  %v10665_v28 = vsub.f32 %v18509_v15, %v10639_v52 }
0x3153   :  { %15496 = vpow2.f32 %v10680_v8  ;;  %v10686_v49 = vmul.f32 1.442695, %v10661_v11  ;;  %v10690_v57 = vmul.f32 1.442695, %v10663_v51  ;;  %v10667_v16 = vsub.f32 %v18526_v36, %v10643_v25 }
0x3154   :  { %15498 = vpow2.f32 %v10674_v34  ;;  %v10696_v37 = vmul.f32 1.442695, %v10666_v59  ;;  %v10694_v47 = vmul.f32 1.442695, %v10665_v28 }
0x3155   :  { %15500 = vpow2.f32 %v10684_v14  ;;  %v10698_v15 = vmul.f32 1.442695, %v10667_v16 }
0x3156   :  { %15502 = vpow2.f32 %v10678_v44 }
0x3157   :  { %15504 = vpow2.f32 %v10688_v4 }
0x3158   :  { %15506 = vpow2.f32 %v10682_v40 }
0x3159   :  { %v18552_v56 = vpop.eup %15488  ;;  %15508 = vpow2.f32 %v10692_v43 }
0x315a   :  { %v18554_v35 = vpop.eup %15490  ;;  %10717 = vperm.xlu0 %15011, %v18552_v56   ;;  %15510 = vpow2.f32 %v10686_v49 }
0x315b   :  { %10720 = vperm.xlu1 %15010, %v18554_v35   ;;  %v18561_v19 = vpop.eup %15492  ;;  %15512 = vpow2.f32 %v10696_v37 }
0x315c   :  { %v18563_v7 = vpop.eup %15494  ;;  %15514 = vpow2.f32 %v10690_v57 }
0x315d   :  { %v18569_v53 = vpop.eup %15496  ;;  %15516 = vpow2.f32 %v10694_v47 }
0x315e   :  { %10729 = vperm.xlu0 %15011, %v18561_v19   ;;  %v18571_v50 = vpop.eup %15498  ;;  %15518 = vpow2.f32 %v10698_v15 }
0x315f   :  { %10723 = vperm.xlu1 %15010, %v18563_v7   ;;  %v18576_v9 = vpop.eup %15500 }
0x3160   :  { %v18578_v54 = vpop.eup %15502 }
0x3161   :  { %v18583_v39 = vpop.eup %15504 }
0x3162   :  { %10735 = vperm.xlu0 %15011, %v18569_v53   ;;  %v18585_v8 = vpop.eup %15506 }
0x3163   :  { %10726 = vperm.xlu1 %15010, %v18571_v50   ;;  %v18589_v12 = vpop.eup %15508 }
0x3164   :  { %v18591_v34 = vpop.eup %15510 }
0x3165   :  { %v18595_v36 = vpop.eup %15512 }
0x3166   :  { %10741 = vperm.xlu0 %15011, %v18576_v9   ;;  %v18597_v52 = vpop.eup %15514 }
0x3167   :  { %10732 = vperm.xlu1 %15010, %v18578_v54   ;;  %v18601_v31 = vpop.eup %15516 }
0x3168   :  { %v18604_v14 = vpop.eup %15518 }
0x316a   :  { %10747 = vperm.xlu0 %15011, %v18583_v39  }
0x316b   :  { %10738 = vperm.xlu1 %15010, %v18585_v8  }
0x316e   :  { %10753 = vperm.xlu0 %15011, %v18589_v12  }
0x316f   :  { %10744 = vperm.xlu1 %15010, %v18591_v34  }
0x3172   :  { %10759 = vperm.xlu0 %15011, %v18595_v36  }
0x3173   :  { %10750 = vperm.xlu1 %15010, %v18597_v52  }
0x3177   :  { %10756 = vperm.xlu1 %15010, %v18601_v31  }
0x317b   :  { %10762 = vperm.xlu1 %15010, %v18604_v14  }
0x31d9   :  { %v10718_v62 = vpop.permute.xlu0 %10717 }
0x31da   :  { %v10721_v44 = vpop.permute.xlu1 %10720  ;;  %v10767_v15 = vrot.slane %v10718_v62, %v15967_v45 }
0x31db   :  { %v10771_v47 = vrot.slane %v10721_v44, %v15962_v42 }
0x31dd   :  { %v10730_v25 = vpop.permute.xlu0 %10729  ;;  %v10772_v62 = vsel %vm558_vm3, %v10771_v47, %v10767_v15 }
0x31de   :  { %v10724_v21 = vpop.permute.xlu1 %10723  ;;  %v10785_v58 = vrot.slane %v10730_v25, %v15967_v45 }
0x31df   :  { %v10776_v33 = vrot.slane %v10724_v21, %v15967_v45 }
0x31e1   :  { %v10736_v4 = vpop.permute.xlu0 %10735 }
0x31e2   :  { %v10727_v11 = vpop.permute.xlu1 %10726 }
0x31e3   :  { %v10780_v37 = vrot.slane %v10727_v11, %v15962_v42  ;;  %v10794_v11 = vrot.slane %v10736_v4, %v15967_v45 }
0x31e5   :  { %v10742_v59 = vpop.permute.xlu0 %10741  ;;  %v10781_v2 = vsel %vm558_vm3, %v10780_v37, %v10776_v33 }
0x31e6   :  { %v10733_v40 = vpop.permute.xlu1 %10732  ;;  %v10803_v44 = vrot.slane %v10742_v59, %v15967_v45 }
0x31e7   :  { %v10789_v28 = vrot.slane %v10733_v40, %v15962_v42 }
0x31e9   :  { %v10748_v51 = vpop.permute.xlu0 %10747  ;;  %v10790_v30 = vsel %vm558_vm3, %v10789_v28, %v10785_v58 }
0x31ea   :  { %v10739_v43 = vpop.permute.xlu1 %10738 }
0x31eb   :  { %v10798_v24 = vrot.slane %v10739_v43, %v15962_v42  ;;  %v10812_v43 = vrot.slane %v10748_v51, %v15967_v45 }
0x31ed   :  { %v10754_v57 = vpop.permute.xlu0 %10753  ;;  %v10799_v21 = vsel %vm558_vm3, %v10798_v24, %v10794_v11 }
0x31ee   :  { %v10745_v49 = vpop.permute.xlu1 %10744  ;;  %v10821_v4 = vrot.slane %v10754_v57, %v15967_v45 }
0x31ef   :  { %v10807_v3 = vrot.slane %v10745_v49, %v15962_v42  ;;  %v10836_v49 = vsel %vm623_vm4, %v10781_v2, %v10772_v62 }
0x31f0   :  { %v10837_v58 = vsel %vm625_vm5, %v10790_v30, %v10836_v49 }
0x31f1   :  { %v10808_v33 = vsel %vm558_vm3, %v10807_v3, %v10803_v44  ;;  %v10760_v37 = vpop.permute.xlu0 %10759  ;;  %v10838_v28 = vsel %vm627_vm6, %v10799_v21, %v10837_v58 }
0x31f2   :  { %v10751_v16 = vpop.permute.xlu1 %10750  ;;  %v10839_v51 = vsel %vm629_vm7, %v10808_v33, %v10838_v28 }
0x31f3   :  { %v10816_v40 = vrot.slane %v10751_v16, %v15962_v42 }
0x31f5   :  { %v10817_v59 = vsel %vm558_vm3, %v10816_v40, %v10812_v43 }
0x31f6   :  { %v10757_v60 = vpop.permute.xlu1 %10756  ;;  %v10840_v3 = vsel %vm631_vm8, %v10817_v59, %v10839_v51  ;;  %v11623_v51 = vld [vmem:[%s19212_s1 + $0x36] sm:$0x1] }
0x31f7   :  { %v10825_v25 = vrot.slane %v10757_v60, %v15962_v42  ;;  %v10830_v60 = vrot.slane %v10760_v37, %v15967_v45 }
0x31f9   :  { %v10826_v16 = vsel %vm558_vm3, %v10825_v25, %v10821_v4 }
0x31fa   :  { %v10763_v24 = vpop.permute.xlu1 %10762  ;;  %v10841_v47 = vsel %vm633_vm9, %v10826_v16, %v10840_v3 }
0x31fb   :  { %v10834_v2 = vrot.slane %v10763_v24, %v15962_v42 }
0x31fd   :  { %v10835_v57 = vsel %vm558_vm3, %v10834_v2, %v10830_v60 }
0x31fe   :  { %v10842_v30 = vsel %vm635_vm10, %v10835_v57, %v10841_v47 }
0x31ff   :  { %v10844_v15 = vsel %vm265_vm2, %v10842_v30, 0.0 }
0x3200   :  { %10845 = vadd.xlane.f32.xlu0 %v10844_v15 }
0x328d   :  { %v10846_v11 = vpop.xlane.xlu0 %10845 }
0x328e   :  { %15520 = vrcp.f32 %v10846_v11  ;;  %v11666_v11 = vrot.slane %v11623_v51, 2 }
0x3298   :  { %v15521_v40 = vpop.eup %15520 }
0x3299   :  { %v10864_v44 = vrot.slane %v15521_v40, %v16061_v1  ;;  %v10852_v62 = vrot.slane %v15521_v40, %v15848_v46  ;;  %v10880_v25 = vrot.slane %v15521_v40, %v16039_v61  ;;  %v10856_v4 = vrot.slane %v15521_v40, %v16025_v27 }
0x329b   :  { %v10896_v21 = vmul.f32 %v18585_v8, %v10864_v44  ;;  %v10889_v43 = vmul.f32 %v18552_v56, %v10852_v62  ;;  %v10903_v49 = vmul.f32 %v18595_v36, %v10880_v25  ;;  %v10890_v33 = vmul.f32 %v18554_v35, %v10852_v62 }
0x329c   :  { %v10891_v37 = vmul.f32 %v18563_v7, %v10856_v4  ;;  %v10892_v58 = vmul.f32 %v18571_v50, %v10856_v4  ;;  %v10860_v8 = vrot.slane %v15521_v40, %v16047_v63  ;;  %v10895_v35 = vmul.f32 %v18569_v53, %v10864_v44 }
0x329d   :  { %11178 = vperm.xlu0 %15011, %v10896_v21   ;;  %10908 = vperm.xlu1 %15010, %v10889_v43   ;;  %v10868_v36 = vrot.slane %v15521_v40, %v16073_v29  ;;  %v10872_v50 = vrot.slane %v15521_v40, %v16028_v41 }
0x329e   :  { %v10893_v56 = vmul.f32 %v18561_v19, %v10860_v8  ;;  %v10894_v59 = vmul.f32 %v18578_v54, %v10860_v8  ;;  %v10876_v54 = vrot.slane %v15521_v40, %v16031_v32 }
0x329f   :  { %v10897_v28 = vmul.f32 %v18576_v9, %v10868_v36  ;;  %v10898_v7 = vmul.f32 %v18591_v34, %v10868_v36  ;;  %v10899_v16 = vmul.f32 %v18583_v39, %v10872_v50  ;;  %v10900_v19 = vmul.f32 %v18597_v52, %v10872_v50  ;;  %v11617_v34 = vld [vmem:[%s19212_s1 + $0x6] sm:$0x1]  ;;  %v11618_v39 = vld [vmem:[%s19212_s1 + $0xe] sm:$0x1]  ;;  %v11619_v52 = vld [vmem:[%s19212_s1 + $0x16] sm:$0x1] }
0x32a0   :  { %v10901_v53 = vmul.f32 %v18589_v12, %v10876_v54  ;;  %v10902_v24 = vmul.f32 %v18601_v31, %v10876_v54  ;;  %v10904_v9 = vmul.f32 %v18604_v14, %v10880_v25  ;;  %v11620_v12 = vld [vmem:[%s19212_s1 + $0x1e] sm:$0x1]  ;;  %v11621_v31 = vld [vmem:[%s19212_s1 + $0x26] sm:$0x1]  ;;  %v11622_v14 = vld [vmem:[%s19212_s1 + $0x2e] sm:$0x1] }
0x32a1   :  { %11531 = vperm.xlu0 %15011, %v10903_v49   ;;  %10911 = vperm.xlu1 %15010, %v10890_v33   ;;  %v11656_v60 = vrot.slane %v11618_v39, 7  ;;  %v11658_v2 = vrot.slane %v11619_v52, 6  ;;  %v11660_v3 = vrot.slane %v11620_v12, 5  ;;  %v11662_v57 = vrot.slane %v11621_v31, 4 }
0x32a2   :  { %v11664_v30 = vrot.slane %v11622_v14, 3 }
0x32a3   :  { %v11657_v47 = vsel %vm623_vm4, %v11656_v60, %v11617_v34 }
0x32a4   :  { %v11659_v15 = vsel %vm625_vm5, %v11658_v2, %v11657_v47 }
0x32a5   :  { %10997 = vperm.xlu1 %15010, %v10891_v37   ;;  %v11661_v40 = vsel %vm627_vm6, %v11660_v3, %v11659_v15 }
0x32a6   :  { %v11663_v62 = vsel %vm629_vm7, %v11662_v57, %v11661_v40 }
0x32a7   :  { %v11665_v21 = vsel %vm631_vm8, %v11664_v30, %v11663_v62 }
0x32a8   :  { %v11667_v43 = vsel %vm633_vm9, %v11666_v11, %v11665_v21 }
0x32a9   :  { %11000 = vperm.xlu1 %15010, %v10892_v58  }
0x32ad   :  { %11086 = vperm.xlu1 %15010, %v10893_v56  }
0x32b1   :  { %11089 = vperm.xlu1 %15010, %v10894_v59  }
0x32b5   :  { %11175 = vperm.xlu1 %15010, %v10895_v35  }
0x32b9   :  { %11264 = vperm.xlu1 %15010, %v10897_v28  }
0x32bd   :  { %11267 = vperm.xlu1 %15010, %v10898_v7  }
0x32c1   :  { %11353 = vperm.xlu1 %15010, %v10899_v16  }
0x32c5   :  { %11356 = vperm.xlu1 %15010, %v10900_v19  }
0x32c9   :  { %11442 = vperm.xlu1 %15010, %v10901_v53  }
0x32cd   :  { %11445 = vperm.xlu1 %15010, %v10902_v24  }
0x32d1   :  { %11534 = vperm.xlu1 %15010, %v10904_v9  }
0x32d5   :  { %11673 = vrot.lane.b32.xlu1 %v18374_v48, %s15662_s13  ;;  %v11624_v48 = vld [vmem:[%s19212_s1 + $0x3e] sm:$0x1] }
0x32d6   :  { %v11668_v44 = vrot.slane %v11624_v48, 1 }
0x32d8   :  { %v11669_v25 = vsel %vm635_vm10, %v11668_v44, %v11667_v43 }
0x32d9   :  { %11670 = vrot.lane.b32.xlu0 %v11669_v25, %s15661_s25 }
0x331c   :  { %v10909_v49 = vpop.permute.xlu1 %10908  ;;  %v11179_v19 = vpop.permute.xlu0 %11178 }
0x331d   :  { %v10916_v4 = vrot.slane %v10909_v49, %v15967_v45  ;;  %v11187_v24 = vrot.slane %v11179_v19, %v15962_v42 }
0x3320   :  { %v10912_v33 = vpop.permute.xlu1 %10911  ;;  %v11532_v11 = vpop.permute.xlu0 %11531 }
0x3321   :  { %v10920_v37 = vrot.slane %v10912_v33, %v15962_v42  ;;  %v11539_v62 = vrot.slane %v11532_v11, %v15967_v45  ;;  %v15626_v11 = vld [vmem:[%s19218_s7] ss:$0 sm:$0xff] }
0x3323   :  { %v10921_v58 = vsel %vm558_vm3, %v10920_v37, %v10916_v4 }
0x3324   :  { %14560 = vmatmul.mubr.msk.f32.vlgmr.msra.gmra.mrb[68].mxu1 %vm265_vm2, %v10921_v58  ;;  %v10998_v8 = vpop.permute.xlu1 %10997 }
0x3325   :  { %14937 = vmatpush3.bf16.msra.mxu1 %v15759_v13  ;;  %14573 = vmatprep.mubr.msk.f32.mxu1 %vm15657_vm1, %v19293_v55  ;;  %v11005_v59 = vrot.slane %v10998_v8, %v15967_v45 }
0x3326   :  { %14941 = vmatprep.subr.bf16.mxu1 %v19294_v0 }
0x3328   :  { %v11001_v56 = vpop.permute.xlu1 %11000 }
0x3329   :  { %v11009_v35 = vrot.slane %v11001_v56, %v15962_v42 }
0x332b   :  { %v11010_v36 = vsel %vm558_vm3, %v11009_v35, %v11005_v59 }
0x332c   :  { %14567 = vmatmul.mubr.msk.f32.vlgmr.msra.gmra.mrb[82].mxu0 %vm265_vm2, %v11010_v36  ;;  %v11087_v28 = vpop.permute.xlu1 %11086 }
0x332d   :  { %14940 = vmatpush3.bf16.msra.mxu0 %v15774_v18  ;;  %14580 = vmatprep.mubr.msk.f32.mxu0 %vm15657_vm1, %v19293_v55  ;;  %v11094_v50 = vrot.slane %v11087_v28, %v15967_v45 }
0x332e   :  { %14944 = vmatprep.subr.bf16.mxu0 %v19294_v0 }
0x3330   :  { %v11090_v7 = vpop.permute.xlu1 %11089 }
0x3331   :  { %v11098_v16 = vrot.slane %v11090_v7, %v15962_v42 }
0x3333   :  { %v11099_v54 = vsel %vm558_vm3, %v11098_v16, %v11094_v50 }
0x3334   :  { %14574 = vmatmul.mubr.msk.f32.vlgmr.msra.gmra.mrb[70].mxu1 %vm265_vm2, %v11099_v54  ;;  %v11176_v53 = vpop.permute.xlu1 %11175 }
0x3335   :  { %v11183_v9 = vrot.slane %v11176_v53, %v15967_v45  ;;  %14943 = vmatpush3.bf16.msra.mxu1 %v15785_v22  ;;  %14587 = vmatprep.mubr.msk.f32.mxu1 %vm15657_vm1, %v19293_v55 }
0x3336   :  { %14947 = vmatprep.subr.bf16.mxu1 %v19294_v0 }
0x3337   :  { %v11188_v34 = vsel %vm558_vm3, %v11187_v24, %v11183_v9 }
0x3338   :  { %14581 = vmatmul.mubr.msk.f32.vlgmr.msra.gmra.mrb[84].mxu0 %vm265_vm2, %v11188_v34  ;;  %v11265_v39 = vpop.permute.xlu1 %11264 }
0x3339   :  { %14946 = vmatpush3.bf16.msra.mxu0 %v15787_v23  ;;  %14594 = vmatprep.mubr.msk.f32.mxu0 %vm15657_vm1, %v19293_v55  ;;  %v11272_v12 = vrot.slane %v11265_v39, %v15967_v45 }
0x333a   :  { %14950 = vmatprep.subr.bf16.mxu0 %v19294_v0 }
0x333c   :  { %v11268_v52 = vpop.permute.xlu1 %11267 }
0x333d   :  { %v11276_v31 = vrot.slane %v11268_v52, %v15962_v42 }
0x333f   :  { %v11277_v14 = vsel %vm558_vm3, %v11276_v31, %v11272_v12 }
0x3340   :  { %14588 = vmatmul.mubr.msk.f32.vlgmr.msra.gmra.mrb[72].mxu1 %vm265_vm2, %v11277_v14  ;;  %v11354_v51 = vpop.permute.xlu1 %11353 }
0x3341   :  { %14949 = vmatpush3.bf16.msra.mxu1 %v15797_v26  ;;  %14601 = vmatprep.mubr.msk.f32.mxu1 %vm15657_vm1, %v19293_v55  ;;  %v11361_v2 = vrot.slane %v11354_v51, %v15967_v45 }
0x3342   :  { %14953 = vmatprep.subr.bf16.mxu1 %v19294_v0 }
0x3344   :  { %v11357_v60 = vpop.permute.xlu1 %11356 }
0x3345   :  { %v11365_v48 = vrot.slane %v11357_v60, %v15962_v42 }
0x3347   :  { %v11366_v3 = vsel %vm558_vm3, %v11365_v48, %v11361_v2 }
0x3348   :  { %14595 = vmatmul.mubr.msk.f32.vlgmr.msra.gmra.mrb[86].mxu0 %vm265_vm2, %v11366_v3  ;;  %v11443_v57 = vpop.permute.xlu1 %11442 }
0x3349   :  { %14952 = vmatpush3.bf16.msra.mxu0 %v19306_v38  ;;  %14608 = vmatprep.mubr.msk.f32.mxu0 %vm15657_vm1, %v19293_v55  ;;  %v11450_v30 = vrot.slane %v11443_v57, %v15967_v45 }
0x334a   :  { %14959 = vmatprep.subr.bf16.mxu0 %v19294_v0 }
0x334b   :  { %v11671_v48 = vpop.permute.xlu0 %11670 }
0x334c   :  { %v11446_v47 = vpop.permute.xlu1 %11445 }
0x334d   :  { %v11454_v15 = vrot.slane %v11446_v47, %v15962_v42 }
0x334f   :  { %v11455_v40 = vsel %vm558_vm3, %v11454_v15, %v11450_v30 }
0x3350   :  { %14602 = vmatmul.mubr.msk.f32.vlgmr.msra.gmra.mrb[74].mxu1 %vm265_vm2, %v11455_v40  ;;  %v11535_v44 = vpop.permute.xlu1 %11534 }
0x3351   :  { %v11543_v21 = vrot.slane %v11535_v44, %v15962_v42  ;;  %14955 = vmatpush3.bf16.msra.mxu1 %v16282_v10  ;;  %14619 = vmatprep.mubr.msk.f32.mxu1 %vm15657_vm1, %v19293_v55 }
0x3352   :  { %14956 = vmatprep.subr.bf16.mxu1 %v19294_v0 }
0x3353   :  { %v11544_v43 = vsel %vm558_vm3, %v11543_v21, %v11539_v62 }
0x3354   :  { %14609 = vmatmul.mubr.msk.f32.vlgmr.msra.gmra.mrb[88].mxu0 %vm265_vm2, %v11544_v43  ;;  %v11674_v57 = vpop.permute.xlu1 %11673 }
0x3355   :  { %14958 = vmatpush3.bf16.msra.mxu1 %v16292_v5  ;;  %14961 = vmatpush3.bf16.msra.mxu0 %v16324_v6 }
0x3356   :  { %14626 = vmatprep.mubr.msk.f32.mxu0 %vm15657_vm1, %v19293_v55  ;;  %14962 = vmatprep.subr.bf16.mxu0 %v19294_v0 }
0x3357   :  { %14965 = vmatprep.subr.bf16.mxu1 %v19294_v0 }
0x33f7   :  { %v10990_v25 = vpop.f32.mrb[68].mxu1 }
0x33f8   :  { %v14561_v49 = vpop.f32.mrb[69].mxu1 }
0x33ff   :  { %v11079_v33 = vpop.f32.mrb[82].mxu0 }
0x3400   :  { %v11633_v4 = vrot.slane %v11079_v33, 7  ;;  %v14568_v37 = vpop.f32.mrb[83].mxu0 }
0x3402   :  { %v11634_v58 = vsel %vm623_vm4, %v11633_v4, %v10990_v25 }
0x3407   :  { %v11168_v8 = vpop.f32.mrb[70].mxu1 }
0x3408   :  { %v11635_v56 = vrot.slane %v11168_v8, 6  ;;  %v14575_v59 = vpop.f32.mrb[71].mxu1 }
0x340a   :  { %v11636_v35 = vsel %vm625_vm5, %v11635_v56, %v11634_v58 }
0x340b   :  { %v11257_v36 = vpop.f32.mrb[84].mxu0 }
0x340c   :  { %v11637_v28 = vrot.slane %v11257_v36, 5  ;;  %v14582_v7 = vpop.f32.mrb[85].mxu0  ;;  %v19399_v36 = vld [vmem:[#allocation5_spill] sm:$0xff] }
0x340d   :  { %v15627_v7 = vld [vmem:[%s19220_s9] ss:$0 sm:$0xff] }
0x340e   :  { %v11638_v50 = vsel %vm627_vm6, %v11637_v28, %v11636_v35 }
0x3413   :  { %v11346_v16 = vpop.f32.mrb[72].mxu1 }
0x3414   :  { %v11639_v19 = vrot.slane %v11346_v16, 4  ;;  %v14589_v54 = vpop.f32.mrb[73].mxu1 }
0x3415   :  { %v19401_v54 = vld [vmem:[#allocation10_spill] sm:$0xff] }
0x3416   :  { %v11640_v53 = vsel %vm629_vm7, %v11639_v19, %v11638_v50 }
0x341b   :  { %v11435_v24 = vpop.f32.mrb[86].mxu0 }
0x341c   :  { %v11641_v9 = vrot.slane %v11435_v24, 3  ;;  %v14596_v34 = vpop.f32.mrb[87].mxu0 }
0x341e   :  { %v11642_v39 = vsel %vm631_vm8, %v11641_v9, %v11640_v53 }
0x3423   :  { %v11524_v52 = vpop.f32.mrb[74].mxu1 }
0x3424   :  { %v11643_v12 = vrot.slane %v11524_v52, 2  ;;  %v14603_v31 = vpop.f32.mrb[75].mxu1  ;;  %v15628_v52 = vld [vmem:[%s19215_s4] ss:$0 sm:$0xff] }
0x3426   :  { %v11644_v14 = vsel %vm633_vm9, %v11643_v12, %v11642_v39 }
0x3427   :  { %v11613_v51 = vpop.f32.mrb[88].mxu0 }
0x3428   :  { %v11645_v60 = vrot.slane %v11613_v51, 1  ;;  %v14610_v2 = vpop.f32.mrb[89].mxu0 }
0x342a   :  { %v11646_v3 = vsel %vm635_vm10, %v11645_v60, %v11644_v14 }
0x342b   :  { %v11676_v47 = vsel %vm53_vm0, %v11646_v3, %v11671_v48 }
0x342c   :  { %v11677_v30 = vsel %vm265_vm2, %v11676_v47, %v11674_v57 }
0x342d   :  { %14620 = vmatmul.mubr.msk.f32.vlgmr.msra.gmra.mrb[76].mxu1 %vm1711_vm11, %v11677_v30 }
0x342e   :  { %14967 = vmatpush3.bf16.msra.mxu1 %v15770_v17  ;;  %14640 = vmatprep.mubr.msk.f32.mxu1 %vm15657_vm1, %v19293_v55 }
0x342f   :  { %14971 = vmatprep.subr.bf16.mxu1 %v19294_v0 }
0x3500   :  { %v11747_v15 = vpop.f32.mrb[76].mxu1 }
0x3501   :  { %v11748_v40 = vadd.f32 %v15626_v11, %v11747_v15  ;;  %v14621_v44 = vpop.f32.mrb[77].mxu1 }
0x3503   :  { %15522 = vtanh.f32 %v11748_v40  ;;  %v13717_v21 = vmul.f32 -1.442695, %v11748_v40 }
0x3505   :  { %15524 = vpow2.f32 %v13717_v21 }
0x350d   :  { %v15523_v62 = vpop.eup %15522 }
0x350e   :  { %11760 = vrot.lane.b32.xlu0 %v15523_v62, %s15662_s13 }
0x350f   :  { %v15525_v43 = vpop.eup %15524 }
0x3510   :  { %v11754_v17 = vadd.f32 1.0, %v15525_v43 }
0x3512   :  { %15526 = vrcp.f32 %v11754_v17 }
0x351c   :  { %v15527_v25 = vpop.eup %15526 }
0x351d   :  { %v11758_v4 = vmul.f32 %v15527_v25, %v18370_v20  ;;  %v19400_v20 = vld [vmem:[#allocation6_spill] sm:$0xff] }
0x3580   :  { %v11761_v49 = vpop.permute.xlu0 %11760 }
0x3581   :  { %v11763_v33 = vmul.f32 %v15527_v25, %v11761_v49 }
0x3583   :  { %11765 = vrot.lane.b32.xlu1 %v11763_v33, %s15663_s14 }
0x35f5   :  { %v11766_v37 = vpop.permute.xlu1 %11765 }
0x35f6   :  { %v18783_v58 = vadd.f32 %v11766_v37, %v11758_v4 }
0x35f8   :  { %15528 = vtanh.f32 %v18783_v58 }
0x3602   :  { %v15529_v8 = vpop.eup %15528 }
0x3603   :  { %11771 = vrot.lane.b32.xlu0 %v15529_v8, %s15664_s19 }
0x3675   :  { %v11772_v56 = vpop.permute.xlu0 %11771 }
0x3676   :  { %v18787_v59 = vmul.f32 %v15527_v25, %v11772_v56 }
0x3678   :  { %11776 = vrot.lane.b32.xlu1 %v18787_v59, %s15665_s20 }
0x36ea   :  { %v11777_v35 = vpop.permute.xlu1 %11776 }
0x36eb   :  { %14627 = vmatmul.mubr.msk.f32.vlgmr.msra.gmra.mrb[90].mxu0 %vm265_vm2, %v11777_v35 }
0x36ec   :  { %14964 = vmatpush3.bf16.msra.mxu0 %v19399_v36  ;;  %14633 = vmatprep.mubr.msk.f32.mxu0 %vm15657_vm1, %v19293_v55 }
0x36ed   :  { %14968 = vmatprep.subr.bf16.mxu0 %v19294_v0 }
0x36ef   :  { %14634 = vmatmul.mubr.msk.f32.vlgmr.msra.gmra.mrb[92].mxu0 %vm265_vm2, %v11777_v35  ;;  %v19402_v35 = vld [vmem:[#allocation9_spill] sm:$0xff] }
0x36f0   :  { %14970 = vmatpush3.bf16.msra.mxu0 %v19400_v20  ;;  %14647 = vmatprep.mubr.msk.f32.mxu0 %vm15657_vm1, %v19293_v55  ;;  %v19403_v20 = vld [vmem:[#allocation8_spill] sm:$0xff] }
0x36f1   :  { %14974 = vmatprep.subr.bf16.mxu0 %v19294_v0 }
0x37be   :  { %v11846_v28 = vpop.f32.mrb[90].mxu0 }
0x37bf   :  { %v11847_v50 = vadd.f32 %v15627_v7, %v11846_v28  ;;  %v14628_v16 = vpop.f32.mrb[91].mxu0 }
0x37c1   :  { %v11851_v19 = vcombine.high %v11847_v50, %v11847_v50  ;;  %v11858_v53 = vrot.slane %v11847_v50, %v19401_v54 }
0x37c2   :  { %v11982_v24 = vpop.f32.mrb[92].mxu0 }
0x37c3   :  { %v11865_v9 = vrot.slane %v11851_v19, %v19401_v54  ;;  %v11866_v34 = vcombine.high %v11858_v53, %v11858_v53  ;;  %v11874_v39 = vrot.slane %v11858_v53, %v19401_v54  ;;  %13719 = vst.sshfl [vmem:[#allocation2 + $0x6] sm:$0x1 pattern:$0x73625140] %v11858_v53  ;;  %v11983_v12 = vadd.f32 %v15628_v52, %v11982_v24  ;;  %v14635_v31 = vpop.f32.mrb[93].mxu0  ;;  %v19404_v53 = vld [vmem:[#allocation12_spill] sm:$0xff] }
0x37c5   :  { %v11867_v14 = vcombine.high %v11865_v9, %v11865_v9  ;;  %v11881_v51 = vrot.slane %v11865_v9, %v19401_v54  ;;  %v11888_v60 = vrot.slane %v11866_v34, %v19401_v54  ;;  %v11896_v2 = vcombine.high %v11874_v39, %v11874_v39  ;;  %13720 = vst.sshfl [vmem:[#allocation2 + $0xe] sm:$0x1 pattern:$0x73625140] %v11866_v34  ;;  %v19406_v39 = vld [vmem:[#allocation14_spill] sm:$0xff] }
0x37c6   :  { %13721 = vst.sshfl [vmem:[#allocation2 + $0x26] sm:$0x1 pattern:$0x73625140] %v11865_v9  ;;  %v11987_v48 = vcombine.high %v11983_v12, %v11983_v12  ;;  %v11994_v3 = vrot.slane %v11983_v12, %v19401_v54  ;;  %v19405_v9 = vld [vmem:[#allocation11_spill] sm:$0xff]  ;;  %v19407_v12 = vld [vmem:[#allocation13_spill] sm:$0xff] }
0x37c7   :  { %v11895_v57 = vrot.slane %v11867_v14, %v19401_v54  ;;  %v11897_v47 = vcombine.high %v11881_v51, %v11881_v51  ;;  %v11898_v30 = vcombine.high %v11888_v60, %v11888_v60  ;;  %11910 = vst [vmem:[#allocation2 + $0x16] sm:$0x1] %v11896_v2  ;;  %13722 = vst.sshfl [vmem:[#allocation2 + $0x2e] sm:$0x1 pattern:$0x73625140] %v11867_v14 }
0x37c8   :  { %v12001_v15 = vrot.slane %v11987_v48, %v19401_v54  ;;  %v12002_v11 = vcombine.high %v11994_v3, %v11994_v3  ;;  %v12010_v40 = vrot.slane %v11994_v3, %v19401_v54  ;;  %v19408_v51 = vld [vmem:[#allocation16_spill] sm:$0xff]  ;;  %v19409_v2 = vld [vmem:[#allocation15_spill] sm:$0xff]  ;;  %v19410_v3 = vld [vmem:[#allocation18_spill] sm:$0xff] }
0x37c9   :  { %v11899_v44 = vcombine.high %v11895_v57, %v11895_v57  ;;  %11911 = vst [vmem:[#allocation2 + $0x1e] sm:$0x1] %v11898_v30  ;;  %11914 = vst [vmem:[#allocation2 + $0x36] sm:$0x1] %v11897_v47  ;;  %v19411_v47 = vld [vmem:[#allocation17_spill] sm:$0xff] }
0x37ca   :  { %v12003_v62 = vcombine.high %v12001_v15, %v12001_v15  ;;  %v12017_v21 = vrot.slane %v12001_v15, %v19401_v54  ;;  %v12024_v43 = vrot.slane %v12002_v11, %v19401_v54  ;;  %v12032_v17 = vcombine.high %v12010_v40, %v12010_v40  ;;  %v19412_v15 = vld [vmem:[#allocation20_spill] sm:$0xff] }
0x37cb   :  { %11915 = vst [vmem:[#allocation2 + $0x3e] sm:$0x1] %v11899_v44  ;;  %v12039_v25 = vrot.slane %v12010_v40, %v15848_v46  ;;  %v19413_v40 = vld [vmem:[#allocation19_spill] sm:$0xff] }
0x37cc   :  { %v12031_v49 = vrot.slane %v12003_v62, %v19401_v54  ;;  %v12033_v33 = vcombine.high %v12017_v21, %v12017_v21  ;;  %v12034_v4 = vcombine.high %v12024_v43, %v12024_v43  ;;  %v12043_v37 = vrot.slane %v12024_v43, %v15848_v46  ;;  %v19414_v62 = vld [vmem:[#allocation22_spill] sm:$0xff]  ;;  %v19415_v43 = vld [vmem:[#allocation21_spill] sm:$0xff] }
0x37cd   :  { %v12047_v8 = vrot.slane %v12032_v17, %v15848_v46  ;;  %v12055_v56 = vrot.slane %v12017_v21, %v15848_v46  ;;  %v12076_v36 = vadd.f32 %v12039_v25, %v19402_v35  ;;  %v12077_v28 = vadd.f32 %v19403_v20, %v12039_v25  ;;  %v19416_v25 = vld [vmem:[#allocation24_spill] sm:$0xff] }
0x37ce   :  { %v12035_v7 = vcombine.high %v12031_v49, %v12031_v49  ;;  %v12051_v50 = vrot.slane %v12034_v4, %v15848_v46  ;;  %v12059_v16 = vrot.slane %v12031_v49, %v15848_v46  ;;  %v12063_v19 = vrot.slane %v12033_v33, %v15848_v46  ;;  %v19417_v33 = vld [vmem:[#allocation23_spill] sm:$0xff] }
0x37cf   :  { %v12078_v24 = vadd.f32 %v12043_v37, %v19404_v53  ;;  %v12079_v34 = vadd.f32 %v19405_v9, %v12043_v37  ;;  %v12080_v52 = vadd.f32 %v12047_v8, %v19406_v39  ;;  %v12081_v31 = vadd.f32 %v19407_v12, %v12047_v8 }
0x37d0   :  { %v12067_v14 = vrot.slane %v12035_v7, %v15848_v46  ;;  %v12082_v60 = vadd.f32 %v12051_v50, %v19408_v51  ;;  %v12083_v48 = vadd.f32 %v19409_v2, %v12051_v50  ;;  %v12084_v57 = vadd.f32 %v12055_v56, %v19410_v3 }
0x37d1   :  { %v12085_v30 = vadd.f32 %v19411_v47, %v12055_v56  ;;  %v12086_v11 = vadd.f32 %v12059_v16, %v19412_v15  ;;  %v12087_v44 = vadd.f32 %v19413_v40, %v12059_v16  ;;  %v12088_v21 = vadd.f32 %v12063_v19, %v19414_v62  ;;  %v18846_v56 = vld [vmem:[%s19216_s5] ss:$0 sm:$0xff] }
0x37d2   :  { %v12089_v17 = vadd.f32 %v19415_v43, %v12063_v19  ;;  %v12090_v49 = vadd.f32 %v12067_v14, %v19416_v25  ;;  %v12091_v4 = vadd.f32 %v19417_v33, %v12067_v14  ;;  %15530 = vtanh.f32 %v12076_v36 }
0x37d3   :  { %15532 = vtanh.f32 %v12077_v28 }
0x37d4   :  { %15534 = vtanh.f32 %v12078_v24 }
0x37d5   :  { %15536 = vtanh.f32 %v12079_v34 }
0x37d6   :  { %15538 = vtanh.f32 %v12080_v52 }
0x37d7   :  { %15540 = vtanh.f32 %v12081_v31 }
0x37d8   :  { %15542 = vtanh.f32 %v12084_v57 }
0x37d9   :  { %15544 = vtanh.f32 %v12082_v60 }
0x37da   :  { %15546 = vtanh.f32 %v12085_v30 }
0x37db   :  { %15548 = vtanh.f32 %v12086_v11 }
0x37dc   :  { %v15531_v37 = vpop.eup %15530  ;;  %15550 = vtanh.f32 %v12083_v48 }
0x37dd   :  { %v15533_v8 = vpop.eup %15532  ;;  %v12108_v35 = vmul.f32 %v18846_v56, %v15531_v37  ;;  %15552 = vtanh.f32 %v12088_v21 }
0x37de   :  { %v15535_v20 = vpop.eup %15534  ;;  %v12109_v36 = vmul.f32 %v18846_v56, %v15533_v8  ;;  %15554 = vtanh.f32 %v12087_v44 }
0x37df   :  { %v15537_v28 = vpop.eup %15536  ;;  %v12124_v7 = vsel %vm265_vm2, %v12108_v35, 0.0  ;;  %v12110_v50 = vmul.f32 %v18846_v56, %v15535_v20  ;;  %15556 = vtanh.f32 %v12090_v49 }
0x37e0   :  { %v15539_v16 = vpop.eup %15538  ;;  %v12127_v19 = vsel %vm265_vm2, %v12109_v36, 0.0  ;;  %12125 = vadd.xlane.f32.xlu0 %v12124_v7  ;;  %v12111_v34 = vmul.f32 %v18846_v56, %v15537_v28  ;;  %15558 = vtanh.f32 %v12089_v17 }
0x37e1   :  { %12128 = vadd.xlane.f32.xlu1 %v12127_v19  ;;  %v12112_v53 = vmul.f32 %v18846_v56, %v15539_v16  ;;  %v15541_v24 = vpop.eup %15540  ;;  %v12130_v9 = vsel %vm265_vm2, %v12110_v50, 0.0  ;;  %15560 = vtanh.f32 %v12091_v4 }
0x37e2   :  { %v15543_v39 = vpop.eup %15542  ;;  %v12133_v14 = vsel %vm265_vm2, %v12111_v34, 0.0  ;;  %v12113_v51 = vmul.f32 %v18846_v56, %v15541_v24 }
0x37e3   :  { %v12136_v52 = vsel %vm265_vm2, %v12112_v53, 0.0  ;;  %v15545_v12 = vpop.eup %15544  ;;  %v12116_v31 = vmul.f32 %v18846_v56, %v15543_v39 }
0x37e4   :  { %12131 = vadd.xlane.f32.xlu0 %v12130_v9  ;;  %v15547_v60 = vpop.eup %15546  ;;  %v12114_v48 = vmul.f32 %v18846_v56, %v15545_v12  ;;  %v12139_v57 = vsel %vm265_vm2, %v12113_v51, 0.0 }
0x37e5   :  { %12137 = vadd.xlane.f32.xlu1 %v12136_v52  ;;  %v12148_v2 = vsel %vm265_vm2, %v12116_v31, 0.0  ;;  %v15549_v3 = vpop.eup %15548  ;;  %v12117_v47 = vmul.f32 %v18846_v56, %v15547_v60 }
0x37e6   :  { %v15551_v30 = vpop.eup %15550  ;;  %v12142_v15 = vsel %vm265_vm2, %v12114_v48, 0.0  ;;  %v12118_v11 = vmul.f32 %v18846_v56, %v15549_v3 }
0x37e7   :  { %v15553_v40 = vpop.eup %15552  ;;  %v12151_v44 = vsel %vm265_vm2, %v12117_v47, 0.0  ;;  %v12115_v62 = vmul.f32 %v18846_v56, %v15551_v30 }
0x37e8   :  { %12134 = vadd.xlane.f32.xlu0 %v12133_v14  ;;  %v15555_v21 = vpop.eup %15554  ;;  %v12154_v43 = vsel %vm265_vm2, %v12118_v11, 0.0  ;;  %v12120_v17 = vmul.f32 %v18846_v56, %v15553_v40 }
0x37e9   :  { %12149 = vadd.xlane.f32.xlu1 %v12148_v2  ;;  %v15557_v25 = vpop.eup %15556  ;;  %v12145_v49 = vsel %vm265_vm2, %v12115_v62, 0.0  ;;  %v12119_v33 = vmul.f32 %v18846_v56, %v15555_v21 }
0x37ea   :  { %v15559_v37 = vpop.eup %15558  ;;  %v12160_v4 = vsel %vm265_vm2, %v12120_v17, 0.0  ;;  %v12122_v8 = vmul.f32 %v18846_v56, %v15557_v25 }
0x37eb   :  { %v12157_v35 = vsel %vm265_vm2, %v12119_v33, 0.0  ;;  %v12121_v20 = vmul.f32 %v18846_v56, %v15559_v37  ;;  %v15561_v36 = vpop.eup %15560 }
0x37ec   :  { %12140 = vadd.xlane.f32.xlu0 %v12139_v57  ;;  %v12166_v28 = vsel %vm265_vm2, %v12122_v8, 0.0  ;;  %v12123_v50 = vmul.f32 %v18846_v56, %v15561_v36 }
0x37ed   :  { %12143 = vadd.xlane.f32.xlu1 %v12142_v15  ;;  %v12163_v7 = vsel %vm265_vm2, %v12121_v20, 0.0 }
0x37ee   :  { %v12169_v16 = vsel %vm265_vm2, %v12123_v50, 0.0 }
0x37f0   :  { %12152 = vadd.xlane.f32.xlu0 %v12151_v44 }
0x37f1   :  { %12155 = vadd.xlane.f32.xlu1 %v12154_v43 }
0x37f4   :  { %12146 = vadd.xlane.f32.xlu0 %v12145_v49 }
0x37f5   :  { %12161 = vadd.xlane.f32.xlu1 %v12160_v4 }
0x37f8   :  { %12158 = vadd.xlane.f32.xlu0 %v12157_v35 }
0x37f9   :  { %12167 = vadd.xlane.f32.xlu1 %v12166_v28 }
0x37fc   :  { %12164 = vadd.xlane.f32.xlu0 %v12163_v7 }
0x3800   :  { %12170 = vadd.xlane.f32.xlu0 %v12169_v16 }
0x386d   :  { %v12126_v19 = vpop.xlane.xlu0 %12125 }
0x386e   :  { %v12129_v53 = vpop.xlane.xlu1 %12128  ;;  %v12191_v48 = vrot.slane %v12126_v19, %v15967_v45 }
0x386f   :  { %v12195_v2 = vrot.slane %v12129_v53, %v15962_v42 }
0x3871   :  { %v18880_v24 = vpop.xlane.xlu0 %12131  ;;  %v12196_v62 = vsel %vm558_vm3, %v12195_v2, %v12191_v48 }
0x3872   :  { %v18882_v9 = vpop.xlane.xlu1 %12137  ;;  %v12200_v3 = vrot.slane %v18880_v24, %v15967_v45 }
0x3873   :  { %v12209_v47 = vrot.slane %v18882_v9, %v15967_v45 }
0x3875   :  { %v12135_v34 = vpop.xlane.xlu0 %12134 }
0x3876   :  { %v18884_v39 = vpop.xlane.xlu1 %12149  ;;  %v12204_v51 = vrot.slane %v12135_v34, %v15962_v42 }
0x3877   :  { %v12227_v8 = vrot.slane %v18884_v39, %v15967_v45 }
0x3878   :  { %v12205_v11 = vsel %vm558_vm3, %v12204_v51, %v12200_v3 }
0x3879   :  { %v18886_v52 = vpop.xlane.xlu0 %12140  ;;  %v12260_v17 = vsel %vm623_vm4, %v12205_v11, %v12196_v62 }
0x387a   :  { %v18888_v12 = vpop.xlane.xlu1 %12143  ;;  %v12213_v60 = vrot.slane %v18886_v52, %v15962_v42 }
0x387b   :  { %v12218_v40 = vrot.slane %v18888_v12, %v15967_v45 }
0x387c   :  { %v12214_v44 = vsel %vm558_vm3, %v12213_v60, %v12209_v47 }
0x387d   :  { %v18890_v31 = vpop.xlane.xlu0 %12152  ;;  %v12261_v33 = vsel %vm625_vm5, %v12214_v44, %v12260_v17 }
0x387e   :  { %v18892_v56 = vpop.xlane.xlu1 %12155  ;;  %v12231_v25 = vrot.slane %v18890_v31, %v15962_v42 }
0x387f   :  { %v12236_v37 = vrot.slane %v18892_v56, %v15967_v45 }
0x3880   :  { %v12232_v7 = vsel %vm558_vm3, %v12231_v25, %v12227_v8 }
0x3881   :  { %v18894_v14 = vpop.xlane.xlu0 %12146 }
0x3882   :  { %v12222_v57 = vrot.slane %v18894_v14, %v15962_v42  ;;  %v18907_v30 = vpop.xlane.xlu1 %12161 }
0x3883   :  { %v12245_v20 = vrot.slane %v18907_v30, %v15967_v45 }
0x3884   :  { %v12223_v21 = vsel %vm558_vm3, %v12222_v57, %v12218_v40 }
0x3885   :  { %v18909_v15 = vpop.xlane.xlu0 %12158  ;;  %v12262_v35 = vsel %vm627_vm6, %v12223_v21, %v12261_v33 }
0x3886   :  { %v12240_v43 = vrot.slane %v18909_v15, %v15962_v42  ;;  %v18934_v36 = vpop.xlane.xlu1 %12167  ;;  %v12263_v2 = vsel %vm629_vm7, %v12232_v7, %v12262_v35 }
0x3887   :  { %v12254_v51 = vrot.slane %v18934_v36, %v15967_v45 }
0x3888   :  { %v12241_v28 = vsel %vm558_vm3, %v12240_v43, %v12236_v37 }
0x3889   :  { %v18922_v49 = vpop.xlane.xlu0 %12164  ;;  %v12264_v48 = vsel %vm631_vm8, %v12241_v28, %v12263_v2 }
0x388a   :  { %v12249_v4 = vrot.slane %v18922_v49, %v15962_v42 }
0x388c   :  { %v12250_v50 = vsel %vm558_vm3, %v12249_v4, %v12245_v20 }
0x388d   :  { %v18939_v16 = vpop.xlane.xlu0 %12170  ;;  %v12265_v57 = vsel %vm633_vm9, %v12250_v50, %v12264_v48 }
0x388e   :  { %v12258_v60 = vrot.slane %v18939_v16, %v15962_v42 }
0x3890   :  { %v12259_v3 = vsel %vm558_vm3, %v12258_v60, %v12254_v51 }
0x3891   :  { %v12266_v47 = vsel %vm635_vm10, %v12259_v3, %v12265_v57 }
0x3892   :  { %v12268_v11 = vsel %vm265_vm2, %v12266_v47, -inf }
0x3893   :  { %12269 = vmax.xlane.f32.xlu1 %v12268_v11 }
0x3920   :  { %v12270_v40 = vpop.xlane.xlu1 %12269 }
0x3921   :  { %v12275_v44 = vrot.slane %v12270_v40, %v15848_v46  ;;  %v12279_v62 = vrot.slane %v12270_v40, %v16025_v27  ;;  %v12283_v17 = vrot.slane %v12270_v40, %v16047_v63  ;;  %v12287_v8 = vrot.slane %v12270_v40, %v16061_v1 }
0x3922   :  { %v12295_v51 = vrot.slane %v12270_v40, %v16028_v41 }
0x3923   :  { %v12312_v21 = vsub.f32 %v12126_v19, %v12275_v44  ;;  %v12313_v43 = vsub.f32 %v12129_v53, %v12275_v44  ;;  %v12315_v25 = vsub.f32 %v12135_v34, %v12279_v62  ;;  %v12314_v33 = vsub.f32 %v18880_v24, %v12279_v62 }
0x3924   :  { %v12317_v35 = vsub.f32 %v18886_v52, %v12283_v17  ;;  %v12316_v28 = vsub.f32 %v18882_v9, %v12283_v17  ;;  %v12291_v19 = vrot.slane %v12270_v40, %v16073_v29  ;;  %v12319_v53 = vsub.f32 %v18894_v14, %v12287_v8 }
0x3925   :  { %v12328_v37 = vmul.f32 1.442695, %v12312_v21  ;;  %v12330_v4 = vmul.f32 1.442695, %v12313_v43  ;;  %v12334_v20 = vmul.f32 1.442695, %v12315_v25  ;;  %v12318_v24 = vsub.f32 %v18888_v12, %v12287_v8 }
0x3926   :  { %v12332_v7 = vmul.f32 1.442695, %v12314_v33  ;;  %v12338_v34 = vmul.f32 1.442695, %v12317_v35  ;;  %v12336_v50 = vmul.f32 1.442695, %v12316_v28  ;;  %v12321_v52 = vsub.f32 %v18890_v31, %v12291_v19 }
0x3927   :  { %15562 = vpow2.f32 %v12328_v37  ;;  %v12342_v60 = vmul.f32 1.442695, %v12319_v53  ;;  %v12320_v9 = vsub.f32 %v18884_v39, %v12291_v19  ;;  %v12340_v2 = vmul.f32 1.442695, %v12318_v24 }
0x3928   :  { %15564 = vpow2.f32 %v12330_v4  ;;  %v12299_v12 = vrot.slane %v12270_v40, %v16031_v32  ;;  %v12323_v14 = vsub.f32 %v18909_v15, %v12295_v51  ;;  %v12346_v57 = vmul.f32 1.442695, %v12321_v52 }
0x3929   :  { %15566 = vpow2.f32 %v12334_v20  ;;  %v12322_v31 = vsub.f32 %v18892_v56, %v12295_v51  ;;  %v12344_v39 = vmul.f32 1.442695, %v12320_v9  ;;  %v12303_v44 = vrot.slane %v12270_v40, %v16039_v61 }
0x392a   :  { %15568 = vpow2.f32 %v12332_v7  ;;  %v12325_v62 = vsub.f32 %v18922_v49, %v12299_v12  ;;  %v12350_v15 = vmul.f32 1.442695, %v12323_v14  ;;  %v12324_v21 = vsub.f32 %v18907_v30, %v12299_v12 }
0x392b   :  { %15570 = vpow2.f32 %v12338_v34  ;;  %v12348_v56 = vmul.f32 1.442695, %v12322_v31  ;;  %v12327_v25 = vsub.f32 %v18939_v16, %v12303_v44  ;;  %v12326_v49 = vsub.f32 %v18934_v36, %v12303_v44 }
0x392c   :  { %15572 = vpow2.f32 %v12336_v50  ;;  %v12354_v40 = vmul.f32 1.442695, %v12325_v62  ;;  %v12352_v33 = vmul.f32 1.442695, %v12324_v21 }
0x392d   :  { %15574 = vpow2.f32 %v12342_v60  ;;  %v12358_v4 = vmul.f32 1.442695, %v12327_v25  ;;  %v12356_v16 = vmul.f32 1.442695, %v12326_v49 }
0x392e   :  { %15576 = vpow2.f32 %v12340_v2 }
0x392f   :  { %15578 = vpow2.f32 %v12346_v57 }
0x3930   :  { %15580 = vpow2.f32 %v12344_v39 }
0x3931   :  { %v18964_v48 = vpop.eup %15562  ;;  %15582 = vpow2.f32 %v12350_v15 }
0x3932   :  { %v18966_v3 = vpop.eup %15564  ;;  %12377 = vperm.xlu0 %15011, %v18964_v48   ;;  %15584 = vpow2.f32 %v12348_v56 }
0x3933   :  { %12380 = vperm.xlu1 %15010, %v18966_v3   ;;  %v18973_v47 = vpop.eup %15566  ;;  %15586 = vpow2.f32 %v12354_v40 }
0x3934   :  { %v18975_v11 = vpop.eup %15568  ;;  %15588 = vpow2.f32 %v12352_v33 }
0x3935   :  { %v18982_v43 = vpop.eup %15570  ;;  %15590 = vpow2.f32 %v12358_v4 }
0x3936   :  { %12386 = vperm.xlu0 %15011, %v18973_v47   ;;  %v18984_v17 = vpop.eup %15572  ;;  %15592 = vpow2.f32 %v12356_v16 }
0x3937   :  { %12383 = vperm.xlu1 %15010, %v18975_v11   ;;  %v18990_v37 = vpop.eup %15574 }
0x3938   :  { %v18992_v30 = vpop.eup %15576 }
0x3939   :  { %v18996_v8 = vpop.eup %15578 }
0x393a   :  { %12392 = vperm.xlu0 %15011, %v18982_v43   ;;  %v18998_v35 = vpop.eup %15580 }
0x393b   :  { %12389 = vperm.xlu1 %15010, %v18984_v17   ;;  %v19002_v36 = vpop.eup %15582 }
0x393c   :  { %v19004_v20 = vpop.eup %15584 }
0x393d   :  { %v19008_v28 = vpop.eup %15586 }
0x393e   :  { %12398 = vperm.xlu0 %15011, %v18990_v37   ;;  %v19010_v7 = vpop.eup %15588 }
0x393f   :  { %12395 = vperm.xlu1 %15010, %v18992_v30   ;;  %v19014_v19 = vpop.eup %15590 }
0x3940   :  { %v15593_v53 = vpop.eup %15592 }
0x3942   :  { %12404 = vperm.xlu0 %15011, %v18996_v8  }
0x3943   :  { %12401 = vperm.xlu1 %15010, %v18998_v35  }
0x3946   :  { %12410 = vperm.xlu0 %15011, %v19002_v36  }
0x3947   :  { %12407 = vperm.xlu1 %15010, %v19004_v20  }
0x394a   :  { %12416 = vperm.xlu0 %15011, %v19008_v28  }
0x394b   :  { %12413 = vperm.xlu1 %15010, %v19010_v7  }
0x394e   :  { %12422 = vperm.xlu0 %15011, %v19014_v19  }
0x394f   :  { %12419 = vperm.xlu1 %15010, %v15593_v53  }
0x39b1   :  { %v12378_v34 = vpop.permute.xlu0 %12377 }
0x39b2   :  { %v12381_v24 = vpop.permute.xlu1 %12380  ;;  %v12427_v56 = vrot.slane %v12378_v34, %v15967_v45 }
0x39b3   :  { %v12431_v21 = vrot.slane %v12381_v24, %v15962_v42 }
0x39b5   :  { %v12387_v50 = vpop.permute.xlu0 %12386 }
0x39b6   :  { %v12384_v51 = vpop.permute.xlu1 %12383  ;;  %v12440_v31 = vrot.slane %v12387_v50, %v15962_v42 }
0x39b7   :  { %v12436_v57 = vrot.slane %v12384_v51, %v15967_v45 }
0x39b9   :  { %v12393_v52 = vpop.permute.xlu0 %12392  ;;  %v12441_v4 = vsel %vm558_vm3, %v12440_v31, %v12436_v57 }
0x39ba   :  { %v12390_v60 = vpop.permute.xlu1 %12389  ;;  %v12449_v62 = vrot.slane %v12393_v52, %v15962_v42 }
0x39bb   :  { %v12445_v44 = vrot.slane %v12390_v60, %v15967_v45  ;;  %v12432_v60 = vsel %vm558_vm3, %v12431_v21, %v12427_v56 }
0x39bd   :  { %v12399_v9 = vpop.permute.xlu0 %12398  ;;  %v12450_v52 = vsel %vm558_vm3, %v12449_v62, %v12445_v44 }
0x39be   :  { %v12396_v2 = vpop.permute.xlu1 %12395  ;;  %v12458_v40 = vrot.slane %v12399_v9, %v15962_v42 }
0x39bf   :  { %v12454_v25 = vrot.slane %v12396_v2, %v15967_v45 }
0x39c1   :  { %v12405_v12 = vpop.permute.xlu0 %12404  ;;  %v12459_v9 = vsel %vm558_vm3, %v12458_v40, %v12454_v25 }
0x39c2   :  { %v12402_v14 = vpop.permute.xlu1 %12401  ;;  %v12467_v33 = vrot.slane %v12405_v12, %v15962_v42  ;;  %v12496_v12 = vsel %vm623_vm4, %v12441_v4, %v12432_v60 }
0x39c3   :  { %v12463_v49 = vrot.slane %v12402_v14, %v15967_v45  ;;  %v12497_v57 = vsel %vm625_vm5, %v12450_v52, %v12496_v12 }
0x39c4   :  { %v12498_v44 = vsel %vm627_vm6, %v12459_v9, %v12497_v57 }
0x39c5   :  { %v12411_v39 = vpop.permute.xlu0 %12410  ;;  %v12468_v14 = vsel %vm558_vm3, %v12467_v33, %v12463_v49 }
0x39c6   :  { %v12408_v15 = vpop.permute.xlu1 %12407  ;;  %v12476_v50 = vrot.slane %v12411_v39, %v15962_v42  ;;  %v12499_v56 = vsel %vm629_vm7, %v12468_v14, %v12498_v44 }
0x39c7   :  { %v12472_v16 = vrot.slane %v12408_v15, %v15967_v45 }
0x39c9   :  { %v12417_v51 = vpop.permute.xlu0 %12416  ;;  %v12477_v31 = vsel %vm558_vm3, %v12476_v50, %v12472_v16 }
0x39ca   :  { %v12414_v24 = vpop.permute.xlu1 %12413  ;;  %v12485_v34 = vrot.slane %v12417_v51, %v15962_v42  ;;  %v12500_v40 = vsel %vm631_vm8, %v12477_v31, %v12499_v56 }
0x39cb   :  { %v12481_v2 = vrot.slane %v12414_v24, %v15967_v45 }
0x39cd   :  { %v12423_v39 = vpop.permute.xlu0 %12422  ;;  %v12486_v62 = vsel %vm558_vm3, %v12485_v34, %v12481_v2 }
0x39ce   :  { %v12420_v15 = vpop.permute.xlu1 %12419  ;;  %v12494_v21 = vrot.slane %v12423_v39, %v15962_v42  ;;  %v12501_v33 = vsel %vm633_vm9, %v12486_v62, %v12500_v40 }
0x39cf   :  { %v12490_v25 = vrot.slane %v12420_v15, %v15967_v45 }
0x39d1   :  { %v12495_v49 = vsel %vm558_vm3, %v12494_v21, %v12490_v25 }
0x39d2   :  { %v12502_v4 = vsel %vm635_vm10, %v12495_v49, %v12501_v33 }
0x39d3   :  { %v12504_v16 = vsel %vm265_vm2, %v12502_v4, 0.0 }
0x39d4   :  { %12505 = vadd.xlane.f32.xlu1 %v12504_v16 }
0x3a61   :  { %v12506_v50 = vpop.xlane.xlu1 %12505 }
0x3a62   :  { %15594 = vrcp.f32 %v12506_v50 }
0x3a6c   :  { %v15595_v51 = vpop.eup %15594 }
0x3a6d   :  { %v12528_v52 = vrot.slane %v15595_v51, %v16073_v29  ;;  %v12512_v24 = vrot.slane %v15595_v51, %v15848_v46  ;;  %v12540_v9 = vrot.slane %v15595_v51, %v16039_v61  ;;  %v12516_v14 = vrot.slane %v15595_v51, %v16025_v27 }
0x3a6e   :  { %v12520_v29 = vrot.slane %v15595_v51, %v16047_v63 }
0x3a6f   :  { %v12558_v34 = vmul.f32 %v18996_v8, %v12528_v52  ;;  %v12549_v60 = vmul.f32 %v18964_v48, %v12512_v24  ;;  %v12563_v2 = vmul.f32 %v15593_v53, %v12540_v9  ;;  %v12550_v12 = vmul.f32 %v18966_v3, %v12512_v24 }
0x3a70   :  { %v12551_v57 = vmul.f32 %v18975_v11, %v12516_v14  ;;  %v12552_v46 = vmul.f32 %v18973_v47, %v12516_v14  ;;  %v12553_v48 = vmul.f32 %v18984_v17, %v12520_v29  ;;  %v12554_v61 = vmul.f32 %v18982_v43, %v12520_v29 }
0x3a71   :  { %12927 = vperm.xlu1 %15010, %v12558_v34   ;;  %12568 = vperm.xlu0 %15011, %v12549_v60   ;;  %v12524_v8 = vrot.slane %v15595_v51, %v16061_v1  ;;  %v12557_v11 = vmul.f32 %v18998_v35, %v12528_v52  ;;  %v12532_v47 = vrot.slane %v15595_v51, %v16028_v41  ;;  %v13277_v41 = vld [vmem:[%s19212_s1 + $0x7] sm:$0x1]  ;;  %v13278_v35 = vld [vmem:[%s19212_s1 + $0xf] sm:$0x1] }
0x3a72   :  { %v12536_v43 = vrot.slane %v15595_v51, %v16031_v32  ;;  %v13279_v32 = vld [vmem:[%s19212_s1 + $0x17] sm:$0x1] }
0x3a73   :  { %v12555_v27 = vmul.f32 %v18992_v30, %v12524_v8  ;;  %v12556_v3 = vmul.f32 %v18990_v37, %v12524_v8  ;;  %v12559_v63 = vmul.f32 %v19004_v20, %v12532_v47  ;;  %v12560_v17 = vmul.f32 %v19002_v36, %v12532_v47  ;;  %v13280_v36 = vld [vmem:[%s19212_s1 + $0x1f] sm:$0x1]  ;;  %v13281_v20 = vld [vmem:[%s19212_s1 + $0x27] sm:$0x1] }
0x3a74   :  { %v12561_v1 = vmul.f32 %v19010_v7, %v12536_v43  ;;  %v12562_v30 = vmul.f32 %v19008_v28, %v12536_v43  ;;  %v12564_v37 = vmul.f32 %v19014_v19, %v12540_v9  ;;  %v13282_v28 = vld [vmem:[%s19212_s1 + $0x2f] sm:$0x1]  ;;  %v13283_v7 = vld [vmem:[%s19212_s1 + $0x37] sm:$0x1]  ;;  %v13316_v19 = vrot.slane %v13278_v35, 7 }
0x3a75   :  { %13191 = vperm.xlu1 %15010, %v12563_v2   ;;  %12571 = vperm.xlu0 %15011, %v12550_v12   ;;  %v13318_v53 = vrot.slane %v13279_v32, 6  ;;  %v13320_v31 = vrot.slane %v13280_v36, 5  ;;  %v13322_v39 = vrot.slane %v13281_v20, 4  ;;  %v13324_v62 = vrot.slane %v13282_v28, 3 }
0x3a76   :  { %v13317_v44 = vsel %vm623_vm4, %v13316_v19, %v13277_v41  ;;  %v13326_v21 = vrot.slane %v13283_v7, 2 }
0x3a77   :  { %v13319_v15 = vsel %vm625_vm5, %v13318_v53, %v13317_v44 }
0x3a78   :  { %v13321_v56 = vsel %vm627_vm6, %v13320_v31, %v13319_v15 }
0x3a79   :  { %12657 = vperm.xlu0 %15011, %v12551_v57   ;;  %v13323_v40 = vsel %vm629_vm7, %v13322_v39, %v13321_v56 }
0x3a7a   :  { %v13325_v49 = vsel %vm631_vm8, %v13324_v62, %v13323_v40 }
0x3a7b   :  { %v13327_v33 = vsel %vm633_vm9, %v13326_v21, %v13325_v49 }
0x3a7d   :  { %12660 = vperm.xlu0 %15011, %v12552_v46  }
0x3a81   :  { %12746 = vperm.xlu0 %15011, %v12553_v48  }
0x3a85   :  { %12749 = vperm.xlu0 %15011, %v12554_v61  }
0x3a89   :  { %12835 = vperm.xlu0 %15011, %v12555_v27  }
0x3a8d   :  { %12838 = vperm.xlu0 %15011, %v12556_v3  }
0x3a91   :  { %12924 = vperm.xlu0 %15011, %v12557_v11  }
0x3a95   :  { %13013 = vperm.xlu0 %15011, %v12559_v63  }
0x3a99   :  { %13016 = vperm.xlu0 %15011, %v12560_v17  }
0x3a9d   :  { %13102 = vperm.xlu0 %15011, %v12561_v1  }
0x3aa1   :  { %13105 = vperm.xlu0 %15011, %v12562_v30  }
0x3aa5   :  { %13194 = vperm.xlu0 %15011, %v12564_v37  }
0x3aa9   :  { %13333 = vrot.lane.b32.xlu0 %v18787_v59, %s15662_s13  ;;  %v13284_v59 = vld [vmem:[%s19212_s1 + $0x3f] sm:$0x1] }
0x3aaa   :  { %v13328_v25 = vrot.slane %v13284_v59, 1 }
0x3aac   :  { %v13329_v4 = vsel %vm635_vm10, %v13328_v25, %v13327_v33 }
0x3aad   :  { %13330 = vrot.lane.b32.xlu1 %v13329_v4, %s15661_s25 }
0x3af0   :  { %v12569_v16 = vpop.permute.xlu0 %12568  ;;  %v12928_v27 = vpop.permute.xlu1 %12927 }
0x3af1   :  { %v12576_v51 = vrot.slane %v12569_v16, %v15967_v45  ;;  %v12936_v47 = vrot.slane %v12928_v27, %v15962_v42 }
0x3af4   :  { %v12572_v50 = vpop.permute.xlu0 %12571  ;;  %v13192_v32 = vpop.permute.xlu1 %13191 }
0x3af5   :  { %v12580_v52 = vrot.slane %v12572_v50, %v15962_v42  ;;  %v13199_v28 = vrot.slane %v13192_v32, %v15967_v45 }
0x3af7   :  { %v12581_v24 = vsel %vm558_vm3, %v12580_v52, %v12576_v51 }
0x3af8   :  { %14641 = vmatmul.mubr.msk.f32.vlgmr.msra.gmra.mrb[78].mxu1 %vm265_vm2, %v12581_v24  ;;  %v12658_v34 = vpop.permute.xlu0 %12657 }
0x3af9   :  { %14973 = vmatpush3.bf16.msra.mxu1 %v15759_v13  ;;  %14654 = vmatprep.mubr.msk.f32.mxu1 %vm15657_vm1, %v19293_v55  ;;  %v12665_v9 = vrot.slane %v12658_v34, %v15967_v45 }
0x3afa   :  { %14977 = vmatprep.subr.bf16.mxu1 %v19294_v0 }
0x3afc   :  { %v12661_v60 = vpop.permute.xlu0 %12660 }
0x3afd   :  { %v12669_v2 = vrot.slane %v12661_v60, %v15962_v42 }
0x3aff   :  { %v12670_v12 = vsel %vm558_vm3, %v12669_v2, %v12665_v9 }
0x3b00   :  { %14648 = vmatmul.mubr.msk.f32.vlgmr.msra.gmra.mrb[94].mxu0 %vm265_vm2, %v12670_v12  ;;  %v12747_v14 = vpop.permute.xlu0 %12746 }
0x3b01   :  { %14976 = vmatpush3.bf16.msra.mxu0 %v15774_v18  ;;  %14661 = vmatprep.mubr.msk.f32.mxu0 %vm15657_vm1, %v19293_v55  ;;  %v12754_v57 = vrot.slane %v12747_v14, %v15967_v45 }
0x3b02   :  { %14980 = vmatprep.subr.bf16.mxu0 %v19294_v0 }
0x3b04   :  { %v12750_v13 = vpop.permute.xlu0 %12749 }
0x3b05   :  { %v12758_v46 = vrot.slane %v12750_v13, %v15962_v42 }
0x3b07   :  { %v12759_v29 = vsel %vm558_vm3, %v12758_v46, %v12754_v57  ;;  %v15630_v46 = vld [vmem:[%s19218_s7] ss:$0 sm:$0xff] }
0x3b08   :  { %14655 = vmatmul.mubr.msk.f32.vlgmr.msra.gmra.mrb[80].mxu1 %vm265_vm2, %v12759_v29  ;;  %v12836_v48 = vpop.permute.xlu0 %12835 }
0x3b09   :  { %14979 = vmatpush3.bf16.msra.mxu1 %v15785_v22  ;;  %14668 = vmatprep.mubr.msk.f32.mxu1 %vm15657_vm1, %v19293_v55  ;;  %v12843_v61 = vrot.slane %v12836_v48, %v15967_v45 }
0x3b0a   :  { %14983 = vmatprep.subr.bf16.mxu1 %v19294_v0 }
0x3b0c   :  { %v12839_v18 = vpop.permute.xlu0 %12838 }
0x3b0d   :  { %v12847_v8 = vrot.slane %v12839_v18, %v15962_v42 }
0x3b0f   :  { %v12848_v3 = vsel %vm558_vm3, %v12847_v8, %v12843_v61 }
0x3b10   :  { %14662 = vmatmul.mubr.msk.f32.vlgmr.msra.gmra.mrb[96].mxu0 %vm265_vm2, %v12848_v3  ;;  %v12925_v11 = vpop.permute.xlu0 %12924 }
0x3b11   :  { %v12932_v22 = vrot.slane %v12925_v11, %v15967_v45  ;;  %14982 = vmatpush3.bf16.msra.mxu0 %v15787_v23  ;;  %14675 = vmatprep.mubr.msk.f32.mxu0 %vm15657_vm1, %v19293_v55 }
0x3b12   :  { %14986 = vmatprep.subr.bf16.mxu0 %v19294_v0 }
0x3b13   :  { %v12937_v63 = vsel %vm558_vm3, %v12936_v47, %v12932_v22 }
0x3b14   :  { %14669 = vmatmul.mubr.msk.f32.vlgmr.msra.gmra.mrb[82].mxu1 %vm265_vm2, %v12937_v63  ;;  %v13014_v17 = vpop.permute.xlu0 %13013 }
0x3b15   :  { %14985 = vmatpush3.bf16.msra.mxu1 %v15797_v26  ;;  %14682 = vmatprep.mubr.msk.f32.mxu1 %vm15657_vm1, %v19293_v55  ;;  %v13021_v23 = vrot.slane %v13014_v17, %v15967_v45 }
0x3b16   :  { %14989 = vmatprep.subr.bf16.mxu1 %v19294_v0 }
0x3b18   :  { %v13017_v43 = vpop.permute.xlu0 %13016 }
0x3b19   :  { %v13025_v1 = vrot.slane %v13017_v43, %v15962_v42 }
0x3b1b   :  { %v13026_v30 = vsel %vm558_vm3, %v13025_v1, %v13021_v23 }
0x3b1c   :  { %14676 = vmatmul.mubr.msk.f32.vlgmr.msra.gmra.mrb[98].mxu0 %vm265_vm2, %v13026_v30  ;;  %v13103_v37 = vpop.permute.xlu0 %13102 }
0x3b1d   :  { %14988 = vmatpush3.bf16.msra.mxu0 %v19306_v38  ;;  %14689 = vmatprep.mubr.msk.f32.mxu0 %vm15657_vm1, %v19293_v55  ;;  %v13110_v41 = vrot.slane %v13103_v37, %v15967_v45 }
0x3b1e   :  { %14995 = vmatprep.subr.bf16.mxu0 %v19294_v0 }
0x3b1f   :  { %v13331_v9 = vpop.permute.xlu1 %13330 }
0x3b20   :  { %v13106_v26 = vpop.permute.xlu0 %13105 }
0x3b21   :  { %v13114_v35 = vrot.slane %v13106_v26, %v15962_v42  ;;  %v15631_v26 = vld [vmem:[%s19220_s9] ss:$0 sm:$0xff]  ;;  %s15666_s9 = smov [#allocation2]  }
0x3b23   :  { %v13115_v36 = vsel %vm558_vm3, %v13114_v35, %v13110_v41 }
0x3b24   :  { %14683 = vmatmul.mubr.msk.f32.vlgmr.msra.gmra.mrb[84].mxu1 %vm265_vm2, %v13115_v36  ;;  %v13195_v20 = vpop.permute.xlu0 %13194 }
0x3b25   :  { %v13203_v38 = vrot.slane %v13195_v20, %v15962_v42  ;;  %14991 = vmatpush3.bf16.msra.mxu1 %v16282_v10  ;;  %14700 = vmatprep.mubr.msk.f32.mxu1 %vm15657_vm1, %v19293_v55 }
0x3b26   :  { %14992 = vmatprep.subr.bf16.mxu1 %v19294_v0 }
0x3b27   :  { %v13204_v7 = vsel %vm558_vm3, %v13203_v38, %v13199_v28 }
0x3b28   :  { %14690 = vmatmul.mubr.msk.f32.vlgmr.msra.gmra.mrb[100].mxu0 %vm265_vm2, %v13204_v7  ;;  %v13334_v12 = vpop.permute.xlu0 %13333 }
0x3b29   :  { %14994 = vmatpush3.bf16.msra.mxu1 %v16292_v5  ;;  %14997 = vmatpush3.bf16.msra.mxu0 %v16324_v6 }
0x3b2a   :  { %14707 = vmatprep.mubr.msk.f32.mxu0 %vm15657_vm1, %v19293_v55 }
0x3bcb   :  { %v12650_v45 = vpop.f32.mrb[78].mxu1 }
0x3bcc   :  { %v14642_v42 = vpop.f32.mrb[79].mxu1 }
0x3bd3   :  { %v12739_v19 = vpop.f32.mrb[94].mxu0 }
0x3bd4   :  { %v13293_v10 = vrot.slane %v12739_v19, 7  ;;  %v14649_v53 = vpop.f32.mrb[95].mxu0 }
0x3bd6   :  { %v13294_v59 = vsel %vm623_vm4, %v13293_v10, %v12650_v45 }
0x3bdb   :  { %v12828_v31 = vpop.f32.mrb[80].mxu1 }
0x3bdc   :  { %v13295_v0 = vrot.slane %v12828_v31, 6  ;;  %v14656_v39 = vpop.f32.mrb[81].mxu1 }
0x3bde   :  { %v13296_v44 = vsel %vm625_vm5, %v13295_v0, %v13294_v59 }
0x3be3   :  { %v12917_v62 = vpop.f32.mrb[96].mxu0 }
0x3be4   :  { %v13297_v15 = vrot.slane %v12917_v62, 5  ;;  %v14663_v5 = vpop.f32.mrb[97].mxu0 }
0x3be6   :  { %v13298_v6 = vsel %vm627_vm6, %v13297_v15, %v13296_v44 }
0x3be7   :  { %v13006_v21 = vpop.f32.mrb[82].mxu1 }
0x3be8   :  { %v13299_v56 = vrot.slane %v13006_v21, 4  ;;  %v14670_v55 = vpop.f32.mrb[83].mxu1 }
0x3bea   :  { %v13300_v25 = vsel %vm629_vm7, %v13299_v56, %v13298_v6 }
0x3bef   :  { %v13095_v40 = vpop.f32.mrb[98].mxu0 }
0x3bf0   :  { %v13301_v49 = vrot.slane %v13095_v40, 3  ;;  %v14677_v33 = vpop.f32.mrb[99].mxu0 }
0x3bf2   :  { %v13302_v4 = vsel %vm631_vm8, %v13301_v49, %v13300_v25 }
0x3bf7   :  { %v13184_v16 = vpop.f32.mrb[84].mxu1 }
0x3bf8   :  { %v13303_v50 = vrot.slane %v13184_v16, 2  ;;  %v14684_v51 = vpop.f32.mrb[85].mxu1 }
0x3bfa   :  { %v13304_v52 = vsel %vm633_vm9, %v13303_v50, %v13302_v4 }
0x3bfb   :  { %v13273_v24 = vpop.f32.mrb[100].mxu0 }
0x3bfc   :  { %v13305_v34 = vrot.slane %v13273_v24, 1  ;;  %v14691_v60 = vpop.f32.mrb[101].mxu0 }
0x3bfe   :  { %v13306_v2 = vsel %vm635_vm10, %v13305_v34, %v13304_v52 }
0x3bff   :  { %v13336_v14 = vsel %vm53_vm0, %v13306_v2, %v13331_v9 }
0x3c00   :  { %v13337_v13 = vsel %vm265_vm2, %v13336_v14, %v13334_v12 }
0x3c01   :  { %14701 = vmatmul.mubr.msk.f32.vlgmr.msra.gmra.mrb[86].mxu1 %vm1711_vm11, %v13337_v13 }
0x3cd4   :  { %v13407_v57 = vpop.f32.mrb[86].mxu1 }
0x3cd5   :  { %v13408_v29 = vadd.f32 %v15630_v46, %v13407_v57  ;;  %v14702_v48 = vpop.f32.mrb[87].mxu1 }
0x3cd7   :  { %15596 = vtanh.f32 %v13408_v29  ;;  %v13733_v61 = vmul.f32 -1.442695, %v13408_v29 }
0x3cd9   :  { %15598 = vpow2.f32 %v13733_v61 }
0x3ce1   :  { %v15597_v18 = vpop.eup %15596 }
0x3ce2   :  { %13420 = vrot.lane.b32.xlu1 %v15597_v18, %s15662_s13 }
0x3ce3   :  { %v15599_v8 = vpop.eup %15598 }
0x3ce4   :  { %v13414_v27 = vadd.f32 1.0, %v15599_v8 }
0x3ce6   :  { %15600 = vrcp.f32 %v13414_v27 }
0x3cf0   :  { %v15601_v3 = vpop.eup %15600 }
0x3cf1   :  { %v13418_v22 = vmul.f32 %v15601_v3, %v18783_v58 }
0x3d54   :  { %v13421_v11 = vpop.permute.xlu1 %13420 }
0x3d55   :  { %v13423_v47 = vmul.f32 %v15601_v3, %v13421_v11 }
0x3d57   :  { %13425 = vrot.lane.b32.xlu0 %v13423_v47, %s15663_s14  ;;  %s13581_s14 = sshll.u32 %s15666_s9, 4  ;;  %s13582_s14 = int_to_ptr.vmem [resolvable:$true] %s13581_s14 }
0x3d58   :  { %p15637_p1 = scmp.lt.s32.totalorder %s13582_s14, %s13582_s14 }
0x3dc9   :  { %v13426_v63 = vpop.permute.xlu0 %13425 }
0x3dca   :  { %v13428_v17 = vadd.f32 %v13426_v63, %v13418_v22 }
0x3dcc   :  { %15602 = vtanh.f32 %v13428_v17 }
0x3dd6   :  { %v15603_v43 = vpop.eup %15602 }
0x3dd7   :  { %13431 = vrot.lane.b32.xlu1 %v15603_v43, %s15664_s19  ;;  %s15632_s19 = scalar_lea.vmem %s13582_s14, 1024 }
0x3dd8   :  { %p15633_p0 = scmp.ne.s32.totalorder %s13582_s14, %s15632_s19  ;;  %p15638_p2 = scmp.lt.s32.totalorder %s15632_s19, %s15632_s19 }
0x3dda   :  { %p15639_p3 = por %p15638_p2, %p15637_p1 }
0x3ddc   :  { %p15640_p4 = pnand %p15639_p3, %p15633_p0 }
0x3e49   :  { %v13432_v23 = vpop.permute.xlu1 %13431 }
0x3e4a   :  { %v13434_v1 = vmul.f32 %v15601_v3, %v13432_v23 }
0x3e4c   :  { %13436 = vrot.lane.b32.xlu0 %v13434_v1, %s15665_s20 }
0x3ebe   :  { %v13437_v30 = vpop.permute.xlu0 %13436 }
0x3ebf   :  { %14708 = vmatmul.mubr.msk.f32.vlgmr.msra.gmra.mrb[102].mxu0 %vm265_vm2, %v13437_v30 }
0x3f92   :  { %v13506_v37 = vpop.f32.mrb[102].mxu0 }
0x3f93   :  { %v13507_v41 = vadd.f32 %v15631_v26, %v13506_v37  ;;  %v14709_v58 = vpop.f32.mrb[103].mxu0 }
0x3f95   :  { %v13511_v35 = vcombine.high %v13507_v41, %v13507_v41  ;;  %v13518_v32 = vrot.slane %v13507_v41, %v19401_v54 }
0x3f97   :  { %v13525_v36 = vrot.slane %v13511_v35, %v19401_v54  ;;  %v13526_v20 = vcombine.high %v13518_v32, %v13518_v32  ;;  %v13534_v28 = vrot.slane %v13518_v32, %v19401_v54  ;;  %13735 = vst.sshfl [vmem:[#allocation2 + $0x7] sm:$0x1 pattern:$0x73625140] %v13518_v32 }
0x3f99   :  { %v13527_v38 = vcombine.high %v13525_v36, %v13525_v36  ;;  %v13541_v7 = vrot.slane %v13525_v36, %v19401_v54  ;;  %v13548_v45 = vrot.slane %v13526_v20, %v19401_v54  ;;  %v13556_v42 = vcombine.high %v13534_v28, %v13534_v28  ;;  %13736 = vst.sshfl [vmem:[#allocation2 + $0xf] sm:$0x1 pattern:$0x73625140] %v13526_v20 }
0x3f9a   :  { %13737 = vst.sshfl [vmem:[#allocation2 + $0x27] sm:$0x1 pattern:$0x73625140] %v13525_v36 }
0x3f9b   :  { %v13555_v19 = vrot.slane %v13527_v38, %v19401_v54  ;;  %v13557_v10 = vcombine.high %v13541_v7, %v13541_v7  ;;  %v13558_v53 = vcombine.high %v13548_v45, %v13548_v45  ;;  %13570 = vst [vmem:[#allocation2 + $0x17] sm:$0x1] %v13556_v42  ;;  %13738 = vst.sshfl [vmem:[#allocation2 + $0x2f] sm:$0x1 pattern:$0x73625140] %v13527_v38 }
0x3f9d   :  { %v13559_v59 = vcombine.high %v13555_v19, %v13555_v19  ;;  %13571 = vst [vmem:[#allocation2 + $0x1f] sm:$0x1] %v13558_v53  ;;  %13574 = vst [vmem:[#allocation2 + $0x37] sm:$0x1] %v13557_v10 }
0x3f9f   :  { %13575 = vst [vmem:[#allocation2 + $0x3f] sm:$0x1] %v13559_v59 }
0x3fa0   :  { %15643 = shalt.err (!%p15640_p4)
}
0x3fa1   :  { %s15644_s26 = scalar_lea.hbm %s19221_s10, 1024 }
0x3fa2   :  { %p15645_p5 = scmp.ne.s32.totalorder %s19221_s10, %s15644_s26  ;;  %p15648_p6 = scmp.lt.u32.totalorder %s15644_s26, %s19221_s10 }
0x3fa4   :  { %p15650_p7 = pnand %p15648_p6, %p15645_p5 }
0x3fa6   :  { %15653 = shalt.err (!%p15650_p7)
}
0x3fa7   :  { %s15667_s28 = smov 128  }
0x3fa8   :  { %13587 = dma.vmem_to_hbm [thread:$0]  %s13582_s14, 1024, %s19221_s10, [#allocation3], %s15667_s28, %s15667_s28, %s15661_s25  }
0x3fa9   :  { %15654 = dma.done.wait [#allocation3], 1024  }
0x3faa   :  { %15655 = vsyncadd [#allocation3], 4294966272 }
0x3fab   :  { %13591 = vsyncpa [#allocation3], 1 }

</bundles_post_ra>
